<compile_context>
chip_gen: v5e
topology: v5e:2x2
jax: 0.10.0
libtpu: 0.0.40
codegen_flags: <defaults>
</compile_context>

<pallas_src>
import jax
import jax.numpy as jnp
from jax import lax, random
from jax.experimental import pallas as pl
from jax.experimental.pallas import tpu as pltpu

BN_EPS = 1e-5

# f32 keeps verification tight; set to jnp.bfloat16 on v6e/v7x for higher MXU throughput
# (accumulation stays f32 via preferred_element_type).
MXU_DTYPE = jnp.float32


# ---------------------------------------------------------------------------
# Fused kernel factory: conv stack -> attention -> prompt application
# ---------------------------------------------------------------------------
def _make_fused_kernel(H, W, ps, cfgs):
    """cfgs: per-layer static config (Hin, Win, Cin, Cout, relu, pool)."""
    nl = len(cfgs)
    Pn = H // ps                                    # attention spatial size (patch_num)

    # Flat zero-padded activation scratch per layer: pixel (i, j) lives at flat row
    # (i+1)*(Wk+2) + (j+1); one extra padded row keeps the junk-column reads of the last
    # output row in bounds.  Channels sit on lanes.
    pad_shapes = [((Hk + 3) * (Wk + 2), Cin) for (Hk, Wk, Cin, _, _, _) in cfgs]
    att_shape = (Pn * Pn, cfgs[-1][3])              # attention map, channels on lanes
    scratch_shapes = ([pltpu.VMEM(s, jnp.float32) for s in pad_shapes]
                      + [pltpu.VMEM(att_shape, jnp.float32)])

    def kernel(x_hwc_ref, x_chw_ref, prog_ref, *args):
        w_refs = args[0:nl]                 # each (9, Cin, Cout)
        sc_refs = args[nl:2 * nl]           # each (1, Cout)   folded BN scale
        bi_refs = args[2 * nl:3 * nl]       # each (1, Cout)   folded BN bias
        out_ref = args[3 * nl]              # (1, 3, H, W)
        pad_refs = args[3 * nl + 1:4 * nl + 1]
        att_ref = args[4 * nl + 1]

        # Zero the padded scratches (the borders ARE the SAME-conv halo).  Done every
        # grid step so the kernel stays correct when the batch axis is core-parallel.
        for pr in pad_refs:
            pr[...] = jnp.zeros(pr.shape, jnp.float32)

        # ---- stage 0: copy the NHWC input rows into layer-1's flat padded scratch ----
        Wp0 = W + 2
        for i in range(H):
            base = (i + 1) * Wp0 + 1
            pad_refs[0][base:base + W, :] = x_hwc_ref[0, i, :, :]

        # ---- stages 1..nl: conv3x3 (+folded BN) (+ReLU) (+2x2 maxpool), all in VMEM ----
        for k in range(nl):
            Hk, Wk, Cin, Cout, relu, pool = cfgs[k]
            Wp = Wk + 2
            M = Hk * Wp                      # whole layer in one shot (incl. junk cols)
            last = (k == nl - 1)
            pad_ref = pad_refs[k]
            nxt_ref = att_ref if last else pad_refs[k + 1]
            Wp_next = 0 if last else cfgs[k + 1][1] + 2

            # 3x3 conv = nine accumulated matmuls; tap (dy,dx)'s LHS is the contiguous
            # flat slice starting at dy*Wp+dx (static offset, full lane width -> no
            # masked/unaligned stores anywhere).
            acc = None
            for t in range(9):
                dy, dx = divmod(t, 3)
                off = dy * Wp + dx
                win = pad_ref[off:off + M, :]                  # (M, Cin)
                w_t = w_refs[k][t]                             # (Cin, Cout)
                if MXU_DTYPE != jnp.float32:
                    win = win.astype(MXU_DTYPE)
                    w_t = w_t.astype(MXU_DTYPE)
                part = jnp.dot(win, w_t, preferred_element_type=jnp.float32)
                acc = part if acc is None else acc + part

            # Folded eval-BN epilogue (+ ReLU).
            y = acc * sc_refs[k][...] + bi_refs[k][...]
            if relu:
                y = jnp.maximum(y, 0.0)

            if pool:
                Wout = Wk // 2
                # stride-2 column selection as exact 0/1 selection matmuls (hoisted).
                oo = lax.broadcasted_iota(jnp.int32, (Wout, Wk), 0)
                cc = lax.broadcasted_iota(jnp.int32, (Wout, Wk), 1)
                s_even = (cc == 2 * oo).astype(jnp.float32)
                s_odd = (cc == 2 * oo + 1).astype(jnp.float32)
                for io in range(Hk // 2):
                    r0 = y[2 * io * Wp:2 * io * Wp + Wk, :]
                    r1 = y[(2 * io + 1) * Wp:(2 * io + 1) * Wp + Wk, :]
                    rh = jnp.maximum(r0, r1)
                    pooled = jnp.maximum(
                        jnp.dot(s_even, rh, preferred_element_type=jnp.float32),
                        jnp.dot(s_odd, rh, preferred_element_type=jnp.float32))
                    b2 = (io + 1) * Wp_next + 1
                    nxt_ref[b2:b2 + Wout, :] = pooled
            else:
                for i in range(Hk):
                    row = y[i * Wp:i * Wp + Wk, :]
                    if last:
                        nxt_ref[i * Wk:(i + 1) * Wk, :] = row          # attention map
                    else:
                        b2 = (i + 1) * Wp_next + 1
                        nxt_ref[b2:b2 + Wk, :] = row

        # ---- final stage: patch-nearest upsample of attention + prompt application ----
        att_t = att_ref[...].T                              # (3, Pn*Pn)
        pp = lax.broadcasted_iota(jnp.int32, (Pn, W), 0)
        ww = lax.broadcasted_iota(jnp.int32, (Pn, W), 1)
        u_t = ((ww >= pp * ps) & (ww < (pp + 1) * ps)).astype(jnp.float32)  # (Pn, W)

        for pi in range(Pn):
            att_up = jnp.dot(att_t[:, pi * Pn:(pi + 1) * Pn], u_t,
                             preferred_element_type=jnp.float32)        # (3, W)
            r0, r1 = pi * ps, (pi + 1) * ps
            for c in range(3):
                a_c = att_up[c:c + 1, :]                                # (1, W) bcast
                out_ref[0, c, r0:r1, :] = (x_chw_ref[0, c, r0:r1, :]
                                           + prog_ref[c, r0:r1, :] * a_c)

    return kernel, scratch_shapes


# ---------------------------------------------------------------------------
# Wrapper (single pallas_call, grid over batch)
# ---------------------------------------------------------------------------
def instancewise_visual_prompt_forward(x_nchw, layer_params, program_chw, patch_size):
    """layer_params: list of (w (9,Cin,Cout), scale (1,Cout), bias (1,Cout), relu, pool)."""
    x_nchw = x_nchw.astype(jnp.float32)
    B, _, H, W = x_nchw.shape
    x_nhwc = jnp.transpose(x_nchw, (0, 2, 3, 1))           # conv path consumes NHWC
    program_chw = program_chw.astype(jnp.float32)

    cfgs = []
    h, w = H, W
    for (wm, _, _, relu, pool) in layer_params:
        cin, cout = wm.shape[1], wm.shape[2]
        cfgs.append((h, w, cin, cout, relu, pool))
        if pool:
            h, w = h // 2, w // 2
    assert h == H // patch_size and w == W // patch_size, "pool/patch mismatch"

    kernel, scratch_shapes = _make_fused_kernel(H, W, patch_size, cfgs)

    ws = [p[0].astype(jnp.float32) for p in layer_params]
    scs = [p[1].astype(jnp.float32) for p in layer_params]
    bis = [p[2].astype(jnp.float32) for p in layer_params]

    def const_spec(shape):
        return pl.BlockSpec(shape, lambda b, _n=len(shape): (0,) * _n)

    in_specs = ([
        pl.BlockSpec((1, H, W, 3), lambda b: (b, 0, 0, 0)),   # x (NHWC) for the conv stack
        pl.BlockSpec((1, 3, H, W), lambda b: (b, 0, 0, 0)),   # x (NCHW) for the prompt add
        pl.BlockSpec((3, H, W), lambda b: (0, 0, 0)),         # program (CHW)
    ] + [const_spec(a.shape) for a in ws]
      + [const_spec(a.shape) for a in scs]
      + [const_spec(a.shape) for a in bis])

    return pl.pallas_call(
        kernel,
        out_shape=jax.ShapeDtypeStruct((B, 3, H, W), jnp.float32),
        grid_spec=pltpu.PrefetchScalarGridSpec(
            num_scalar_prefetch=0,
            grid=(B,),
            in_specs=in_specs,
            out_specs=pl.BlockSpec((1, 3, H, W), lambda b: (b, 0, 0, 0)),
            scratch_shapes=scratch_shapes,
        ),
        compiler_params=pltpu.CompilerParams(
            dimension_semantics=("parallel",),        # batch images are independent
            vmem_limit_bytes=32 * 1024 * 1024,
        ),
    )(x_nhwc, x_nchw, program_chw, *ws, *scs, *bis)


# ---------------------------------------------------------------------------
# Pure-JAX (NCHW, PyTorch-semantics) reference for verification
# ---------------------------------------------------------------------------
def reference_forward(x, torch_like_params, program_chw, patch_size):
    y = x
    for p in torch_like_params:
        y = lax.conv_general_dilated(
            y, p["w"], window_strides=(1, 1), padding=((1, 1), (1, 1)),
            dimension_numbers=("NCHW", "OIHW", "NCHW"),
            precision=lax.Precision.HIGHEST) + p["b"][None, :, None, None]
        if p["has_bn"]:   # eval-mode BatchNorm (running stats), then ReLU
            y = ((y - p["mean"][None, :, None, None])
                 / jnp.sqrt(p["var"][None, :, None, None] + BN_EPS)
                 * p["gamma"][None, :, None, None] + p["beta"][None, :, None, None])
            y = jnp.maximum(y, 0.0)
        if p["pool"]:
            y = lax.reduce_window(y, -jnp.inf, lax.max,
                                  (1, 1, 2, 2), (1, 1, 2, 2), "VALID")
    up = jnp.repeat(jnp.repeat(y, patch_size, axis=2), patch_size, axis=3)
    return x + program_chw[None] * up


if __name__ == "__main__":
    size = 16          # small demo image size; patch_num = size / patch_size = 2
    patch_size = 8
    B = 2
    key = random.PRNGKey(0)

    # AttributeNet(layers=5, patch_size=8, channels=3): (Cin, Cout, has_bn+relu, pool)
    cfg = [
        (3, 8, True, True),     # conv1/bn1/relu1 + pool
        (8, 16, True, True),    # conv2/bn2/relu2 + pool
        (16, 32, True, True),   # conv3/bn3/relu3 + pool
        (32, 64, True, False),  # conv4/bn4/relu4
        (64, 3, False, False),  # conv6
    ]

    # Deterministic synthetic parameters (PyTorch-layout shapes).
    torch_like_params = []
    for (cin, cout, has_bn, pool) in cfg:
        key, kw, kb = random.split(key, 3)
        w = random.normal(kw, (cout, cin, 3, 3), jnp.float32) / jnp.sqrt(9.0 * cin)
        b = 0.1 * random.normal(kb, (cout,), jnp.float32)
        torch_like_params.append(dict(
            w=w, b=b,
            gamma=jnp.ones((cout,), jnp.float32),   # BatchNorm defaults (eval mode)
            beta=jnp.zeros((cout,), jnp.float32),
            mean=jnp.zeros((cout,), jnp.float32),
            var=jnp.ones((cout,), jnp.float32),
            has_bn=has_bn, pool=pool))

    # NOTE: the PyTorch module initializes `program` to zeros; we use small random
    # values so the elementwise prompt path is actually exercised.
    key, kp, kx = random.split(key, 3)
    program_chw = 0.5 * random.normal(kp, (3, size, size), jnp.float32)
    x = random.normal(kx, (B, 3, size, size), jnp.float32)

    # Convert to kernel-friendly parameters: per-tap weights + folded BN scale/bias.
    # TODO(synk): BatchNorm is folded in eval mode (running stats); training-mode batch
    # statistics are not modeled.
    layer_params = []
    for p in torch_like_params:
        cout, cin = p["w"].shape[0], p["w"].shape[1]
        wtap = jnp.transpose(p["w"], (2, 3, 1, 0)).reshape(9, cin, cout)  # (9, Cin, Cout)
        if p["has_bn"]:
            s = p["gamma"] / jnp.sqrt(p["var"] + BN_EPS)
            bias = (p["b"] - p["mean"]) * s + p["beta"]
        else:
            s = jnp.ones((cout,), jnp.float32)
            bias = p["b"]
        layer_params.append((wtap, s.reshape(1, cout), bias.reshape(1, cout),
                             p["has_bn"], p["pool"]))

    out = instancewise_visual_prompt_forward(x, layer_params, program_chw, patch_size)
    out = jax.block_until_ready(out)

    ref = reference_forward(x, torch_like_params, program_chw, patch_size)
    max_err = float(jnp.max(jnp.abs(out - ref)))
    assert out.shape == (B, 3, size, size)
    assert max_err < 2e-2, f"mismatch vs reference: max_err={max_err}"
    print("KERNEL_OK")
</pallas_src>

<mosaic_0001>
module attributes {stable_mosaic.version = 11 : i64} {
  func.func @kernel(%arg0: i32, %arg1: memref<1x16x16x3xf32, #tpu.memory_space<vmem>>, %arg2: memref<1x3x16x16xf32, #tpu.memory_space<vmem>>, %arg3: memref<3x16x16xf32, #tpu.memory_space<vmem>>, %arg4: memref<9x3x8xf32, #tpu.memory_space<vmem>>, %arg5: memref<9x8x16xf32, #tpu.memory_space<vmem>>, %arg6: memref<9x16x32xf32, #tpu.memory_space<vmem>>, %arg7: memref<9x32x64xf32, #tpu.memory_space<vmem>>, %arg8: memref<9x64x3xf32, #tpu.memory_space<vmem>>, %arg9: memref<1x8xf32, #tpu.memory_space<vmem>>, %arg10: memref<1x16xf32, #tpu.memory_space<vmem>>, %arg11: memref<1x32xf32, #tpu.memory_space<vmem>>, %arg12: memref<1x64xf32, #tpu.memory_space<vmem>>, %arg13: memref<1x3xf32, #tpu.memory_space<vmem>>, %arg14: memref<1x8xf32, #tpu.memory_space<vmem>>, %arg15: memref<1x16xf32, #tpu.memory_space<vmem>>, %arg16: memref<1x32xf32, #tpu.memory_space<vmem>>, %arg17: memref<1x64xf32, #tpu.memory_space<vmem>>, %arg18: memref<1x3xf32, #tpu.memory_space<vmem>>, %arg19: memref<1x3x16x16xf32, #tpu.memory_space<vmem>>, %arg20: memref<342x3xf32, #tpu.memory_space<vmem>>, %arg21: memref<110x8xf32, #tpu.memory_space<vmem>>, %arg22: memref<42x16xf32, #tpu.memory_space<vmem>>, %arg23: memref<20x32xf32, #tpu.memory_space<vmem>>, %arg24: memref<20x64xf32, #tpu.memory_space<vmem>>, %arg25: memref<4x3xf32, #tpu.memory_space<vmem>>) attributes {dimension_semantics = [#tpu.dimension_semantics<parallel>], iteration_bounds = array<i64: 2>, scalar_prefetch = 0 : i64, scratch_operands = 6 : i64, tpu.core_type = #tpu.core_type<tc>, window_params = [{transform_indices = @transform_0, window_bounds = array<i64: 1, 16, 16, 3>}, {transform_indices = @transform_1, window_bounds = array<i64: 1, 3, 16, 16>}, {pipeline_mode = #tpu.pipeline_mode<synchronous>, transform_indices = @transform_2, window_bounds = array<i64: 3, 16, 16>}, {pipeline_mode = #tpu.pipeline_mode<synchronous>, transform_indices = @transform_3, window_bounds = array<i64: 9, 3, 8>}, {pipeline_mode = #tpu.pipeline_mode<synchronous>, transform_indices = @transform_4, window_bounds = array<i64: 9, 8, 16>}, {pipeline_mode = #tpu.pipeline_mode<synchronous>, transform_indices = @transform_5, window_bounds = array<i64: 9, 16, 32>}, {pipeline_mode = #tpu.pipeline_mode<synchronous>, transform_indices = @transform_6, window_bounds = array<i64: 9, 32, 64>}, {pipeline_mode = #tpu.pipeline_mode<synchronous>, transform_indices = @transform_7, window_bounds = array<i64: 9, 64, 3>}, {pipeline_mode = #tpu.pipeline_mode<synchronous>, transform_indices = @transform_8, window_bounds = array<i64: 1, 8>}, {pipeline_mode = #tpu.pipeline_mode<synchronous>, transform_indices = @transform_9, window_bounds = array<i64: 1, 16>}, {pipeline_mode = #tpu.pipeline_mode<synchronous>, transform_indices = @transform_10, window_bounds = array<i64: 1, 32>}, {pipeline_mode = #tpu.pipeline_mode<synchronous>, transform_indices = @transform_11, window_bounds = array<i64: 1, 64>}, {pipeline_mode = #tpu.pipeline_mode<synchronous>, transform_indices = @transform_12, window_bounds = array<i64: 1, 3>}, {pipeline_mode = #tpu.pipeline_mode<synchronous>, transform_indices = @transform_13, window_bounds = array<i64: 1, 8>}, {pipeline_mode = #tpu.pipeline_mode<synchronous>, transform_indices = @transform_14, window_bounds = array<i64: 1, 16>}, {pipeline_mode = #tpu.pipeline_mode<synchronous>, transform_indices = @transform_15, window_bounds = array<i64: 1, 32>}, {pipeline_mode = #tpu.pipeline_mode<synchronous>, transform_indices = @transform_16, window_bounds = array<i64: 1, 64>}, {pipeline_mode = #tpu.pipeline_mode<synchronous>, transform_indices = @transform_17, window_bounds = array<i64: 1, 3>}, {transform_indices = @transform_18, window_bounds = array<i64: 1, 3, 16, 16>}]} {
    %cst = arith.constant 0.000000e+00 : f32
    %0 = vector.broadcast %cst : f32 to vector<342x3xf32>
    %c0 = arith.constant 0 : index
    %c0_0 = arith.constant 0 : index
    %1 = vector.load %arg20[%c0, %c0_0] : memref<342x3xf32, #tpu.memory_space<vmem>>, vector<342x3xf32>
    tpu.vector_store %arg20[%c0, %c0_0], %0 {strides = array<i32>} : memref<342x3xf32, #tpu.memory_space<vmem>>, vector<342x3xf32>,
    %cst_1 = arith.constant 0.000000e+00 : f32
    %2 = vector.broadcast %cst_1 : f32 to vector<110x8xf32>
    %c0_2 = arith.constant 0 : index
    %c0_3 = arith.constant 0 : index
    %3 = vector.load %arg21[%c0_2, %c0_3] : memref<110x8xf32, #tpu.memory_space<vmem>>, vector<110x8xf32>
    tpu.vector_store %arg21[%c0_2, %c0_3], %2 {strides = array<i32>} : memref<110x8xf32, #tpu.memory_space<vmem>>, vector<110x8xf32>,
    %cst_4 = arith.constant 0.000000e+00 : f32
    %4 = vector.broadcast %cst_4 : f32 to vector<42x16xf32>
    %c0_5 = arith.constant 0 : index
    %c0_6 = arith.constant 0 : index
    %5 = vector.load %arg22[%c0_5, %c0_6] : memref<42x16xf32, #tpu.memory_space<vmem>>, vector<42x16xf32>
    tpu.vector_store %arg22[%c0_5, %c0_6], %4 {strides = array<i32>} : memref<42x16xf32, #tpu.memory_space<vmem>>, vector<42x16xf32>,
    %cst_7 = arith.constant 0.000000e+00 : f32
    %6 = vector.broadcast %cst_7 : f32 to vector<20x32xf32>
    %c0_8 = arith.constant 0 : index
    %c0_9 = arith.constant 0 : index
    %7 = vector.load %arg23[%c0_8, %c0_9] : memref<20x32xf32, #tpu.memory_space<vmem>>, vector<20x32xf32>
    tpu.vector_store %arg23[%c0_8, %c0_9], %6 {strides = array<i32>} : memref<20x32xf32, #tpu.memory_space<vmem>>, vector<20x32xf32>,
    %cst_10 = arith.constant 0.000000e+00 : f32
    %8 = vector.broadcast %cst_10 : f32 to vector<20x64xf32>
    %c0_11 = arith.constant 0 : index
    %c0_12 = arith.constant 0 : index
    %9 = vector.load %arg24[%c0_11, %c0_12] : memref<20x64xf32, #tpu.memory_space<vmem>>, vector<20x64xf32>
    tpu.vector_store %arg24[%c0_11, %c0_12], %8 {strides = array<i32>} : memref<20x64xf32, #tpu.memory_space<vmem>>, vector<20x64xf32>,
    %c0_13 = arith.constant 0 : index
    %c0_14 = arith.constant 0 : index
    %c0_15 = arith.constant 0 : index
    %c0_16 = arith.constant 0 : index
    %10 = vector.load %arg1[%c0_13, %c0_14, %c0_15, %c0_16] : memref<1x16x16x3xf32, #tpu.memory_space<vmem>>, vector<1x1x16x3xf32>
    %11 = vector.shape_cast %10 : vector<1x1x16x3xf32> to vector<16x3xf32>
    %c19 = arith.constant 19 : index
    %c0_17 = arith.constant 0 : index
    %12 = vector.load %arg20[%c19, %c0_17] : memref<342x3xf32, #tpu.memory_space<vmem>>, vector<16x3xf32>
    tpu.vector_store %arg20[%c19, %c0_17], %11 {strides = array<i32>} : memref<342x3xf32, #tpu.memory_space<vmem>>, vector<16x3xf32>,
    %c0_18 = arith.constant 0 : index
    %c1 = arith.constant 1 : index
    %c0_19 = arith.constant 0 : index
    %c0_20 = arith.constant 0 : index
    %13 = vector.load %arg1[%c0_18, %c1, %c0_19, %c0_20] : memref<1x16x16x3xf32, #tpu.memory_space<vmem>>, vector<1x1x16x3xf32>
    %14 = vector.shape_cast %13 : vector<1x1x16x3xf32> to vector<16x3xf32>
    %c37 = arith.constant 37 : index
    %c0_21 = arith.constant 0 : index
    %15 = vector.load %arg20[%c37, %c0_21] : memref<342x3xf32, #tpu.memory_space<vmem>>, vector<16x3xf32>
    tpu.vector_store %arg20[%c37, %c0_21], %14 {strides = array<i32>} : memref<342x3xf32, #tpu.memory_space<vmem>>, vector<16x3xf32>,
    %c0_22 = arith.constant 0 : index
    %c2 = arith.constant 2 : index
    %c0_23 = arith.constant 0 : index
    %c0_24 = arith.constant 0 : index
    %16 = vector.load %arg1[%c0_22, %c2, %c0_23, %c0_24] : memref<1x16x16x3xf32, #tpu.memory_space<vmem>>, vector<1x1x16x3xf32>
    %17 = vector.shape_cast %16 : vector<1x1x16x3xf32> to vector<16x3xf32>
    %c55 = arith.constant 55 : index
    %c0_25 = arith.constant 0 : index
    %18 = vector.load %arg20[%c55, %c0_25] : memref<342x3xf32, #tpu.memory_space<vmem>>, vector<16x3xf32>
    tpu.vector_store %arg20[%c55, %c0_25], %17 {strides = array<i32>} : memref<342x3xf32, #tpu.memory_space<vmem>>, vector<16x3xf32>,
    %c0_26 = arith.constant 0 : index
    %c3 = arith.constant 3 : index
    %c0_27 = arith.constant 0 : index
    %c0_28 = arith.constant 0 : index
    %19 = vector.load %arg1[%c0_26, %c3, %c0_27, %c0_28] : memref<1x16x16x3xf32, #tpu.memory_space<vmem>>, vector<1x1x16x3xf32>
    %20 = vector.shape_cast %19 : vector<1x1x16x3xf32> to vector<16x3xf32>
    %c73 = arith.constant 73 : index
    %c0_29 = arith.constant 0 : index
    %21 = vector.load %arg20[%c73, %c0_29] : memref<342x3xf32, #tpu.memory_space<vmem>>, vector<16x3xf32>
    tpu.vector_store %arg20[%c73, %c0_29], %20 {strides = array<i32>} : memref<342x3xf32, #tpu.memory_space<vmem>>, vector<16x3xf32>,
    %c0_30 = arith.constant 0 : index
    %c4 = arith.constant 4 : index
    %c0_31 = arith.constant 0 : index
    %c0_32 = arith.constant 0 : index
    %22 = vector.load %arg1[%c0_30, %c4, %c0_31, %c0_32] : memref<1x16x16x3xf32, #tpu.memory_space<vmem>>, vector<1x1x16x3xf32>
    %23 = vector.shape_cast %22 : vector<1x1x16x3xf32> to vector<16x3xf32>
    %c91 = arith.constant 91 : index
    %c0_33 = arith.constant 0 : index
    %24 = vector.load %arg20[%c91, %c0_33] : memref<342x3xf32, #tpu.memory_space<vmem>>, vector<16x3xf32>
    tpu.vector_store %arg20[%c91, %c0_33], %23 {strides = array<i32>} : memref<342x3xf32, #tpu.memory_space<vmem>>, vector<16x3xf32>,
    %c0_34 = arith.constant 0 : index
    %c5 = arith.constant 5 : index
    %c0_35 = arith.constant 0 : index
    %c0_36 = arith.constant 0 : index
    %25 = vector.load %arg1[%c0_34, %c5, %c0_35, %c0_36] : memref<1x16x16x3xf32, #tpu.memory_space<vmem>>, vector<1x1x16x3xf32>
    %26 = vector.shape_cast %25 : vector<1x1x16x3xf32> to vector<16x3xf32>
    %c109 = arith.constant 109 : index
    %c0_37 = arith.constant 0 : index
    %27 = vector.load %arg20[%c109, %c0_37] : memref<342x3xf32, #tpu.memory_space<vmem>>, vector<16x3xf32>
    tpu.vector_store %arg20[%c109, %c0_37], %26 {strides = array<i32>} : memref<342x3xf32, #tpu.memory_space<vmem>>, vector<16x3xf32>,
    %c0_38 = arith.constant 0 : index
    %c6 = arith.constant 6 : index
    %c0_39 = arith.constant 0 : index
    %c0_40 = arith.constant 0 : index
    %28 = vector.load %arg1[%c0_38, %c6, %c0_39, %c0_40] : memref<1x16x16x3xf32, #tpu.memory_space<vmem>>, vector<1x1x16x3xf32>
    %29 = vector.shape_cast %28 : vector<1x1x16x3xf32> to vector<16x3xf32>
    %c127 = arith.constant 127 : index
    %c0_41 = arith.constant 0 : index
    %30 = vector.load %arg20[%c127, %c0_41] : memref<342x3xf32, #tpu.memory_space<vmem>>, vector<16x3xf32>
    tpu.vector_store %arg20[%c127, %c0_41], %29 {strides = array<i32>} : memref<342x3xf32, #tpu.memory_space<vmem>>, vector<16x3xf32>,
    %c0_42 = arith.constant 0 : index
    %c7 = arith.constant 7 : index
    %c0_43 = arith.constant 0 : index
    %c0_44 = arith.constant 0 : index
    %31 = vector.load %arg1[%c0_42, %c7, %c0_43, %c0_44] : memref<1x16x16x3xf32, #tpu.memory_space<vmem>>, vector<1x1x16x3xf32>
    %32 = vector.shape_cast %31 : vector<1x1x16x3xf32> to vector<16x3xf32>
    %c145 = arith.constant 145 : index
    %c0_45 = arith.constant 0 : index
    %33 = vector.load %arg20[%c145, %c0_45] : memref<342x3xf32, #tpu.memory_space<vmem>>, vector<16x3xf32>
    tpu.vector_store %arg20[%c145, %c0_45], %32 {strides = array<i32>} : memref<342x3xf32, #tpu.memory_space<vmem>>, vector<16x3xf32>,
    %c0_46 = arith.constant 0 : index
    %c8 = arith.constant 8 : index
    %c0_47 = arith.constant 0 : index
    %c0_48 = arith.constant 0 : index
    %34 = vector.load %arg1[%c0_46, %c8, %c0_47, %c0_48] : memref<1x16x16x3xf32, #tpu.memory_space<vmem>>, vector<1x1x16x3xf32>
    %35 = vector.shape_cast %34 : vector<1x1x16x3xf32> to vector<16x3xf32>
    %c163 = arith.constant 163 : index
    %c0_49 = arith.constant 0 : index
    %36 = vector.load %arg20[%c163, %c0_49] : memref<342x3xf32, #tpu.memory_space<vmem>>, vector<16x3xf32>
    tpu.vector_store %arg20[%c163, %c0_49], %35 {strides = array<i32>} : memref<342x3xf32, #tpu.memory_space<vmem>>, vector<16x3xf32>,
    %c0_50 = arith.constant 0 : index
    %c9 = arith.constant 9 : index
    %c0_51 = arith.constant 0 : index
    %c0_52 = arith.constant 0 : index
    %37 = vector.load %arg1[%c0_50, %c9, %c0_51, %c0_52] : memref<1x16x16x3xf32, #tpu.memory_space<vmem>>, vector<1x1x16x3xf32>
    %38 = vector.shape_cast %37 : vector<1x1x16x3xf32> to vector<16x3xf32>
    %c181 = arith.constant 181 : index
    %c0_53 = arith.constant 0 : index
    %39 = vector.load %arg20[%c181, %c0_53] : memref<342x3xf32, #tpu.memory_space<vmem>>, vector<16x3xf32>
    tpu.vector_store %arg20[%c181, %c0_53], %38 {strides = array<i32>} : memref<342x3xf32, #tpu.memory_space<vmem>>, vector<16x3xf32>,
    %c0_54 = arith.constant 0 : index
    %c10 = arith.constant 10 : index
    %c0_55 = arith.constant 0 : index
    %c0_56 = arith.constant 0 : index
    %40 = vector.load %arg1[%c0_54, %c10, %c0_55, %c0_56] : memref<1x16x16x3xf32, #tpu.memory_space<vmem>>, vector<1x1x16x3xf32>
    %41 = vector.shape_cast %40 : vector<1x1x16x3xf32> to vector<16x3xf32>
    %c199 = arith.constant 199 : index
    %c0_57 = arith.constant 0 : index
    %42 = vector.load %arg20[%c199, %c0_57] : memref<342x3xf32, #tpu.memory_space<vmem>>, vector<16x3xf32>
    tpu.vector_store %arg20[%c199, %c0_57], %41 {strides = array<i32>} : memref<342x3xf32, #tpu.memory_space<vmem>>, vector<16x3xf32>,
    %c0_58 = arith.constant 0 : index
    %c11 = arith.constant 11 : index
    %c0_59 = arith.constant 0 : index
    %c0_60 = arith.constant 0 : index
    %43 = vector.load %arg1[%c0_58, %c11, %c0_59, %c0_60] : memref<1x16x16x3xf32, #tpu.memory_space<vmem>>, vector<1x1x16x3xf32>
    %44 = vector.shape_cast %43 : vector<1x1x16x3xf32> to vector<16x3xf32>
    %c217 = arith.constant 217 : index
    %c0_61 = arith.constant 0 : index
    %45 = vector.load %arg20[%c217, %c0_61] : memref<342x3xf32, #tpu.memory_space<vmem>>, vector<16x3xf32>
    tpu.vector_store %arg20[%c217, %c0_61], %44 {strides = array<i32>} : memref<342x3xf32, #tpu.memory_space<vmem>>, vector<16x3xf32>,
    %c0_62 = arith.constant 0 : index
    %c12 = arith.constant 12 : index
    %c0_63 = arith.constant 0 : index
    %c0_64 = arith.constant 0 : index
    %46 = vector.load %arg1[%c0_62, %c12, %c0_63, %c0_64] : memref<1x16x16x3xf32, #tpu.memory_space<vmem>>, vector<1x1x16x3xf32>
    %47 = vector.shape_cast %46 : vector<1x1x16x3xf32> to vector<16x3xf32>
    %c235 = arith.constant 235 : index
    %c0_65 = arith.constant 0 : index
    %48 = vector.load %arg20[%c235, %c0_65] : memref<342x3xf32, #tpu.memory_space<vmem>>, vector<16x3xf32>
    tpu.vector_store %arg20[%c235, %c0_65], %47 {strides = array<i32>} : memref<342x3xf32, #tpu.memory_space<vmem>>, vector<16x3xf32>,
    %c0_66 = arith.constant 0 : index
    %c13 = arith.constant 13 : index
    %c0_67 = arith.constant 0 : index
    %c0_68 = arith.constant 0 : index
    %49 = vector.load %arg1[%c0_66, %c13, %c0_67, %c0_68] : memref<1x16x16x3xf32, #tpu.memory_space<vmem>>, vector<1x1x16x3xf32>
    %50 = vector.shape_cast %49 : vector<1x1x16x3xf32> to vector<16x3xf32>
    %c253 = arith.constant 253 : index
    %c0_69 = arith.constant 0 : index
    %51 = vector.load %arg20[%c253, %c0_69] : memref<342x3xf32, #tpu.memory_space<vmem>>, vector<16x3xf32>
    tpu.vector_store %arg20[%c253, %c0_69], %50 {strides = array<i32>} : memref<342x3xf32, #tpu.memory_space<vmem>>, vector<16x3xf32>,
    %c0_70 = arith.constant 0 : index
    %c14 = arith.constant 14 : index
    %c0_71 = arith.constant 0 : index
    %c0_72 = arith.constant 0 : index
    %52 = vector.load %arg1[%c0_70, %c14, %c0_71, %c0_72] : memref<1x16x16x3xf32, #tpu.memory_space<vmem>>, vector<1x1x16x3xf32>
    %53 = vector.shape_cast %52 : vector<1x1x16x3xf32> to vector<16x3xf32>
    %c271 = arith.constant 271 : index
    %c0_73 = arith.constant 0 : index
    %54 = vector.load %arg20[%c271, %c0_73] : memref<342x3xf32, #tpu.memory_space<vmem>>, vector<16x3xf32>
    tpu.vector_store %arg20[%c271, %c0_73], %53 {strides = array<i32>} : memref<342x3xf32, #tpu.memory_space<vmem>>, vector<16x3xf32>,
    %c0_74 = arith.constant 0 : index
    %c15 = arith.constant 15 : index
    %c0_75 = arith.constant 0 : index
    %c0_76 = arith.constant 0 : index
    %55 = vector.load %arg1[%c0_74, %c15, %c0_75, %c0_76] : memref<1x16x16x3xf32, #tpu.memory_space<vmem>>, vector<1x1x16x3xf32>
    %56 = vector.shape_cast %55 : vector<1x1x16x3xf32> to vector<16x3xf32>
    %c289 = arith.constant 289 : index
    %c0_77 = arith.constant 0 : index
    %57 = vector.load %arg20[%c289, %c0_77] : memref<342x3xf32, #tpu.memory_space<vmem>>, vector<16x3xf32>
    tpu.vector_store %arg20[%c289, %c0_77], %56 {strides = array<i32>} : memref<342x3xf32, #tpu.memory_space<vmem>>, vector<16x3xf32>,
    %c0_78 = arith.constant 0 : index
    %c0_79 = arith.constant 0 : index
    %58 = vector.load %arg20[%c0_78, %c0_79] : memref<342x3xf32, #tpu.memory_space<vmem>>, vector<288x3xf32>
    %c0_80 = arith.constant 0 : index
    %c0_81 = arith.constant 0 : index
    %c0_82 = arith.constant 0 : index
    %59 = vector.load %arg4[%c0_80, %c0_81, %c0_82] : memref<9x3x8xf32, #tpu.memory_space<vmem>>, vector<1x3x8xf32>
    %60 = vector.shape_cast %59 : vector<1x3x8xf32> to vector<3x8xf32>
    %cst_83 = arith.constant dense<0.000000e+00> : vector<288x8xf32>
    %61 = tpu.matmul %58, %60, %cst_83 {dimension_numbers = #tpu.dot_dimension_numbers<[1], [0], [0], [1], [0, 0, 1, 1], [], []>} : vector<288x3xf32>, vector<3x8xf32>, vector<288x8xf32> -> vector<288x8xf32>
    %c1_84 = arith.constant 1 : index
    %c0_85 = arith.constant 0 : index
    %62 = vector.load %arg20[%c1_84, %c0_85] : memref<342x3xf32, #tpu.memory_space<vmem>>, vector<288x3xf32>
    %c1_86 = arith.constant 1 : index
    %c0_87 = arith.constant 0 : index
    %c0_88 = arith.constant 0 : index
    %63 = vector.load %arg4[%c1_86, %c0_87, %c0_88] : memref<9x3x8xf32, #tpu.memory_space<vmem>>, vector<1x3x8xf32>
    %64 = vector.shape_cast %63 : vector<1x3x8xf32> to vector<3x8xf32>
    %cst_89 = arith.constant dense<0.000000e+00> : vector<288x8xf32>
    %65 = tpu.matmul %62, %64, %cst_89 {dimension_numbers = #tpu.dot_dimension_numbers<[1], [0], [0], [1], [0, 0, 1, 1], [], []>} : vector<288x3xf32>, vector<3x8xf32>, vector<288x8xf32> -> vector<288x8xf32>
    %66 = arith.addf %61, %65 : vector<288x8xf32>
    %c2_90 = arith.constant 2 : index
    %c0_91 = arith.constant 0 : index
    %67 = vector.load %arg20[%c2_90, %c0_91] : memref<342x3xf32, #tpu.memory_space<vmem>>, vector<288x3xf32>
    %c2_92 = arith.constant 2 : index
    %c0_93 = arith.constant 0 : index
    %c0_94 = arith.constant 0 : index
    %68 = vector.load %arg4[%c2_92, %c0_93, %c0_94] : memref<9x3x8xf32, #tpu.memory_space<vmem>>, vector<1x3x8xf32>
    %69 = vector.shape_cast %68 : vector<1x3x8xf32> to vector<3x8xf32>
    %cst_95 = arith.constant dense<0.000000e+00> : vector<288x8xf32>
    %70 = tpu.matmul %67, %69, %cst_95 {dimension_numbers = #tpu.dot_dimension_numbers<[1], [0], [0], [1], [0, 0, 1, 1], [], []>} : vector<288x3xf32>, vector<3x8xf32>, vector<288x8xf32> -> vector<288x8xf32>
    %71 = arith.addf %66, %70 : vector<288x8xf32>
    %c18 = arith.constant 18 : index
    %c0_96 = arith.constant 0 : index
    %72 = vector.load %arg20[%c18, %c0_96] : memref<342x3xf32, #tpu.memory_space<vmem>>, vector<288x3xf32>
    %c3_97 = arith.constant 3 : index
    %c0_98 = arith.constant 0 : index
    %c0_99 = arith.constant 0 : index
    %73 = vector.load %arg4[%c3_97, %c0_98, %c0_99] : memref<9x3x8xf32, #tpu.memory_space<vmem>>, vector<1x3x8xf32>
    %74 = vector.shape_cast %73 : vector<1x3x8xf32> to vector<3x8xf32>
    %cst_100 = arith.constant dense<0.000000e+00> : vector<288x8xf32>
    %75 = tpu.matmul %72, %74, %cst_100 {dimension_numbers = #tpu.dot_dimension_numbers<[1], [0], [0], [1], [0, 0, 1, 1], [], []>} : vector<288x3xf32>, vector<3x8xf32>, vector<288x8xf32> -> vector<288x8xf32>
    %76 = arith.addf %71, %75 : vector<288x8xf32>
    %c19_101 = arith.constant 19 : index
    %c0_102 = arith.constant 0 : index
    %77 = vector.load %arg20[%c19_101, %c0_102] : memref<342x3xf32, #tpu.memory_space<vmem>>, vector<288x3xf32>
    %c4_103 = arith.constant 4 : index
    %c0_104 = arith.constant 0 : index
    %c0_105 = arith.constant 0 : index
    %78 = vector.load %arg4[%c4_103, %c0_104, %c0_105] : memref<9x3x8xf32, #tpu.memory_space<vmem>>, vector<1x3x8xf32>
    %79 = vector.shape_cast %78 : vector<1x3x8xf32> to vector<3x8xf32>
    %cst_106 = arith.constant dense<0.000000e+00> : vector<288x8xf32>
    %80 = tpu.matmul %77, %79, %cst_106 {dimension_numbers = #tpu.dot_dimension_numbers<[1], [0], [0], [1], [0, 0, 1, 1], [], []>} : vector<288x3xf32>, vector<3x8xf32>, vector<288x8xf32> -> vector<288x8xf32>
    %81 = arith.addf %76, %80 : vector<288x8xf32>
    %c20 = arith.constant 20 : index
    %c0_107 = arith.constant 0 : index
    %82 = vector.load %arg20[%c20, %c0_107] : memref<342x3xf32, #tpu.memory_space<vmem>>, vector<288x3xf32>
    %c5_108 = arith.constant 5 : index
    %c0_109 = arith.constant 0 : index
    %c0_110 = arith.constant 0 : index
    %83 = vector.load %arg4[%c5_108, %c0_109, %c0_110] : memref<9x3x8xf32, #tpu.memory_space<vmem>>, vector<1x3x8xf32>
    %84 = vector.shape_cast %83 : vector<1x3x8xf32> to vector<3x8xf32>
    %cst_111 = arith.constant dense<0.000000e+00> : vector<288x8xf32>
    %85 = tpu.matmul %82, %84, %cst_111 {dimension_numbers = #tpu.dot_dimension_numbers<[1], [0], [0], [1], [0, 0, 1, 1], [], []>} : vector<288x3xf32>, vector<3x8xf32>, vector<288x8xf32> -> vector<288x8xf32>
    %86 = arith.addf %81, %85 : vector<288x8xf32>
    %c36 = arith.constant 36 : index
    %c0_112 = arith.constant 0 : index
    %87 = vector.load %arg20[%c36, %c0_112] : memref<342x3xf32, #tpu.memory_space<vmem>>, vector<288x3xf32>
    %c6_113 = arith.constant 6 : index
    %c0_114 = arith.constant 0 : index
    %c0_115 = arith.constant 0 : index
    %88 = vector.load %arg4[%c6_113, %c0_114, %c0_115] : memref<9x3x8xf32, #tpu.memory_space<vmem>>, vector<1x3x8xf32>
    %89 = vector.shape_cast %88 : vector<1x3x8xf32> to vector<3x8xf32>
    %cst_116 = arith.constant dense<0.000000e+00> : vector<288x8xf32>
    %90 = tpu.matmul %87, %89, %cst_116 {dimension_numbers = #tpu.dot_dimension_numbers<[1], [0], [0], [1], [0, 0, 1, 1], [], []>} : vector<288x3xf32>, vector<3x8xf32>, vector<288x8xf32> -> vector<288x8xf32>
    %91 = arith.addf %86, %90 : vector<288x8xf32>
    %c37_117 = arith.constant 37 : index
    %c0_118 = arith.constant 0 : index
    %92 = vector.load %arg20[%c37_117, %c0_118] : memref<342x3xf32, #tpu.memory_space<vmem>>, vector<288x3xf32>
    %c7_119 = arith.constant 7 : index
    %c0_120 = arith.constant 0 : index
    %c0_121 = arith.constant 0 : index
    %93 = vector.load %arg4[%c7_119, %c0_120, %c0_121] : memref<9x3x8xf32, #tpu.memory_space<vmem>>, vector<1x3x8xf32>
    %94 = vector.shape_cast %93 : vector<1x3x8xf32> to vector<3x8xf32>
    %cst_122 = arith.constant dense<0.000000e+00> : vector<288x8xf32>
    %95 = tpu.matmul %92, %94, %cst_122 {dimension_numbers = #tpu.dot_dimension_numbers<[1], [0], [0], [1], [0, 0, 1, 1], [], []>} : vector<288x3xf32>, vector<3x8xf32>, vector<288x8xf32> -> vector<288x8xf32>
    %96 = arith.addf %91, %95 : vector<288x8xf32>
    %c38 = arith.constant 38 : index
    %c0_123 = arith.constant 0 : index
    %97 = vector.load %arg20[%c38, %c0_123] : memref<342x3xf32, #tpu.memory_space<vmem>>, vector<288x3xf32>
    %c8_124 = arith.constant 8 : index
    %c0_125 = arith.constant 0 : index
    %c0_126 = arith.constant 0 : index
    %98 = vector.load %arg4[%c8_124, %c0_125, %c0_126] : memref<9x3x8xf32, #tpu.memory_space<vmem>>, vector<1x3x8xf32>
    %99 = vector.shape_cast %98 : vector<1x3x8xf32> to vector<3x8xf32>
    %cst_127 = arith.constant dense<0.000000e+00> : vector<288x8xf32>
    %100 = tpu.matmul %97, %99, %cst_127 {dimension_numbers = #tpu.dot_dimension_numbers<[1], [0], [0], [1], [0, 0, 1, 1], [], []>} : vector<288x3xf32>, vector<3x8xf32>, vector<288x8xf32> -> vector<288x8xf32>
    %101 = arith.addf %96, %100 : vector<288x8xf32>
    %c0_128 = arith.constant 0 : index
    %c0_129 = arith.constant 0 : index
    %102 = vector.load %arg9[%c0_128, %c0_129] : memref<1x8xf32, #tpu.memory_space<vmem>>, vector<1x8xf32>
    %103 = vector.broadcast %102 : vector<1x8xf32> to vector<288x8xf32>
    %104 = arith.mulf %101, %103 : vector<288x8xf32>
    %c0_130 = arith.constant 0 : index
    %c0_131 = arith.constant 0 : index
    %105 = vector.load %arg14[%c0_130, %c0_131] : memref<1x8xf32, #tpu.memory_space<vmem>>, vector<1x8xf32>
    %106 = vector.broadcast %105 : vector<1x8xf32> to vector<288x8xf32>
    %107 = arith.addf %104, %106 : vector<288x8xf32>
    %cst_132 = arith.constant 0.000000e+00 : f32
    %108 = vector.broadcast %cst_132 : f32 to vector<288x8xf32>
    %109 = arith.maximumf %107, %108 : vector<288x8xf32>
    %110 = tpu.iota {dimensions = array<i32: 0>} : vector<8x16xi32>
    %111 = tpu.iota {dimensions = array<i32: 1>} : vector<8x16xi32>
    %c2_i32 = arith.constant 2 : i32
    %112 = vector.broadcast %c2_i32 : i32 to vector<8x16xi32>
    %113 = arith.muli %112, %110 : vector<8x16xi32>
    %114 = arith.cmpi eq, %111, %113 : vector<8x16xi32>
    %115 = arith.extui %114 : vector<8x16xi1> to vector<8x16xi32>
    %116 = arith.sitofp %115 : vector<8x16xi32> to vector<8x16xf32>
    %c2_i32_133 = arith.constant 2 : i32
    %117 = vector.broadcast %c2_i32_133 : i32 to vector<8x16xi32>
    %118 = arith.muli %117, %110 : vector<8x16xi32>
    %c1_i32 = arith.constant 1 : i32
    %119 = vector.broadcast %c1_i32 : i32 to vector<8x16xi32>
    %120 = arith.addi %118, %119 : vector<8x16xi32>
    %121 = arith.cmpi eq, %111, %120 : vector<8x16xi32>
    %122 = arith.extui %121 : vector<8x16xi1> to vector<8x16xi32>
    %123 = arith.sitofp %122 : vector<8x16xi32> to vector<8x16xf32>
    %124 = vector.extract_strided_slice %109 {offsets = [0, 0], sizes = [16, 8], strides = [1, 1]} : vector<288x8xf32> to vector<16x8xf32>
    %125 = vector.extract_strided_slice %109 {offsets = [18, 0], sizes = [16, 8], strides = [1, 1]} : vector<288x8xf32> to vector<16x8xf32>
    %126 = arith.maximumf %124, %125 : vector<16x8xf32>
    %cst_134 = arith.constant dense<0.000000e+00> : vector<8x8xf32>
    %127 = tpu.matmul %116, %126, %cst_134 {dimension_numbers = #tpu.dot_dimension_numbers<[1], [0], [0], [1], [0, 0, 1, 1], [], []>} : vector<8x16xf32>, vector<16x8xf32>, vector<8x8xf32> -> vector<8x8xf32>
    %cst_135 = arith.constant dense<0.000000e+00> : vector<8x8xf32>
    %128 = tpu.matmul %123, %126, %cst_135 {dimension_numbers = #tpu.dot_dimension_numbers<[1], [0], [0], [1], [0, 0, 1, 1], [], []>} : vector<8x16xf32>, vector<16x8xf32>, vector<8x8xf32> -> vector<8x8xf32>
    %129 = arith.maximumf %127, %128 : vector<8x8xf32>
    %c11_136 = arith.constant 11 : index
    %c0_137 = arith.constant 0 : index
    %130 = vector.load %arg21[%c11_136, %c0_137] : memref<110x8xf32, #tpu.memory_space<vmem>>, vector<8x8xf32>
    tpu.vector_store %arg21[%c11_136, %c0_137], %129 {strides = array<i32>} : memref<110x8xf32, #tpu.memory_space<vmem>>, vector<8x8xf32>,
    %131 = vector.extract_strided_slice %109 {offsets = [36, 0], sizes = [16, 8], strides = [1, 1]} : vector<288x8xf32> to vector<16x8xf32>
    %132 = vector.extract_strided_slice %109 {offsets = [54, 0], sizes = [16, 8], strides = [1, 1]} : vector<288x8xf32> to vector<16x8xf32>
    %133 = arith.maximumf %131, %132 : vector<16x8xf32>
    %cst_138 = arith.constant dense<0.000000e+00> : vector<8x8xf32>
    %134 = tpu.matmul %116, %133, %cst_138 {dimension_numbers = #tpu.dot_dimension_numbers<[1], [0], [0], [1], [0, 0, 1, 1], [], []>} : vector<8x16xf32>, vector<16x8xf32>, vector<8x8xf32> -> vector<8x8xf32>
    %cst_139 = arith.constant dense<0.000000e+00> : vector<8x8xf32>
    %135 = tpu.matmul %123, %133, %cst_139 {dimension_numbers = #tpu.dot_dimension_numbers<[1], [0], [0], [1], [0, 0, 1, 1], [], []>} : vector<8x16xf32>, vector<16x8xf32>, vector<8x8xf32> -> vector<8x8xf32>
    %136 = arith.maximumf %134, %135 : vector<8x8xf32>
    %c21 = arith.constant 21 : index
    %c0_140 = arith.constant 0 : index
    %137 = vector.load %arg21[%c21, %c0_140] : memref<110x8xf32, #tpu.memory_space<vmem>>, vector<8x8xf32>
    tpu.vector_store %arg21[%c21, %c0_140], %136 {strides = array<i32>} : memref<110x8xf32, #tpu.memory_space<vmem>>, vector<8x8xf32>,
    %138 = vector.extract_strided_slice %109 {offsets = [72, 0], sizes = [16, 8], strides = [1, 1]} : vector<288x8xf32> to vector<16x8xf32>
    %139 = vector.extract_strided_slice %109 {offsets = [90, 0], sizes = [16, 8], strides = [1, 1]} : vector<288x8xf32> to vector<16x8xf32>
    %140 = arith.maximumf %138, %139 : vector<16x8xf32>
    %cst_141 = arith.constant dense<0.000000e+00> : vector<8x8xf32>
    %141 = tpu.matmul %116, %140, %cst_141 {dimension_numbers = #tpu.dot_dimension_numbers<[1], [0], [0], [1], [0, 0, 1, 1], [], []>} : vector<8x16xf32>, vector<16x8xf32>, vector<8x8xf32> -> vector<8x8xf32>
    %cst_142 = arith.constant dense<0.000000e+00> : vector<8x8xf32>
    %142 = tpu.matmul %123, %140, %cst_142 {dimension_numbers = #tpu.dot_dimension_numbers<[1], [0], [0], [1], [0, 0, 1, 1], [], []>} : vector<8x16xf32>, vector<16x8xf32>, vector<8x8xf32> -> vector<8x8xf32>
    %143 = arith.maximumf %141, %142 : vector<8x8xf32>
    %c31 = arith.constant 31 : index
    %c0_143 = arith.constant 0 : index
    %144 = vector.load %arg21[%c31, %c0_143] : memref<110x8xf32, #tpu.memory_space<vmem>>, vector<8x8xf32>
    tpu.vector_store %arg21[%c31, %c0_143], %143 {strides = array<i32>} : memref<110x8xf32, #tpu.memory_space<vmem>>, vector<8x8xf32>,
    %145 = vector.extract_strided_slice %109 {offsets = [108, 0], sizes = [16, 8], strides = [1, 1]} : vector<288x8xf32> to vector<16x8xf32>
    %146 = vector.extract_strided_slice %109 {offsets = [126, 0], sizes = [16, 8], strides = [1, 1]} : vector<288x8xf32> to vector<16x8xf32>
    %147 = arith.maximumf %145, %146 : vector<16x8xf32>
    %cst_144 = arith.constant dense<0.000000e+00> : vector<8x8xf32>
    %148 = tpu.matmul %116, %147, %cst_144 {dimension_numbers = #tpu.dot_dimension_numbers<[1], [0], [0], [1], [0, 0, 1, 1], [], []>} : vector<8x16xf32>, vector<16x8xf32>, vector<8x8xf32> -> vector<8x8xf32>
    %cst_145 = arith.constant dense<0.000000e+00> : vector<8x8xf32>
    %149 = tpu.matmul %123, %147, %cst_145 {dimension_numbers = #tpu.dot_dimension_numbers<[1], [0], [0], [1], [0, 0, 1, 1], [], []>} : vector<8x16xf32>, vector<16x8xf32>, vector<8x8xf32> -> vector<8x8xf32>
    %150 = arith.maximumf %148, %149 : vector<8x8xf32>
    %c41 = arith.constant 41 : index
    %c0_146 = arith.constant 0 : index
    %151 = vector.load %arg21[%c41, %c0_146] : memref<110x8xf32, #tpu.memory_space<vmem>>, vector<8x8xf32>
    tpu.vector_store %arg21[%c41, %c0_146], %150 {strides = array<i32>} : memref<110x8xf32, #tpu.memory_space<vmem>>, vector<8x8xf32>,
    %152 = vector.extract_strided_slice %109 {offsets = [144, 0], sizes = [16, 8], strides = [1, 1]} : vector<288x8xf32> to vector<16x8xf32>
    %153 = vector.extract_strided_slice %109 {offsets = [162, 0], sizes = [16, 8], strides = [1, 1]} : vector<288x8xf32> to vector<16x8xf32>
    %154 = arith.maximumf %152, %153 : vector<16x8xf32>
    %cst_147 = arith.constant dense<0.000000e+00> : vector<8x8xf32>
    %155 = tpu.matmul %116, %154, %cst_147 {dimension_numbers = #tpu.dot_dimension_numbers<[1], [0], [0], [1], [0, 0, 1, 1], [], []>} : vector<8x16xf32>, vector<16x8xf32>, vector<8x8xf32> -> vector<8x8xf32>
    %cst_148 = arith.constant dense<0.000000e+00> : vector<8x8xf32>
    %156 = tpu.matmul %123, %154, %cst_148 {dimension_numbers = #tpu.dot_dimension_numbers<[1], [0], [0], [1], [0, 0, 1, 1], [], []>} : vector<8x16xf32>, vector<16x8xf32>, vector<8x8xf32> -> vector<8x8xf32>
    %157 = arith.maximumf %155, %156 : vector<8x8xf32>
    %c51 = arith.constant 51 : index
    %c0_149 = arith.constant 0 : index
    %158 = vector.load %arg21[%c51, %c0_149] : memref<110x8xf32, #tpu.memory_space<vmem>>, vector<8x8xf32>
    tpu.vector_store %arg21[%c51, %c0_149], %157 {strides = array<i32>} : memref<110x8xf32, #tpu.memory_space<vmem>>, vector<8x8xf32>,
    %159 = vector.extract_strided_slice %109 {offsets = [180, 0], sizes = [16, 8], strides = [1, 1]} : vector<288x8xf32> to vector<16x8xf32>
    %160 = vector.extract_strided_slice %109 {offsets = [198, 0], sizes = [16, 8], strides = [1, 1]} : vector<288x8xf32> to vector<16x8xf32>
    %161 = arith.maximumf %159, %160 : vector<16x8xf32>
    %cst_150 = arith.constant dense<0.000000e+00> : vector<8x8xf32>
    %162 = tpu.matmul %116, %161, %cst_150 {dimension_numbers = #tpu.dot_dimension_numbers<[1], [0], [0], [1], [0, 0, 1, 1], [], []>} : vector<8x16xf32>, vector<16x8xf32>, vector<8x8xf32> -> vector<8x8xf32>
    %cst_151 = arith.constant dense<0.000000e+00> : vector<8x8xf32>
    %163 = tpu.matmul %123, %161, %cst_151 {dimension_numbers = #tpu.dot_dimension_numbers<[1], [0], [0], [1], [0, 0, 1, 1], [], []>} : vector<8x16xf32>, vector<16x8xf32>, vector<8x8xf32> -> vector<8x8xf32>
    %164 = arith.maximumf %162, %163 : vector<8x8xf32>
    %c61 = arith.constant 61 : index
    %c0_152 = arith.constant 0 : index
    %165 = vector.load %arg21[%c61, %c0_152] : memref<110x8xf32, #tpu.memory_space<vmem>>, vector<8x8xf32>
    tpu.vector_store %arg21[%c61, %c0_152], %164 {strides = array<i32>} : memref<110x8xf32, #tpu.memory_space<vmem>>, vector<8x8xf32>,
    %166 = vector.extract_strided_slice %109 {offsets = [216, 0], sizes = [16, 8], strides = [1, 1]} : vector<288x8xf32> to vector<16x8xf32>
    %167 = vector.extract_strided_slice %109 {offsets = [234, 0], sizes = [16, 8], strides = [1, 1]} : vector<288x8xf32> to vector<16x8xf32>
    %168 = arith.maximumf %166, %167 : vector<16x8xf32>
    %cst_153 = arith.constant dense<0.000000e+00> : vector<8x8xf32>
    %169 = tpu.matmul %116, %168, %cst_153 {dimension_numbers = #tpu.dot_dimension_numbers<[1], [0], [0], [1], [0, 0, 1, 1], [], []>} : vector<8x16xf32>, vector<16x8xf32>, vector<8x8xf32> -> vector<8x8xf32>
    %cst_154 = arith.constant dense<0.000000e+00> : vector<8x8xf32>
    %170 = tpu.matmul %123, %168, %cst_154 {dimension_numbers = #tpu.dot_dimension_numbers<[1], [0], [0], [1], [0, 0, 1, 1], [], []>} : vector<8x16xf32>, vector<16x8xf32>, vector<8x8xf32> -> vector<8x8xf32>
    %171 = arith.maximumf %169, %170 : vector<8x8xf32>
    %c71 = arith.constant 71 : index
    %c0_155 = arith.constant 0 : index
    %172 = vector.load %arg21[%c71, %c0_155] : memref<110x8xf32, #tpu.memory_space<vmem>>, vector<8x8xf32>
    tpu.vector_store %arg21[%c71, %c0_155], %171 {strides = array<i32>} : memref<110x8xf32, #tpu.memory_space<vmem>>, vector<8x8xf32>,
    %173 = vector.extract_strided_slice %109 {offsets = [252, 0], sizes = [16, 8], strides = [1, 1]} : vector<288x8xf32> to vector<16x8xf32>
    %174 = vector.extract_strided_slice %109 {offsets = [270, 0], sizes = [16, 8], strides = [1, 1]} : vector<288x8xf32> to vector<16x8xf32>
    %175 = arith.maximumf %173, %174 : vector<16x8xf32>
    %cst_156 = arith.constant dense<0.000000e+00> : vector<8x8xf32>
    %176 = tpu.matmul %116, %175, %cst_156 {dimension_numbers = #tpu.dot_dimension_numbers<[1], [0], [0], [1], [0, 0, 1, 1], [], []>} : vector<8x16xf32>, vector<16x8xf32>, vector<8x8xf32> -> vector<8x8xf32>
    %cst_157 = arith.constant dense<0.000000e+00> : vector<8x8xf32>
    %177 = tpu.matmul %123, %175, %cst_157 {dimension_numbers = #tpu.dot_dimension_numbers<[1], [0], [0], [1], [0, 0, 1, 1], [], []>} : vector<8x16xf32>, vector<16x8xf32>, vector<8x8xf32> -> vector<8x8xf32>
    %178 = arith.maximumf %176, %177 : vector<8x8xf32>
    %c81 = arith.constant 81 : index
    %c0_158 = arith.constant 0 : index
    %179 = vector.load %arg21[%c81, %c0_158] : memref<110x8xf32, #tpu.memory_space<vmem>>, vector<8x8xf32>
    tpu.vector_store %arg21[%c81, %c0_158], %178 {strides = array<i32>} : memref<110x8xf32, #tpu.memory_space<vmem>>, vector<8x8xf32>,
    %c0_159 = arith.constant 0 : index
    %c0_160 = arith.constant 0 : index
    %180 = vector.load %arg21[%c0_159, %c0_160] : memref<110x8xf32, #tpu.memory_space<vmem>>, vector<80x8xf32>
    %c0_161 = arith.constant 0 : index
    %c0_162 = arith.constant 0 : index
    %c0_163 = arith.constant 0 : index
    %181 = vector.load %arg5[%c0_161, %c0_162, %c0_163] : memref<9x8x16xf32, #tpu.memory_space<vmem>>, vector<1x8x16xf32>
    %182 = vector.shape_cast %181 : vector<1x8x16xf32> to vector<8x16xf32>
    %cst_164 = arith.constant dense<0.000000e+00> : vector<80x16xf32>
    %183 = tpu.matmul %180, %182, %cst_164 {dimension_numbers = #tpu.dot_dimension_numbers<[1], [0], [0], [1], [0, 0, 1, 1], [], []>} : vector<80x8xf32>, vector<8x16xf32>, vector<80x16xf32> -> vector<80x16xf32>
    %c1_165 = arith.constant 1 : index
    %c0_166 = arith.constant 0 : index
    %184 = vector.load %arg21[%c1_165, %c0_166] : memref<110x8xf32, #tpu.memory_space<vmem>>, vector<80x8xf32>
    %c1_167 = arith.constant 1 : index
    %c0_168 = arith.constant 0 : index
    %c0_169 = arith.constant 0 : index
    %185 = vector.load %arg5[%c1_167, %c0_168, %c0_169] : memref<9x8x16xf32, #tpu.memory_space<vmem>>, vector<1x8x16xf32>
    %186 = vector.shape_cast %185 : vector<1x8x16xf32> to vector<8x16xf32>
    %cst_170 = arith.constant dense<0.000000e+00> : vector<80x16xf32>
    %187 = tpu.matmul %184, %186, %cst_170 {dimension_numbers = #tpu.dot_dimension_numbers<[1], [0], [0], [1], [0, 0, 1, 1], [], []>} : vector<80x8xf32>, vector<8x16xf32>, vector<80x16xf32> -> vector<80x16xf32>
    %188 = arith.addf %183, %187 : vector<80x16xf32>
    %c2_171 = arith.constant 2 : index
    %c0_172 = arith.constant 0 : index
    %189 = vector.load %arg21[%c2_171, %c0_172] : memref<110x8xf32, #tpu.memory_space<vmem>>, vector<80x8xf32>
    %c2_173 = arith.constant 2 : index
    %c0_174 = arith.constant 0 : index
    %c0_175 = arith.constant 0 : index
    %190 = vector.load %arg5[%c2_173, %c0_174, %c0_175] : memref<9x8x16xf32, #tpu.memory_space<vmem>>, vector<1x8x16xf32>
    %191 = vector.shape_cast %190 : vector<1x8x16xf32> to vector<8x16xf32>
    %cst_176 = arith.constant dense<0.000000e+00> : vector<80x16xf32>
    %192 = tpu.matmul %189, %191, %cst_176 {dimension_numbers = #tpu.dot_dimension_numbers<[1], [0], [0], [1], [0, 0, 1, 1], [], []>} : vector<80x8xf32>, vector<8x16xf32>, vector<80x16xf32> -> vector<80x16xf32>
    %193 = arith.addf %188, %192 : vector<80x16xf32>
    %c10_177 = arith.constant 10 : index
    %c0_178 = arith.constant 0 : index
    %194 = vector.load %arg21[%c10_177, %c0_178] : memref<110x8xf32, #tpu.memory_space<vmem>>, vector<80x8xf32>
    %c3_179 = arith.constant 3 : index
    %c0_180 = arith.constant 0 : index
    %c0_181 = arith.constant 0 : index
    %195 = vector.load %arg5[%c3_179, %c0_180, %c0_181] : memref<9x8x16xf32, #tpu.memory_space<vmem>>, vector<1x8x16xf32>
    %196 = vector.shape_cast %195 : vector<1x8x16xf32> to vector<8x16xf32>
    %cst_182 = arith.constant dense<0.000000e+00> : vector<80x16xf32>
    %197 = tpu.matmul %194, %196, %cst_182 {dimension_numbers = #tpu.dot_dimension_numbers<[1], [0], [0], [1], [0, 0, 1, 1], [], []>} : vector<80x8xf32>, vector<8x16xf32>, vector<80x16xf32> -> vector<80x16xf32>
    %198 = arith.addf %193, %197 : vector<80x16xf32>
    %c11_183 = arith.constant 11 : index
    %c0_184 = arith.constant 0 : index
    %199 = vector.load %arg21[%c11_183, %c0_184] : memref<110x8xf32, #tpu.memory_space<vmem>>, vector<80x8xf32>
    %c4_185 = arith.constant 4 : index
    %c0_186 = arith.constant 0 : index
    %c0_187 = arith.constant 0 : index
    %200 = vector.load %arg5[%c4_185, %c0_186, %c0_187] : memref<9x8x16xf32, #tpu.memory_space<vmem>>, vector<1x8x16xf32>
    %201 = vector.shape_cast %200 : vector<1x8x16xf32> to vector<8x16xf32>
    %cst_188 = arith.constant dense<0.000000e+00> : vector<80x16xf32>
    %202 = tpu.matmul %199, %201, %cst_188 {dimension_numbers = #tpu.dot_dimension_numbers<[1], [0], [0], [1], [0, 0, 1, 1], [], []>} : vector<80x8xf32>, vector<8x16xf32>, vector<80x16xf32> -> vector<80x16xf32>
    %203 = arith.addf %198, %202 : vector<80x16xf32>
    %c12_189 = arith.constant 12 : index
    %c0_190 = arith.constant 0 : index
    %204 = vector.load %arg21[%c12_189, %c0_190] : memref<110x8xf32, #tpu.memory_space<vmem>>, vector<80x8xf32>
    %c5_191 = arith.constant 5 : index
    %c0_192 = arith.constant 0 : index
    %c0_193 = arith.constant 0 : index
    %205 = vector.load %arg5[%c5_191, %c0_192, %c0_193] : memref<9x8x16xf32, #tpu.memory_space<vmem>>, vector<1x8x16xf32>
    %206 = vector.shape_cast %205 : vector<1x8x16xf32> to vector<8x16xf32>
    %cst_194 = arith.constant dense<0.000000e+00> : vector<80x16xf32>
    %207 = tpu.matmul %204, %206, %cst_194 {dimension_numbers = #tpu.dot_dimension_numbers<[1], [0], [0], [1], [0, 0, 1, 1], [], []>} : vector<80x8xf32>, vector<8x16xf32>, vector<80x16xf32> -> vector<80x16xf32>
    %208 = arith.addf %203, %207 : vector<80x16xf32>
    %c20_195 = arith.constant 20 : index
    %c0_196 = arith.constant 0 : index
    %209 = vector.load %arg21[%c20_195, %c0_196] : memref<110x8xf32, #tpu.memory_space<vmem>>, vector<80x8xf32>
    %c6_197 = arith.constant 6 : index
    %c0_198 = arith.constant 0 : index
    %c0_199 = arith.constant 0 : index
    %210 = vector.load %arg5[%c6_197, %c0_198, %c0_199] : memref<9x8x16xf32, #tpu.memory_space<vmem>>, vector<1x8x16xf32>
    %211 = vector.shape_cast %210 : vector<1x8x16xf32> to vector<8x16xf32>
    %cst_200 = arith.constant dense<0.000000e+00> : vector<80x16xf32>
    %212 = tpu.matmul %209, %211, %cst_200 {dimension_numbers = #tpu.dot_dimension_numbers<[1], [0], [0], [1], [0, 0, 1, 1], [], []>} : vector<80x8xf32>, vector<8x16xf32>, vector<80x16xf32> -> vector<80x16xf32>
    %213 = arith.addf %208, %212 : vector<80x16xf32>
    %c21_201 = arith.constant 21 : index
    %c0_202 = arith.constant 0 : index
    %214 = vector.load %arg21[%c21_201, %c0_202] : memref<110x8xf32, #tpu.memory_space<vmem>>, vector<80x8xf32>
    %c7_203 = arith.constant 7 : index
    %c0_204 = arith.constant 0 : index
    %c0_205 = arith.constant 0 : index
    %215 = vector.load %arg5[%c7_203, %c0_204, %c0_205] : memref<9x8x16xf32, #tpu.memory_space<vmem>>, vector<1x8x16xf32>
    %216 = vector.shape_cast %215 : vector<1x8x16xf32> to vector<8x16xf32>
    %cst_206 = arith.constant dense<0.000000e+00> : vector<80x16xf32>
    %217 = tpu.matmul %214, %216, %cst_206 {dimension_numbers = #tpu.dot_dimension_numbers<[1], [0], [0], [1], [0, 0, 1, 1], [], []>} : vector<80x8xf32>, vector<8x16xf32>, vector<80x16xf32> -> vector<80x16xf32>
    %218 = arith.addf %213, %217 : vector<80x16xf32>
    %c22 = arith.constant 22 : index
    %c0_207 = arith.constant 0 : index
    %219 = vector.load %arg21[%c22, %c0_207] : memref<110x8xf32, #tpu.memory_space<vmem>>, vector<80x8xf32>
    %c8_208 = arith.constant 8 : index
    %c0_209 = arith.constant 0 : index
    %c0_210 = arith.constant 0 : index
    %220 = vector.load %arg5[%c8_208, %c0_209, %c0_210] : memref<9x8x16xf32, #tpu.memory_space<vmem>>, vector<1x8x16xf32>
    %221 = vector.shape_cast %220 : vector<1x8x16xf32> to vector<8x16xf32>
    %cst_211 = arith.constant dense<0.000000e+00> : vector<80x16xf32>
    %222 = tpu.matmul %219, %221, %cst_211 {dimension_numbers = #tpu.dot_dimension_numbers<[1], [0], [0], [1], [0, 0, 1, 1], [], []>} : vector<80x8xf32>, vector<8x16xf32>, vector<80x16xf32> -> vector<80x16xf32>
    %223 = arith.addf %218, %222 : vector<80x16xf32>
    %c0_212 = arith.constant 0 : index
    %c0_213 = arith.constant 0 : index
    %224 = vector.load %arg10[%c0_212, %c0_213] : memref<1x16xf32, #tpu.memory_space<vmem>>, vector<1x16xf32>
    %225 = vector.broadcast %224 : vector<1x16xf32> to vector<80x16xf32>
    %226 = arith.mulf %223, %225 : vector<80x16xf32>
    %c0_214 = arith.constant 0 : index
    %c0_215 = arith.constant 0 : index
    %227 = vector.load %arg15[%c0_214, %c0_215] : memref<1x16xf32, #tpu.memory_space<vmem>>, vector<1x16xf32>
    %228 = vector.broadcast %227 : vector<1x16xf32> to vector<80x16xf32>
    %229 = arith.addf %226, %228 : vector<80x16xf32>
    %cst_216 = arith.constant 0.000000e+00 : f32
    %230 = vector.broadcast %cst_216 : f32 to vector<80x16xf32>
    %231 = arith.maximumf %229, %230 : vector<80x16xf32>
    %232 = tpu.iota {dimensions = array<i32: 0>} : vector<4x8xi32>
    %233 = tpu.iota {dimensions = array<i32: 1>} : vector<4x8xi32>
    %c2_i32_217 = arith.constant 2 : i32
    %234 = vector.broadcast %c2_i32_217 : i32 to vector<4x8xi32>
    %235 = arith.muli %234, %232 : vector<4x8xi32>
    %236 = arith.cmpi eq, %233, %235 : vector<4x8xi32>
    %237 = arith.extui %236 : vector<4x8xi1> to vector<4x8xi32>
    %238 = arith.sitofp %237 : vector<4x8xi32> to vector<4x8xf32>
    %c2_i32_218 = arith.constant 2 : i32
    %239 = vector.broadcast %c2_i32_218 : i32 to vector<4x8xi32>
    %240 = arith.muli %239, %232 : vector<4x8xi32>
    %c1_i32_219 = arith.constant 1 : i32
    %241 = vector.broadcast %c1_i32_219 : i32 to vector<4x8xi32>
    %242 = arith.addi %240, %241 : vector<4x8xi32>
    %243 = arith.cmpi eq, %233, %242 : vector<4x8xi32>
    %244 = arith.extui %243 : vector<4x8xi1> to vector<4x8xi32>
    %245 = arith.sitofp %244 : vector<4x8xi32> to vector<4x8xf32>
    %246 = vector.extract_strided_slice %231 {offsets = [0, 0], sizes = [8, 16], strides = [1, 1]} : vector<80x16xf32> to vector<8x16xf32>
    %247 = vector.extract_strided_slice %231 {offsets = [10, 0], sizes = [8, 16], strides = [1, 1]} : vector<80x16xf32> to vector<8x16xf32>
    %248 = arith.maximumf %246, %247 : vector<8x16xf32>
    %cst_220 = arith.constant dense<0.000000e+00> : vector<4x16xf32>
    %249 = tpu.matmul %238, %248, %cst_220 {dimension_numbers = #tpu.dot_dimension_numbers<[1], [0], [0], [1], [0, 0, 1, 1], [], []>} : vector<4x8xf32>, vector<8x16xf32>, vector<4x16xf32> -> vector<4x16xf32>
    %cst_221 = arith.constant dense<0.000000e+00> : vector<4x16xf32>
    %250 = tpu.matmul %245, %248, %cst_221 {dimension_numbers = #tpu.dot_dimension_numbers<[1], [0], [0], [1], [0, 0, 1, 1], [], []>} : vector<4x8xf32>, vector<8x16xf32>, vector<4x16xf32> -> vector<4x16xf32>
    %251 = arith.maximumf %249, %250 : vector<4x16xf32>
    %c7_222 = arith.constant 7 : index
    %c0_223 = arith.constant 0 : index
    %252 = vector.load %arg22[%c7_222, %c0_223] : memref<42x16xf32, #tpu.memory_space<vmem>>, vector<4x16xf32>
    tpu.vector_store %arg22[%c7_222, %c0_223], %251 {strides = array<i32>} : memref<42x16xf32, #tpu.memory_space<vmem>>, vector<4x16xf32>,
    %253 = vector.extract_strided_slice %231 {offsets = [20, 0], sizes = [8, 16], strides = [1, 1]} : vector<80x16xf32> to vector<8x16xf32>
    %254 = vector.extract_strided_slice %231 {offsets = [30, 0], sizes = [8, 16], strides = [1, 1]} : vector<80x16xf32> to vector<8x16xf32>
    %255 = arith.maximumf %253, %254 : vector<8x16xf32>
    %cst_224 = arith.constant dense<0.000000e+00> : vector<4x16xf32>
    %256 = tpu.matmul %238, %255, %cst_224 {dimension_numbers = #tpu.dot_dimension_numbers<[1], [0], [0], [1], [0, 0, 1, 1], [], []>} : vector<4x8xf32>, vector<8x16xf32>, vector<4x16xf32> -> vector<4x16xf32>
    %cst_225 = arith.constant dense<0.000000e+00> : vector<4x16xf32>
    %257 = tpu.matmul %245, %255, %cst_225 {dimension_numbers = #tpu.dot_dimension_numbers<[1], [0], [0], [1], [0, 0, 1, 1], [], []>} : vector<4x8xf32>, vector<8x16xf32>, vector<4x16xf32> -> vector<4x16xf32>
    %258 = arith.maximumf %256, %257 : vector<4x16xf32>
    %c13_226 = arith.constant 13 : index
    %c0_227 = arith.constant 0 : index
    %259 = vector.load %arg22[%c13_226, %c0_227] : memref<42x16xf32, #tpu.memory_space<vmem>>, vector<4x16xf32>
    tpu.vector_store %arg22[%c13_226, %c0_227], %258 {strides = array<i32>} : memref<42x16xf32, #tpu.memory_space<vmem>>, vector<4x16xf32>,
    %260 = vector.extract_strided_slice %231 {offsets = [40, 0], sizes = [8, 16], strides = [1, 1]} : vector<80x16xf32> to vector<8x16xf32>
    %261 = vector.extract_strided_slice %231 {offsets = [50, 0], sizes = [8, 16], strides = [1, 1]} : vector<80x16xf32> to vector<8x16xf32>
    %262 = arith.maximumf %260, %261 : vector<8x16xf32>
    %cst_228 = arith.constant dense<0.000000e+00> : vector<4x16xf32>
    %263 = tpu.matmul %238, %262, %cst_228 {dimension_numbers = #tpu.dot_dimension_numbers<[1], [0], [0], [1], [0, 0, 1, 1], [], []>} : vector<4x8xf32>, vector<8x16xf32>, vector<4x16xf32> -> vector<4x16xf32>
    %cst_229 = arith.constant dense<0.000000e+00> : vector<4x16xf32>
    %264 = tpu.matmul %245, %262, %cst_229 {dimension_numbers = #tpu.dot_dimension_numbers<[1], [0], [0], [1], [0, 0, 1, 1], [], []>} : vector<4x8xf32>, vector<8x16xf32>, vector<4x16xf32> -> vector<4x16xf32>
    %265 = arith.maximumf %263, %264 : vector<4x16xf32>
    %c19_230 = arith.constant 19 : index
    %c0_231 = arith.constant 0 : index
    %266 = vector.load %arg22[%c19_230, %c0_231] : memref<42x16xf32, #tpu.memory_space<vmem>>, vector<4x16xf32>
    tpu.vector_store %arg22[%c19_230, %c0_231], %265 {strides = array<i32>} : memref<42x16xf32, #tpu.memory_space<vmem>>, vector<4x16xf32>,
    %267 = vector.extract_strided_slice %231 {offsets = [60, 0], sizes = [8, 16], strides = [1, 1]} : vector<80x16xf32> to vector<8x16xf32>
    %268 = vector.extract_strided_slice %231 {offsets = [70, 0], sizes = [8, 16], strides = [1, 1]} : vector<80x16xf32> to vector<8x16xf32>
    %269 = arith.maximumf %267, %268 : vector<8x16xf32>
    %cst_232 = arith.constant dense<0.000000e+00> : vector<4x16xf32>
    %270 = tpu.matmul %238, %269, %cst_232 {dimension_numbers = #tpu.dot_dimension_numbers<[1], [0], [0], [1], [0, 0, 1, 1], [], []>} : vector<4x8xf32>, vector<8x16xf32>, vector<4x16xf32> -> vector<4x16xf32>
    %cst_233 = arith.constant dense<0.000000e+00> : vector<4x16xf32>
    %271 = tpu.matmul %245, %269, %cst_233 {dimension_numbers = #tpu.dot_dimension_numbers<[1], [0], [0], [1], [0, 0, 1, 1], [], []>} : vector<4x8xf32>, vector<8x16xf32>, vector<4x16xf32> -> vector<4x16xf32>
    %272 = arith.maximumf %270, %271 : vector<4x16xf32>
    %c25 = arith.constant 25 : index
    %c0_234 = arith.constant 0 : index
    %273 = vector.load %arg22[%c25, %c0_234] : memref<42x16xf32, #tpu.memory_space<vmem>>, vector<4x16xf32>
    tpu.vector_store %arg22[%c25, %c0_234], %272 {strides = array<i32>} : memref<42x16xf32, #tpu.memory_space<vmem>>, vector<4x16xf32>,
    %c0_235 = arith.constant 0 : index
    %c0_236 = arith.constant 0 : index
    %274 = vector.load %arg22[%c0_235, %c0_236] : memref<42x16xf32, #tpu.memory_space<vmem>>, vector<24x16xf32>
    %c0_237 = arith.constant 0 : index
    %c0_238 = arith.constant 0 : index
    %c0_239 = arith.constant 0 : index
    %275 = vector.load %arg6[%c0_237, %c0_238, %c0_239] : memref<9x16x32xf32, #tpu.memory_space<vmem>>, vector<1x16x32xf32>
    %276 = vector.shape_cast %275 : vector<1x16x32xf32> to vector<16x32xf32>
    %cst_240 = arith.constant dense<0.000000e+00> : vector<24x32xf32>
    %277 = tpu.matmul %274, %276, %cst_240 {dimension_numbers = #tpu.dot_dimension_numbers<[1], [0], [0], [1], [0, 0, 1, 1], [], []>} : vector<24x16xf32>, vector<16x32xf32>, vector<24x32xf32> -> vector<24x32xf32>
    %c1_241 = arith.constant 1 : index
    %c0_242 = arith.constant 0 : index
    %278 = vector.load %arg22[%c1_241, %c0_242] : memref<42x16xf32, #tpu.memory_space<vmem>>, vector<24x16xf32>
    %c1_243 = arith.constant 1 : index
    %c0_244 = arith.constant 0 : index
    %c0_245 = arith.constant 0 : index
    %279 = vector.load %arg6[%c1_243, %c0_244, %c0_245] : memref<9x16x32xf32, #tpu.memory_space<vmem>>, vector<1x16x32xf32>
    %280 = vector.shape_cast %279 : vector<1x16x32xf32> to vector<16x32xf32>
    %cst_246 = arith.constant dense<0.000000e+00> : vector<24x32xf32>
    %281 = tpu.matmul %278, %280, %cst_246 {dimension_numbers = #tpu.dot_dimension_numbers<[1], [0], [0], [1], [0, 0, 1, 1], [], []>} : vector<24x16xf32>, vector<16x32xf32>, vector<24x32xf32> -> vector<24x32xf32>
    %282 = arith.addf %277, %281 : vector<24x32xf32>
    %c2_247 = arith.constant 2 : index
    %c0_248 = arith.constant 0 : index
    %283 = vector.load %arg22[%c2_247, %c0_248] : memref<42x16xf32, #tpu.memory_space<vmem>>, vector<24x16xf32>
    %c2_249 = arith.constant 2 : index
    %c0_250 = arith.constant 0 : index
    %c0_251 = arith.constant 0 : index
    %284 = vector.load %arg6[%c2_249, %c0_250, %c0_251] : memref<9x16x32xf32, #tpu.memory_space<vmem>>, vector<1x16x32xf32>
    %285 = vector.shape_cast %284 : vector<1x16x32xf32> to vector<16x32xf32>
    %cst_252 = arith.constant dense<0.000000e+00> : vector<24x32xf32>
    %286 = tpu.matmul %283, %285, %cst_252 {dimension_numbers = #tpu.dot_dimension_numbers<[1], [0], [0], [1], [0, 0, 1, 1], [], []>} : vector<24x16xf32>, vector<16x32xf32>, vector<24x32xf32> -> vector<24x32xf32>
    %287 = arith.addf %282, %286 : vector<24x32xf32>
    %c6_253 = arith.constant 6 : index
    %c0_254 = arith.constant 0 : index
    %288 = vector.load %arg22[%c6_253, %c0_254] : memref<42x16xf32, #tpu.memory_space<vmem>>, vector<24x16xf32>
    %c3_255 = arith.constant 3 : index
    %c0_256 = arith.constant 0 : index
    %c0_257 = arith.constant 0 : index
    %289 = vector.load %arg6[%c3_255, %c0_256, %c0_257] : memref<9x16x32xf32, #tpu.memory_space<vmem>>, vector<1x16x32xf32>
    %290 = vector.shape_cast %289 : vector<1x16x32xf32> to vector<16x32xf32>
    %cst_258 = arith.constant dense<0.000000e+00> : vector<24x32xf32>
    %291 = tpu.matmul %288, %290, %cst_258 {dimension_numbers = #tpu.dot_dimension_numbers<[1], [0], [0], [1], [0, 0, 1, 1], [], []>} : vector<24x16xf32>, vector<16x32xf32>, vector<24x32xf32> -> vector<24x32xf32>
    %292 = arith.addf %287, %291 : vector<24x32xf32>
    %c7_259 = arith.constant 7 : index
    %c0_260 = arith.constant 0 : index
    %293 = vector.load %arg22[%c7_259, %c0_260] : memref<42x16xf32, #tpu.memory_space<vmem>>, vector<24x16xf32>
    %c4_261 = arith.constant 4 : index
    %c0_262 = arith.constant 0 : index
    %c0_263 = arith.constant 0 : index
    %294 = vector.load %arg6[%c4_261, %c0_262, %c0_263] : memref<9x16x32xf32, #tpu.memory_space<vmem>>, vector<1x16x32xf32>
    %295 = vector.shape_cast %294 : vector<1x16x32xf32> to vector<16x32xf32>
    %cst_264 = arith.constant dense<0.000000e+00> : vector<24x32xf32>
    %296 = tpu.matmul %293, %295, %cst_264 {dimension_numbers = #tpu.dot_dimension_numbers<[1], [0], [0], [1], [0, 0, 1, 1], [], []>} : vector<24x16xf32>, vector<16x32xf32>, vector<24x32xf32> -> vector<24x32xf32>
    %297 = arith.addf %292, %296 : vector<24x32xf32>
    %c8_265 = arith.constant 8 : index
    %c0_266 = arith.constant 0 : index
    %298 = vector.load %arg22[%c8_265, %c0_266] : memref<42x16xf32, #tpu.memory_space<vmem>>, vector<24x16xf32>
    %c5_267 = arith.constant 5 : index
    %c0_268 = arith.constant 0 : index
    %c0_269 = arith.constant 0 : index
    %299 = vector.load %arg6[%c5_267, %c0_268, %c0_269] : memref<9x16x32xf32, #tpu.memory_space<vmem>>, vector<1x16x32xf32>
    %300 = vector.shape_cast %299 : vector<1x16x32xf32> to vector<16x32xf32>
    %cst_270 = arith.constant dense<0.000000e+00> : vector<24x32xf32>
    %301 = tpu.matmul %298, %300, %cst_270 {dimension_numbers = #tpu.dot_dimension_numbers<[1], [0], [0], [1], [0, 0, 1, 1], [], []>} : vector<24x16xf32>, vector<16x32xf32>, vector<24x32xf32> -> vector<24x32xf32>
    %302 = arith.addf %297, %301 : vector<24x32xf32>
    %c12_271 = arith.constant 12 : index
    %c0_272 = arith.constant 0 : index
    %303 = vector.load %arg22[%c12_271, %c0_272] : memref<42x16xf32, #tpu.memory_space<vmem>>, vector<24x16xf32>
    %c6_273 = arith.constant 6 : index
    %c0_274 = arith.constant 0 : index
    %c0_275 = arith.constant 0 : index
    %304 = vector.load %arg6[%c6_273, %c0_274, %c0_275] : memref<9x16x32xf32, #tpu.memory_space<vmem>>, vector<1x16x32xf32>
    %305 = vector.shape_cast %304 : vector<1x16x32xf32> to vector<16x32xf32>
    %cst_276 = arith.constant dense<0.000000e+00> : vector<24x32xf32>
    %306 = tpu.matmul %303, %305, %cst_276 {dimension_numbers = #tpu.dot_dimension_numbers<[1], [0], [0], [1], [0, 0, 1, 1], [], []>} : vector<24x16xf32>, vector<16x32xf32>, vector<24x32xf32> -> vector<24x32xf32>
    %307 = arith.addf %302, %306 : vector<24x32xf32>
    %c13_277 = arith.constant 13 : index
    %c0_278 = arith.constant 0 : index
    %308 = vector.load %arg22[%c13_277, %c0_278] : memref<42x16xf32, #tpu.memory_space<vmem>>, vector<24x16xf32>
    %c7_279 = arith.constant 7 : index
    %c0_280 = arith.constant 0 : index
    %c0_281 = arith.constant 0 : index
    %309 = vector.load %arg6[%c7_279, %c0_280, %c0_281] : memref<9x16x32xf32, #tpu.memory_space<vmem>>, vector<1x16x32xf32>
    %310 = vector.shape_cast %309 : vector<1x16x32xf32> to vector<16x32xf32>
    %cst_282 = arith.constant dense<0.000000e+00> : vector<24x32xf32>
    %311 = tpu.matmul %308, %310, %cst_282 {dimension_numbers = #tpu.dot_dimension_numbers<[1], [0], [0], [1], [0, 0, 1, 1], [], []>} : vector<24x16xf32>, vector<16x32xf32>, vector<24x32xf32> -> vector<24x32xf32>
    %312 = arith.addf %307, %311 : vector<24x32xf32>
    %c14_283 = arith.constant 14 : index
    %c0_284 = arith.constant 0 : index
    %313 = vector.load %arg22[%c14_283, %c0_284] : memref<42x16xf32, #tpu.memory_space<vmem>>, vector<24x16xf32>
    %c8_285 = arith.constant 8 : index
    %c0_286 = arith.constant 0 : index
    %c0_287 = arith.constant 0 : index
    %314 = vector.load %arg6[%c8_285, %c0_286, %c0_287] : memref<9x16x32xf32, #tpu.memory_space<vmem>>, vector<1x16x32xf32>
    %315 = vector.shape_cast %314 : vector<1x16x32xf32> to vector<16x32xf32>
    %cst_288 = arith.constant dense<0.000000e+00> : vector<24x32xf32>
    %316 = tpu.matmul %313, %315, %cst_288 {dimension_numbers = #tpu.dot_dimension_numbers<[1], [0], [0], [1], [0, 0, 1, 1], [], []>} : vector<24x16xf32>, vector<16x32xf32>, vector<24x32xf32> -> vector<24x32xf32>
    %317 = arith.addf %312, %316 : vector<24x32xf32>
    %c0_289 = arith.constant 0 : index
    %c0_290 = arith.constant 0 : index
    %318 = vector.load %arg11[%c0_289, %c0_290] : memref<1x32xf32, #tpu.memory_space<vmem>>, vector<1x32xf32>
    %319 = vector.broadcast %318 : vector<1x32xf32> to vector<24x32xf32>
    %320 = arith.mulf %317, %319 : vector<24x32xf32>
    %c0_291 = arith.constant 0 : index
    %c0_292 = arith.constant 0 : index
    %321 = vector.load %arg16[%c0_291, %c0_292] : memref<1x32xf32, #tpu.memory_space<vmem>>, vector<1x32xf32>
    %322 = vector.broadcast %321 : vector<1x32xf32> to vector<24x32xf32>
    %323 = arith.addf %320, %322 : vector<24x32xf32>
    %cst_293 = arith.constant 0.000000e+00 : f32
    %324 = vector.broadcast %cst_293 : f32 to vector<24x32xf32>
    %325 = arith.maximumf %323, %324 : vector<24x32xf32>
    %326 = tpu.iota {dimensions = array<i32: 0>} : vector<2x4xi32>
    %327 = tpu.iota {dimensions = array<i32: 1>} : vector<2x4xi32>
    %c2_i32_294 = arith.constant 2 : i32
    %328 = vector.broadcast %c2_i32_294 : i32 to vector<2x4xi32>
    %329 = arith.muli %328, %326 : vector<2x4xi32>
    %330 = arith.cmpi eq, %327, %329 : vector<2x4xi32>
    %331 = arith.extui %330 : vector<2x4xi1> to vector<2x4xi32>
    %332 = arith.sitofp %331 : vector<2x4xi32> to vector<2x4xf32>
    %c2_i32_295 = arith.constant 2 : i32
    %333 = vector.broadcast %c2_i32_295 : i32 to vector<2x4xi32>
    %334 = arith.muli %333, %326 : vector<2x4xi32>
    %c1_i32_296 = arith.constant 1 : i32
    %335 = vector.broadcast %c1_i32_296 : i32 to vector<2x4xi32>
    %336 = arith.addi %334, %335 : vector<2x4xi32>
    %337 = arith.cmpi eq, %327, %336 : vector<2x4xi32>
    %338 = arith.extui %337 : vector<2x4xi1> to vector<2x4xi32>
    %339 = arith.sitofp %338 : vector<2x4xi32> to vector<2x4xf32>
    %340 = vector.extract_strided_slice %325 {offsets = [0, 0], sizes = [4, 32], strides = [1, 1]} : vector<24x32xf32> to vector<4x32xf32>
    %341 = vector.extract_strided_slice %325 {offsets = [6, 0], sizes = [4, 32], strides = [1, 1]} : vector<24x32xf32> to vector<4x32xf32>
    %342 = arith.maximumf %340, %341 : vector<4x32xf32>
    %cst_297 = arith.constant dense<0.000000e+00> : vector<2x32xf32>
    %343 = tpu.matmul %332, %342, %cst_297 {dimension_numbers = #tpu.dot_dimension_numbers<[1], [0], [0], [1], [0, 0, 1, 1], [], []>} : vector<2x4xf32>, vector<4x32xf32>, vector<2x32xf32> -> vector<2x32xf32>
    %cst_298 = arith.constant dense<0.000000e+00> : vector<2x32xf32>
    %344 = tpu.matmul %339, %342, %cst_298 {dimension_numbers = #tpu.dot_dimension_numbers<[1], [0], [0], [1], [0, 0, 1, 1], [], []>} : vector<2x4xf32>, vector<4x32xf32>, vector<2x32xf32> -> vector<2x32xf32>
    %345 = arith.maximumf %343, %344 : vector<2x32xf32>
    %c5_299 = arith.constant 5 : index
    %c0_300 = arith.constant 0 : index
    %346 = vector.load %arg23[%c5_299, %c0_300] : memref<20x32xf32, #tpu.memory_space<vmem>>, vector<2x32xf32>
    tpu.vector_store %arg23[%c5_299, %c0_300], %345 {strides = array<i32>} : memref<20x32xf32, #tpu.memory_space<vmem>>, vector<2x32xf32>,
    %347 = vector.extract_strided_slice %325 {offsets = [12, 0], sizes = [4, 32], strides = [1, 1]} : vector<24x32xf32> to vector<4x32xf32>
    %348 = vector.extract_strided_slice %325 {offsets = [18, 0], sizes = [4, 32], strides = [1, 1]} : vector<24x32xf32> to vector<4x32xf32>
    %349 = arith.maximumf %347, %348 : vector<4x32xf32>
    %cst_301 = arith.constant dense<0.000000e+00> : vector<2x32xf32>
    %350 = tpu.matmul %332, %349, %cst_301 {dimension_numbers = #tpu.dot_dimension_numbers<[1], [0], [0], [1], [0, 0, 1, 1], [], []>} : vector<2x4xf32>, vector<4x32xf32>, vector<2x32xf32> -> vector<2x32xf32>
    %cst_302 = arith.constant dense<0.000000e+00> : vector<2x32xf32>
    %351 = tpu.matmul %339, %349, %cst_302 {dimension_numbers = #tpu.dot_dimension_numbers<[1], [0], [0], [1], [0, 0, 1, 1], [], []>} : vector<2x4xf32>, vector<4x32xf32>, vector<2x32xf32> -> vector<2x32xf32>
    %352 = arith.maximumf %350, %351 : vector<2x32xf32>
    %c9_303 = arith.constant 9 : index
    %c0_304 = arith.constant 0 : index
    %353 = vector.load %arg23[%c9_303, %c0_304] : memref<20x32xf32, #tpu.memory_space<vmem>>, vector<2x32xf32>
    tpu.vector_store %arg23[%c9_303, %c0_304], %352 {strides = array<i32>} : memref<20x32xf32, #tpu.memory_space<vmem>>, vector<2x32xf32>,
    %c0_305 = arith.constant 0 : index
    %c0_306 = arith.constant 0 : index
    %354 = vector.load %arg23[%c0_305, %c0_306] : memref<20x32xf32, #tpu.memory_space<vmem>>, vector<8x32xf32>
    %c0_307 = arith.constant 0 : index
    %c0_308 = arith.constant 0 : index
    %c0_309 = arith.constant 0 : index
    %355 = vector.load %arg7[%c0_307, %c0_308, %c0_309] : memref<9x32x64xf32, #tpu.memory_space<vmem>>, vector<1x32x64xf32>
    %356 = vector.shape_cast %355 : vector<1x32x64xf32> to vector<32x64xf32>
    %cst_310 = arith.constant dense<0.000000e+00> : vector<8x64xf32>
    %357 = tpu.matmul %354, %356, %cst_310 {dimension_numbers = #tpu.dot_dimension_numbers<[1], [0], [0], [1], [0, 0, 1, 1], [], []>} : vector<8x32xf32>, vector<32x64xf32>, vector<8x64xf32> -> vector<8x64xf32>
    %c1_311 = arith.constant 1 : index
    %c0_312 = arith.constant 0 : index
    %358 = vector.load %arg23[%c1_311, %c0_312] : memref<20x32xf32, #tpu.memory_space<vmem>>, vector<8x32xf32>
    %c1_313 = arith.constant 1 : index
    %c0_314 = arith.constant 0 : index
    %c0_315 = arith.constant 0 : index
    %359 = vector.load %arg7[%c1_313, %c0_314, %c0_315] : memref<9x32x64xf32, #tpu.memory_space<vmem>>, vector<1x32x64xf32>
    %360 = vector.shape_cast %359 : vector<1x32x64xf32> to vector<32x64xf32>
    %cst_316 = arith.constant dense<0.000000e+00> : vector<8x64xf32>
    %361 = tpu.matmul %358, %360, %cst_316 {dimension_numbers = #tpu.dot_dimension_numbers<[1], [0], [0], [1], [0, 0, 1, 1], [], []>} : vector<8x32xf32>, vector<32x64xf32>, vector<8x64xf32> -> vector<8x64xf32>
    %362 = arith.addf %357, %361 : vector<8x64xf32>
    %c2_317 = arith.constant 2 : index
    %c0_318 = arith.constant 0 : index
    %363 = vector.load %arg23[%c2_317, %c0_318] : memref<20x32xf32, #tpu.memory_space<vmem>>, vector<8x32xf32>
    %c2_319 = arith.constant 2 : index
    %c0_320 = arith.constant 0 : index
    %c0_321 = arith.constant 0 : index
    %364 = vector.load %arg7[%c2_319, %c0_320, %c0_321] : memref<9x32x64xf32, #tpu.memory_space<vmem>>, vector<1x32x64xf32>
    %365 = vector.shape_cast %364 : vector<1x32x64xf32> to vector<32x64xf32>
    %cst_322 = arith.constant dense<0.000000e+00> : vector<8x64xf32>
    %366 = tpu.matmul %363, %365, %cst_322 {dimension_numbers = #tpu.dot_dimension_numbers<[1], [0], [0], [1], [0, 0, 1, 1], [], []>} : vector<8x32xf32>, vector<32x64xf32>, vector<8x64xf32> -> vector<8x64xf32>
    %367 = arith.addf %362, %366 : vector<8x64xf32>
    %c4_323 = arith.constant 4 : index
    %c0_324 = arith.constant 0 : index
    %368 = vector.load %arg23[%c4_323, %c0_324] : memref<20x32xf32, #tpu.memory_space<vmem>>, vector<8x32xf32>
    %c3_325 = arith.constant 3 : index
    %c0_326 = arith.constant 0 : index
    %c0_327 = arith.constant 0 : index
    %369 = vector.load %arg7[%c3_325, %c0_326, %c0_327] : memref<9x32x64xf32, #tpu.memory_space<vmem>>, vector<1x32x64xf32>
    %370 = vector.shape_cast %369 : vector<1x32x64xf32> to vector<32x64xf32>
    %cst_328 = arith.constant dense<0.000000e+00> : vector<8x64xf32>
    %371 = tpu.matmul %368, %370, %cst_328 {dimension_numbers = #tpu.dot_dimension_numbers<[1], [0], [0], [1], [0, 0, 1, 1], [], []>} : vector<8x32xf32>, vector<32x64xf32>, vector<8x64xf32> -> vector<8x64xf32>
    %372 = arith.addf %367, %371 : vector<8x64xf32>
    %c5_329 = arith.constant 5 : index
    %c0_330 = arith.constant 0 : index
    %373 = vector.load %arg23[%c5_329, %c0_330] : memref<20x32xf32, #tpu.memory_space<vmem>>, vector<8x32xf32>
    %c4_331 = arith.constant 4 : index
    %c0_332 = arith.constant 0 : index
    %c0_333 = arith.constant 0 : index
    %374 = vector.load %arg7[%c4_331, %c0_332, %c0_333] : memref<9x32x64xf32, #tpu.memory_space<vmem>>, vector<1x32x64xf32>
    %375 = vector.shape_cast %374 : vector<1x32x64xf32> to vector<32x64xf32>
    %cst_334 = arith.constant dense<0.000000e+00> : vector<8x64xf32>
    %376 = tpu.matmul %373, %375, %cst_334 {dimension_numbers = #tpu.dot_dimension_numbers<[1], [0], [0], [1], [0, 0, 1, 1], [], []>} : vector<8x32xf32>, vector<32x64xf32>, vector<8x64xf32> -> vector<8x64xf32>
    %377 = arith.addf %372, %376 : vector<8x64xf32>
    %c6_335 = arith.constant 6 : index
    %c0_336 = arith.constant 0 : index
    %378 = vector.load %arg23[%c6_335, %c0_336] : memref<20x32xf32, #tpu.memory_space<vmem>>, vector<8x32xf32>
    %c5_337 = arith.constant 5 : index
    %c0_338 = arith.constant 0 : index
    %c0_339 = arith.constant 0 : index
    %379 = vector.load %arg7[%c5_337, %c0_338, %c0_339] : memref<9x32x64xf32, #tpu.memory_space<vmem>>, vector<1x32x64xf32>
    %380 = vector.shape_cast %379 : vector<1x32x64xf32> to vector<32x64xf32>
    %cst_340 = arith.constant dense<0.000000e+00> : vector<8x64xf32>
    %381 = tpu.matmul %378, %380, %cst_340 {dimension_numbers = #tpu.dot_dimension_numbers<[1], [0], [0], [1], [0, 0, 1, 1], [], []>} : vector<8x32xf32>, vector<32x64xf32>, vector<8x64xf32> -> vector<8x64xf32>
    %382 = arith.addf %377, %381 : vector<8x64xf32>
    %c8_341 = arith.constant 8 : index
    %c0_342 = arith.constant 0 : index
    %383 = vector.load %arg23[%c8_341, %c0_342] : memref<20x32xf32, #tpu.memory_space<vmem>>, vector<8x32xf32>
    %c6_343 = arith.constant 6 : index
    %c0_344 = arith.constant 0 : index
    %c0_345 = arith.constant 0 : index
    %384 = vector.load %arg7[%c6_343, %c0_344, %c0_345] : memref<9x32x64xf32, #tpu.memory_space<vmem>>, vector<1x32x64xf32>
    %385 = vector.shape_cast %384 : vector<1x32x64xf32> to vector<32x64xf32>
    %cst_346 = arith.constant dense<0.000000e+00> : vector<8x64xf32>
    %386 = tpu.matmul %383, %385, %cst_346 {dimension_numbers = #tpu.dot_dimension_numbers<[1], [0], [0], [1], [0, 0, 1, 1], [], []>} : vector<8x32xf32>, vector<32x64xf32>, vector<8x64xf32> -> vector<8x64xf32>
    %387 = arith.addf %382, %386 : vector<8x64xf32>
    %c9_347 = arith.constant 9 : index
    %c0_348 = arith.constant 0 : index
    %388 = vector.load %arg23[%c9_347, %c0_348] : memref<20x32xf32, #tpu.memory_space<vmem>>, vector<8x32xf32>
    %c7_349 = arith.constant 7 : index
    %c0_350 = arith.constant 0 : index
    %c0_351 = arith.constant 0 : index
    %389 = vector.load %arg7[%c7_349, %c0_350, %c0_351] : memref<9x32x64xf32, #tpu.memory_space<vmem>>, vector<1x32x64xf32>
    %390 = vector.shape_cast %389 : vector<1x32x64xf32> to vector<32x64xf32>
    %cst_352 = arith.constant dense<0.000000e+00> : vector<8x64xf32>
    %391 = tpu.matmul %388, %390, %cst_352 {dimension_numbers = #tpu.dot_dimension_numbers<[1], [0], [0], [1], [0, 0, 1, 1], [], []>} : vector<8x32xf32>, vector<32x64xf32>, vector<8x64xf32> -> vector<8x64xf32>
    %392 = arith.addf %387, %391 : vector<8x64xf32>
    %c10_353 = arith.constant 10 : index
    %c0_354 = arith.constant 0 : index
    %393 = vector.load %arg23[%c10_353, %c0_354] : memref<20x32xf32, #tpu.memory_space<vmem>>, vector<8x32xf32>
    %c8_355 = arith.constant 8 : index
    %c0_356 = arith.constant 0 : index
    %c0_357 = arith.constant 0 : index
    %394 = vector.load %arg7[%c8_355, %c0_356, %c0_357] : memref<9x32x64xf32, #tpu.memory_space<vmem>>, vector<1x32x64xf32>
    %395 = vector.shape_cast %394 : vector<1x32x64xf32> to vector<32x64xf32>
    %cst_358 = arith.constant dense<0.000000e+00> : vector<8x64xf32>
    %396 = tpu.matmul %393, %395, %cst_358 {dimension_numbers = #tpu.dot_dimension_numbers<[1], [0], [0], [1], [0, 0, 1, 1], [], []>} : vector<8x32xf32>, vector<32x64xf32>, vector<8x64xf32> -> vector<8x64xf32>
    %397 = arith.addf %392, %396 : vector<8x64xf32>
    %c0_359 = arith.constant 0 : index
    %c0_360 = arith.constant 0 : index
    %398 = vector.load %arg12[%c0_359, %c0_360] : memref<1x64xf32, #tpu.memory_space<vmem>>, vector<1x64xf32>
    %399 = vector.broadcast %398 : vector<1x64xf32> to vector<8x64xf32>
    %400 = arith.mulf %397, %399 : vector<8x64xf32>
    %c0_361 = arith.constant 0 : index
    %c0_362 = arith.constant 0 : index
    %401 = vector.load %arg17[%c0_361, %c0_362] : memref<1x64xf32, #tpu.memory_space<vmem>>, vector<1x64xf32>
    %402 = vector.broadcast %401 : vector<1x64xf32> to vector<8x64xf32>
    %403 = arith.addf %400, %402 : vector<8x64xf32>
    %cst_363 = arith.constant 0.000000e+00 : f32
    %404 = vector.broadcast %cst_363 : f32 to vector<8x64xf32>
    %405 = arith.maximumf %403, %404 : vector<8x64xf32>
    %406 = vector.extract_strided_slice %405 {offsets = [0, 0], sizes = [2, 64], strides = [1, 1]} : vector<8x64xf32> to vector<2x64xf32>
    %c5_364 = arith.constant 5 : index
    %c0_365 = arith.constant 0 : index
    %407 = vector.load %arg24[%c5_364, %c0_365] : memref<20x64xf32, #tpu.memory_space<vmem>>, vector<2x64xf32>
    tpu.vector_store %arg24[%c5_364, %c0_365], %406 {strides = array<i32>} : memref<20x64xf32, #tpu.memory_space<vmem>>, vector<2x64xf32>,
    %408 = vector.extract_strided_slice %405 {offsets = [4, 0], sizes = [2, 64], strides = [1, 1]} : vector<8x64xf32> to vector<2x64xf32>
    %c9_366 = arith.constant 9 : index
    %c0_367 = arith.constant 0 : index
    %409 = vector.load %arg24[%c9_366, %c0_367] : memref<20x64xf32, #tpu.memory_space<vmem>>, vector<2x64xf32>
    tpu.vector_store %arg24[%c9_366, %c0_367], %408 {strides = array<i32>} : memref<20x64xf32, #tpu.memory_space<vmem>>, vector<2x64xf32>,
    %c0_368 = arith.constant 0 : index
    %c0_369 = arith.constant 0 : index
    %410 = vector.load %arg24[%c0_368, %c0_369] : memref<20x64xf32, #tpu.memory_space<vmem>>, vector<8x64xf32>
    %c0_370 = arith.constant 0 : index
    %c0_371 = arith.constant 0 : index
    %c0_372 = arith.constant 0 : index
    %411 = vector.load %arg8[%c0_370, %c0_371, %c0_372] : memref<9x64x3xf32, #tpu.memory_space<vmem>>, vector<1x64x3xf32>
    %412 = vector.shape_cast %411 : vector<1x64x3xf32> to vector<64x3xf32>
    %cst_373 = arith.constant dense<0.000000e+00> : vector<8x3xf32>
    %413 = tpu.matmul %410, %412, %cst_373 {dimension_numbers = #tpu.dot_dimension_numbers<[1], [0], [0], [1], [0, 0, 1, 1], [], []>} : vector<8x64xf32>, vector<64x3xf32>, vector<8x3xf32> -> vector<8x3xf32>
    %c1_374 = arith.constant 1 : index
    %c0_375 = arith.constant 0 : index
    %414 = vector.load %arg24[%c1_374, %c0_375] : memref<20x64xf32, #tpu.memory_space<vmem>>, vector<8x64xf32>
    %c1_376 = arith.constant 1 : index
    %c0_377 = arith.constant 0 : index
    %c0_378 = arith.constant 0 : index
    %415 = vector.load %arg8[%c1_376, %c0_377, %c0_378] : memref<9x64x3xf32, #tpu.memory_space<vmem>>, vector<1x64x3xf32>
    %416 = vector.shape_cast %415 : vector<1x64x3xf32> to vector<64x3xf32>
    %cst_379 = arith.constant dense<0.000000e+00> : vector<8x3xf32>
    %417 = tpu.matmul %414, %416, %cst_379 {dimension_numbers = #tpu.dot_dimension_numbers<[1], [0], [0], [1], [0, 0, 1, 1], [], []>} : vector<8x64xf32>, vector<64x3xf32>, vector<8x3xf32> -> vector<8x3xf32>
    %418 = arith.addf %413, %417 : vector<8x3xf32>
    %c2_380 = arith.constant 2 : index
    %c0_381 = arith.constant 0 : index
    %419 = vector.load %arg24[%c2_380, %c0_381] : memref<20x64xf32, #tpu.memory_space<vmem>>, vector<8x64xf32>
    %c2_382 = arith.constant 2 : index
    %c0_383 = arith.constant 0 : index
    %c0_384 = arith.constant 0 : index
    %420 = vector.load %arg8[%c2_382, %c0_383, %c0_384] : memref<9x64x3xf32, #tpu.memory_space<vmem>>, vector<1x64x3xf32>
    %421 = vector.shape_cast %420 : vector<1x64x3xf32> to vector<64x3xf32>
    %cst_385 = arith.constant dense<0.000000e+00> : vector<8x3xf32>
    %422 = tpu.matmul %419, %421, %cst_385 {dimension_numbers = #tpu.dot_dimension_numbers<[1], [0], [0], [1], [0, 0, 1, 1], [], []>} : vector<8x64xf32>, vector<64x3xf32>, vector<8x3xf32> -> vector<8x3xf32>
    %423 = arith.addf %418, %422 : vector<8x3xf32>
    %c4_386 = arith.constant 4 : index
    %c0_387 = arith.constant 0 : index
    %424 = vector.load %arg24[%c4_386, %c0_387] : memref<20x64xf32, #tpu.memory_space<vmem>>, vector<8x64xf32>
    %c3_388 = arith.constant 3 : index
    %c0_389 = arith.constant 0 : index
    %c0_390 = arith.constant 0 : index
    %425 = vector.load %arg8[%c3_388, %c0_389, %c0_390] : memref<9x64x3xf32, #tpu.memory_space<vmem>>, vector<1x64x3xf32>
    %426 = vector.shape_cast %425 : vector<1x64x3xf32> to vector<64x3xf32>
    %cst_391 = arith.constant dense<0.000000e+00> : vector<8x3xf32>
    %427 = tpu.matmul %424, %426, %cst_391 {dimension_numbers = #tpu.dot_dimension_numbers<[1], [0], [0], [1], [0, 0, 1, 1], [], []>} : vector<8x64xf32>, vector<64x3xf32>, vector<8x3xf32> -> vector<8x3xf32>
    %428 = arith.addf %423, %427 : vector<8x3xf32>
    %c5_392 = arith.constant 5 : index
    %c0_393 = arith.constant 0 : index
    %429 = vector.load %arg24[%c5_392, %c0_393] : memref<20x64xf32, #tpu.memory_space<vmem>>, vector<8x64xf32>
    %c4_394 = arith.constant 4 : index
    %c0_395 = arith.constant 0 : index
    %c0_396 = arith.constant 0 : index
    %430 = vector.load %arg8[%c4_394, %c0_395, %c0_396] : memref<9x64x3xf32, #tpu.memory_space<vmem>>, vector<1x64x3xf32>
    %431 = vector.shape_cast %430 : vector<1x64x3xf32> to vector<64x3xf32>
    %cst_397 = arith.constant dense<0.000000e+00> : vector<8x3xf32>
    %432 = tpu.matmul %429, %431, %cst_397 {dimension_numbers = #tpu.dot_dimension_numbers<[1], [0], [0], [1], [0, 0, 1, 1], [], []>} : vector<8x64xf32>, vector<64x3xf32>, vector<8x3xf32> -> vector<8x3xf32>
    %433 = arith.addf %428, %432 : vector<8x3xf32>
    %c6_398 = arith.constant 6 : index
    %c0_399 = arith.constant 0 : index
    %434 = vector.load %arg24[%c6_398, %c0_399] : memref<20x64xf32, #tpu.memory_space<vmem>>, vector<8x64xf32>
    %c5_400 = arith.constant 5 : index
    %c0_401 = arith.constant 0 : index
    %c0_402 = arith.constant 0 : index
    %435 = vector.load %arg8[%c5_400, %c0_401, %c0_402] : memref<9x64x3xf32, #tpu.memory_space<vmem>>, vector<1x64x3xf32>
    %436 = vector.shape_cast %435 : vector<1x64x3xf32> to vector<64x3xf32>
    %cst_403 = arith.constant dense<0.000000e+00> : vector<8x3xf32>
    %437 = tpu.matmul %434, %436, %cst_403 {dimension_numbers = #tpu.dot_dimension_numbers<[1], [0], [0], [1], [0, 0, 1, 1], [], []>} : vector<8x64xf32>, vector<64x3xf32>, vector<8x3xf32> -> vector<8x3xf32>
    %438 = arith.addf %433, %437 : vector<8x3xf32>
    %c8_404 = arith.constant 8 : index
    %c0_405 = arith.constant 0 : index
    %439 = vector.load %arg24[%c8_404, %c0_405] : memref<20x64xf32, #tpu.memory_space<vmem>>, vector<8x64xf32>
    %c6_406 = arith.constant 6 : index
    %c0_407 = arith.constant 0 : index
    %c0_408 = arith.constant 0 : index
    %440 = vector.load %arg8[%c6_406, %c0_407, %c0_408] : memref<9x64x3xf32, #tpu.memory_space<vmem>>, vector<1x64x3xf32>
    %441 = vector.shape_cast %440 : vector<1x64x3xf32> to vector<64x3xf32>
    %cst_409 = arith.constant dense<0.000000e+00> : vector<8x3xf32>
    %442 = tpu.matmul %439, %441, %cst_409 {dimension_numbers = #tpu.dot_dimension_numbers<[1], [0], [0], [1], [0, 0, 1, 1], [], []>} : vector<8x64xf32>, vector<64x3xf32>, vector<8x3xf32> -> vector<8x3xf32>
    %443 = arith.addf %438, %442 : vector<8x3xf32>
    %c9_410 = arith.constant 9 : index
    %c0_411 = arith.constant 0 : index
    %444 = vector.load %arg24[%c9_410, %c0_411] : memref<20x64xf32, #tpu.memory_space<vmem>>, vector<8x64xf32>
    %c7_412 = arith.constant 7 : index
    %c0_413 = arith.constant 0 : index
    %c0_414 = arith.constant 0 : index
    %445 = vector.load %arg8[%c7_412, %c0_413, %c0_414] : memref<9x64x3xf32, #tpu.memory_space<vmem>>, vector<1x64x3xf32>
    %446 = vector.shape_cast %445 : vector<1x64x3xf32> to vector<64x3xf32>
    %cst_415 = arith.constant dense<0.000000e+00> : vector<8x3xf32>
    %447 = tpu.matmul %444, %446, %cst_415 {dimension_numbers = #tpu.dot_dimension_numbers<[1], [0], [0], [1], [0, 0, 1, 1], [], []>} : vector<8x64xf32>, vector<64x3xf32>, vector<8x3xf32> -> vector<8x3xf32>
    %448 = arith.addf %443, %447 : vector<8x3xf32>
    %c10_416 = arith.constant 10 : index
    %c0_417 = arith.constant 0 : index
    %449 = vector.load %arg24[%c10_416, %c0_417] : memref<20x64xf32, #tpu.memory_space<vmem>>, vector<8x64xf32>
    %c8_418 = arith.constant 8 : index
    %c0_419 = arith.constant 0 : index
    %c0_420 = arith.constant 0 : index
    %450 = vector.load %arg8[%c8_418, %c0_419, %c0_420] : memref<9x64x3xf32, #tpu.memory_space<vmem>>, vector<1x64x3xf32>
    %451 = vector.shape_cast %450 : vector<1x64x3xf32> to vector<64x3xf32>
    %cst_421 = arith.constant dense<0.000000e+00> : vector<8x3xf32>
    %452 = tpu.matmul %449, %451, %cst_421 {dimension_numbers = #tpu.dot_dimension_numbers<[1], [0], [0], [1], [0, 0, 1, 1], [], []>} : vector<8x64xf32>, vector<64x3xf32>, vector<8x3xf32> -> vector<8x3xf32>
    %453 = arith.addf %448, %452 : vector<8x3xf32>
    %c0_422 = arith.constant 0 : index
    %c0_423 = arith.constant 0 : index
    %454 = vector.load %arg13[%c0_422, %c0_423] : memref<1x3xf32, #tpu.memory_space<vmem>>, vector<1x3xf32>
    %455 = vector.broadcast %454 : vector<1x3xf32> to vector<8x3xf32>
    %456 = arith.mulf %453, %455 : vector<8x3xf32>
    %c0_424 = arith.constant 0 : index
    %c0_425 = arith.constant 0 : index
    %457 = vector.load %arg18[%c0_424, %c0_425] : memref<1x3xf32, #tpu.memory_space<vmem>>, vector<1x3xf32>
    %458 = vector.broadcast %457 : vector<1x3xf32> to vector<8x3xf32>
    %459 = arith.addf %456, %458 : vector<8x3xf32>
    %460 = vector.extract_strided_slice %459 {offsets = [0, 0], sizes = [2, 3], strides = [1, 1]} : vector<8x3xf32> to vector<2x3xf32>
    %c0_426 = arith.constant 0 : index
    %c0_427 = arith.constant 0 : index
    %461 = vector.load %arg25[%c0_426, %c0_427] : memref<4x3xf32, #tpu.memory_space<vmem>>, vector<2x3xf32>
    tpu.vector_store %arg25[%c0_426, %c0_427], %460 {strides = array<i32>} : memref<4x3xf32, #tpu.memory_space<vmem>>, vector<2x3xf32>,
    %462 = vector.extract_strided_slice %459 {offsets = [4, 0], sizes = [2, 3], strides = [1, 1]} : vector<8x3xf32> to vector<2x3xf32>
    %c2_428 = arith.constant 2 : index
    %c0_429 = arith.constant 0 : index
    %463 = vector.load %arg25[%c2_428, %c0_429] : memref<4x3xf32, #tpu.memory_space<vmem>>, vector<2x3xf32>
    tpu.vector_store %arg25[%c2_428, %c0_429], %462 {strides = array<i32>} : memref<4x3xf32, #tpu.memory_space<vmem>>, vector<2x3xf32>,
    %c0_430 = arith.constant 0 : index
    %c0_431 = arith.constant 0 : index
    %464 = vector.load %arg25[%c0_430, %c0_431] : memref<4x3xf32, #tpu.memory_space<vmem>>, vector<4x3xf32>
    %465 = tpu.transpose %464, [1, 0] : vector<4x3xf32> -> vector<3x4xf32>
    %466 = tpu.iota {dimensions = array<i32: 0>} : vector<2x16xi32>
    %467 = tpu.iota {dimensions = array<i32: 1>} : vector<2x16xi32>
    %c8_i32 = arith.constant 8 : i32
    %468 = vector.broadcast %c8_i32 : i32 to vector<2x16xi32>
    %469 = arith.muli %466, %468 : vector<2x16xi32>
    %470 = arith.cmpi sge, %467, %469 : vector<2x16xi32>
    %c1_i32_432 = arith.constant 1 : i32
    %471 = vector.broadcast %c1_i32_432 : i32 to vector<2x16xi32>
    %472 = arith.addi %466, %471 : vector<2x16xi32>
    %c8_i32_433 = arith.constant 8 : i32
    %473 = vector.broadcast %c8_i32_433 : i32 to vector<2x16xi32>
    %474 = arith.muli %472, %473 : vector<2x16xi32>
    %475 = arith.cmpi slt, %467, %474 : vector<2x16xi32>
    %476 = arith.andi %470, %475 : vector<2x16xi1>
    %477 = arith.extui %476 : vector<2x16xi1> to vector<2x16xi32>
    %478 = arith.sitofp %477 : vector<2x16xi32> to vector<2x16xf32>
    %479 = vector.extract_strided_slice %465 {offsets = [0, 0], sizes = [3, 2], strides = [1, 1]} : vector<3x4xf32> to vector<3x2xf32>
    %cst_434 = arith.constant dense<0.000000e+00> : vector<3x16xf32>
    %480 = tpu.matmul %479, %478, %cst_434 {dimension_numbers = #tpu.dot_dimension_numbers<[1], [0], [0], [1], [0, 0, 1, 1], [], []>} : vector<3x2xf32>, vector<2x16xf32>, vector<3x16xf32> -> vector<3x16xf32>
    %481 = vector.extract_strided_slice %480 {offsets = [0, 0], sizes = [1, 16], strides = [1, 1]} : vector<3x16xf32> to vector<1x16xf32>
    %c0_435 = arith.constant 0 : index
    %c0_436 = arith.constant 0 : index
    %c0_437 = arith.constant 0 : index
    %c0_438 = arith.constant 0 : index
    %482 = vector.load %arg2[%c0_435, %c0_436, %c0_437, %c0_438] : memref<1x3x16x16xf32, #tpu.memory_space<vmem>>, vector<1x1x8x16xf32>
    %483 = vector.shape_cast %482 : vector<1x1x8x16xf32> to vector<8x16xf32>
    %c0_439 = arith.constant 0 : index
    %c0_440 = arith.constant 0 : index
    %c0_441 = arith.constant 0 : index
    %484 = vector.load %arg3[%c0_439, %c0_440, %c0_441] : memref<3x16x16xf32, #tpu.memory_space<vmem>>, vector<1x8x16xf32>
    %485 = vector.shape_cast %484 : vector<1x8x16xf32> to vector<8x16xf32>
    %486 = vector.broadcast %481 : vector<1x16xf32> to vector<8x16xf32>
    %487 = arith.mulf %485, %486 : vector<8x16xf32>
    %488 = arith.addf %483, %487 : vector<8x16xf32>
    %c0_442 = arith.constant 0 : index
    %c0_443 = arith.constant 0 : index
    %c0_444 = arith.constant 0 : index
    %c0_445 = arith.constant 0 : index
    %489 = vector.load %arg19[%c0_442, %c0_443, %c0_444, %c0_445] : memref<1x3x16x16xf32, #tpu.memory_space<vmem>>, vector<1x1x8x16xf32>
    %490 = vector.shape_cast %489 : vector<1x1x8x16xf32> to vector<8x16xf32>
    %491 = vector.shape_cast %488 : vector<8x16xf32> to vector<1x1x8x16xf32>
    tpu.vector_store %arg19[%c0_442, %c0_443, %c0_444, %c0_445], %491 {strides = array<i32>} : memref<1x3x16x16xf32, #tpu.memory_space<vmem>>, vector<1x1x8x16xf32>,
    %492 = vector.extract_strided_slice %480 {offsets = [1, 0], sizes = [1, 16], strides = [1, 1]} : vector<3x16xf32> to vector<1x16xf32>
    %c0_446 = arith.constant 0 : index
    %c1_447 = arith.constant 1 : index
    %c0_448 = arith.constant 0 : index
    %c0_449 = arith.constant 0 : index
    %493 = vector.load %arg2[%c0_446, %c1_447, %c0_448, %c0_449] : memref<1x3x16x16xf32, #tpu.memory_space<vmem>>, vector<1x1x8x16xf32>
    %494 = vector.shape_cast %493 : vector<1x1x8x16xf32> to vector<8x16xf32>
    %c1_450 = arith.constant 1 : index
    %c0_451 = arith.constant 0 : index
    %c0_452 = arith.constant 0 : index
    %495 = vector.load %arg3[%c1_450, %c0_451, %c0_452] : memref<3x16x16xf32, #tpu.memory_space<vmem>>, vector<1x8x16xf32>
    %496 = vector.shape_cast %495 : vector<1x8x16xf32> to vector<8x16xf32>
    %497 = vector.broadcast %492 : vector<1x16xf32> to vector<8x16xf32>
    %498 = arith.mulf %496, %497 : vector<8x16xf32>
    %499 = arith.addf %494, %498 : vector<8x16xf32>
    %c0_453 = arith.constant 0 : index
    %c1_454 = arith.constant 1 : index
    %c0_455 = arith.constant 0 : index
    %c0_456 = arith.constant 0 : index
    %500 = vector.load %arg19[%c0_453, %c1_454, %c0_455, %c0_456] : memref<1x3x16x16xf32, #tpu.memory_space<vmem>>, vector<1x1x8x16xf32>
    %501 = vector.shape_cast %500 : vector<1x1x8x16xf32> to vector<8x16xf32>
    %502 = vector.shape_cast %499 : vector<8x16xf32> to vector<1x1x8x16xf32>
    tpu.vector_store %arg19[%c0_453, %c1_454, %c0_455, %c0_456], %502 {strides = array<i32>} : memref<1x3x16x16xf32, #tpu.memory_space<vmem>>, vector<1x1x8x16xf32>,
    %503 = vector.extract_strided_slice %480 {offsets = [2, 0], sizes = [1, 16], strides = [1, 1]} : vector<3x16xf32> to vector<1x16xf32>
    %c0_457 = arith.constant 0 : index
    %c2_458 = arith.constant 2 : index
    %c0_459 = arith.constant 0 : index
    %c0_460 = arith.constant 0 : index
    %504 = vector.load %arg2[%c0_457, %c2_458, %c0_459, %c0_460] : memref<1x3x16x16xf32, #tpu.memory_space<vmem>>, vector<1x1x8x16xf32>
    %505 = vector.shape_cast %504 : vector<1x1x8x16xf32> to vector<8x16xf32>
    %c2_461 = arith.constant 2 : index
    %c0_462 = arith.constant 0 : index
    %c0_463 = arith.constant 0 : index
    %506 = vector.load %arg3[%c2_461, %c0_462, %c0_463] : memref<3x16x16xf32, #tpu.memory_space<vmem>>, vector<1x8x16xf32>
    %507 = vector.shape_cast %506 : vector<1x8x16xf32> to vector<8x16xf32>
    %508 = vector.broadcast %503 : vector<1x16xf32> to vector<8x16xf32>
    %509 = arith.mulf %507, %508 : vector<8x16xf32>
    %510 = arith.addf %505, %509 : vector<8x16xf32>
    %c0_464 = arith.constant 0 : index
    %c2_465 = arith.constant 2 : index
    %c0_466 = arith.constant 0 : index
    %c0_467 = arith.constant 0 : index
    %511 = vector.load %arg19[%c0_464, %c2_465, %c0_466, %c0_467] : memref<1x3x16x16xf32, #tpu.memory_space<vmem>>, vector<1x1x8x16xf32>
    %512 = vector.shape_cast %511 : vector<1x1x8x16xf32> to vector<8x16xf32>
    %513 = vector.shape_cast %510 : vector<8x16xf32> to vector<1x1x8x16xf32>
    tpu.vector_store %arg19[%c0_464, %c2_465, %c0_466, %c0_467], %513 {strides = array<i32>} : memref<1x3x16x16xf32, #tpu.memory_space<vmem>>, vector<1x1x8x16xf32>,
    %514 = vector.extract_strided_slice %465 {offsets = [0, 2], sizes = [3, 2], strides = [1, 1]} : vector<3x4xf32> to vector<3x2xf32>
    %cst_468 = arith.constant dense<0.000000e+00> : vector<3x16xf32>
    %515 = tpu.matmul %514, %478, %cst_468 {dimension_numbers = #tpu.dot_dimension_numbers<[1], [0], [0], [1], [0, 0, 1, 1], [], []>} : vector<3x2xf32>, vector<2x16xf32>, vector<3x16xf32> -> vector<3x16xf32>
    %516 = vector.extract_strided_slice %515 {offsets = [0, 0], sizes = [1, 16], strides = [1, 1]} : vector<3x16xf32> to vector<1x16xf32>
    %c0_469 = arith.constant 0 : index
    %c0_470 = arith.constant 0 : index
    %c8_471 = arith.constant 8 : index
    %c0_472 = arith.constant 0 : index
    %517 = vector.load %arg2[%c0_469, %c0_470, %c8_471, %c0_472] : memref<1x3x16x16xf32, #tpu.memory_space<vmem>>, vector<1x1x8x16xf32>
    %518 = vector.shape_cast %517 : vector<1x1x8x16xf32> to vector<8x16xf32>
    %c0_473 = arith.constant 0 : index
    %c8_474 = arith.constant 8 : index
    %c0_475 = arith.constant 0 : index
    %519 = vector.load %arg3[%c0_473, %c8_474, %c0_475] : memref<3x16x16xf32, #tpu.memory_space<vmem>>, vector<1x8x16xf32>
    %520 = vector.shape_cast %519 : vector<1x8x16xf32> to vector<8x16xf32>
    %521 = vector.broadcast %516 : vector<1x16xf32> to vector<8x16xf32>
    %522 = arith.mulf %520, %521 : vector<8x16xf32>
    %523 = arith.addf %518, %522 : vector<8x16xf32>
    %c0_476 = arith.constant 0 : index
    %c0_477 = arith.constant 0 : index
    %c8_478 = arith.constant 8 : index
    %c0_479 = arith.constant 0 : index
    %524 = vector.load %arg19[%c0_476, %c0_477, %c8_478, %c0_479] : memref<1x3x16x16xf32, #tpu.memory_space<vmem>>, vector<1x1x8x16xf32>
    %525 = vector.shape_cast %524 : vector<1x1x8x16xf32> to vector<8x16xf32>
    %526 = vector.shape_cast %523 : vector<8x16xf32> to vector<1x1x8x16xf32>
    tpu.vector_store %arg19[%c0_476, %c0_477, %c8_478, %c0_479], %526 {strides = array<i32>} : memref<1x3x16x16xf32, #tpu.memory_space<vmem>>, vector<1x1x8x16xf32>,
    %527 = vector.extract_strided_slice %515 {offsets = [1, 0], sizes = [1, 16], strides = [1, 1]} : vector<3x16xf32> to vector<1x16xf32>
    %c0_480 = arith.constant 0 : index
    %c1_481 = arith.constant 1 : index
    %c8_482 = arith.constant 8 : index
    %c0_483 = arith.constant 0 : index
    %528 = vector.load %arg2[%c0_480, %c1_481, %c8_482, %c0_483] : memref<1x3x16x16xf32, #tpu.memory_space<vmem>>, vector<1x1x8x16xf32>
    %529 = vector.shape_cast %528 : vector<1x1x8x16xf32> to vector<8x16xf32>
    %c1_484 = arith.constant 1 : index
    %c8_485 = arith.constant 8 : index
    %c0_486 = arith.constant 0 : index
    %530 = vector.load %arg3[%c1_484, %c8_485, %c0_486] : memref<3x16x16xf32, #tpu.memory_space<vmem>>, vector<1x8x16xf32>
    %531 = vector.shape_cast %530 : vector<1x8x16xf32> to vector<8x16xf32>
    %532 = vector.broadcast %527 : vector<1x16xf32> to vector<8x16xf32>
    %533 = arith.mulf %531, %532 : vector<8x16xf32>
    %534 = arith.addf %529, %533 : vector<8x16xf32>
    %c0_487 = arith.constant 0 : index
    %c1_488 = arith.constant 1 : index
    %c8_489 = arith.constant 8 : index
    %c0_490 = arith.constant 0 : index
    %535 = vector.load %arg19[%c0_487, %c1_488, %c8_489, %c0_490] : memref<1x3x16x16xf32, #tpu.memory_space<vmem>>, vector<1x1x8x16xf32>
    %536 = vector.shape_cast %535 : vector<1x1x8x16xf32> to vector<8x16xf32>
    %537 = vector.shape_cast %534 : vector<8x16xf32> to vector<1x1x8x16xf32>
    tpu.vector_store %arg19[%c0_487, %c1_488, %c8_489, %c0_490], %537 {strides = array<i32>} : memref<1x3x16x16xf32, #tpu.memory_space<vmem>>, vector<1x1x8x16xf32>,
    %538 = vector.extract_strided_slice %515 {offsets = [2, 0], sizes = [1, 16], strides = [1, 1]} : vector<3x16xf32> to vector<1x16xf32>
    %c0_491 = arith.constant 0 : index
    %c2_492 = arith.constant 2 : index
    %c8_493 = arith.constant 8 : index
    %c0_494 = arith.constant 0 : index
    %539 = vector.load %arg2[%c0_491, %c2_492, %c8_493, %c0_494] : memref<1x3x16x16xf32, #tpu.memory_space<vmem>>, vector<1x1x8x16xf32>
    %540 = vector.shape_cast %539 : vector<1x1x8x16xf32> to vector<8x16xf32>
    %c2_495 = arith.constant 2 : index
    %c8_496 = arith.constant 8 : index
    %c0_497 = arith.constant 0 : index
    %541 = vector.load %arg3[%c2_495, %c8_496, %c0_497] : memref<3x16x16xf32, #tpu.memory_space<vmem>>, vector<1x8x16xf32>
    %542 = vector.shape_cast %541 : vector<1x8x16xf32> to vector<8x16xf32>
    %543 = vector.broadcast %538 : vector<1x16xf32> to vector<8x16xf32>
    %544 = arith.mulf %542, %543 : vector<8x16xf32>
    %545 = arith.addf %540, %544 : vector<8x16xf32>
    %c0_498 = arith.constant 0 : index
    %c2_499 = arith.constant 2 : index
    %c8_500 = arith.constant 8 : index
    %c0_501 = arith.constant 0 : index
    %546 = vector.load %arg19[%c0_498, %c2_499, %c8_500, %c0_501] : memref<1x3x16x16xf32, #tpu.memory_space<vmem>>, vector<1x1x8x16xf32>
    %547 = vector.shape_cast %546 : vector<1x1x8x16xf32> to vector<8x16xf32>
    %548 = vector.shape_cast %545 : vector<8x16xf32> to vector<1x1x8x16xf32>
    tpu.vector_store %arg19[%c0_498, %c2_499, %c8_500, %c0_501], %548 {strides = array<i32>} : memref<1x3x16x16xf32, #tpu.memory_space<vmem>>, vector<1x1x8x16xf32>,
    return
  }
  func.func @transform_0(%arg0: i32) -> (i32, i32, i32, i32) {
    %c0_i32 = arith.constant 0 : i32
    %c0_i32_0 = arith.constant 0 : i32
    %c0_i32_1 = arith.constant 0 : i32
    %c0_i32_2 = arith.constant 0 : i32
    return %arg0, %c0_i32, %c0_i32_0, %c0_i32_1 : i32, i32, i32, i32
  }
  func.func @transform_1(%arg0: i32) -> (i32, i32, i32, i32) {
    %c0_i32 = arith.constant 0 : i32
    %c0_i32_0 = arith.constant 0 : i32
    %c0_i32_1 = arith.constant 0 : i32
    %c0_i32_2 = arith.constant 0 : i32
    return %arg0, %c0_i32, %c0_i32_0, %c0_i32_1 : i32, i32, i32, i32
  }
  func.func @transform_2(%arg0: i32) -> (i32, i32, i32) {
    %c0_i32 = arith.constant 0 : i32
    %c0_i32_0 = arith.constant 0 : i32
    %c0_i32_1 = arith.constant 0 : i32
    %c0_i32_2 = arith.constant 0 : i32
    return %c0_i32, %c0_i32_0, %c0_i32_1 : i32, i32, i32
  }
  func.func @transform_3(%arg0: i32) -> (i32, i32, i32) {
    %c0_i32 = arith.constant 0 : i32
    %c0_i32_0 = arith.constant 0 : i32
    %c0_i32_1 = arith.constant 0 : i32
    %c0_i32_2 = arith.constant 0 : i32
    return %c0_i32, %c0_i32_0, %c0_i32_1 : i32, i32, i32
  }
  func.func @transform_4(%arg0: i32) -> (i32, i32, i32) {
    %c0_i32 = arith.constant 0 : i32
    %c0_i32_0 = arith.constant 0 : i32
    %c0_i32_1 = arith.constant 0 : i32
    %c0_i32_2 = arith.constant 0 : i32
    return %c0_i32, %c0_i32_0, %c0_i32_1 : i32, i32, i32
  }
  func.func @transform_5(%arg0: i32) -> (i32, i32, i32) {
    %c0_i32 = arith.constant 0 : i32
    %c0_i32_0 = arith.constant 0 : i32
    %c0_i32_1 = arith.constant 0 : i32
    %c0_i32_2 = arith.constant 0 : i32
    return %c0_i32, %c0_i32_0, %c0_i32_1 : i32, i32, i32
  }
  func.func @transform_6(%arg0: i32) -> (i32, i32, i32) {
    %c0_i32 = arith.constant 0 : i32
    %c0_i32_0 = arith.constant 0 : i32
    %c0_i32_1 = arith.constant 0 : i32
    %c0_i32_2 = arith.constant 0 : i32
    return %c0_i32, %c0_i32_0, %c0_i32_1 : i32, i32, i32
  }
  func.func @transform_7(%arg0: i32) -> (i32, i32, i32) {
    %c0_i32 = arith.constant 0 : i32
    %c0_i32_0 = arith.constant 0 : i32
    %c0_i32_1 = arith.constant 0 : i32
    %c0_i32_2 = arith.constant 0 : i32
    return %c0_i32, %c0_i32_0, %c0_i32_1 : i32, i32, i32
  }
  func.func @transform_8(%arg0: i32) -> (i32, i32) {
    %c0_i32 = arith.constant 0 : i32
    %c0_i32_0 = arith.constant 0 : i32
    %c0_i32_1 = arith.constant 0 : i32
    return %c0_i32, %c0_i32_0 : i32, i32
  }
  func.func @transform_9(%arg0: i32) -> (i32, i32) {
    %c0_i32 = arith.constant 0 : i32
    %c0_i32_0 = arith.constant 0 : i32
    %c0_i32_1 = arith.constant 0 : i32
    return %c0_i32, %c0_i32_0 : i32, i32
  }
  func.func @transform_10(%arg0: i32) -> (i32, i32) {
    %c0_i32 = arith.constant 0 : i32
    %c0_i32_0 = arith.constant 0 : i32
    %c0_i32_1 = arith.constant 0 : i32
    return %c0_i32, %c0_i32_0 : i32, i32
  }
  func.func @transform_11(%arg0: i32) -> (i32, i32) {
    %c0_i32 = arith.constant 0 : i32
    %c0_i32_0 = arith.constant 0 : i32
    %c0_i32_1 = arith.constant 0 : i32
    return %c0_i32, %c0_i32_0 : i32, i32
  }
  func.func @transform_12(%arg0: i32) -> (i32, i32) {
    %c0_i32 = arith.constant 0 : i32
    %c0_i32_0 = arith.constant 0 : i32
    %c0_i32_1 = arith.constant 0 : i32
    return %c0_i32, %c0_i32_0 : i32, i32
  }
  func.func @transform_13(%arg0: i32) -> (i32, i32) {
    %c0_i32 = arith.constant 0 : i32
    %c0_i32_0 = arith.constant 0 : i32
    %c0_i32_1 = arith.constant 0 : i32
    return %c0_i32, %c0_i32_0 : i32, i32
  }
  func.func @transform_14(%arg0: i32) -> (i32, i32) {
    %c0_i32 = arith.constant 0 : i32
    %c0_i32_0 = arith.constant 0 : i32
    %c0_i32_1 = arith.constant 0 : i32
    return %c0_i32, %c0_i32_0 : i32, i32
  }
  func.func @transform_15(%arg0: i32) -> (i32, i32) {
    %c0_i32 = arith.constant 0 : i32
    %c0_i32_0 = arith.constant 0 : i32
    %c0_i32_1 = arith.constant 0 : i32
    return %c0_i32, %c0_i32_0 : i32, i32
  }
  func.func @transform_16(%arg0: i32) -> (i32, i32) {
    %c0_i32 = arith.constant 0 : i32
    %c0_i32_0 = arith.constant 0 : i32
    %c0_i32_1 = arith.constant 0 : i32
    return %c0_i32, %c0_i32_0 : i32, i32
  }
  func.func @transform_17(%arg0: i32) -> (i32, i32) {
    %c0_i32 = arith.constant 0 : i32
    %c0_i32_0 = arith.constant 0 : i32
    %c0_i32_1 = arith.constant 0 : i32
    return %c0_i32, %c0_i32_0 : i32, i32
  }
  func.func @transform_18(%arg0: i32) -> (i32, i32, i32, i32) {
    %c0_i32 = arith.constant 0 : i32
    %c0_i32_0 = arith.constant 0 : i32
    %c0_i32_1 = arith.constant 0 : i32
    %c0_i32_2 = arith.constant 0 : i32
    return %arg0, %c0_i32, %c0_i32_0, %c0_i32_1 : i32, i32, i32, i32
  }
}

</mosaic_0001>

<bundles_post_ra>
// kernel: tpu_custom_call.1
= control target key start
LH: loop header
LB: loop body
LE: loop exit
PB: predicated region body
PF: predicated region fallthrough
CT: control target
= control target key end

     0   :  { %s9488_s0 = inlined_call_operand.vmem [shape: f32[2,16,16,3], index: 0, kind: input, shape index: {}]   ;;  %s9489_s1 = inlined_call_operand.vmem [shape: f32[2,3,16,16], index: 1, kind: input, shape index: {}]   ;;  %s9490_s2 = inlined_call_operand.vmem [shape: f32[3,16,16], index: 2, kind: input, shape index: {}]   ;;  %s9491_s3 = inlined_call_operand.vmem [shape: f32[9,3,8], index: 3, kind: input, shape index: {}]   ;;  %s9492_s4 = inlined_call_operand.vmem [shape: f32[9,8,16], index: 4, kind: input, shape index: {}]   ;;  %s9493_s5 = inlined_call_operand.vmem [shape: f32[9,16,32], index: 5, kind: input, shape index: {}]   ;;  %s9494_s6 = inlined_call_operand.vmem [shape: f32[9,32,64], index: 6, kind: input, shape index: {}]   ;;  %s9495_s7 = inlined_call_operand.vmem [shape: f32[9,64,3], index: 7, kind: input, shape index: {}]   ;;  %s9496_s8 = inlined_call_operand.vmem [shape: f32[1,8], index: 8, kind: input, shape index: {}]   ;;  %s9497_s9 = inlined_call_operand.vmem [shape: f32[1,16], index: 9, kind: input, shape index: {}]   ;;  %s9498_s10 = inlined_call_operand.vmem [shape: f32[1,32], index: 10, kind: input, shape index: {}]   ;;  %s9499_s11 = inlined_call_operand.vmem [shape: f32[1,64], index: 11, kind: input, shape index: {}]   ;;  %s9500_s12 = inlined_call_operand.vmem [shape: f32[1,3], index: 12, kind: input, shape index: {}]   ;;  %s9501_s13 = inlined_call_operand.vmem [shape: f32[1,8], index: 13, kind: input, shape index: {}]   ;;  %s9502_s14 = inlined_call_operand.vmem [shape: f32[1,16], index: 14, kind: input, shape index: {}]   ;;  %s9503_s15 = inlined_call_operand.vmem [shape: f32[1,32], index: 15, kind: input, shape index: {}]   ;;  %s9504_s16 = inlined_call_operand.vmem [shape: f32[1,64], index: 16, kind: input, shape index: {}]   ;;  %s9505_s17 = inlined_call_operand.vmem [shape: f32[1,3], index: 17, kind: input, shape index: {}]   ;;  %s9506_s18 = inlined_call_operand.hbm [shape: f32[2,3,16,16], index: 18, kind: output, shape index: {}]  }
   0x1   :  { %9515 = sst [smem:[#allocation35_spill]] %s9488_s0 }
   0x2   :  { %9516 = sst [smem:[#allocation36_spill]] %s9489_s1 }
   0x3   :  { %9517 = sst [smem:[#allocation37_spill]] %s9490_s2 }
   0x4   :  { %9518 = sst [smem:[#allocation38_spill]] %s9491_s3 }
   0x5   :  { %9519 = sst [smem:[#allocation39_spill]] %s9492_s4 }
   0x6   :  { %9520 = sst [smem:[#allocation40_spill]] %s9493_s5 }
   0x7   :  { %9521 = sst [smem:[#allocation41_spill]] %s9494_s6 }
   0x8   :  { %9522 = sst [smem:[#allocation42_spill]] %s9495_s7 }
   0x9   :  { %9523 = sst [smem:[#allocation43_spill]] %s9496_s8 }
   0xa   :  { %9524 = sst [smem:[#allocation44_spill]] %s9497_s9 }
   0xb   :  { %9525 = sst [smem:[#allocation45_spill]] %s9501_s13 }
   0xc   :  { %23 = vsyncpa [#allocation9], 0 }
   0xd   :  { %25 = vsyncpa [#allocation9 + $0x1], 0  ;;  %s7458_s27 = smov 0   ;;  %s7460_s28 = smov 0  }
   0xe   :  { %s7462_s29 = smov 0   ;;  %s7464_s30 = smov 0  }
   0xf LB: > { %s7479_s0 = sadd.s32 4294967295, %s7357_s30   ;;  %s6549_s19 = sadd.s32 4294967294, %s7357_s30   ;;  %s7357_s30 = sphi %s7464_s30, %s9620_s30   ;;  %s7353_s29 = sphi %s7462_s29, %s9619_s29   ;;  %s7349_s28 = sphi %s7460_s28, %s9618_s28   ;;  %s7345_s27 = sphi %s7458_s27, %s9617_s27  }
  0x10   : > { %s7483_s1 = sadd.s32 1, %s7357_s30   ;;  %s426_s20 = sadd.s32 1, %s7353_s29 }
  0x11   : > { %s423_s21 = ssub.s32 %s7357_s30, %s7483_s1  ;;  %p436_p0 = scmp.ne.s32.totalorder %s7353_s29, %s7349_s28 }
  0x12   : > { %p424_p1 = scmp.eq.s32.totalorder %s423_s21, 0  ;;  %p437_p2 = scmp.eq.s32.totalorder %s7479_s0, 1 }
  0x13   : > { %p442_p3 = scmp.ne.s32.totalorder %s7349_s28, %s7345_s27  ;;  %p443_p4 = scmp.eq.s32.totalorder %s6549_s19, 1 }
  0x14   : > { %s7494_s22 = scalar_select %p424_p1, %s7353_s29, %s426_s20  }
  0x15   : > { %p7496_p5 = por %p437_p2, %p436_p0  ;;  %p7500_p6 = por %p443_p4, %p442_p3 }
  0x16   : > { %p6552_p7 = scmp.ge.s32.totalorder %s7357_s30, 1  ;;  %p525_p8 = scmp.lt.s32.totalorder %s7357_s30, 3 }
  0x18   : > { %p526_p9 = pnand %p6552_p7, %p525_p8 }
  0x1a   : > { %529 = sbr.rel (%p526_p9) target bundleno = 2714 (0xa9a), region = 92 }
  0x1f   : > { %s9528_s3 = sld [smem:[#allocation38_spill]]  ;;  %vm935_vm0 = vcmask 1042432   ;;  %vm594_vm1 = vcmask 23552   ;;  %v9508_v3 = vmov 0.0   ;;  %p584_p10 = scmp.lt.s32.totalorder %s7479_s0, 1  ;;  %vm3601_vm2 = vcmask 1045504  }
  0x20   : > { %595 = vst.msk [vmem:[#allocation2] sm:$0xff] %vm594_vm1, %v9508_v3  ;;  %s9529_s24 = sld [smem:[#allocation35_spill]]  ;;  %vm3676_vm3 = vcmask 1043456   ;;  %vm655_vm4 = vcmask 130048   ;;  %vm639_vm7 = vcmask 64512   ;;  %vm5046_vm8 = vcmask 125952  }
  0x21   : > { %596 = vst.msk [vmem:[#allocation2 + $0x8] sm:$0xff] %vm594_vm1, %v9508_v3  ;;  %s7588_s26 = scalar_select %p584_p10, %s7479_s0, 1  ;;  %vm5619_vm9 = vcmask 1041408   ;;  %vm5625_vm10 = vcmask 31744   ;;  %vm663_vm11 = vcmask 261120   ;;  %vm666_vm12 = vcmask 257024  }
  0x22   : > { %597 = vst.msk [vmem:[#allocation2 + $0x10] sm:$0xff] %vm594_vm1, %v9508_v3  ;;  %s9552_s8 = sld [smem:[#allocation43_spill]]  ;;  %vm5674_vm13 = vcmask 254976   ;;  %vm668_vm14 = vcmask 523264   ;;  %vm671_vm15 = vcmask 519168  }
  0x23   : > { %598 = vst.msk [vmem:[#allocation2 + $0x18] sm:$0xff] %vm594_vm1, %v9508_v3  ;;  %s7236_s19 = sshll.u32 %s7588_s26, 8  ;;  %s9553_s13 = sld [smem:[#allocation45_spill]] }
  0x24   : > { %599 = vst.msk [vmem:[#allocation2 + $0x20] sm:$0xff] %vm594_vm1, %v9508_v3  ;;  %s9577_s4 = sld [smem:[#allocation39_spill]]  ;;  %s7238_s20 = smul.u32 48, %s7588_s26 }
  0x25   : > { %v6586_v0 = vld [vmem:[%s9528_s3 + $0x4] sm:$0x7]  ;;  %v788_v1 = vld [vmem:[%s9528_s3] sm:$0x7]  ;;  %v6661_v2 = vld [vmem:[%s9528_s3 + $0x8] sm:$0x7] }
  0x26   : > { %6587 = vmatpush.msk.msra.mxu0 %vm935_vm0, %v6586_v0  ;;  %6624 = vmatpush.msk.msra.mxu1 %vm935_vm0, %v788_v1  ;;  %v6699_v4 = vld [vmem:[%s9528_s3 + $0xc] sm:$0x7]  ;;  %600 = vst.msk [vmem:[#allocation2 + $0x28] sm:$0xff] %vm594_vm1, %v9508_v3  ;;  %s7608_s25 = scalar_lea.vmem %s9529_s24, %s7236_s19  ;;  %s9594_s9 = sld [smem:[#allocation44_spill]] }
  0x27   : > { %6662 = vmatpush.msk.msra.mxu2 %vm935_vm0, %v6661_v2  ;;  %6700 = vmatpush.msk.msra.mxu3 %vm935_vm0, %v6699_v4  ;;  %v752_v5 = vld [vmem:[#allocation2] sm:$0xff]  ;;  %601 = vst.msk [vmem:[#allocation2 + $0x30] sm:$0xff] %vm594_vm1, %v9508_v3  ;;  %v674_v12 = vld [vmem:[%s7608_s25 + $0x8] sm:$0xff]  ;;  %v6556_v13 = vld [vmem:[%s7608_s25 + $0x10] sm:$0xff]  ;;  %s9609_s5 = sld [smem:[#allocation40_spill]]  ;;  %s7360_s19 = smov 126  }
  0x28   : > { %v789_v6 = vld [vmem:[#allocation2 + $0x1] sm:$0xff]  ;;  %6625 = vmatmul.msk.f32.vlgmr.msra.gmra.mxu1 %vm594_vm1, %v752_v5  ;;  %602 = vst.msk [vmem:[#allocation2 + $0x38] sm:$0xff] %vm594_vm1, %v9508_v3  ;;  %v6557_v14 = vld [vmem:[%s7608_s25 + $0x18] sm:$0xff]  ;;  %v6560_v23 = vld [vmem:[%s7608_s25 + $0x30] sm:$0xff]  ;;  %s9611_s6 = sld [smem:[#allocation41_spill]] }
  0x29   : > { %v1300_v7 = vld [vmem:[#allocation2 + $0x2] sm:$0xff]  ;;  %6588 = vmatmul.msk.f32.vlgmr.msra.gmra.mxu0 %vm594_vm1, %v789_v6  ;;  %603 = vst.msk [vmem:[#allocation2 + $0x40] sm:$0xff] %vm594_vm1, %v9508_v3  ;;  %v1301_v10 = vld [vmem:[#allocation2 + $0xa] sm:$0xff]  ;;  %v6561_v27 = vld [vmem:[%s7608_s25 + $0x38] sm:$0xff]  ;;  %s9612_s7 = sld [smem:[#allocation42_spill]] }
  0x2a   : > { %6663 = vmatmul.msk.f32.vlgmr.msra.gmra.mxu2 %vm594_vm1, %v1300_v7  ;;  %604 = vst.msk [vmem:[#allocation2 + $0x48] sm:$0xff] %vm594_vm1, %v9508_v3  ;;  %v790_v8 = vld [vmem:[#allocation2 + $0x9] sm:$0xff]  ;;  %v673_v11 = vld [vmem:[%s7608_s25] sm:$0xff]  ;;  %v6565_v46 = vld [vmem:[%s7608_s25 + $0x58] sm:$0xff] }
  0x2b   : > { %605 = vst.msk [vmem:[#allocation2 + $0x50] sm:$0xff] %vm594_vm1, %v9508_v3  ;;  %v753_v9 = vld [vmem:[#allocation2 + $0x8] sm:$0xff]  ;;  %v6558_v15 = vld [vmem:[%s7608_s25 + $0x20] sm:$0xff]  ;;  %v6564_v42 = vld [vmem:[%s7608_s25 + $0x50] sm:$0xff] }
  0x2c   : > { %606 = vst.msk [vmem:[#allocation2 + $0x58] sm:$0xff] %vm594_vm1, %v9508_v3  ;;  %v6559_v19 = vld [vmem:[%s7608_s25 + $0x28] sm:$0xff]  ;;  %v6562_v34 = vld [vmem:[%s7608_s25 + $0x40] sm:$0xff]  ;;  %v6568_v58 = vld [vmem:[%s7608_s25 + $0x70] sm:$0xff] }
  0x2d   : > { %607 = vst.msk [vmem:[#allocation2 + $0x60] sm:$0xff] %vm594_vm1, %v9508_v3  ;;  %v6563_v38 = vld [vmem:[%s7608_s25 + $0x48] sm:$0xff]  ;;  %v6566_v50 = vld [vmem:[%s7608_s25 + $0x60] sm:$0xff]  ;;  %v6569_v62 = vld [vmem:[%s7608_s25 + $0x78] sm:$0xff] }
  0x2e   : > { %608 = vst.msk [vmem:[#allocation2 + $0x68] sm:$0xff] %vm594_vm1, %v9508_v3  ;;  %v6567_v54 = vld [vmem:[%s7608_s25 + $0x68] sm:$0xff]  ;;  %v6570_v6 = vld [vmem:[%s7608_s25 + $0x80] sm:$0xff] }
  0x2f   : > { %609 = vst.msk [vmem:[#allocation2 + $0x70] sm:$0xff] %vm594_vm1, %v9508_v3 }
  0x30   : > { %610 = vst.msk [vmem:[#allocation2 + $0x78] sm:$0xff] %vm594_vm1, %v9508_v3  ;;  %6626 = vmatmul.msk.f32.gmra.mxu1 %vm594_vm1, %v753_v9 }
  0x31   : > { %611 = vst.msk [vmem:[#allocation2 + $0x80] sm:$0xff] %vm594_vm1, %v9508_v3  ;;  %6589 = vmatmul.msk.f32.gmra.mxu0 %vm594_vm1, %v790_v8 }
  0x32   : > { %612 = vst.msk [vmem:[#allocation2 + $0x88] sm:$0xff] %vm594_vm1, %v9508_v3  ;;  %6664 = vmatmul.msk.f32.gmra.mxu2 %vm594_vm1, %v1301_v10 }
  0x33   : > { %613 = vst.msk [vmem:[#allocation2 + $0x90] sm:$0xff] %vm594_vm1, %v9508_v3 }
  0x34   : > { %614 = vst.msk [vmem:[#allocation2 + $0x98] sm:$0xff] %vm594_vm1, %v9508_v3 }
  0x35   : > { %615 = vst.msk [vmem:[#allocation2 + $0xa0] sm:$0xff] %vm594_vm1, %v9508_v3 }
  0x36   : > { %616 = vst.msk [vmem:[#allocation2 + $0xa8] sm:$0xff] %vm594_vm1, %v9508_v3 }
  0x37   : > { %617 = vst.msk [vmem:[#allocation2 + $0xb0] sm:$0xff] %vm594_vm1, %v9508_v3 }
  0x38   : > { %618 = vst.msk [vmem:[#allocation2 + $0xb8] sm:$0xff] %vm594_vm1, %v9508_v3 }
  0x39   : > { %619 = vst.msk [vmem:[#allocation2 + $0xc0] sm:$0xff] %vm594_vm1, %v9508_v3 }
  0x3a   : > { %620 = vst.msk [vmem:[#allocation2 + $0xc8] sm:$0xff] %vm594_vm1, %v9508_v3 }
  0x3b   : > { %621 = vst.msk [vmem:[#allocation2 + $0xd0] sm:$0xff] %vm594_vm1, %v9508_v3 }
  0x3c   : > { %622 = vst.msk [vmem:[#allocation2 + $0xd8] sm:$0xff] %vm594_vm1, %v9508_v3 }
  0x3d   : > { %623 = vst.msk [vmem:[#allocation2 + $0xe0] sm:$0xff] %vm594_vm1, %v9508_v3 }
  0x3e   : > { %624 = vst.msk [vmem:[#allocation2 + $0xe8] sm:$0xff] %vm594_vm1, %v9508_v3 }
  0x3f   : > { %625 = vst.msk [vmem:[#allocation2 + $0xf0] sm:$0xff] %vm594_vm1, %v9508_v3 }
  0x40   : > { %626 = vst.msk [vmem:[#allocation2 + $0xf8] sm:$0xff] %vm594_vm1, %v9508_v3 }
  0x41   : > { %627 = vst.msk [vmem:[#allocation2 + $0x100] sm:$0xff] %vm594_vm1, %v9508_v3 }
  0x42   : > { %628 = vst.msk [vmem:[#allocation2 + $0x108] sm:$0xff] %vm594_vm1, %v9508_v3 }
  0x43   : > { %629 = vst.msk [vmem:[#allocation2 + $0x110] sm:$0xff] %vm594_vm1, %v9508_v3 }
  0x44   : > { %630 = vst.msk [vmem:[#allocation2 + $0x118] sm:$0xff] %vm594_vm1, %v9508_v3 }
  0x45   : > { %631 = vst.msk [vmem:[#allocation2 + $0x120] sm:$0xff] %vm594_vm1, %v9508_v3 }
  0x46   : > { %632 = vst.msk [vmem:[#allocation2 + $0x128] sm:$0xff] %vm594_vm1, %v9508_v3 }
  0x47   : > { %633 = vst.msk [vmem:[#allocation2 + $0x130] sm:$0xff] %vm594_vm1, %v9508_v3 }
  0x48   : > { %634 = vst.msk [vmem:[#allocation2 + $0x138] sm:$0xff] %vm594_vm1, %v9508_v3 }
  0x49   : > { %635 = vst.msk [vmem:[#allocation2 + $0x140] sm:$0xff] %vm594_vm1, %v9508_v3 }
  0x4a   : > { %675 = vst.msk [vmem:[#allocation2 + $0x13] sm:$0xff] %vm594_vm1, %v673_v11 }
  0x4b   : > { %676 = vst.msk [vmem:[#allocation2 + $0x1b] sm:$0xff] %vm594_vm1, %v674_v12  ;;  %v6571_v12 = vld [vmem:[%s7608_s25 + $0x88] sm:$0xff] }
  0x4c   : > { %680 = vst.msk [vmem:[#allocation2 + $0x25] sm:$0xff] %vm594_vm1, %v6556_v13 }
  0x4d   : > { %681 = vst.msk [vmem:[#allocation2 + $0x2d] sm:$0xff] %vm594_vm1, %v6557_v14 }
  0x4e   : > { %685 = vst.msk [vmem:[#allocation2 + $0x37] sm:$0xff] %vm594_vm1, %v6558_v15 }
  0x4f   : > { %686 = vst.msk [vmem:[#allocation2 + $0x3f] sm:$0xff] %vm594_vm1, %v6559_v19  ;;  %v6572_v19 = vld [vmem:[%s7608_s25 + $0x90] sm:$0xff] }
  0x50   : > { %690 = vst.msk [vmem:[#allocation2 + $0x49] sm:$0xff] %vm594_vm1, %v6560_v23 }
  0x51   : > { %v1610_v16 = vld [vmem:[#allocation2 + $0x12] sm:$0xff]  ;;  %691 = vst.msk [vmem:[#allocation2 + $0x51] sm:$0xff] %vm594_vm1, %v6561_v27 }
  0x52   : > { %v791_v17 = vld [vmem:[#allocation2 + $0x11] sm:$0xff]  ;;  %6701 = vmatmul.msk.f32.vlgmr.msra.gmra.mxu3 %vm594_vm1, %v1610_v16  ;;  %6665 = vmatmul.msk.f32.gmra.mxu2 %vm594_vm1, %v1610_v16  ;;  %v1611_v20 = vld [vmem:[#allocation2 + $0x1a] sm:$0xff]  ;;  %695 = vst.msk [vmem:[#allocation2 + $0x5b] sm:$0xff] %vm594_vm1, %v6562_v34 }
  0x53   : > { %v754_v18 = vld [vmem:[#allocation2 + $0x10] sm:$0xff]  ;;  %6590 = vmatmul.msk.f32.gmra.mxu0 %vm594_vm1, %v791_v17  ;;  %v792_v21 = vld [vmem:[#allocation2 + $0x19] sm:$0xff]  ;;  %v1612_v24 = vld [vmem:[#allocation2 + $0x22] sm:$0xff]  ;;  %696 = vst.msk [vmem:[#allocation2 + $0x63] sm:$0xff] %vm594_vm1, %v6563_v38 }
  0x54   : > { %6627 = vmatmul.msk.f32.gmra.mxu1 %vm594_vm1, %v754_v18  ;;  %v755_v22 = vld [vmem:[#allocation2 + $0x18] sm:$0xff]  ;;  %v793_v25 = vld [vmem:[#allocation2 + $0x21] sm:$0xff]  ;;  %v1613_v28 = vld [vmem:[#allocation2 + $0x2a] sm:$0xff]  ;;  %700 = vst.msk [vmem:[#allocation2 + $0x6d] sm:$0xff] %vm594_vm1, %v6564_v42 }
  0x55   : > { %v756_v26 = vld [vmem:[#allocation2 + $0x20] sm:$0xff]  ;;  %v794_v29 = vld [vmem:[#allocation2 + $0x29] sm:$0xff]  ;;  %v1614_v31 = vld [vmem:[#allocation2 + $0x32] sm:$0xff]  ;;  %701 = vst.msk [vmem:[#allocation2 + $0x75] sm:$0xff] %vm594_vm1, %v6565_v46 }
  0x56   : > { %v757_v30 = vld [vmem:[#allocation2 + $0x28] sm:$0xff]  ;;  %v795_v32 = vld [vmem:[#allocation2 + $0x31] sm:$0xff]  ;;  %v1615_v35 = vld [vmem:[#allocation2 + $0x3a] sm:$0xff]  ;;  %705 = vst.msk [vmem:[#allocation2 + $0x7f] sm:$0xff] %vm594_vm1, %v6566_v50 }
  0x57   : > { %v758_v33 = vld [vmem:[#allocation2 + $0x30] sm:$0xff]  ;;  %v796_v36 = vld [vmem:[#allocation2 + $0x39] sm:$0xff]  ;;  %v1616_v39 = vld [vmem:[#allocation2 + $0x42] sm:$0xff]  ;;  %706 = vst.msk [vmem:[#allocation2 + $0x87] sm:$0xff] %vm594_vm1, %v6567_v54 }
  0x58   : > { %v759_v37 = vld [vmem:[#allocation2 + $0x38] sm:$0xff]  ;;  %v797_v40 = vld [vmem:[#allocation2 + $0x41] sm:$0xff]  ;;  %v1617_v43 = vld [vmem:[#allocation2 + $0x4a] sm:$0xff]  ;;  %710 = vst.msk [vmem:[#allocation2 + $0x91] sm:$0xff] %vm594_vm1, %v6568_v58 }
  0x59   : > { %v760_v41 = vld [vmem:[#allocation2 + $0x40] sm:$0xff]  ;;  %v798_v44 = vld [vmem:[#allocation2 + $0x49] sm:$0xff]  ;;  %v1618_v47 = vld [vmem:[#allocation2 + $0x52] sm:$0xff]  ;;  %711 = vst.msk [vmem:[#allocation2 + $0x99] sm:$0xff] %vm594_vm1, %v6569_v62 }
  0x5a   : > { %6702 = vmatmul.msk.f32.gmra.mxu3 %vm594_vm1, %v1611_v20  ;;  %6666 = vmatmul.msk.f32.gmra.mxu2 %vm594_vm1, %v1611_v20  ;;  %v761_v45 = vld [vmem:[#allocation2 + $0x48] sm:$0xff]  ;;  %v799_v48 = vld [vmem:[#allocation2 + $0x51] sm:$0xff]  ;;  %v1619_v51 = vld [vmem:[#allocation2 + $0x5a] sm:$0xff]  ;;  %715 = vst.msk [vmem:[#allocation2 + $0xa3] sm:$0xff] %vm594_vm1, %v6570_v6 }
  0x5b   : > { %6591 = vmatmul.msk.f32.gmra.mxu0 %vm594_vm1, %v792_v21  ;;  %v762_v49 = vld [vmem:[#allocation2 + $0x50] sm:$0xff]  ;;  %v800_v52 = vld [vmem:[#allocation2 + $0x59] sm:$0xff]  ;;  %v1620_v55 = vld [vmem:[#allocation2 + $0x62] sm:$0xff]  ;;  %716 = vst.msk [vmem:[#allocation2 + $0xab] sm:$0xff] %vm594_vm1, %v6571_v12 }
  0x5c   : > { %6628 = vmatmul.msk.f32.gmra.mxu1 %vm594_vm1, %v755_v22  ;;  %v763_v53 = vld [vmem:[#allocation2 + $0x58] sm:$0xff]  ;;  %v801_v56 = vld [vmem:[#allocation2 + $0x61] sm:$0xff]  ;;  %v1621_v59 = vld [vmem:[#allocation2 + $0x6a] sm:$0xff]  ;;  %720 = vst.msk [vmem:[#allocation2 + $0xb5] sm:$0xff] %vm594_vm1, %v6572_v19 }
  0x5d   : > { %v764_v57 = vld [vmem:[#allocation2 + $0x60] sm:$0xff]  ;;  %v802_v60 = vld [vmem:[#allocation2 + $0x69] sm:$0xff]  ;;  %v1622_v63 = vld [vmem:[#allocation2 + $0x72] sm:$0xff] }
  0x5e   : > { %v765_v61 = vld [vmem:[#allocation2 + $0x68] sm:$0xff]  ;;  %v803_v0 = vld [vmem:[#allocation2 + $0x71] sm:$0xff]  ;;  %v1623_v2 = vld [vmem:[#allocation2 + $0x7a] sm:$0xff] }
  0x5f   : > { %v766_v1 = vld [vmem:[#allocation2 + $0x70] sm:$0xff]  ;;  %v804_v4 = vld [vmem:[#allocation2 + $0x79] sm:$0xff]  ;;  %v1624_v9 = vld [vmem:[#allocation2 + $0x82] sm:$0xff] }
  0x60   : > { %v767_v5 = vld [vmem:[#allocation2 + $0x78] sm:$0xff]  ;;  %v805_v10 = vld [vmem:[#allocation2 + $0x81] sm:$0xff]  ;;  %v1625_v16 = vld [vmem:[#allocation2 + $0x8a] sm:$0xff] }
  0x61   : > { %v768_v11 = vld [vmem:[#allocation2 + $0x80] sm:$0xff]  ;;  %v806_v17 = vld [vmem:[#allocation2 + $0x89] sm:$0xff]  ;;  %v1626_v21 = vld [vmem:[#allocation2 + $0x92] sm:$0xff] }
  0x62   : > { %6703 = vmatmul.msk.f32.gmra.mxu3 %vm594_vm1, %v1612_v24  ;;  %6667 = vmatmul.msk.f32.gmra.mxu2 %vm594_vm1, %v1612_v24  ;;  %v769_v18 = vld [vmem:[#allocation2 + $0x88] sm:$0xff]  ;;  %v807_v23 = vld [vmem:[#allocation2 + $0x91] sm:$0xff]  ;;  %v6574_v34 = vld [vmem:[%s7608_s25 + $0xa0] sm:$0xff] }
  0x63   : > { %6592 = vmatmul.msk.f32.gmra.mxu0 %vm594_vm1, %v793_v25  ;;  %v770_v25 = vld [vmem:[#allocation2 + $0x90] sm:$0xff]  ;;  %725 = vst.msk [vmem:[#allocation2 + $0xc7] sm:$0xff] %vm594_vm1, %v6574_v34  ;;  %v6575_v42 = vld [vmem:[%s7608_s25 + $0xa8] sm:$0xff] }
  0x64   : > { %6629 = vmatmul.msk.f32.gmra.mxu1 %vm594_vm1, %v756_v26  ;;  %v6573_v26 = vld [vmem:[%s7608_s25 + $0x98] sm:$0xff]  ;;  %726 = vst.msk [vmem:[#allocation2 + $0xcf] sm:$0xff] %vm594_vm1, %v6575_v42  ;;  %v810_v50 = vld [vmem:[#allocation2 + $0xa9] sm:$0xff] }
  0x65   : > { %721 = vst.msk [vmem:[#allocation2 + $0xbd] sm:$0xff] %vm594_vm1, %v6573_v26  ;;  %v3174_v3 = vld [vmem:[#allocation2 + $0x96] sm:$0xff] }
  0x6a   : > { %6704 = vmatmul.msk.f32.gmra.mxu3 %vm594_vm1, %v1613_v28  ;;  %6668 = vmatmul.msk.f32.gmra.mxu2 %vm594_vm1, %v1613_v28 }
  0x6b   : > { %6593 = vmatmul.msk.f32.gmra.mxu0 %vm594_vm1, %v794_v29  ;;  %v1627_v29 = vld [vmem:[#allocation2 + $0x9a] sm:$0xff] }
  0x6c   : > { %6630 = vmatmul.msk.f32.gmra.mxu1 %vm594_vm1, %v757_v30 }
  0x72   : > { %6705 = vmatmul.msk.f32.gmra.mxu3 %vm594_vm1, %v1614_v31  ;;  %6669 = vmatmul.msk.f32.gmra.mxu2 %vm594_vm1, %v1614_v31  ;;  %v808_v31 = vld [vmem:[#allocation2 + $0x99] sm:$0xff] }
  0x73   : > { %6594 = vmatmul.msk.f32.gmra.mxu0 %vm594_vm1, %v795_v32 }
  0x74   : > { %6631 = vmatmul.msk.f32.gmra.mxu1 %vm594_vm1, %v758_v33  ;;  %v771_v33 = vld [vmem:[#allocation2 + $0x98] sm:$0xff] }
  0x7a   : > { %6706 = vmatmul.msk.f32.gmra.mxu3 %vm594_vm1, %v1615_v35  ;;  %6670 = vmatmul.msk.f32.gmra.mxu2 %vm594_vm1, %v1615_v35 }
  0x7b   : > { %6595 = vmatmul.msk.f32.gmra.mxu0 %vm594_vm1, %v796_v36 }
  0x7c   : > { %6632 = vmatmul.msk.f32.gmra.mxu1 %vm594_vm1, %v759_v37  ;;  %v1628_v37 = vld [vmem:[#allocation2 + $0xa2] sm:$0xff] }
  0x82   : > { %6707 = vmatmul.msk.f32.gmra.mxu3 %vm594_vm1, %v1616_v39  ;;  %6671 = vmatmul.msk.f32.gmra.mxu2 %vm594_vm1, %v1616_v39  ;;  %v809_v39 = vld [vmem:[#allocation2 + $0xa1] sm:$0xff] }
  0x83   : > { %6596 = vmatmul.msk.f32.gmra.mxu0 %vm594_vm1, %v797_v40 }
  0x84   : > { %6633 = vmatmul.msk.f32.gmra.mxu1 %vm594_vm1, %v760_v41  ;;  %v772_v41 = vld [vmem:[#allocation2 + $0xa0] sm:$0xff] }
  0x8a   : > { %6708 = vmatmul.msk.f32.gmra.mxu3 %vm594_vm1, %v1617_v43  ;;  %6672 = vmatmul.msk.f32.gmra.mxu2 %vm594_vm1, %v1617_v43 }
  0x8b   : > { %6597 = vmatmul.msk.f32.gmra.mxu0 %vm594_vm1, %v798_v44 }
  0x8c   : > { %6634 = vmatmul.msk.f32.gmra.mxu1 %vm594_vm1, %v761_v45 }
  0x92   : > { %6709 = vmatmul.msk.f32.gmra.mxu3 %vm594_vm1, %v1618_v47  ;;  %6673 = vmatmul.msk.f32.gmra.mxu2 %vm594_vm1, %v1618_v47 }
  0x93   : > { %6598 = vmatmul.msk.f32.gmra.mxu0 %vm594_vm1, %v799_v48  ;;  %v1629_v48 = vld [vmem:[#allocation2 + $0xaa] sm:$0xff] }
  0x94   : > { %6635 = vmatmul.msk.f32.gmra.mxu1 %vm594_vm1, %v762_v49 }
  0x9a   : > { %6710 = vmatmul.msk.f32.gmra.mxu3 %vm594_vm1, %v1619_v51  ;;  %6674 = vmatmul.msk.f32.gmra.mxu2 %vm594_vm1, %v1619_v51 }
  0x9b   : > { %6599 = vmatmul.msk.f32.gmra.mxu0 %vm594_vm1, %v800_v52  ;;  %v773_v52 = vld [vmem:[#allocation2 + $0xa8] sm:$0xff] }
  0x9c   : > { %6636 = vmatmul.msk.f32.gmra.mxu1 %vm594_vm1, %v763_v53  ;;  %v6576_v53 = vld [vmem:[%s7608_s25 + $0xb0] sm:$0xff] }
  0x9d   : > { %730 = vst.msk [vmem:[#allocation2 + $0xd9] sm:$0xff] %vm594_vm1, %v6576_v53  ;;  %v6580_v53 = vld [vmem:[%s7608_s25 + $0xd0] sm:$0xff] }
  0x9e   : > { %740 = vst.msk [vmem:[#allocation2 + $0xfd] sm:$0xff] %vm594_vm1, %v6580_v53 }
  0xa2   : > { %6711 = vmatmul.msk.f32.gmra.mxu3 %vm594_vm1, %v1620_v55  ;;  %6675 = vmatmul.msk.f32.gmra.mxu2 %vm594_vm1, %v1620_v55 }
  0xa3   : > { %6600 = vmatmul.msk.f32.gmra.mxu0 %vm594_vm1, %v801_v56 }
  0xa4   : > { %6637 = vmatmul.msk.f32.gmra.mxu1 %vm594_vm1, %v764_v57 }
  0xa5   : > { %v7712_v8 = vpop.f32.mrf.mxu1 }
  0xa6   : > { %v7710_v7 = vpop.f32.mrf.mxu0 }
  0xaa   : > { %6712 = vmatmul.msk.f32.gmra.mxu3 %vm594_vm1, %v1621_v59  ;;  %6676 = vmatmul.msk.f32.gmra.mxu2 %vm594_vm1, %v1621_v59  ;;  %v1630_v59 = vld [vmem:[#allocation2 + $0xb2] sm:$0xff] }
  0xab   : > { %6601 = vmatmul.msk.f32.gmra.mxu0 %vm594_vm1, %v802_v60 }
  0xac   : > { %6638 = vmatmul.msk.f32.gmra.mxu1 %vm594_vm1, %v765_v61  ;;  %v811_v61 = vld [vmem:[#allocation2 + $0xb1] sm:$0xff] }
  0xad   : > { %v7717_v13 = vpop.f32.mrf.mxu2  ;;  %v7724_v15 = vpop.f32.mrf.mxu1 }
  0xae   : > { %v7722_v14 = vpop.f32.mrf.mxu0 }
  0xb2   : > { %6713 = vmatmul.msk.f32.gmra.mxu3 %vm594_vm1, %v1622_v63  ;;  %6677 = vmatmul.msk.f32.gmra.mxu2 %vm594_vm1, %v1622_v63  ;;  %v774_v63 = vld [vmem:[#allocation2 + $0xb0] sm:$0xff] }
  0xb3   : > { %6602 = vmatmul.msk.f32.gmra.mxu0 %vm594_vm1, %v803_v0  ;;  %v6577_v0 = vld [vmem:[%s7608_s25 + $0xb8] sm:$0xff] }
  0xb4   : > { %6639 = vmatmul.msk.f32.gmra.mxu1 %vm594_vm1, %v766_v1  ;;  %731 = vst.msk [vmem:[#allocation2 + $0xe1] sm:$0xff] %vm594_vm1, %v6577_v0  ;;  %v779_v0 = vld [vmem:[#allocation2 + $0xd8] sm:$0xff] }
  0xb5   : > { %v7732_v20 = vpop.f32.mrf.mxu2 }
  0xba   : > { %6714 = vmatmul.msk.f32.gmra.mxu3 %vm594_vm1, %v1623_v2  ;;  %6678 = vmatmul.msk.f32.gmra.mxu2 %vm594_vm1, %v1623_v2 }
  0xbb   : > { %6603 = vmatmul.msk.f32.gmra.mxu0 %vm594_vm1, %v804_v4 }
  0xbc   : > { %6640 = vmatmul.msk.f32.gmra.mxu1 %vm594_vm1, %v767_v5 }
  0xc2   : > { %6715 = vmatmul.msk.f32.gmra.mxu3 %vm594_vm1, %v1624_v9  ;;  %6679 = vmatmul.msk.f32.gmra.mxu2 %vm594_vm1, %v1624_v9  ;;  %v1631_v9 = vld [vmem:[#allocation2 + $0xba] sm:$0xff] }
  0xc3   : > { %6604 = vmatmul.msk.f32.gmra.mxu0 %vm594_vm1, %v805_v10 }
  0xc4   : > { %6641 = vmatmul.msk.f32.gmra.mxu1 %vm594_vm1, %v768_v11  ;;  %v812_v11 = vld [vmem:[#allocation2 + $0xb9] sm:$0xff] }
  0xca   : > { %6716 = vmatmul.msk.f32.gmra.mxu3 %vm594_vm1, %v1625_v16  ;;  %6680 = vmatmul.msk.f32.gmra.mxu2 %vm594_vm1, %v1625_v16  ;;  %v775_v16 = vld [vmem:[#allocation2 + $0xb8] sm:$0xff] }
  0xcb   : > { %6605 = vmatmul.msk.f32.gmra.mxu0 %vm594_vm1, %v806_v17 }
  0xcc   : > { %6642 = vmatmul.msk.f32.gmra.mxu1 %vm594_vm1, %v769_v18 }
  0xd0   : > { %v962_v22 = vpop.f32.mrf.mxu0 }
  0xd1   : > { %v1198_v24 = vpop.f32.mrf.mxu1 }
  0xd2   : > { %6717 = vmatmul.msk.f32.gmra.mxu3 %vm594_vm1, %v1626_v21  ;;  %6681 = vmatmul.msk.f32.gmra.mxu2 %vm594_vm1, %v1626_v21  ;;  %v1199_v43 = vadd.f32 %v1198_v24, %v962_v22 }
  0xd3   : > { %6606 = vmatmul.msk.f32.gmra.mxu0 %vm594_vm1, %v807_v23  ;;  %v1632_v23 = vld [vmem:[#allocation2 + $0xc2] sm:$0xff] }
  0xd4   : > { %6643 = vmatmul.msk.f32.gmra.mxu1 %vm594_vm1, %v770_v25  ;;  %v813_v25 = vld [vmem:[#allocation2 + $0xc1] sm:$0xff] }
  0xd5   : > { %v7740_v27 = vpop.f32.mrf.mxu3  ;;  %v1472_v28 = vpop.f32.mrf.mxu2 }
  0xd6   : > { %v1576_v44 = vadd.f32 %v1472_v28, %v1199_v43  ;;  %v776_v28 = vld [vmem:[#allocation2 + $0xc0] sm:$0xff] }
  0xd8   : > { %v965_v30 = vpop.f32.mrf.mxu0 }
  0xd9   : > { %v1201_v32 = vpop.f32.mrf.mxu1 }
  0xda   : > { %6718 = vmatmul.msk.f32.gmra.mxu3 %vm594_vm1, %v1627_v29  ;;  %6682 = vmatmul.msk.f32.gmra.mxu2 %vm594_vm1, %v1627_v29  ;;  %v1202_v54 = vadd.f32 %v1201_v32, %v965_v30  ;;  %v6578_v29 = vld [vmem:[%s7608_s25 + $0xc0] sm:$0xff] }
  0xdb   : > { %6607 = vmatmul.msk.f32.gmra.mxu0 %vm594_vm1, %v808_v31  ;;  %735 = vst.msk [vmem:[#allocation2 + $0xeb] sm:$0xff] %vm594_vm1, %v6578_v29 }
  0xdc   : > { %6644 = vmatmul.msk.f32.gmra.mxu1 %vm594_vm1, %v771_v33 }
  0xdd   : > { %v7748_v35 = vpop.f32.mrf.mxu3  ;;  %v1475_v36 = vpop.f32.mrf.mxu2 }
  0xde   : > { %v1577_v55 = vadd.f32 %v1475_v36, %v1202_v54  ;;  %v1633_v36 = vld [vmem:[#allocation2 + $0xca] sm:$0xff] }
  0xe0   : > { %v968_v38 = vpop.f32.mrf.mxu0 }
  0xe1   : > { %v1204_v40 = vpop.f32.mrf.mxu1 }
  0xe2   : > { %6719 = vmatmul.msk.f32.gmra.mxu3 %vm594_vm1, %v1628_v37  ;;  %6683 = vmatmul.msk.f32.gmra.mxu2 %vm594_vm1, %v1628_v37  ;;  %v1205_v1 = vadd.f32 %v1204_v40, %v968_v38  ;;  %v814_v38 = vld [vmem:[#allocation2 + $0xc9] sm:$0xff] }
  0xe3   : > { %6608 = vmatmul.msk.f32.gmra.mxu0 %vm594_vm1, %v809_v39  ;;  %v777_v40 = vld [vmem:[#allocation2 + $0xc8] sm:$0xff] }
  0xe4   : > { %6645 = vmatmul.msk.f32.gmra.mxu1 %vm594_vm1, %v772_v41  ;;  %v6579_v41 = vld [vmem:[%s7608_s25 + $0xc8] sm:$0xff] }
  0xe5   : > { %v1782_v45 = vpop.f32.mrf.mxu3  ;;  %v1478_v47 = vpop.f32.mrf.mxu2  ;;  %736 = vst.msk [vmem:[#allocation2 + $0xf3] sm:$0xff] %vm594_vm1, %v6579_v41 }
  0xe6   : > { %v7756_v46 = vadd.f32 %v1782_v45, %v1576_v44  ;;  %v1578_v2 = vadd.f32 %v1478_v47, %v1205_v1  ;;  %v6581_v1 = vld [vmem:[%s7608_s25 + $0xd8] sm:$0xff] }
  0xe7   : > { %741 = vst.msk [vmem:[#allocation2 + $0x105] sm:$0xff] %vm594_vm1, %v6581_v1 }
  0xe8   : > { %v971_v49 = vpop.f32.mrf.mxu0 }
  0xe9   : > { %v1207_v51 = vpop.f32.mrf.mxu1 }
  0xea   : > { %6720 = vmatmul.msk.f32.gmra.mxu3 %vm594_vm1, %v1629_v48  ;;  %6684 = vmatmul.msk.f32.gmra.mxu2 %vm594_vm1, %v1629_v48  ;;  %v1208_v17 = vadd.f32 %v1207_v51, %v971_v49  ;;  %v1634_v48 = vld [vmem:[#allocation2 + $0xd2] sm:$0xff] }
  0xeb   : > { %6609 = vmatmul.msk.f32.gmra.mxu0 %vm594_vm1, %v810_v50  ;;  %v815_v50 = vld [vmem:[#allocation2 + $0xd1] sm:$0xff] }
  0xec   : > { %6646 = vmatmul.msk.f32.gmra.mxu1 %vm594_vm1, %v773_v52  ;;  %v778_v52 = vld [vmem:[#allocation2 + $0xd0] sm:$0xff] }
  0xed   : > { %v1785_v56 = vpop.f32.mrf.mxu3  ;;  %v1481_v58 = vpop.f32.mrf.mxu2  ;;  %v1638_v41 = vld [vmem:[#allocation2 + $0xf2] sm:$0xff] }
  0xee   : > { %v7764_v57 = vadd.f32 %v1785_v56, %v1577_v55  ;;  %v1579_v18 = vadd.f32 %v1481_v58, %v1208_v17 }
  0xf0   : > { %v974_v60 = vpop.f32.mrf.mxu0 }
  0xf1   : > { %v1210_v62 = vpop.f32.mrf.mxu1 }
  0xf2   : > { %6721 = vmatmul.msk.f32.gmra.mxu3 %vm594_vm1, %v1630_v59  ;;  %6685 = vmatmul.msk.f32.gmra.mxu2 %vm594_vm1, %v1630_v59  ;;  %v1211_v30 = vadd.f32 %v1210_v62, %v974_v60  ;;  %v1635_v60 = vld [vmem:[#allocation2 + $0xda] sm:$0xff] }
  0xf3   : > { %6610 = vmatmul.msk.f32.gmra.mxu0 %vm594_vm1, %v811_v61  ;;  %v816_v62 = vld [vmem:[#allocation2 + $0xd9] sm:$0xff] }
  0xf4   : > { %6647 = vmatmul.msk.f32.gmra.mxu1 %vm594_vm1, %v774_v63 }
  0xf5   : > { %v1788_v4 = vpop.f32.mrf.mxu3  ;;  %v1484_v6 = vpop.f32.mrf.mxu2 }
  0xf6   : > { %v7772_v5 = vadd.f32 %v1788_v4, %v1578_v2  ;;  %v1580_v31 = vadd.f32 %v1484_v6, %v1211_v30  ;;  %v818_v30 = vld [vmem:[#allocation2 + $0xe9] sm:$0xff] }
  0xf8   : > { %v977_v10 = vpop.f32.mrf.mxu0 }
  0xf9   : > { %v1213_v12 = vpop.f32.mrf.mxu1 }
  0xfa   : > { %6722 = vmatmul.msk.f32.gmra.mxu3 %vm594_vm1, %v1631_v9  ;;  %6686 = vmatmul.msk.f32.gmra.mxu2 %vm594_vm1, %v1631_v9  ;;  %v1214_v42 = vadd.f32 %v1213_v12, %v977_v10 }
  0xfb   : > { %6611 = vmatmul.msk.f32.gmra.mxu0 %vm594_vm1, %v812_v11  ;;  %v1636_v11 = vld [vmem:[#allocation2 + $0xe2] sm:$0xff] }
  0xfc   : > { %6648 = vmatmul.msk.f32.gmra.mxu1 %vm594_vm1, %v775_v16  ;;  %v817_v16 = vld [vmem:[#allocation2 + $0xe1] sm:$0xff] }
  0xfd   : > { %v1791_v19 = vpop.f32.mrf.mxu3  ;;  %v1487_v22 = vpop.f32.mrf.mxu2 }
  0xfe   : > { %v7778_v21 = vadd.f32 %v1791_v19, %v1579_v18  ;;  %v1581_v43 = vadd.f32 %v1487_v22, %v1214_v42  ;;  %v780_v18 = vld [vmem:[#allocation2 + $0xe0] sm:$0xff] }
  0xff   : > { %v6582_v19 = vld [vmem:[%s7608_s25 + $0xe0] sm:$0xff] }
 0x100   : > { %v980_v24 = vpop.f32.mrf.mxu0  ;;  %745 = vst.msk [vmem:[#allocation2 + $0x10f] sm:$0xff] %vm594_vm1, %v6582_v19 }
 0x101   : > { %v1216_v26 = vpop.f32.mrf.mxu1 }
 0x102   : > { %6723 = vmatmul.msk.f32.gmra.mxu3 %vm594_vm1, %v1632_v23  ;;  %6687 = vmatmul.msk.f32.gmra.mxu2 %vm594_vm1, %v1632_v23  ;;  %v1217_v54 = vadd.f32 %v1216_v26, %v980_v24 }
 0x103   : > { %6612 = vmatmul.msk.f32.gmra.mxu0 %vm594_vm1, %v813_v25 }
 0x104   : > { %6649 = vmatmul.msk.f32.gmra.mxu1 %vm594_vm1, %v776_v28  ;;  %v1637_v28 = vld [vmem:[#allocation2 + $0xea] sm:$0xff] }
 0x105   : > { %v1794_v32 = vpop.f32.mrf.mxu3  ;;  %v1490_v34 = vpop.f32.mrf.mxu2 }
 0x106   : > { %v7786_v33 = vadd.f32 %v1794_v32, %v1580_v31  ;;  %v1582_v55 = vadd.f32 %v1490_v34, %v1217_v54  ;;  %v781_v32 = vld [vmem:[#allocation2 + $0xe8] sm:$0xff]  ;;  %v6737_v54 = vld [vmem:[%s9528_s3 + $0x10] sm:$0x7] }
 0x107   : > { %v6583_v34 = vld [vmem:[%s7608_s25 + $0xe8] sm:$0xff]  ;;  %6738 = vmatpush.msk.msrb.mxu0 %vm935_vm0, %v6737_v54 }
 0x108   : > { %v983_v37 = vpop.f32.mrf.mxu0  ;;  %746 = vst.msk [vmem:[#allocation2 + $0x117] sm:$0xff] %vm594_vm1, %v6583_v34 }
 0x109   : > { %v1219_v39 = vpop.f32.mrf.mxu1 }
 0x10a   : > { %6724 = vmatmul.msk.f32.gmra.mxu3 %vm594_vm1, %v1633_v36  ;;  %6688 = vmatmul.msk.f32.gmra.mxu2 %vm594_vm1, %v1633_v36  ;;  %v1220_v2 = vadd.f32 %v1219_v39, %v983_v37 }
 0x10b   : > { %6613 = vmatmul.msk.f32.gmra.mxu0 %vm594_vm1, %v814_v38 }
 0x10c   : > { %6650 = vmatmul.msk.f32.gmra.mxu1 %vm594_vm1, %v777_v40 }
 0x10d   : > { %v1797_v44 = vpop.f32.mrf.mxu3  ;;  %v1493_v47 = vpop.f32.mrf.mxu2 }
 0x10e   : > { %v7794_v45 = vadd.f32 %v1797_v44, %v1581_v43  ;;  %v1583_v4 = vadd.f32 %v1493_v47, %v1220_v2  ;;  %v819_v43 = vld [vmem:[#allocation2 + $0xf1] sm:$0xff] }
 0x10f   : > { %v782_v47 = vld [vmem:[#allocation2 + $0xf0] sm:$0xff] }
 0x110   : > { %v986_v49 = vpop.f32.mrf.mxu0 }
 0x111   : > { %v1222_v51 = vpop.f32.mrf.mxu1 }
 0x112   : > { %6725 = vmatmul.msk.f32.gmra.mxu3 %vm594_vm1, %v1634_v48  ;;  %6689 = vmatmul.msk.f32.gmra.mxu2 %vm594_vm1, %v1634_v48  ;;  %v1223_v22 = vadd.f32 %v1222_v51, %v986_v49  ;;  %v6584_v48 = vld [vmem:[%s7608_s25 + $0xf0] sm:$0xff] }
 0x113   : > { %6614 = vmatmul.msk.f32.gmra.mxu0 %vm594_vm1, %v815_v50  ;;  %750 = vst.msk [vmem:[#allocation2 + $0x121] sm:$0xff] %vm594_vm1, %v6584_v48  ;;  %v786_v48 = vld [vmem:[#allocation2 + $0x110] sm:$0xff] }
 0x114   : > { %6651 = vmatmul.msk.f32.gmra.mxu1 %vm594_vm1, %v778_v52 }
 0x115   : > { %v1800_v56 = vpop.f32.mrf.mxu3  ;;  %v1496_v59 = vpop.f32.mrf.mxu2 }
 0x116   : > { %v7802_v58 = vadd.f32 %v1800_v56, %v1582_v55  ;;  %v1584_v23 = vadd.f32 %v1496_v59, %v1223_v22  ;;  %v1639_v55 = vld [vmem:[#allocation2 + $0xfa] sm:$0xff] }
 0x117   : > { %v820_v59 = vld [vmem:[#allocation2 + $0xf9] sm:$0xff] }
 0x118   : > { %v989_v61 = vpop.f32.mrf.mxu0 }
 0x119   : > { %v1225_v63 = vpop.f32.mrf.mxu1 }
 0x11a   : > { %6726 = vmatmul.msk.f32.gmra.mxu3 %vm594_vm1, %v1635_v60  ;;  %6690 = vmatmul.msk.f32.gmra.mxu2 %vm594_vm1, %v1635_v60  ;;  %v1226_v36 = vadd.f32 %v1225_v63, %v989_v61  ;;  %v783_v61 = vld [vmem:[#allocation2 + $0xf8] sm:$0xff] }
 0x11b   : > { %6615 = vmatmul.msk.f32.gmra.mxu0 %vm594_vm1, %v816_v62  ;;  %v6585_v62 = vld [vmem:[%s7608_s25 + $0xf8] sm:$0xff] }
 0x11c   : > { %6652 = vmatmul.msk.f32.gmra.mxu1 %vm594_vm1, %v779_v0  ;;  %751 = vst.msk [vmem:[#allocation2 + $0x129] sm:$0xff] %vm594_vm1, %v6585_v62 }
 0x11d   : > { %v1803_v6 = vpop.f32.mrf.mxu3  ;;  %v1499_v10 = vpop.f32.mrf.mxu2 }
 0x11e   : > { %v7810_v9 = vadd.f32 %v1803_v6, %v1583_v4  ;;  %v1585_v37 = vadd.f32 %v1499_v10, %v1226_v36  ;;  %v1640_v6 = vld [vmem:[#allocation2 + $0x102] sm:$0xff]  ;;  %v6775_v36 = vld [vmem:[%s9528_s3 + $0x14] sm:$0x7] }
 0x11f   : > { %6776 = vmatpush.msk.msrb.mxu1 %vm935_vm0, %v6775_v36 }
 0x120   : > { %v992_v12 = vpop.f32.mrf.mxu0 }
 0x121   : > { %v1228_v17 = vpop.f32.mrf.mxu1 }
 0x122   : > { %6727 = vmatmul.msk.f32.gmra.mxu3 %vm594_vm1, %v1636_v11  ;;  %6691 = vmatmul.msk.f32.gmra.mxu2 %vm594_vm1, %v1636_v11  ;;  %v1229_v49 = vadd.f32 %v1228_v17, %v992_v12  ;;  %v821_v11 = vld [vmem:[#allocation2 + $0x101] sm:$0xff] }
 0x123   : > { %6616 = vmatmul.msk.f32.gmra.mxu0 %vm594_vm1, %v817_v16  ;;  %v784_v16 = vld [vmem:[#allocation2 + $0x100] sm:$0xff] }
 0x124   : > { %6653 = vmatmul.msk.f32.gmra.mxu1 %vm594_vm1, %v780_v18 }
 0x125   : > { %v1806_v24 = vpop.f32.mrf.mxu3  ;;  %v1502_v26 = vpop.f32.mrf.mxu2 }
 0x126   : > { %v7818_v25 = vadd.f32 %v1806_v24, %v1584_v23  ;;  %v1586_v50 = vadd.f32 %v1502_v26, %v1229_v49  ;;  %v1641_v24 = vld [vmem:[#allocation2 + $0x10a] sm:$0xff] }
 0x128   : > { %v995_v29 = vpop.f32.mrf.mxu0 }
 0x129   : > { %v1231_v31 = vpop.f32.mrf.mxu1 }
 0x12a   : > { %6728 = vmatmul.msk.f32.gmra.mxu3 %vm594_vm1, %v1637_v28  ;;  %6692 = vmatmul.msk.f32.gmra.mxu2 %vm594_vm1, %v1637_v28  ;;  %v1232_v63 = vadd.f32 %v1231_v31, %v995_v29  ;;  %v822_v28 = vld [vmem:[#allocation2 + $0x109] sm:$0xff] }
 0x12b   : > { %6617 = vmatmul.msk.f32.gmra.mxu0 %vm594_vm1, %v818_v30  ;;  %v785_v30 = vld [vmem:[#allocation2 + $0x108] sm:$0xff] }
 0x12c   : > { %6654 = vmatmul.msk.f32.gmra.mxu1 %vm594_vm1, %v781_v32  ;;  %v6813_v32 = vld [vmem:[%s9528_s3 + $0x18] sm:$0x7] }
 0x12d   : > { %v1809_v38 = vpop.f32.mrf.mxu3  ;;  %v1505_v40 = vpop.f32.mrf.mxu2  ;;  %6814 = vmatpush.msk.msrb.mxu2 %vm935_vm0, %v6813_v32  ;;  %v2541_v32 = vld [vmem:[#allocation2 + $0x2c] sm:$0xff] }
 0x12e   : > { %v7826_v39 = vadd.f32 %v1809_v38, %v1585_v37  ;;  %v1587_v0 = vadd.f32 %v1505_v40, %v1232_v63 }
 0x130   : > { %v998_v42 = vpop.f32.mrf.mxu0 }
 0x131   : > { %v1234_v44 = vpop.f32.mrf.mxu1 }
 0x132   : > { %6729 = vmatmul.msk.f32.gmra.mxu3 %vm594_vm1, %v1638_v41  ;;  %6693 = vmatmul.msk.f32.gmra.mxu2 %vm594_vm1, %v1638_v41  ;;  %v1235_v17 = vadd.f32 %v1234_v44, %v998_v42  ;;  %v6851_v41 = vld [vmem:[%s9528_s3 + $0x1c] sm:$0x7]  ;;  %v1642_v42 = vld [vmem:[#allocation2 + $0x112] sm:$0xff] }
 0x133   : > { %6618 = vmatmul.msk.f32.gmra.mxu0 %vm594_vm1, %v819_v43  ;;  %v823_v44 = vld [vmem:[#allocation2 + $0x111] sm:$0xff]  ;;  %6852 = vmatpush.msk.msrb.mxu3 %vm935_vm0, %v6851_v41 }
 0x134   : > { %6655 = vmatmul.msk.f32.gmra.mxu1 %vm594_vm1, %v782_v47 }
 0x135   : > { %v1812_v51 = vpop.f32.mrf.mxu3  ;;  %v1508_v53 = vpop.f32.mrf.mxu2 }
 0x136   : > { %v7834_v52 = vadd.f32 %v1812_v51, %v1586_v50  ;;  %v1588_v18 = vadd.f32 %v1508_v53, %v1235_v17  ;;  %v2230_v17 = vld [vmem:[#allocation2 + $0x14] sm:$0xff] }
 0x138   : > { %v1001_v56 = vpop.f32.mrf.mxu0 }
 0x139   : > { %v1237_v60 = vpop.f32.mrf.mxu1 }
 0x13a   : > { %6730 = vmatmul.msk.f32.gmra.mxu3 %vm594_vm1, %v1639_v55  ;;  %6694 = vmatmul.msk.f32.gmra.mxu2 %vm594_vm1, %v1639_v55  ;;  %v1238_v31 = vadd.f32 %v1237_v60, %v1001_v56  ;;  %v1643_v55 = vld [vmem:[#allocation2 + $0x11a] sm:$0xff] }
 0x13b   : > { %6619 = vmatmul.msk.f32.gmra.mxu0 %vm594_vm1, %v820_v59  ;;  %v824_v59 = vld [vmem:[#allocation2 + $0x119] sm:$0xff] }
 0x13c   : > { %6656 = vmatmul.msk.f32.gmra.mxu1 %vm594_vm1, %v783_v61  ;;  %v787_v61 = vld [vmem:[#allocation2 + $0x118] sm:$0xff] }
 0x13d   : > { %v1815_v1 = vpop.f32.mrf.mxu3  ;;  %v1511_v4 = vpop.f32.mrf.mxu2 }
 0x13e   : > { %v7846_v2 = vadd.f32 %v1815_v1, %v1587_v0  ;;  %v1589_v34 = vadd.f32 %v1511_v4, %v1238_v31 }
 0x140   : > { %v1004_v10 = vpop.f32.mrf.mxu0 }
 0x141   : > { %v1240_v12 = vpop.f32.mrf.mxu1 }
 0x142   : > { %6731 = vmatmul.msk.f32.gmra.mxu3 %vm594_vm1, %v1640_v6  ;;  %6695 = vmatmul.msk.f32.gmra.mxu2 %vm594_vm1, %v1640_v6  ;;  %v1241_v49 = vadd.f32 %v1240_v12, %v1004_v10  ;;  %v1644_v6 = vld [vmem:[#allocation2 + $0x122] sm:$0xff] }
 0x143   : > { %6620 = vmatmul.msk.f32.gmra.mxu0 %vm594_vm1, %v821_v11  ;;  %v1920_v11 = vld [vmem:[#allocation2 + $0x13] sm:$0xff] }
 0x144   : > { %6657 = vmatmul.msk.f32.gmra.mxu1 %vm594_vm1, %v784_v16  ;;  %v2540_v16 = vld [vmem:[#allocation2 + $0x24] sm:$0xff] }
 0x145   : > { %v1818_v19 = vpop.f32.mrf.mxu3  ;;  %v1514_v23 = vpop.f32.mrf.mxu2 }
 0x146   : > { %v7852_v22 = vadd.f32 %v1818_v19, %v1588_v18  ;;  %v1590_v50 = vadd.f32 %v1514_v23, %v1241_v49  ;;  %v2542_v49 = vld [vmem:[#allocation2 + $0x34] sm:$0xff] }
 0x148   : > { %v1007_v26 = vpop.f32.mrf.mxu0 }
 0x149   : > { %v1243_v29 = vpop.f32.mrf.mxu1 }
 0x14a   : > { %6732 = vmatmul.msk.f32.gmra.mxu3 %vm594_vm1, %v1641_v24  ;;  %6696 = vmatmul.msk.f32.gmra.mxu2 %vm594_vm1, %v1641_v24  ;;  %v1244_v62 = vadd.f32 %v1243_v29, %v1007_v26 }
 0x14b   : > { %6621 = vmatmul.msk.f32.gmra.mxu0 %vm594_vm1, %v822_v28  ;;  %v1645_v28 = vld [vmem:[#allocation2 + $0x12a] sm:$0xff] }
 0x14c   : > { %6658 = vmatmul.msk.f32.gmra.mxu1 %vm594_vm1, %v785_v30  ;;  %v1921_v30 = vld [vmem:[#allocation2 + $0x1b] sm:$0xff] }
 0x14d   : > { %v1821_v37 = vpop.f32.mrf.mxu3  ;;  %v1517_v40 = vpop.f32.mrf.mxu2 }
 0x14e   : > { %v7866_v38 = vadd.f32 %v1821_v37, %v1589_v34  ;;  %v1591_v63 = vadd.f32 %v1517_v40, %v1244_v62  ;;  %v2231_v34 = vld [vmem:[#allocation2 + $0x1c] sm:$0xff] }
 0x150   : > { %v1010_v43 = vpop.f32.mrf.mxu0 }
 0x151   : > { %v1246_v47 = vpop.f32.mrf.mxu1 }
 0x152   : > { %6733 = vmatmul.msk.f32.gmra.mxu3 %vm594_vm1, %v1642_v42  ;;  %6697 = vmatmul.msk.f32.gmra.mxu2 %vm594_vm1, %v1642_v42  ;;  %v1247_v18 = vadd.f32 %v1246_v47, %v1010_v43  ;;  %v2850_v43 = vld [vmem:[#allocation2 + $0x25] sm:$0xff] }
 0x153   : > { %6622 = vmatmul.msk.f32.gmra.mxu0 %vm594_vm1, %v823_v44  ;;  %v1922_v47 = vld [vmem:[#allocation2 + $0x23] sm:$0xff] }
 0x154   : > { %6659 = vmatmul.msk.f32.gmra.mxu1 %vm594_vm1, %v786_v48 }
 0x155   : > { %v1824_v51 = vpop.f32.mrf.mxu3  ;;  %v1520_v54 = vpop.f32.mrf.mxu2 }
 0x156   : > { %v7876_v53 = vadd.f32 %v1824_v51, %v1590_v50  ;;  %v1592_v19 = vadd.f32 %v1520_v54, %v1247_v18 }
 0x158   : > { %v1013_v56 = vpop.f32.mrf.mxu0 }
 0x159   : > { %v1249_v60 = vpop.f32.mrf.mxu1 }
 0x15a   : > { %6734 = vmatmul.msk.f32.gmra.mxu3 %vm594_vm1, %v1643_v55  ;;  %6698 = vmatmul.msk.f32.gmra.mxu2 %vm594_vm1, %v1643_v55  ;;  %v1250_v36 = vadd.f32 %v1249_v60, %v1013_v56 }
 0x15b   : > { %6623 = vmatmul.msk.f32.gmra.mxu0 %vm594_vm1, %v824_v59  ;;  %v2851_v59 = vld [vmem:[#allocation2 + $0x2d] sm:$0xff] }
 0x15c   : > { %6660 = vmatmul.msk.f32.gmra.mxu1 %vm594_vm1, %v787_v61  ;;  %v1923_v61 = vld [vmem:[#allocation2 + $0x2b] sm:$0xff] }
 0x15d   : > { %v1827_v0 = vpop.f32.mrf.mxu3  ;;  %v1523_v4 = vpop.f32.mrf.mxu2 }
 0x15e   : > { %v7882_v1 = vadd.f32 %v1827_v0, %v1591_v63  ;;  %v1593_v37 = vadd.f32 %v1523_v4, %v1250_v36  ;;  %v2543_v63 = vld [vmem:[#allocation2 + $0x3c] sm:$0xff] }
 0x160   : > { %v1016_v10 = vpop.f32.mrf.mxu0 }
 0x161   : > { %v1252_v12 = vpop.f32.mrf.mxu1 }
 0x162   : > { %6735 = vmatmul.msk.f32.gmra.mxu3 %vm594_vm1, %v1644_v6  ;;  %6815 = vmatmul.msk.f32.vlgmr.msrb.gmra.mxu2 %vm594_vm1, %v2540_v16  ;;  %v1253_v50 = vadd.f32 %v1252_v12, %v1016_v10  ;;  %v2852_v12 = vld [vmem:[#allocation2 + $0x35] sm:$0xff] }
 0x163   : > { %6739 = vmatmul.msk.f32.vlgmr.msrb.gmra.mxu0 %vm594_vm1, %v1920_v11 }
 0x164   : > { %6777 = vmatmul.msk.f32.vlgmr.msrb.gmra.mxu1 %vm594_vm1, %v2230_v17  ;;  %v1924_v17 = vld [vmem:[#allocation2 + $0x33] sm:$0xff] }
 0x165   : > { %v1830_v23 = vpop.f32.mrf.mxu3  ;;  %v1526_v26 = vpop.f32.mrf.mxu2 }
 0x166   : > { %v7888_v24 = vadd.f32 %v1830_v23, %v1592_v19  ;;  %v1594_v51 = vadd.f32 %v1526_v26, %v1253_v50  ;;  %v2544_v19 = vld [vmem:[#allocation2 + $0x44] sm:$0xff] }
 0x167   : > { %v1926_v50 = vld [vmem:[#allocation2 + $0x43] sm:$0xff] }
 0x168   : > { %v1019_v29 = vpop.f32.mrf.mxu0 }
 0x169   : > { %v1255_v31 = vpop.f32.mrf.mxu1 }
 0x16a   : > { %6736 = vmatmul.msk.f32.gmra.mxu3 %vm594_vm1, %v1645_v28  ;;  %6816 = vmatmul.msk.f32.gmra.mxu2 %vm594_vm1, %v2541_v32  ;;  %v1256_v0 = vadd.f32 %v1255_v31, %v1019_v29  ;;  %v2853_v31 = vld [vmem:[#allocation2 + $0x3d] sm:$0xff] }
 0x16b   : > { %6740 = vmatmul.msk.f32.gmra.mxu0 %vm594_vm1, %v1921_v30 }
 0x16c   : > { %6778 = vmatmul.msk.f32.gmra.mxu1 %vm594_vm1, %v2231_v34  ;;  %v1925_v34 = vld [vmem:[#allocation2 + $0x3b] sm:$0xff] }
 0x16d   : > { %v1833_v40 = vpop.f32.mrf.mxu3  ;;  %v1529_v42 = vpop.f32.mrf.mxu2 }
 0x16e   : > { %v7894_v41 = vadd.f32 %v1833_v40, %v1593_v37  ;;  %v1595_v4 = vadd.f32 %v1529_v42, %v1256_v0  ;;  %v2545_v37 = vld [vmem:[#allocation2 + $0x4c] sm:$0xff] }
 0x170   : > { %v1022_v44 = vpop.f32.mrf.mxu0 }
 0x171   : > { %v1258_v48 = vpop.f32.mrf.mxu1 }
 0x172   : > { %6853 = vmatmul.msk.f32.vlgmr.msrb.gmra.mxu3 %vm594_vm1, %v2850_v43  ;;  %6817 = vmatmul.msk.f32.gmra.mxu2 %vm594_vm1, %v2542_v49  ;;  %v1259_v23 = vadd.f32 %v1258_v48, %v1022_v44  ;;  %v2854_v48 = vld [vmem:[#allocation2 + $0x45] sm:$0xff] }
 0x173   : > { %6741 = vmatmul.msk.f32.gmra.mxu0 %vm594_vm1, %v1922_v47 }
 0x174   : > { %6779 = vmatmul.msk.f32.gmra.mxu1 %vm594_vm1, %v2540_v16 }
 0x175   : > { %v1836_v54 = vpop.f32.mrf.mxu3  ;;  %v1532_v56 = vpop.f32.mrf.mxu2 }
 0x176   : > { %v7900_v55 = vadd.f32 %v1836_v54, %v1594_v51  ;;  %v1596_v26 = vadd.f32 %v1532_v56, %v1259_v23  ;;  %v2546_v54 = vld [vmem:[#allocation2 + $0x54] sm:$0xff] }
 0x177   : > { %v2856_v23 = vld [vmem:[#allocation2 + $0x55] sm:$0xff] }
 0x178   : > { %v1025_v60 = vpop.f32.mrf.mxu0 }
 0x179   : > { %v1261_v62 = vpop.f32.mrf.mxu1 }
 0x17a   : > { %6854 = vmatmul.msk.f32.gmra.mxu3 %vm594_vm1, %v2851_v59  ;;  %6818 = vmatmul.msk.f32.gmra.mxu2 %vm594_vm1, %v2543_v63  ;;  %v1262_v40 = vadd.f32 %v1261_v62, %v1025_v60 }
 0x17b   : > { %6742 = vmatmul.msk.f32.gmra.mxu0 %vm594_vm1, %v1923_v61 }
 0x17c   : > { %6780 = vmatmul.msk.f32.gmra.mxu1 %vm594_vm1, %v2541_v32 }
 0x17d   : > { %v1839_v6 = vpop.f32.mrf.mxu3  ;;  %v1535_v11 = vpop.f32.mrf.mxu2 }
 0x17e   : > { %v7906_v10 = vadd.f32 %v1839_v6, %v1595_v4  ;;  %v1597_v42 = vadd.f32 %v1535_v11, %v1262_v40  ;;  %v1927_v4 = vld [vmem:[#allocation2 + $0x4b] sm:$0xff]  ;;  %v2547_v11 = vld [vmem:[#allocation2 + $0x5c] sm:$0xff] }
 0x180   : > { %v1028_v16 = vpop.f32.mrf.mxu0 }
 0x181   : > { %v1264_v18 = vpop.f32.mrf.mxu1 }
 0x182   : > { %6855 = vmatmul.msk.f32.gmra.mxu3 %vm594_vm1, %v2852_v12  ;;  %6819 = vmatmul.msk.f32.gmra.mxu2 %vm594_vm1, %v2544_v19  ;;  %v1265_v56 = vadd.f32 %v1264_v18, %v1028_v16 }
 0x183   : > { %6743 = vmatmul.msk.f32.gmra.mxu0 %vm594_vm1, %v1924_v17 }
 0x184   : > { %6781 = vmatmul.msk.f32.gmra.mxu1 %vm594_vm1, %v2542_v49 }
 0x185   : > { %v1842_v28 = vpop.f32.mrf.mxu3  ;;  %v1538_v30 = vpop.f32.mrf.mxu2 }
 0x186   : > { %v7912_v29 = vadd.f32 %v1842_v28, %v1596_v26  ;;  %v1598_v59 = vadd.f32 %v1538_v30, %v1265_v56  ;;  %v1928_v28 = vld [vmem:[#allocation2 + $0x53] sm:$0xff] }
 0x188   : > { %v1031_v32 = vpop.f32.mrf.mxu0 }
 0x189   : > { %v1267_v36 = vpop.f32.mrf.mxu1 }
 0x18a   : > { %6856 = vmatmul.msk.f32.gmra.mxu3 %vm594_vm1, %v2853_v31  ;;  %6820 = vmatmul.msk.f32.gmra.mxu2 %vm594_vm1, %v2545_v37  ;;  %v1268_v12 = vadd.f32 %v1267_v36, %v1031_v32  ;;  %v2548_v31 = vld [vmem:[#allocation2 + $0x64] sm:$0xff] }
 0x18b   : > { %6744 = vmatmul.msk.f32.gmra.mxu0 %vm594_vm1, %v1925_v34 }
 0x18c   : > { %6782 = vmatmul.msk.f32.gmra.mxu1 %vm594_vm1, %v2543_v63  ;;  %v2855_v63 = vld [vmem:[#allocation2 + $0x4d] sm:$0xff] }
 0x18d   : > { %v1845_v43 = vpop.f32.mrf.mxu3  ;;  %v1541_v47 = vpop.f32.mrf.mxu2 }
 0x18e   : > { %v7918_v44 = vadd.f32 %v1845_v43, %v1597_v42  ;;  %v1599_v16 = vadd.f32 %v1541_v47, %v1268_v12  ;;  %v2857_v42 = vld [vmem:[#allocation2 + $0x5d] sm:$0xff]  ;;  %v2550_v12 = vld [vmem:[#allocation2 + $0x74] sm:$0xff] }
 0x18f   : > { %v1929_v47 = vld [vmem:[#allocation2 + $0x5b] sm:$0xff] }
 0x190   : > { %9530 = vst [vmem:[#allocation11_spill] sm:$0xff] %v7918_v44  ;;  %v1034_v49 = vpop.f32.mrf.mxu0 }
 0x191   : > { %v1270_v51 = vpop.f32.mrf.mxu1 }
 0x192   : > { %6857 = vmatmul.msk.f32.gmra.mxu3 %vm594_vm1, %v2854_v48  ;;  %6821 = vmatmul.msk.f32.gmra.mxu2 %vm594_vm1, %v2546_v54  ;;  %v1271_v34 = vadd.f32 %v1270_v51, %v1034_v49 }
 0x193   : > { %6745 = vmatmul.msk.f32.gmra.mxu0 %vm594_vm1, %v1926_v50  ;;  %v2549_v50 = vld [vmem:[#allocation2 + $0x6c] sm:$0xff] }
 0x194   : > { %6783 = vmatmul.msk.f32.gmra.mxu1 %vm594_vm1, %v2544_v19 }
 0x195   : > { %v1848_v60 = vpop.f32.mrf.mxu3  ;;  %v1544_v62 = vpop.f32.mrf.mxu2 }
 0x196   : > { %v7924_v61 = vadd.f32 %v1848_v60, %v1598_v59  ;;  %v1600_v32 = vadd.f32 %v1544_v62, %v1271_v34  ;;  %v2858_v60 = vld [vmem:[#allocation2 + $0x65] sm:$0xff] }
 0x198   : > { %v1037_v0 = vpop.f32.mrf.mxu0 }
 0x199   : > { %v1273_v6 = vpop.f32.mrf.mxu1 }
 0x19a   : > { %6858 = vmatmul.msk.f32.gmra.mxu3 %vm594_vm1, %v2855_v63  ;;  %6822 = vmatmul.msk.f32.gmra.mxu2 %vm594_vm1, %v2547_v11  ;;  %v1274_v56 = vadd.f32 %v1273_v6, %v1037_v0  ;;  %v1930_v63 = vld [vmem:[#allocation2 + $0x63] sm:$0xff] }
 0x19b   : > { %6746 = vmatmul.msk.f32.gmra.mxu0 %vm594_vm1, %v1927_v4 }
 0x19c   : > { %6784 = vmatmul.msk.f32.gmra.mxu1 %vm594_vm1, %v2545_v37 }
 0x19d   : > { %v1851_v17 = vpop.f32.mrf.mxu3  ;;  %v1547_v19 = vpop.f32.mrf.mxu2 }
 0x19e   : > { %v7930_v18 = vadd.f32 %v1851_v17, %v1599_v16  ;;  %v1601_v49 = vadd.f32 %v1547_v19, %v1274_v56  ;;  %v2859_v19 = vld [vmem:[#allocation2 + $0x6d] sm:$0xff] }
 0x19f   : > { %v1932_v56 = vld [vmem:[#allocation2 + $0x73] sm:$0xff] }
 0x1a0   : > { %v1040_v26 = vpop.f32.mrf.mxu0 }
 0x1a1   : > { %v1276_v30 = vpop.f32.mrf.mxu1 }
 0x1a2   : > { %6859 = vmatmul.msk.f32.gmra.mxu3 %vm594_vm1, %v2856_v23  ;;  %6823 = vmatmul.msk.f32.gmra.mxu2 %vm594_vm1, %v2548_v31  ;;  %v1277_v16 = vadd.f32 %v1276_v30, %v1040_v26 }
 0x1a3   : > { %6747 = vmatmul.msk.f32.gmra.mxu0 %vm594_vm1, %v1928_v28  ;;  %v1931_v28 = vld [vmem:[#allocation2 + $0x6b] sm:$0xff] }
 0x1a4   : > { %6785 = vmatmul.msk.f32.gmra.mxu1 %vm594_vm1, %v2546_v54 }
 0x1a5   : > { %v1854_v36 = vpop.f32.mrf.mxu3  ;;  %v1550_v40 = vpop.f32.mrf.mxu2 }
 0x1a6   : > { %v7936_v37 = vadd.f32 %v1854_v36, %v1600_v32  ;;  %v1602_v0 = vadd.f32 %v1550_v40, %v1277_v16  ;;  %v2551_v32 = vld [vmem:[#allocation2 + $0x7c] sm:$0xff] }
 0x1a8   : > { %9531 = vst [vmem:[#allocation12_spill] sm:$0xff] %v7936_v37  ;;  %v1043_v43 = vpop.f32.mrf.mxu0 }
 0x1a9   : > { %v1279_v48 = vpop.f32.mrf.mxu1 }
 0x1aa   : > { %6860 = vmatmul.msk.f32.gmra.mxu3 %vm594_vm1, %v2857_v42  ;;  %6824 = vmatmul.msk.f32.gmra.mxu2 %vm594_vm1, %v2549_v50  ;;  %v1280_v36 = vadd.f32 %v1279_v48, %v1043_v43  ;;  %v2860_v42 = vld [vmem:[#allocation2 + $0x75] sm:$0xff] }
 0x1ab   : > { %6748 = vmatmul.msk.f32.gmra.mxu0 %vm594_vm1, %v1929_v47 }
 0x1ac   : > { %6786 = vmatmul.msk.f32.gmra.mxu1 %vm594_vm1, %v2547_v11 }
 0x1ad   : > { %v1857_v51 = vpop.f32.mrf.mxu3  ;;  %v1553_v59 = vpop.f32.mrf.mxu2 }
 0x1ae   : > { %v7942_v54 = vadd.f32 %v1857_v51, %v1601_v49  ;;  %v1603_v26 = vadd.f32 %v1553_v59, %v1280_v36  ;;  %v2552_v51 = vld [vmem:[#allocation2 + $0x84] sm:$0xff] }
 0x1af   : > { %v2862_v36 = vld [vmem:[#allocation2 + $0x85] sm:$0xff] }
 0x1b0   : > { %9532 = vst [vmem:[#allocation13_spill] sm:$0xff] %v7942_v54  ;;  %v1046_v62 = vpop.f32.mrf.mxu0 }
 0x1b1   : > { %v1282_v4 = vpop.f32.mrf.mxu1 }
 0x1b2   : > { %6861 = vmatmul.msk.f32.gmra.mxu3 %vm594_vm1, %v2858_v60  ;;  %6825 = vmatmul.msk.f32.gmra.mxu2 %vm594_vm1, %v2550_v12  ;;  %v1283_v60 = vadd.f32 %v1282_v4, %v1046_v62 }
 0x1b3   : > { %6749 = vmatmul.msk.f32.gmra.mxu0 %vm594_vm1, %v1930_v63  ;;  %v2861_v63 = vld [vmem:[#allocation2 + $0x7d] sm:$0xff] }
 0x1b4   : > { %6787 = vmatmul.msk.f32.gmra.mxu1 %vm594_vm1, %v2548_v31 }
 0x1b5   : > { %v1860_v6 = vpop.f32.mrf.mxu3  ;;  %v1556_v17 = vpop.f32.mrf.mxu2 }
 0x1b6   : > { %v7948_v11 = vadd.f32 %v1860_v6, %v1602_v0  ;;  %v1604_v43 = vadd.f32 %v1556_v17, %v1283_v60  ;;  %v1933_v0 = vld [vmem:[#allocation2 + $0x7b] sm:$0xff] }
 0x1b8   : > { %9533 = vst [vmem:[#allocation14_spill] sm:$0xff] %v7948_v11  ;;  %v1049_v23 = vpop.f32.mrf.mxu0 }
 0x1b9   : > { %v1285_v34 = vpop.f32.mrf.mxu1 }
 0x1ba   : > { %6862 = vmatmul.msk.f32.gmra.mxu3 %vm594_vm1, %v2859_v19  ;;  %6826 = vmatmul.msk.f32.gmra.mxu2 %vm594_vm1, %v2551_v32  ;;  %v2553_v19 = vld [vmem:[#allocation2 + $0x8c] sm:$0xff] }
 0x1bb   : > { %6750 = vmatmul.msk.f32.gmra.mxu0 %vm594_vm1, %v1931_v28  ;;  %v1286_v28 = vadd.f32 %v1285_v34, %v1049_v23 }
 0x1bc   : > { %6788 = vmatmul.msk.f32.gmra.mxu1 %vm594_vm1, %v2549_v50 }
 0x1bd   : > { %v1863_v30 = vpop.f32.mrf.mxu3  ;;  %v1559_v40 = vpop.f32.mrf.mxu2 }
 0x1be   : > { %v7954_v31 = vadd.f32 %v1863_v30, %v1603_v26  ;;  %v1605_v62 = vadd.f32 %v1559_v40, %v1286_v28  ;;  %v1934_v30 = vld [vmem:[#allocation2 + $0x83] sm:$0xff] }
 0x1bf   : > { %v2555_v28 = vld [vmem:[#allocation2 + $0x9c] sm:$0xff] }
 0x1c0   : > { %9534 = vst [vmem:[#allocation15_spill] sm:$0xff] %v7954_v31  ;;  %v1052_v47 = vpop.f32.mrf.mxu0 }
 0x1c1   : > { %v1288_v49 = vpop.f32.mrf.mxu1 }
 0x1c2   : > { %6863 = vmatmul.msk.f32.gmra.mxu3 %vm594_vm1, %v2860_v42  ;;  %6827 = vmatmul.msk.f32.gmra.mxu2 %vm594_vm1, %v2552_v51  ;;  %v1289_v60 = vadd.f32 %v1288_v49, %v1052_v47  ;;  %v1193_v47 = vadd.f32 %v7712_v8, %v7710_v7  ;;  %v1196_v8 = vadd.f32 %v7724_v15, %v7722_v14  ;;  %v2557_v14 = vld [vmem:[#allocation2 + $0xac] sm:$0xff] }
 0x1c3   : > { %6751 = vmatmul.msk.f32.gmra.mxu0 %vm594_vm1, %v1932_v56  ;;  %v2554_v56 = vld [vmem:[#allocation2 + $0x94] sm:$0xff] }
 0x1c4   : > { %6789 = vmatmul.msk.f32.gmra.mxu1 %vm594_vm1, %v2550_v12 }
 0x1c5   : > { %v1866_v48 = vpop.f32.mrf.mxu3  ;;  %v1562_v59 = vpop.f32.mrf.mxu2 }
 0x1c6   : > { %v7960_v50 = vadd.f32 %v1866_v48, %v1604_v43  ;;  %v1606_v23 = vadd.f32 %v1562_v59, %v1289_v60  ;;  %v2863_v43 = vld [vmem:[#allocation2 + $0x8d] sm:$0xff] }
 0x1c7   : > { %v1936_v60 = vld [vmem:[#allocation2 + $0x93] sm:$0xff] }
 0x1c8   : > { %9535 = vst [vmem:[#allocation16_spill] sm:$0xff] %v7960_v50  ;;  %v1055_v16 = vpop.f32.mrf.mxu0 }
 0x1c9   : > { %v1291_v6 = vpop.f32.mrf.mxu1 }
 0x1ca   : > { %6864 = vmatmul.msk.f32.gmra.mxu3 %vm594_vm1, %v2861_v63  ;;  %6828 = vmatmul.msk.f32.gmra.mxu2 %vm594_vm1, %v2553_v19  ;;  %v1935_v63 = vld [vmem:[#allocation2 + $0x8b] sm:$0xff] }
 0x1cb   : > { %6752 = vmatmul.msk.f32.gmra.mxu0 %vm594_vm1, %v1933_v0 }
 0x1cc   : > { %6790 = vmatmul.msk.f32.gmra.mxu1 %vm594_vm1, %v2551_v32 }
 0x1cd   : > { %v1869_v4 = vpop.f32.mrf.mxu3  ;;  %v1565_v17 = vpop.f32.mrf.mxu2 }
 0x1ce   : > { %v7966_v12 = vadd.f32 %v1869_v4, %v1605_v62  ;;  %v1292_v62 = vadd.f32 %v1291_v6, %v1055_v16  ;;  %v2864_v6 = vld [vmem:[#allocation2 + $0x95] sm:$0xff] }
 0x1d0   : > { %9536 = vst [vmem:[#allocation17_spill] sm:$0xff] %v7966_v12  ;;  %v1058_v26 = vpop.f32.mrf.mxu0  ;;  %v1607_v49 = vadd.f32 %v1565_v17, %v1292_v62 }
 0x1d1   : > { %v1294_v42 = vpop.f32.mrf.mxu1 }
 0x1d2   : > { %6865 = vmatmul.msk.f32.gmra.mxu3 %vm594_vm1, %v2862_v36  ;;  %6829 = vmatmul.msk.f32.gmra.mxu2 %vm594_vm1, %v2554_v56  ;;  %v1295_v7 = vadd.f32 %v1294_v42, %v1058_v26  ;;  %v2865_v42 = vld [vmem:[#allocation2 + $0x9d] sm:$0xff] }
 0x1d3   : > { %6753 = vmatmul.msk.f32.gmra.mxu0 %vm594_vm1, %v1934_v30 }
 0x1d4   : > { %6791 = vmatmul.msk.f32.gmra.mxu1 %vm594_vm1, %v2552_v51  ;;  %v1574_v51 = vadd.f32 %v7717_v13, %v1193_v47 }
 0x1d5   : > { %v1872_v34 = vpop.f32.mrf.mxu3  ;;  %v1568_v40 = vpop.f32.mrf.mxu2 }
 0x1d6   : > { %v7972_v32 = vadd.f32 %v1872_v34, %v1606_v23  ;;  %v1884_v16 = vadd.f32 %v7740_v27, %v1574_v51  ;;  %v2556_v34 = vld [vmem:[#allocation2 + $0xa4] sm:$0xff]  ;;  %v1608_v13 = vadd.f32 %v1568_v40, %v1295_v7  ;;  %v1575_v27 = vadd.f32 %v7732_v20, %v1196_v8  ;;  %v1937_v51 = vld [vmem:[#allocation2 + $0x9b] sm:$0xff] }
 0x1d8   : > { %9537 = vst [vmem:[#allocation18_spill] sm:$0xff] %v7972_v32  ;;  %v1061_v48 = vpop.f32.mrf.mxu0  ;;  %v1885_v26 = vadd.f32 %v7748_v35, %v1575_v27  ;;  %v2867_v27 = vld [vmem:[#allocation2 + $0xad] sm:$0xff] }
 0x1d9   : > { %v1297_v0 = vpop.f32.mrf.mxu1  ;;  %v3177_v32 = vld [vmem:[#allocation2 + $0xae] sm:$0xff] }
 0x1da   : > { %6866 = vmatmul.msk.f32.gmra.mxu3 %vm594_vm1, %v2863_v43  ;;  %6830 = vmatmul.msk.f32.gmra.mxu2 %vm594_vm1, %v2555_v28 }
 0x1db   : > { %6754 = vmatmul.msk.f32.gmra.mxu0 %vm594_vm1, %v1935_v63 }
 0x1dc   : > { %6792 = vmatmul.msk.f32.gmra.mxu1 %vm594_vm1, %v2553_v19 }
 0x1dd   : > { %v1875_v59 = vpop.f32.mrf.mxu3  ;;  %v1571_v36 = vpop.f32.mrf.mxu2 }
 0x1de   : > { %v7981_v4 = vadd.f32 %v1875_v59, %v1607_v49 }
 0x1e0   : > { %9538 = vst [vmem:[#allocation19_spill] sm:$0xff] %v7981_v4  ;;  %v2086_v30 = vpop.f32.mrf.mxu0 }
 0x1e1   : > { %v2396_v23 = vpop.f32.mrf.mxu1  ;;  %v2194_v43 = vadd.f32 %v2086_v30, %v1884_v16  ;;  %v1298_v16 = vadd.f32 %v1297_v0, %v1061_v48  ;;  %v2866_v30 = vld [vmem:[#allocation2 + $0xa5] sm:$0xff]  ;;  %v2558_v48 = vld [vmem:[#allocation2 + $0xb4] sm:$0xff] }
 0x1e2   : > { %6867 = vmatmul.msk.f32.gmra.mxu3 %vm594_vm1, %v2864_v6  ;;  %6831 = vmatmul.msk.f32.gmra.mxu2 %vm594_vm1, %v2556_v34 }
 0x1e3   : > { %6755 = vmatmul.msk.f32.gmra.mxu0 %vm594_vm1, %v1936_v60  ;;  %v2504_v17 = vadd.f32 %v2396_v23, %v2194_v43  ;;  %v1609_v20 = vadd.f32 %v1571_v36, %v1298_v16  ;;  %v1938_v43 = vld [vmem:[#allocation2 + $0xa3] sm:$0xff] }
 0x1e4   : > { %6793 = vmatmul.msk.f32.gmra.mxu1 %vm594_vm1, %v2554_v56 }
 0x1e5   : > { %v1878_v19 = vpop.f32.mrf.mxu3  ;;  %v2706_v62 = vpop.f32.mrf.mxu2 }
 0x1e6   : > { %v7991_v63 = vadd.f32 %v1878_v19, %v1608_v13  ;;  %v2814_v47 = vadd.f32 %v2706_v62, %v2504_v17  ;;  %v1939_v62 = vld [vmem:[#allocation2 + $0xab] sm:$0xff] }
 0x1e8   : > { %9539 = vst [vmem:[#allocation20_spill] sm:$0xff] %v7991_v63  ;;  %v2089_v49 = vpop.f32.mrf.mxu0 }
 0x1e9   : > { %v2399_v59 = vpop.f32.mrf.mxu1  ;;  %v2195_v15 = vadd.f32 %v2089_v49, %v1885_v26 }
 0x1ea   : > { %6868 = vmatmul.msk.f32.gmra.mxu3 %vm594_vm1, %v2865_v42  ;;  %6832 = vmatmul.msk.f32.gmra.mxu2 %vm594_vm1, %v2557_v14  ;;  %v2559_v42 = vld [vmem:[#allocation2 + $0xbc] sm:$0xff] }
 0x1eb   : > { %6756 = vmatmul.msk.f32.gmra.mxu0 %vm594_vm1, %v1937_v51  ;;  %v2505_v40 = vadd.f32 %v2399_v59, %v2195_v15  ;;  %v2868_v59 = vld [vmem:[#allocation2 + $0xb5] sm:$0xff] }
 0x1ec   : > { %6794 = vmatmul.msk.f32.gmra.mxu1 %vm594_vm1, %v2555_v28 }
 0x1ed   : > { %v1881_v56 = vpop.f32.mrf.mxu3  ;;  %v2709_v6 = vpop.f32.mrf.mxu2 }
 0x1ee   : > { %v7998_v35 = vadd.f32 %v1881_v56, %v1609_v20  ;;  %v2815_v60 = vadd.f32 %v2709_v6, %v2505_v40  ;;  %v1940_v20 = vld [vmem:[#allocation2 + $0xb3] sm:$0xff]  ;;  %v2560_v40 = vld [vmem:[#allocation2 + $0xc4] sm:$0xff] }
 0x1f0   : > { %9540 = vst [vmem:[#allocation21_spill] sm:$0xff] %v7998_v35  ;;  %v2092_v23 = vpop.f32.mrf.mxu0  ;;  %v3175_v35 = vld [vmem:[#allocation2 + $0x9e] sm:$0xff] }
 0x1f1   : > { %v2402_v7 = vpop.f32.mrf.mxu1  ;;  %v2196_v0 = vadd.f32 %v2092_v23, %v7756_v46  ;;  %v2869_v23 = vld [vmem:[#allocation2 + $0xbd] sm:$0xff] }
 0x1f2   : > { %6869 = vmatmul.msk.f32.gmra.mxu3 %vm594_vm1, %v2866_v30  ;;  %6833 = vmatmul.msk.f32.gmra.mxu2 %vm594_vm1, %v2558_v48 }
 0x1f3   : > { %6757 = vmatmul.msk.f32.gmra.mxu0 %vm594_vm1, %v1938_v43  ;;  %v2506_v36 = vadd.f32 %v2402_v7, %v2196_v0  ;;  %v1941_v0 = vld [vmem:[#allocation2 + $0xbb] sm:$0xff] }
 0x1f4   : > { %6795 = vmatmul.msk.f32.gmra.mxu1 %vm594_vm1, %v2556_v34 }
 0x1f5   : > { %v3016_v28 = vpop.f32.mrf.mxu3  ;;  %v2712_v13 = vpop.f32.mrf.mxu2 }
 0x1f6   : > { %v8005_v8 = vadd.f32 %v3016_v28, %v2814_v47  ;;  %v2816_v19 = vadd.f32 %v2712_v13, %v2506_v36  ;;  %v2561_v36 = vld [vmem:[#allocation2 + $0xcc] sm:$0xff] }
 0x1f8   : > { %v2095_v17 = vpop.f32.mrf.mxu0 }
 0x1f9   : > { %v2405_v26 = vpop.f32.mrf.mxu1  ;;  %v2197_v46 = vadd.f32 %v2095_v17, %v7764_v57  ;;  %v2870_v17 = vld [vmem:[#allocation2 + $0xc5] sm:$0xff] }
 0x1fa   : > { %6870 = vmatmul.msk.f32.gmra.mxu3 %vm594_vm1, %v2867_v27  ;;  %6834 = vmatmul.msk.f32.gmra.mxu2 %vm594_vm1, %v2559_v42 }
 0x1fb   : > { %6758 = vmatmul.msk.f32.gmra.mxu0 %vm594_vm1, %v1939_v62  ;;  %v2507_v47 = vadd.f32 %v2405_v26, %v2197_v46  ;;  %v1942_v46 = vld [vmem:[#allocation2 + $0xc3] sm:$0xff] }
 0x1fc   : > { %6796 = vmatmul.msk.f32.gmra.mxu1 %vm594_vm1, %v2557_v14 }
 0x1fd   : > { %v3019_v34 = vpop.f32.mrf.mxu3  ;;  %v2715_v51 = vpop.f32.mrf.mxu2 }
 0x1fe   : > { %v8012_v49 = vadd.f32 %v3019_v34, %v2815_v60  ;;  %v2817_v15 = vadd.f32 %v2715_v51, %v2507_v47  ;;  %v2562_v47 = vld [vmem:[#allocation2 + $0xd4] sm:$0xff] }
 0x200   : > { %v2098_v16 = vpop.f32.mrf.mxu0 }
 0x201   : > { %v2408_v56 = vpop.f32.mrf.mxu1  ;;  %v2198_v57 = vadd.f32 %v2098_v16, %v7772_v5  ;;  %v2871_v16 = vld [vmem:[#allocation2 + $0xcd] sm:$0xff] }
 0x202   : > { %6871 = vmatmul.msk.f32.gmra.mxu3 %vm594_vm1, %v2868_v59  ;;  %6835 = vmatmul.msk.f32.gmra.mxu2 %vm594_vm1, %v2560_v40 }
 0x203   : > { %6759 = vmatmul.msk.f32.gmra.mxu0 %vm594_vm1, %v1940_v20  ;;  %v2508_v6 = vadd.f32 %v2408_v56, %v2198_v57  ;;  %v1943_v57 = vld [vmem:[#allocation2 + $0xcb] sm:$0xff] }
 0x204   : > { %6797 = vmatmul.msk.f32.gmra.mxu1 %vm594_vm1, %v2558_v48 }
 0x205   : > { %v3022_v14 = vpop.f32.mrf.mxu3  ;;  %v2718_v60 = vpop.f32.mrf.mxu2 }
 0x206   : > { %v8019_v30 = vadd.f32 %v3022_v14, %v2816_v19  ;;  %v2818_v43 = vadd.f32 %v2718_v60, %v2508_v6  ;;  %v2563_v6 = vld [vmem:[#allocation2 + $0xdc] sm:$0xff] }
 0x208   : > { %v2101_v7 = vpop.f32.mrf.mxu0 }
 0x209   : > { %v2411_v28 = vpop.f32.mrf.mxu1  ;;  %v2199_v5 = vadd.f32 %v2101_v7, %v7778_v21  ;;  %v2872_v7 = vld [vmem:[#allocation2 + $0xd5] sm:$0xff] }
 0x20a   : > { %6872 = vmatmul.msk.f32.gmra.mxu3 %vm594_vm1, %v2869_v23  ;;  %6836 = vmatmul.msk.f32.gmra.mxu2 %vm594_vm1, %v2561_v36 }
 0x20b   : > { %6760 = vmatmul.msk.f32.gmra.mxu0 %vm594_vm1, %v1941_v0  ;;  %v2509_v13 = vadd.f32 %v2411_v28, %v2199_v5  ;;  %v1944_v5 = vld [vmem:[#allocation2 + $0xd3] sm:$0xff] }
 0x20c   : > { %6798 = vmatmul.msk.f32.gmra.mxu1 %vm594_vm1, %v2559_v42 }
 0x20d   : > { %v3025_v48 = vpop.f32.mrf.mxu3  ;;  %v2721_v19 = vpop.f32.mrf.mxu2 }
 0x20e   : > { %v8026_v27 = vadd.f32 %v3025_v48, %v2817_v15  ;;  %v2819_v62 = vadd.f32 %v2721_v19, %v2509_v13  ;;  %v2564_v13 = vld [vmem:[#allocation2 + $0xe4] sm:$0xff] }
 0x210   : > { %v2104_v26 = vpop.f32.mrf.mxu0 }
 0x211   : > { %v2414_v34 = vpop.f32.mrf.mxu1  ;;  %v2200_v21 = vadd.f32 %v2104_v26, %v7786_v33  ;;  %v2873_v26 = vld [vmem:[#allocation2 + $0xdd] sm:$0xff] }
 0x212   : > { %6873 = vmatmul.msk.f32.gmra.mxu3 %vm594_vm1, %v2870_v17  ;;  %6837 = vmatmul.msk.f32.gmra.mxu2 %vm594_vm1, %v2562_v47 }
 0x213   : > { %6761 = vmatmul.msk.f32.gmra.mxu0 %vm594_vm1, %v1942_v46  ;;  %v2510_v51 = vadd.f32 %v2414_v34, %v2200_v21  ;;  %v1945_v21 = vld [vmem:[#allocation2 + $0xdb] sm:$0xff] }
 0x214   : > { %6799 = vmatmul.msk.f32.gmra.mxu1 %vm594_vm1, %v2560_v40 }
 0x215   : > { %v3028_v42 = vpop.f32.mrf.mxu3  ;;  %v2724_v15 = vpop.f32.mrf.mxu2 }
 0x216   : > { %v8033_v59 = vadd.f32 %v3028_v42, %v2818_v43  ;;  %v2820_v20 = vadd.f32 %v2724_v15, %v2510_v51  ;;  %v2565_v51 = vld [vmem:[#allocation2 + $0xec] sm:$0xff] }
 0x218   : > { %v2107_v56 = vpop.f32.mrf.mxu0 }
 0x219   : > { %v2417_v14 = vpop.f32.mrf.mxu1  ;;  %v2201_v33 = vadd.f32 %v2107_v56, %v7794_v45  ;;  %v2874_v56 = vld [vmem:[#allocation2 + $0xe5] sm:$0xff] }
 0x21a   : > { %6874 = vmatmul.msk.f32.gmra.mxu3 %vm594_vm1, %v2871_v16  ;;  %6838 = vmatmul.msk.f32.gmra.mxu2 %vm594_vm1, %v2563_v6 }
 0x21b   : > { %6762 = vmatmul.msk.f32.gmra.mxu0 %vm594_vm1, %v1943_v57  ;;  %v2511_v60 = vadd.f32 %v2417_v14, %v2201_v33  ;;  %v1946_v33 = vld [vmem:[#allocation2 + $0xe3] sm:$0xff] }
 0x21c   : > { %6800 = vmatmul.msk.f32.gmra.mxu1 %vm594_vm1, %v2561_v36 }
 0x21d   : > { %v3031_v40 = vpop.f32.mrf.mxu3  ;;  %v2727_v43 = vpop.f32.mrf.mxu2 }
 0x21e   : > { %v8040_v23 = vadd.f32 %v3031_v40, %v2819_v62  ;;  %v2821_v0 = vadd.f32 %v2727_v43, %v2511_v60  ;;  %v2566_v60 = vld [vmem:[#allocation2 + $0xf4] sm:$0xff] }
 0x220   : > { %v2110_v28 = vpop.f32.mrf.mxu0 }
 0x221   : > { %v2420_v48 = vpop.f32.mrf.mxu1  ;;  %v2202_v45 = vadd.f32 %v2110_v28, %v7802_v58  ;;  %v2875_v28 = vld [vmem:[#allocation2 + $0xed] sm:$0xff] }
 0x222   : > { %6875 = vmatmul.msk.f32.gmra.mxu3 %vm594_vm1, %v2872_v7  ;;  %6839 = vmatmul.msk.f32.gmra.mxu2 %vm594_vm1, %v2564_v13 }
 0x223   : > { %6763 = vmatmul.msk.f32.gmra.mxu0 %vm594_vm1, %v1944_v5  ;;  %v2512_v19 = vadd.f32 %v2420_v48, %v2202_v45  ;;  %v1947_v45 = vld [vmem:[#allocation2 + $0xeb] sm:$0xff] }
 0x224   : > { %6801 = vmatmul.msk.f32.gmra.mxu1 %vm594_vm1, %v2562_v47 }
 0x225   : > { %v3034_v36 = vpop.f32.mrf.mxu3  ;;  %v2730_v62 = vpop.f32.mrf.mxu2 }
 0x226   : > { %v8047_v17 = vadd.f32 %v3034_v36, %v2820_v20  ;;  %v2822_v46 = vadd.f32 %v2730_v62, %v2512_v19  ;;  %v2567_v36 = vld [vmem:[#allocation2 + $0xfc] sm:$0xff] }
 0x228   : > { %v2113_v34 = vpop.f32.mrf.mxu0 }
 0x229   : > { %v2423_v42 = vpop.f32.mrf.mxu1  ;;  %v2203_v58 = vadd.f32 %v2113_v34, %v7810_v9  ;;  %v2876_v34 = vld [vmem:[#allocation2 + $0xf5] sm:$0xff] }
 0x22a   : > { %6876 = vmatmul.msk.f32.gmra.mxu3 %vm594_vm1, %v2873_v26  ;;  %6840 = vmatmul.msk.f32.gmra.mxu2 %vm594_vm1, %v2565_v51 }
 0x22b   : > { %6764 = vmatmul.msk.f32.gmra.mxu0 %vm594_vm1, %v1945_v21  ;;  %v2513_v15 = vadd.f32 %v2423_v42, %v2203_v58  ;;  %v1948_v58 = vld [vmem:[#allocation2 + $0xf3] sm:$0xff] }
 0x22c   : > { %6802 = vmatmul.msk.f32.gmra.mxu1 %vm594_vm1, %v2563_v6 }
 0x22d   : > { %v3037_v47 = vpop.f32.mrf.mxu3  ;;  %v2733_v20 = vpop.f32.mrf.mxu2 }
 0x22e   : > { %v8054_v16 = vadd.f32 %v3037_v47, %v2821_v0  ;;  %v2823_v57 = vadd.f32 %v2733_v20, %v2513_v15  ;;  %v2877_v15 = vld [vmem:[#allocation2 + $0xfd] sm:$0xff] }
 0x230   : > { %v2116_v14 = vpop.f32.mrf.mxu0 }
 0x231   : > { %v2426_v40 = vpop.f32.mrf.mxu1  ;;  %v2204_v9 = vadd.f32 %v2116_v14, %v7818_v25 }
 0x232   : > { %6877 = vmatmul.msk.f32.gmra.mxu3 %vm594_vm1, %v2874_v56  ;;  %6841 = vmatmul.msk.f32.gmra.mxu2 %vm594_vm1, %v2566_v60  ;;  %v1949_v56 = vld [vmem:[#allocation2 + $0xfb] sm:$0xff] }
 0x233   : > { %6765 = vmatmul.msk.f32.gmra.mxu0 %vm594_vm1, %v1946_v33  ;;  %v2514_v43 = vadd.f32 %v2426_v40, %v2204_v9  ;;  %v2878_v40 = vld [vmem:[#allocation2 + $0x105] sm:$0xff] }
 0x234   : > { %6803 = vmatmul.msk.f32.gmra.mxu1 %vm594_vm1, %v2564_v13  ;;  %v1950_v9 = vld [vmem:[#allocation2 + $0x103] sm:$0xff] }
 0x235   : > { %v3040_v6 = vpop.f32.mrf.mxu3  ;;  %v2736_v0 = vpop.f32.mrf.mxu2 }
 0x236   : > { %v8061_v7 = vadd.f32 %v3040_v6, %v2822_v46  ;;  %v2824_v5 = vadd.f32 %v2736_v0, %v2514_v43  ;;  %v2570_v6 = vld [vmem:[#allocation2 + $0x114] sm:$0xff]  ;;  %v6889_v43 = vld [vmem:[%s9528_s3 + $0x20] sm:$0x7]  ;;  %s9615_s3 = sld [smem:[#allocation36_spill]] }
 0x237   : > { %v2879_v0 = vld [vmem:[#allocation2 + $0x10d] sm:$0xff]  ;;  %6890 = vmatpush.msk.msra.mxu0 %vm935_vm0, %v6889_v43  ;;  %v2885_v43 = vld [vmem:[#allocation2 + $0x13d] sm:$0xff]  ;;  %vm6004_vm0 = vcmask 517120  }
 0x238   : > { %v2119_v48 = vpop.f32.mrf.mxu0 }
 0x239   : > { %v2205_v25 = vadd.f32 %v2119_v48, %v7826_v39  ;;  %v2429_v19 = vpop.f32.mrf.mxu1  ;;  %v2568_v39 = vld [vmem:[#allocation2 + $0x104] sm:$0xff]  ;;  %v2571_v48 = vld [vmem:[#allocation2 + $0x11c] sm:$0xff] }
 0x23a   : > { %6878 = vmatmul.msk.f32.gmra.mxu3 %vm594_vm1, %v2875_v28  ;;  %6842 = vmatmul.msk.f32.gmra.mxu2 %vm594_vm1, %v2567_v36 }
 0x23b   : > { %6766 = vmatmul.msk.f32.gmra.mxu0 %vm594_vm1, %v1947_v45  ;;  %v2515_v62 = vadd.f32 %v2429_v19, %v2205_v25  ;;  %v2880_v45 = vld [vmem:[#allocation2 + $0x115] sm:$0xff]  ;;  %v2572_v19 = vld [vmem:[#allocation2 + $0x124] sm:$0xff] }
 0x23c   : > { %6804 = vmatmul.msk.f32.gmra.mxu1 %vm594_vm1, %v2565_v51  ;;  %v1952_v25 = vld [vmem:[#allocation2 + $0x113] sm:$0xff]  ;;  %s9421_s24 = scalar_lea.vmem %s9615_s3, %s7238_s20 }
 0x23d   : > { %v3043_v13 = vpop.f32.mrf.mxu3  ;;  %v2739_v46 = vpop.f32.mrf.mxu2 }
 0x23e   : > { %v8068_v26 = vadd.f32 %v3043_v13, %v2823_v57  ;;  %v2825_v21 = vadd.f32 %v2739_v46, %v2515_v62  ;;  %v2569_v57 = vld [vmem:[#allocation2 + $0x10c] sm:$0xff]  ;;  %v2881_v13 = vld [vmem:[#allocation2 + $0x11d] sm:$0xff] }
 0x23f   : > { %v1953_v46 = vld [vmem:[#allocation2 + $0x11b] sm:$0xff] }
 0x240   : > { %v8070_v42 = vpop.f32.mrf.mxu0 }
 0x242   : > { %6879 = vmatmul.msk.f32.gmra.mxu3 %vm594_vm1, %v2876_v34  ;;  %6843 = vmatmul.msk.f32.gmra.mxu2 %vm594_vm1, %v2568_v39  ;;  %v2573_v34 = vld [vmem:[#allocation2 + $0x12c] sm:$0xff] }
 0x243   : > { %6767 = vmatmul.msk.f32.gmra.mxu0 %vm594_vm1, %v1948_v58 }
 0x244   : > { %6805 = vmatmul.msk.f32.gmra.mxu1 %vm594_vm1, %v2566_v60 }
 0x245   : > { %v3046_v51 = vpop.f32.mrf.mxu3 }
 0x246   : > { %v8076_v47 = vadd.f32 %v3046_v51, %v2824_v5  ;;  %v1951_v5 = vld [vmem:[#allocation2 + $0x10b] sm:$0xff]  ;;  %v2574_v51 = vld [vmem:[#allocation2 + $0x134] sm:$0xff] }
 0x248   : > { %v8078_v20 = vpop.f32.mrf.mxu0 }
 0x24a   : > { %6880 = vmatmul.msk.f32.gmra.mxu3 %vm594_vm1, %v2877_v15  ;;  %6844 = vmatmul.msk.f32.gmra.mxu2 %vm594_vm1, %v2569_v57  ;;  %v2883_v15 = vld [vmem:[#allocation2 + $0x12d] sm:$0xff] }
 0x24b   : > { %6768 = vmatmul.msk.f32.gmra.mxu0 %vm594_vm1, %v1949_v56 }
 0x24c   : > { %6806 = vmatmul.msk.f32.gmra.mxu1 %vm594_vm1, %v2567_v36 }
 0x24d   : > { %v3049_v14 = vpop.f32.mrf.mxu3 }
 0x24e   : > { %v8084_v33 = vadd.f32 %v3049_v14, %v2825_v21  ;;  %v2882_v21 = vld [vmem:[#allocation2 + $0x125] sm:$0xff]  ;;  %v2575_v14 = vld [vmem:[#allocation2 + $0x13c] sm:$0xff] }
 0x250   : > { %v8086_v60 = vpop.f32.mrf.mxu0 }
 0x252   : > { %6881 = vmatmul.msk.f32.gmra.mxu3 %vm594_vm1, %v2878_v40  ;;  %6845 = vmatmul.msk.f32.gmra.mxu2 %vm594_vm1, %v2570_v6  ;;  %v2884_v40 = vld [vmem:[#allocation2 + $0x135] sm:$0xff] }
 0x253   : > { %6769 = vmatmul.msk.f32.gmra.mxu0 %vm594_vm1, %v1950_v9 }
 0x254   : > { %6807 = vmatmul.msk.f32.gmra.mxu1 %vm594_vm1, %v2568_v39  ;;  %v1954_v39 = vld [vmem:[#allocation2 + $0x123] sm:$0xff] }
 0x255   : > { %v8209_v50 = vpop.f32.mrf.mxu3 }
 0x258   : > { %v8095_v28 = vpop.f32.mrf.mxu0 }
 0x25a   : > { %6882 = vmatmul.msk.f32.gmra.mxu3 %vm594_vm1, %v2879_v0  ;;  %6846 = vmatmul.msk.f32.gmra.mxu2 %vm594_vm1, %v2571_v48 }
 0x25b   : > { %6770 = vmatmul.msk.f32.gmra.mxu0 %vm594_vm1, %v1951_v5  ;;  %v3161_v5 = vld [vmem:[#allocation2 + $0x2e] sm:$0xff] }
 0x25c   : > { %6808 = vmatmul.msk.f32.gmra.mxu1 %vm594_vm1, %v2569_v57  ;;  %v1955_v57 = vld [vmem:[#allocation2 + $0x12b] sm:$0xff] }
 0x260   : > { %v8102_v36 = vpop.f32.mrf.mxu0 }
 0x262   : > { %6883 = vmatmul.msk.f32.gmra.mxu3 %vm594_vm1, %v2880_v45  ;;  %6847 = vmatmul.msk.f32.gmra.mxu2 %vm594_vm1, %v2572_v19  ;;  %v3162_v45 = vld [vmem:[#allocation2 + $0x36] sm:$0xff] }
 0x263   : > { %6771 = vmatmul.msk.f32.gmra.mxu0 %vm594_vm1, %v1952_v25 }
 0x264   : > { %6809 = vmatmul.msk.f32.gmra.mxu1 %vm594_vm1, %v2570_v6  ;;  %v3160_v6 = vld [vmem:[#allocation2 + $0x26] sm:$0xff] }
 0x268   : > { %v8108_v62 = vpop.f32.mrf.mxu0 }
 0x26a   : > { %6884 = vmatmul.msk.f32.gmra.mxu3 %vm594_vm1, %v2881_v13  ;;  %6848 = vmatmul.msk.f32.gmra.mxu2 %vm594_vm1, %v2573_v34 }
 0x26b   : > { %6772 = vmatmul.msk.f32.gmra.mxu0 %vm594_vm1, %v1953_v46  ;;  %v3164_v46 = vld [vmem:[#allocation2 + $0x46] sm:$0xff] }
 0x26c   : > { %6810 = vmatmul.msk.f32.gmra.mxu1 %vm594_vm1, %v2571_v48 }
 0x270   : > { %v8114_v58 = vpop.f32.mrf.mxu0 }
 0x272   : > { %6885 = vmatmul.msk.f32.gmra.mxu3 %vm594_vm1, %v2882_v21  ;;  %6849 = vmatmul.msk.f32.gmra.mxu2 %vm594_vm1, %v2574_v51  ;;  %v3165_v21 = vld [vmem:[#allocation2 + $0x4e] sm:$0xff]  ;;  %v3166_v51 = vld [vmem:[#allocation2 + $0x56] sm:$0xff] }
 0x273   : > { %6773 = vmatmul.msk.f32.gmra.mxu0 %vm594_vm1, %v1954_v39 }
 0x274   : > { %6811 = vmatmul.msk.f32.gmra.mxu1 %vm594_vm1, %v2572_v19  ;;  %v3163_v19 = vld [vmem:[#allocation2 + $0x3e] sm:$0xff] }
 0x278   : > { %v8120_v56 = vpop.f32.mrf.mxu0 }
 0x27a   : > { %6886 = vmatmul.msk.f32.gmra.mxu3 %vm594_vm1, %v2883_v15  ;;  %6850 = vmatmul.msk.f32.gmra.mxu2 %vm594_vm1, %v2575_v14 }
 0x27b   : > { %6774 = vmatmul.msk.f32.gmra.mxu0 %vm594_vm1, %v1955_v57  ;;  %v3167_v57 = vld [vmem:[#allocation2 + $0x5e] sm:$0xff] }
 0x27c   : > { %6812 = vmatmul.msk.f32.gmra.mxu1 %vm594_vm1, %v2573_v34 }
 0x280   : > { %v8126_v9 = vpop.f32.mrf.mxu0 }
 0x282   : > { %6887 = vmatmul.msk.f32.gmra.mxu3 %vm594_vm1, %v2884_v40  ;;  %v3168_v40 = vld [vmem:[#allocation2 + $0x66] sm:$0xff] }
 0x283   : > { %6891 = vmatmul.msk.f32.vlgmr.msra.gmra.mxu0 %vm594_vm1, %v3160_v6 }
 0x288   : > { %v8130_v0 = vpop.f32.mrf.mxu0 }
 0x28a   : > { %6888 = vmatmul.msk.f32.gmra.mxu3 %vm594_vm1, %v2885_v43  ;;  %v3169_v43 = vld [vmem:[#allocation2 + $0x6e] sm:$0xff] }
 0x28b   : > { %6892 = vmatmul.msk.f32.gmra.mxu0 %vm594_vm1, %v3161_v5 }
 0x290   : > { %v8134_v48 = vpop.f32.mrf.mxu0 }
 0x293   : > { %6893 = vmatmul.msk.f32.gmra.mxu0 %vm594_vm1, %v3162_v45  ;;  %v3170_v45 = vld [vmem:[#allocation2 + $0x76] sm:$0xff] }
 0x298   : > { %v8137_v25 = vpop.f32.mrf.mxu0 }
 0x299   : > { %9541 = vst [vmem:[#allocation22_spill] sm:$0xff] %v8137_v25 }
 0x29b   : > { %6894 = vmatmul.msk.f32.gmra.mxu0 %vm594_vm1, %v3163_v19 }
 0x2a0   : > { %v8140_v13 = vpop.f32.mrf.mxu0 }
 0x2a3   : > { %6895 = vmatmul.msk.f32.gmra.mxu0 %vm594_vm1, %v3164_v46  ;;  %v3171_v46 = vld [vmem:[#allocation2 + $0x7e] sm:$0xff] }
 0x2a8   : > { %v8143_v34 = vpop.f32.mrf.mxu0 }
 0x2ab   : > { %6896 = vmatmul.msk.f32.gmra.mxu0 %vm594_vm1, %v3165_v21 }
 0x2b0   : > { %v8146_v39 = vpop.f32.mrf.mxu0 }
 0x2b1   : > { %9542 = vst [vmem:[#allocation23_spill] sm:$0xff] %v8146_v39 }
 0x2b3   : > { %6897 = vmatmul.msk.f32.gmra.mxu0 %vm594_vm1, %v3166_v51  ;;  %v3172_v51 = vld [vmem:[#allocation2 + $0x86] sm:$0xff] }
 0x2b8   : > { %v8149_v15 = vpop.f32.mrf.mxu0 }
 0x2b9   : > { %9543 = vst [vmem:[#allocation24_spill] sm:$0xff] %v8149_v15 }
 0x2bb   : > { %6898 = vmatmul.msk.f32.gmra.mxu0 %vm594_vm1, %v3167_v57 }
 0x2c0   : > { %v8152_v14 = vpop.f32.mrf.mxu0 }
 0x2c1   : > { %9544 = vst [vmem:[#allocation25_spill] sm:$0xff] %v8152_v14 }
 0x2c3   : > { %6899 = vmatmul.msk.f32.gmra.mxu0 %vm594_vm1, %v3168_v40  ;;  %v3173_v40 = vld [vmem:[#allocation2 + $0x8e] sm:$0xff] }
 0x2c8   : > { %v8155_v6 = vpop.f32.mrf.mxu0 }
 0x2c9   : > { %9545 = vst [vmem:[#allocation26_spill] sm:$0xff] %v8155_v6  ;;  %v3184_v6 = vld [vmem:[#allocation2 + $0xe6] sm:$0xff] }
 0x2cb   : > { %6900 = vmatmul.msk.f32.gmra.mxu0 %vm594_vm1, %v3169_v43 }
 0x2d0   : > { %v8158_v5 = vpop.f32.mrf.mxu0 }
 0x2d1   : > { %9546 = vst [vmem:[#allocation27_spill] sm:$0xff] %v8158_v5 }
 0x2d3   : > { %6901 = vmatmul.msk.f32.gmra.mxu0 %vm594_vm1, %v3170_v45 }
 0x2d8   : > { %v8161_v19 = vpop.f32.mrf.mxu0 }
 0x2d9   : > { %9547 = vst [vmem:[#allocation28_spill] sm:$0xff] %v8161_v19 }
 0x2db   : > { %6902 = vmatmul.msk.f32.gmra.mxu0 %vm594_vm1, %v3171_v46 }
 0x2e0   : > { %v8164_v21 = vpop.f32.mrf.mxu0 }
 0x2e1   : > { %9548 = vst [vmem:[#allocation29_spill] sm:$0xff] %v8164_v21  ;;  %v3176_v21 = vld [vmem:[#allocation2 + $0xa6] sm:$0xff] }
 0x2e3   : > { %6903 = vmatmul.msk.f32.gmra.mxu0 %vm594_vm1, %v3172_v51 }
 0x2e8   : > { %v8167_v57 = vpop.f32.mrf.mxu0 }
 0x2e9   : > { %9549 = vst [vmem:[#allocation30_spill] sm:$0xff] %v8167_v57  ;;  %v3179_v57 = vld [vmem:[#allocation2 + $0xbe] sm:$0xff] }
 0x2eb   : > { %6904 = vmatmul.msk.f32.gmra.mxu0 %vm594_vm1, %v3173_v40  ;;  %v3178_v40 = vld [vmem:[#allocation2 + $0xb6] sm:$0xff] }
 0x2f0   : > { %v8170_v43 = vpop.f32.mrf.mxu0 }
 0x2f1   : > { %9550 = vst [vmem:[#allocation31_spill] sm:$0xff] %v8170_v43 }
 0x2f3   : > { %6905 = vmatmul.msk.f32.gmra.mxu0 %vm594_vm1, %v3174_v3  ;;  %v8182_v3 = vld [vmem:[%s9552_s8] ss:$0 sm:$0xff] }
 0x2f8   : > { %v8173_v45 = vpop.f32.mrf.mxu0 }
 0x2f9   : > { %9551 = vst [vmem:[#allocation32_spill] sm:$0xff] %v8173_v45 }
 0x2fb   : > { %6906 = vmatmul.msk.f32.gmra.mxu0 %vm594_vm1, %v3175_v35 }
 0x300   : > { %v3326_v46 = vpop.f32.mrf.mxu0 }
 0x301   : > { %v3434_v45 = vadd.f32 %v3326_v46, %v8005_v8 }
 0x303   : > { %6907 = vmatmul.msk.f32.gmra.mxu0 %vm594_vm1, %v3176_v21  ;;  %v8190_v21 = vld [vmem:[%s9553_s13] ss:$0 sm:$0xff]  ;;  %v3474_v4 = vmul.f32 %v8182_v3, %v3434_v45 }
 0x305   : > { %v3514_v12 = vadd.f32 %v8190_v21, %v3474_v4 }
 0x307   : > { %v3550_v5 = vmax.f32 %v3514_v12, 0.0  ;;  %v3181_v12 = vld [vmem:[#allocation2 + $0xce] sm:$0xff] }
 0x308   : > { %v3329_v51 = vpop.f32.mrf.mxu0 }
 0x309   : > { %v3435_v14 = vadd.f32 %v3329_v51, %v8012_v49 }
 0x30b   : > { %6908 = vmatmul.msk.f32.gmra.mxu0 %vm594_vm1, %v3177_v32 }
 0x310   : > { %v3332_v63 = vpop.f32.mrf.mxu0 }
 0x311   : > { %v3436_v43 = vadd.f32 %v3332_v63, %v8019_v30 }
 0x313   : > { %6909 = vmatmul.msk.f32.gmra.mxu0 %vm594_vm1, %v3178_v40  ;;  %v3476_v35 = vmul.f32 %v8182_v3, %v3436_v43  ;;  %v8197_v43 = vpop.f32.mrf.mxu1  ;;  %v8200_v40 = vpop.f32.mrf.mxu2 }
 0x315   : > { %v3516_v63 = vadd.f32 %v8190_v21, %v3476_v35 }
 0x317   : > { %v3552_v8 = vmax.f32 %v3516_v63, 0.0 }
 0x318   : > { %v3335_v32 = vpop.f32.mrf.mxu0 }
 0x319   : > { %v3437_v30 = vadd.f32 %v3335_v32, %v8026_v27  ;;  %v3180_v27 = vld [vmem:[#allocation2 + $0xc6] sm:$0xff]  ;;  %v3602_v45 = vrot.slane %v3552_v8, 2 }
 0x31b   : > { %v3477_v19 = vmul.f32 %v8182_v3, %v3437_v30  ;;  %6910 = vmatmul.msk.f32.gmra.mxu0 %vm594_vm1, %v3179_v57  ;;  %v3475_v57 = vmul.f32 %v8182_v3, %v3435_v14  ;;  %v8213_v8 = vpop.f32.mrf.mxu1 }
 0x31d   : > { %v3517_v46 = vadd.f32 %v8190_v21, %v3477_v19  ;;  %v3515_v51 = vadd.f32 %v8190_v21, %v3475_v57  ;;  %v3182_v57 = vld [vmem:[#allocation2 + $0xd6] sm:$0xff] }
 0x31f   : > { %v3553_v35 = vmax.f32 %v3517_v46, 0.0 }
 0x320   : > { %v3338_v11 = vpop.f32.mrf.mxu0 }
 0x321   : > { %v3603_v32 = vrot.slane %v3553_v35, 2  ;;  %v3438_v30 = vadd.f32 %v3338_v11, %v8033_v59  ;;  %v8215_v11 = vpop.f32.mrf.mxu2  ;;  %v3551_v35 = vmax.f32 %v3515_v51, 0.0 }
 0x323   : > { %v3478_v63 = vmul.f32 %v8182_v3, %v3438_v30  ;;  %6911 = vmatmul.msk.f32.gmra.mxu0 %vm594_vm1, %v3180_v27  ;;  %v3604_v19 = vsel %vm3601_vm2, %v3602_v45, %v3603_v32  ;;  %v8219_v45 = vpop.f32.mrf.mxu3 }
 0x324   : > { %v3609_v4 = vmax.f32 %v3550_v5, %v3604_v19 }
 0x325   : > { %v3518_v49 = vadd.f32 %v8190_v21, %v3478_v63  ;;  %v8221_v63 = vpop.f32.mrf.mxu1 }
 0x327   : > { %v3554_v46 = vmax.f32 %v3518_v49, 0.0 }
 0x328   : > { %v3341_v59 = vpop.f32.mrf.mxu0 }
 0x329   : > { %v3605_v14 = vrot.slane %v3554_v46, 2  ;;  %v8224_v49 = vpop.f32.mrf.mxu2 }
 0x32b   : > { %6912 = vmatmul.msk.f32.gmra.mxu0 %vm594_vm1, %v3181_v12  ;;  %v3606_v27 = vsel %vm3601_vm2, %v3603_v32, %v3605_v14  ;;  %v3183_v12 = vld [vmem:[#allocation2 + $0xde] sm:$0xff]  ;;  %v8228_v14 = vpop.f32.mrf.mxu3 }
 0x32c   : > { %v3610_v5 = vmax.f32 %v3551_v35, %v3606_v27 }
 0x32e   : > { %3628 = vmatpush.msra.mxu1 %v3610_v5  ;;  %3651 = vmatpush.msra.mxu2 %v3610_v5 }
 0x330   : > { %v3344_v30 = vpop.f32.mrf.mxu0  ;;  %3629 = vmatpush.msra.mxu1 %v3609_v4  ;;  %3652 = vmatpush.msra.mxu2 %v3609_v4  ;;  %v8232_v4 = vpop.f32.mrf.mxu1 }
 0x331   : > { %v3440_v19 = vadd.f32 %v3344_v30, %v8047_v17  ;;  %v8236_v17 = vpop.f32.mrf.mxu2 }
 0x333   : > { %6913 = vmatmul.msk.f32.gmra.mxu0 %vm594_vm1, %v3182_v57  ;;  %v3480_v51 = vmul.f32 %v8182_v3, %v3440_v19  ;;  %v3439_v19 = vadd.f32 %v3341_v59, %v8040_v23  ;;  %v8242_v39 = vpop.f32.mrf.mxu3 }
 0x335   : > { %v3520_v35 = vadd.f32 %v8190_v21, %v3480_v51 }
 0x337   : > { %v3556_v30 = vmax.f32 %v3520_v35, 0.0 }
 0x338   : > { %v3347_v32 = vpop.f32.mrf.mxu0 }
 0x339   : > { %v3441_v27 = vadd.f32 %v3347_v32, %v8054_v16  ;;  %v3662_v31 = vrot.slane %v3556_v30, 2  ;;  %v3479_v32 = vmul.f32 %v8182_v3, %v3439_v19  ;;  %v8250_v59 = vpop.f32.mrf.mxu2 }
 0x33b   : > { %v3481_v5 = vmul.f32 %v8182_v3, %v3441_v27  ;;  %6914 = vmatmul.msk.f32.gmra.mxu0 %vm594_vm1, %v3183_v12 }
 0x33d   : > { %v3521_v57 = vadd.f32 %v8190_v21, %v3481_v5  ;;  %v8247_v5 = vpop.f32.mrf.mxu1 }
 0x33f   : > { %v3557_v15 = vmax.f32 %v3521_v57, 0.0  ;;  %v3185_v57 = vld [vmem:[#allocation2 + $0xee] sm:$0xff] }
 0x340   : > { %v3350_v54 = vpop.f32.mrf.mxu0 }
 0x341   : > { %v3663_v51 = vrot.slane %v3557_v15, 2  ;;  %v3442_v16 = vadd.f32 %v3350_v54, %v8061_v7  ;;  %v3519_v15 = vadd.f32 %v8190_v21, %v3479_v32  ;;  %v8259_v32 = vpop.f32.mrf.mxu2 }
 0x343   : > { %v3482_v12 = vmul.f32 %v8182_v3, %v3442_v16  ;;  %6915 = vmatmul.msk.f32.gmra.mxu0 %vm594_vm1, %v3184_v6  ;;  %v3664_v35 = vsel %vm3601_vm2, %v3662_v31, %v3663_v51  ;;  %v3555_v37 = vmax.f32 %v3519_v15, 0.0  ;;  %v3186_v15 = vld [vmem:[#allocation2 + $0xf6] sm:$0xff] }
 0x344   : > { %v3670_v27 = vmax.f32 %v3554_v46, %v3664_v35  ;;  %v8255_v46 = vpop.f32.mrf.mxu3 }
 0x345   : > { %v3522_v23 = vadd.f32 %v8190_v21, %v3482_v12  ;;  %v8257_v44 = vpop.f32.mrf.mxu1 }
 0x346   : > { %v3677_v25 = vrot.slane %v3670_v27, 4  ;;  %v3187_v27 = vld [vmem:[#allocation2 + $0xfe] sm:$0xff] }
 0x347   : > { %v3558_v54 = vmax.f32 %v3522_v23, 0.0 }
 0x348   : > { %v3353_v7 = vpop.f32.mrf.mxu0 }
 0x349   : > { %v3665_v19 = vrot.slane %v3558_v54, 2 }
 0x34b   : > { %6916 = vmatmul.msk.f32.gmra.mxu0 %vm594_vm1, %v3185_v57  ;;  %v3666_v6 = vsel %vm3601_vm2, %v3663_v51, %v3665_v19  ;;  %v3672_v16 = vmax.f32 %v3556_v30, %v3665_v19 }
 0x34c   : > { %v3671_v31 = vmax.f32 %v3555_v37, %v3666_v6  ;;  %v2206_v37 = vadd.f32 %v8070_v42, %v7834_v52  ;;  %v8266_v30 = vpop.f32.mrf.mxu3  ;;  %v3443_v52 = vadd.f32 %v3353_v7, %v8068_v26  ;;  %v2207_v42 = vadd.f32 %v8078_v20, %v7846_v2 }
 0x34d   : > { %v3680_v35 = vrot.slane %v3672_v16, 4  ;;  %v8268_v19 = vpop.f32.mrf.mxu1  ;;  %v8271_v16 = vpop.f32.mrf.mxu2 }
 0x34e   : > { %v3678_v12 = vrot.slane %v3671_v31, 4 }
 0x350   : > { %v3356_v23 = vpop.f32.mrf.mxu0  ;;  %v3681_v54 = vsel %vm3676_vm3, %v3678_v12, %v3680_v35  ;;  %v3679_v57 = vsel %vm3676_vm3, %v3677_v25, %v3678_v12  ;;  %v2516_v25 = vadd.f32 %v8197_v43, %v2206_v37  ;;  %v3483_v37 = vmul.f32 %v8182_v3, %v3443_v52 }
 0x351   : > { %3698 = vmatpush.msra.mxu3 %v3681_v54  ;;  %3718 = vmatpush.msrb.mxu1 %v3681_v54 }
 0x352   : > { %v2826_v31 = vadd.f32 %v8200_v40, %v2516_v25  ;;  %v2517_v40 = vadd.f32 %v8213_v8, %v2207_v42 }
 0x353   : > { %6917 = vmatmul.msk.f32.gmra.mxu0 %vm594_vm1, %v3186_v15  ;;  %3699 = vmatpush.msra.mxu3 %v3679_v57  ;;  %v3188_v15 = vld [vmem:[#allocation2 + $0x106] sm:$0xff] }
 0x354   : > { %3719 = vmatpush.msrb.mxu1 %v3679_v57  ;;  %v3136_v12 = vadd.f32 %v8209_v50, %v2826_v31  ;;  %v2827_v50 = vadd.f32 %v8215_v11, %v2517_v40 }
 0x355   : > { %v8290_v2 = vpop.f32.mrf.mxu2 }
 0x356   : > { %v3137_v25 = vadd.f32 %v8219_v45, %v2827_v50 }
 0x358   : > { %v3359_v51 = vpop.f32.mrf.mxu0 }
 0x359   : > { %v3445_v6 = vadd.f32 %v3359_v51, %v8084_v33  ;;  %v8281_v33 = vpop.f32.mrf.mxu3  ;;  %v8286_v51 = vpop.f32.mrf.mxu1 }
 0x35b   : > { %6918 = vmatmul.msk.f32.gmra.mxu0 %vm594_vm1, %v3187_v27  ;;  %v3485_v35 = vmul.f32 %v8182_v3, %v3445_v6  ;;  %v3523_v27 = vadd.f32 %v8190_v21, %v3483_v37  ;;  %v3444_v6 = vadd.f32 %v3356_v23, %v8076_v47 }
 0x35d   : > { %v3525_v57 = vadd.f32 %v8190_v21, %v3485_v35  ;;  %v3189_v35 = vld [vmem:[#allocation2 + $0x10e] sm:$0xff]  ;;  %v8308_v37 = vpop.f32.mrf.mxu2 }
 0x35f   : > { %v3561_v20 = vmax.f32 %v3525_v57, 0.0 }
 0x360   : > { %v3362_v54 = vpop.f32.mrf.mxu0 }
 0x361   : > { %v3446_v43 = vadd.f32 %v3362_v54, %v3136_v12  ;;  %v3729_v52 = vrot.slane %v3561_v20, 2  ;;  %v3484_v54 = vmul.f32 %v8182_v3, %v3444_v6  ;;  %v8303_v23 = vpop.f32.mrf.mxu1 }
 0x363   : > { %v3486_v26 = vmul.f32 %v8182_v3, %v3446_v43  ;;  %6919 = vmatmul.msk.f32.gmra.mxu0 %vm594_vm1, %v3188_v15  ;;  %v3559_v15 = vmax.f32 %v3523_v27, 0.0  ;;  %v8298_v43 = vpop.f32.mrf.mxu3  ;;  %v3524_v40 = vadd.f32 %v8190_v21, %v3484_v54 }
 0x365   : > { %v3526_v7 = vadd.f32 %v8190_v21, %v3486_v26  ;;  %v2209_v26 = vadd.f32 %v8095_v28, %v7866_v38  ;;  %v3560_v6 = vmax.f32 %v3524_v40, 0.0  ;;  %v2210_v38 = vadd.f32 %v8102_v36, %v7876_v53  ;;  %v8327_v54 = vpop.f32.mrf.mxu2 }
 0x366   : > { %v2208_v53 = vadd.f32 %v8086_v60, %v7852_v22  ;;  %v3192_v60 = vld [vmem:[#allocation2 + $0x126] sm:$0xff] }
 0x367   : > { %v3562_v8 = vmax.f32 %v3526_v7, 0.0  ;;  %v3190_v7 = vld [vmem:[#allocation2 + $0x116] sm:$0xff] }
 0x368   : > { %v3365_v31 = vpop.f32.mrf.mxu0 }
 0x369   : > { %v3730_v42 = vrot.slane %v3562_v8, 2  ;;  %v3447_v12 = vadd.f32 %v3365_v31, %v3137_v25  ;;  %v2519_v25 = vadd.f32 %v8232_v4, %v2209_v26 }
 0x36b   : > { %v3487_v11 = vmul.f32 %v8182_v3, %v3447_v12  ;;  %6920 = vmatmul.msk.f32.gmra.mxu0 %vm594_vm1, %v3189_v35  ;;  %v3731_v57 = vsel %vm3601_vm2, %v3729_v52, %v3730_v42  ;;  %v2829_v35 = vadd.f32 %v8236_v17, %v2519_v25  ;;  %v8320_v52 = vpop.f32.mrf.mxu3  ;;  %v8325_v12 = vpop.f32.mrf.mxu1  ;;  %v2520_v17 = vadd.f32 %v8247_v5, %v2210_v38 }
 0x36c   : > { %v3736_v47 = vmax.f32 %v3559_v15, %v3731_v57 }
 0x36d   : > { %v8306_v45 = vadd.f32 %v8190_v21, %v3487_v11  ;;  %v3139_v28 = vadd.f32 %v8242_v39, %v2829_v35  ;;  %v3586_v11 = vlaneseq  ;;  %v2830_v36 = vadd.f32 %v8250_v59, %v2520_v17 }
 0x36e   : > { %v9556_v59 = vmov 0.0  }
 0x36f   : > { %v3563_v50 = vmax.f32 %v8306_v45, 0.0  ;;  %v8331_v57 = vshrl.u32 %v3586_v11, 7  ;;  %v3140_v26 = vadd.f32 %v8255_v46, %v2830_v36  ;;  %v8343_v5 = vand.u32 127, %v3586_v11  ;;  %656 = vst.msk [vmem:[#allocation4] sm:$0xff] %vm655_vm4, %v9556_v59 }
 0x370   : > { %v3368_v20 = vpop.f32.mrf.mxu0  ;;  %657 = vst.msk [vmem:[#allocation4 + $0x8] sm:$0xff] %vm655_vm4, %v9556_v59 }
 0x371   : > { %v3732_v27 = vrot.slane %v3563_v50, 2  ;;  %9554 = vst [vmem:[#allocation33_spill] sm:$0xff] %v8331_v57  ;;  %v3590_v40 = vmul.u32 2, %v8331_v57 }
 0x372   : > { %9555 = vst [vmem:[#allocation34_spill] sm:$0xff] %v8343_v5 }
 0x373   : > { %6921 = vmatmul.msk.f32.gmra.mxu0 %vm594_vm1, %v3190_v7  ;;  %v3733_v8 = vsel %vm3601_vm2, %v3730_v42, %v3732_v27  ;;  %v3191_v42 = vld [vmem:[#allocation2 + $0x11e] sm:$0xff]  ;;  %v8341_v7 = vpop.f32.mrf.mxu3  ;;  %v3594_v27 = vadd.s32 1, %v3590_v40  ;;  %v8348_v25 = vpop.f32.mrf.mxu1  ;;  %vm3591_vm5 = vcmp.eq.s32.totalorder %v8343_v5, %v3590_v40  ;;  %658 = vst.msk [vmem:[#allocation4 + $0x10] sm:$0xff] %vm655_vm4, %v9556_v59 }
 0x374   : > { %v3737_v31 = vmax.f32 %v3560_v6, %v3733_v8  ;;  %v2518_v6 = vadd.f32 %v8221_v63, %v2208_v53  ;;  %v8356_v63 = vpop.f32.mrf.mxu2  ;;  %v8359_v46 = vsel %vm3591_vm5, 1.0, %v9556_v59  ;;  %659 = vst.msk [vmem:[#allocation4 + $0x18] sm:$0xff] %vm655_vm4, %v9556_v59 }
 0x375   : > { %vm3595_vm6 = vcmp.eq.s32.totalorder %v8343_v5, %v3594_v27  ;;  %6929 = vmatmul.msk.f32.vlgmr.msra.gmra.mxu1 %vm655_vm4, %v8359_v46  ;;  %660 = vst.msk [vmem:[#allocation4 + $0x20] sm:$0xff] %vm655_vm4, %v9556_v59  ;;  %6931 = vmatmul.msk.f32.vlgmr.msra.gmra.mxu3 %vm655_vm4, %v8359_v46 }
 0x376   : > { %3752 = vmatpush.msrb.mxu2 %v3737_v31  ;;  %3772 = vmatpush.msrb.mxu3 %v3737_v31  ;;  %v8364_v31 = vsel %vm3595_vm6, 1.0, %v9556_v59  ;;  %641 = vst.msk [vmem:[#allocation3 + $0x8] sm:$0xff] %vm639_vm7, %v9556_v59  ;;  %vm6321_vm6 = vcmask 17408  }
 0x377   : > { %6930 = vmatmul.msk.f32.vlgmr.msra.gmra.mxu2 %vm655_vm4, %v8364_v31  ;;  %642 = vst.msk [vmem:[#allocation3 + $0x10] sm:$0xff] %vm639_vm7, %v9556_v59 }
 0x378   : > { %v3371_v4 = vpop.f32.mrf.mxu0  ;;  %3753 = vmatpush.msrb.mxu2 %v3736_v47  ;;  %3773 = vmatpush.msrb.mxu3 %v3736_v47  ;;  %v2211_v47 = vadd.f32 %v8108_v62, %v7882_v1  ;;  %v2828_v62 = vadd.f32 %v8224_v49, %v2518_v6  ;;  %640 = vst.msk [vmem:[#allocation3] sm:$0xff] %vm639_vm7, %v9556_v59 }
 0x379   : > { %v3449_v15 = vadd.f32 %v3371_v4, %v3139_v28  ;;  %643 = vst.msk [vmem:[#allocation3 + $0x18] sm:$0xff] %vm639_vm7, %v9556_v59 }
 0x37a   : > { %v2521_v35 = vadd.f32 %v8257_v44, %v2211_v47  ;;  %v3138_v49 = vadd.f32 %v8228_v14, %v2828_v62  ;;  %v3193_v14 = vld [vmem:[#allocation2 + $0x12e] sm:$0xff]  ;;  %644 = vst.msk [vmem:[#allocation3 + $0x20] sm:$0xff] %vm639_vm7, %v9556_v59 }
 0x37b   : > { %6922 = vmatmul.msk.f32.gmra.mxu0 %vm594_vm1, %v3191_v42  ;;  %v3489_v39 = vmul.f32 %v8182_v3, %v3449_v15  ;;  %v8383_v53 = vpop.f32.mrf.mxu3  ;;  %645 = vst.msk [vmem:[#allocation3 + $0x28] sm:$0xff] %vm639_vm7, %v9556_v59 }
 0x37c   : > { %v2831_v44 = vadd.f32 %v8259_v32, %v2521_v35  ;;  %v3448_v42 = vadd.f32 %v3368_v20, %v3138_v49  ;;  %646 = vst.msk [vmem:[#allocation3 + $0x30] sm:$0xff] %vm639_vm7, %v9556_v59 }
 0x37d   : > { %v3529_v8 = vadd.f32 %v8190_v21, %v3489_v39  ;;  %6932 = vmatmul.msk.f32.vlgmr.msrb.gmra.mxu1 %vm655_vm4, %v8364_v31  ;;  %6934 = vmatmul.msk.f32.vlgmr.msrb.gmra.mxu3 %vm655_vm4, %v8364_v31  ;;  %647 = vst.msk [vmem:[#allocation3 + $0x38] sm:$0xff] %vm639_vm7, %v9556_v59 }
 0x37e   : > { %v3141_v15 = vadd.f32 %v8266_v30, %v2831_v44  ;;  %v3488_v47 = vmul.f32 %v8182_v3, %v3448_v42  ;;  %v8393_v30 = vpop.f32.mrf.mxu2  ;;  %648 = vst.msk [vmem:[#allocation3 + $0x40] sm:$0xff] %vm639_vm7, %v9556_v59 }
 0x37f   : > { %v3565_v28 = vmax.f32 %v3529_v8, 0.0  ;;  %6933 = vmatmul.msk.f32.vlgmr.msrb.gmra.mxu2 %vm655_vm4, %v8359_v46  ;;  %649 = vst.msk [vmem:[#allocation3 + $0x48] sm:$0xff] %vm639_vm7, %v9556_v59 }
 0x380   : > { %v3374_v22 = vpop.f32.mrf.mxu0  ;;  %650 = vst.msk [vmem:[#allocation3 + $0x50] sm:$0xff] %vm639_vm7, %v9556_v59 }
 0x381   : > { %v3450_v1 = vadd.f32 %v3374_v22, %v3140_v26  ;;  %v3783_v36 = vrot.slane %v3565_v28, 2  ;;  %v8386_v26 = vpop.f32.mrf.mxu1  ;;  %v3528_v22 = vadd.f32 %v8190_v21, %v3488_v47  ;;  %651 = vst.msk [vmem:[#allocation3 + $0x58] sm:$0xff] %vm639_vm7, %v9556_v59 }
 0x382   : > { %652 = vst.msk [vmem:[#allocation3 + $0x60] sm:$0xff] %vm639_vm7, %v9556_v59 }
 0x383   : > { %v3490_v38 = vmul.f32 %v8182_v3, %v3450_v1  ;;  %6923 = vmatmul.msk.f32.gmra.mxu0 %vm594_vm1, %v3192_v60  ;;  %v3194_v1 = vld [vmem:[#allocation2 + $0x136] sm:$0xff]  ;;  %v3564_v35 = vmax.f32 %v3528_v22, 0.0 }
 0x385   : > { %v3530_v4 = vadd.f32 %v8190_v21, %v3490_v38  ;;  %v8403_v38 = vpop.f32.mrf.mxu3 }
 0x386   : > { %v8409_v42 = vpop.f32.mrf.mxu2 }
 0x387   : > { %v3566_v11 = vmax.f32 %v3530_v4, 0.0 }
 0x388   : > { %v3377_v17 = vpop.f32.mrf.mxu0 }
 0x389   : > { %v3784_v39 = vrot.slane %v3566_v11, 2  ;;  %v3451_v40 = vadd.f32 %v3377_v17, %v3141_v15  ;;  %v8407_v44 = vpop.f32.mrf.mxu1  ;;  %v2214_v17 = vadd.f32 %v8126_v9, %v7900_v55 }
 0x38b   : > { %v3491_v32 = vmul.f32 %v8182_v3, %v3451_v40  ;;  %6924 = vmatmul.msk.f32.gmra.mxu0 %vm594_vm1, %v3193_v14  ;;  %v3785_v20 = vsel %vm3601_vm2, %v3783_v36, %v3784_v39  ;;  %v3195_v40 = vld [vmem:[#allocation2 + $0x13e] sm:$0xff] }
 0x38c   : > { %v3791_v27 = vmax.f32 %v3563_v50, %v3785_v20 }
 0x38d   : > { %v3531_v6 = vadd.f32 %v8190_v21, %v3491_v32  ;;  %v8422_v9 = vpop.f32.mrf.mxu3 }
 0x38e   : > { %v3797_v11 = vrot.slane %v3791_v27, 4 }
 0x38f   : > { %v3567_v60 = vmax.f32 %v3531_v6, 0.0 }
 0x390   : > { %v3380_v8 = vpop.f32.mrf.mxu0 }
 0x391   : > { %v3786_v62 = vrot.slane %v3567_v60, 2  ;;  %v8429_v20 = vpop.f32.mrf.mxu1  ;;  %v2213_v60 = vadd.f32 %v8120_v56, %v7894_v41 }
 0x393   : > { %6925 = vmatmul.msk.f32.gmra.mxu0 %vm594_vm1, %v3194_v1  ;;  %v3787_v45 = vsel %vm3601_vm2, %v3784_v39, %v3786_v62  ;;  %v3793_v50 = vmax.f32 %v3565_v28, %v3786_v62  ;;  %v2524_v28 = vadd.f32 %v8303_v23, %v2214_v17  ;;  %v2212_v39 = vadd.f32 %v8114_v58, %v7888_v24  ;;  %v8432_v58 = vpop.f32.mrf.mxu2 }
 0x394   : > { %v3792_v49 = vmax.f32 %v3564_v35, %v3787_v45  ;;  %v2215_v23 = vadd.f32 %v8130_v0, %v7906_v10 }
 0x395   : > { %v3800_v4 = vrot.slane %v3793_v50, 4  ;;  %v2834_v55 = vadd.f32 %v8308_v37, %v2524_v28  ;;  %v2522_v24 = vadd.f32 %v8268_v19, %v2212_v39  ;;  %v2216_v19 = vadd.f32 %v8134_v48, %v7912_v29  ;;  %v3091_v35 = vpop.f32.mrf.mxu3 }
 0x396   : > { %v3798_v15 = vrot.slane %v3792_v49, 4  ;;  %v2525_v22 = vadd.f32 %v8325_v12, %v2215_v23 }
 0x397   : > { %v3144_v32 = vadd.f32 %v8320_v52, %v2834_v55  ;;  %v2832_v37 = vadd.f32 %v8271_v16, %v2522_v24  ;;  %v2523_v16 = vadd.f32 %v8286_v51, %v2213_v60  ;;  %v2526_v50 = vadd.f32 %v8348_v25, %v2216_v19 }
 0x398   : > { %v3383_v14 = vpop.f32.mrf.mxu0  ;;  %v3801_v36 = vsel %vm3676_vm3, %v3798_v15, %v3800_v4  ;;  %v3799_v47 = vsel %vm3676_vm3, %v3797_v11, %v3798_v15  ;;  %v2835_v10 = vadd.f32 %v8327_v54, %v2525_v22  ;;  %v2218_v24 = vadd.f32 %v8140_v13, %v7924_v61 }
 0x399   : > { %3818 = vmatpush.msra.mxu1 %v3801_v36  ;;  %3838 = vmatpush.msra.mxu2 %v3801_v36  ;;  %v3142_v1 = vadd.f32 %v8281_v33, %v2832_v37  ;;  %v8445_v12 = vpop.f32.mrf.mxu1  ;;  %v2833_v33 = vadd.f32 %v8290_v2, %v2523_v16  ;;  %v2836_v51 = vadd.f32 %v8356_v63, %v2526_v50 }
 0x39a   : > { %v3145_v62 = vadd.f32 %v8341_v7, %v2835_v10  ;;  %v2528_v60 = vadd.f32 %v8407_v44, %v2218_v24  ;;  %v2219_v61 = vadd.f32 %v8143_v34, %v7930_v18 }
 0x39b   : > { %6926 = vmatmul.msk.f32.gmra.mxu0 %vm594_vm1, %v3195_v40  ;;  %3819 = vmatpush.msra.mxu1 %v3799_v47  ;;  %v3452_v52 = vadd.f32 %v3380_v8, %v3142_v1  ;;  %v8449_v54 = vpop.f32.mrf.mxu2  ;;  %v3143_v48 = vadd.f32 %v8298_v43, %v2833_v33  ;;  %v3146_v2 = vadd.f32 %v8383_v53, %v2836_v51  ;;  %vm6006_vm1 = vcmask 521220  }
 0x39c   : > { %3839 = vmatpush.msra.mxu2 %v3799_v47  ;;  %6935 = vmatmul.msk.f32.vlgmr.msra.gmra.mxu1 %vm655_vm4, %v8359_v46 }
 0x39d   : > { %6936 = vmatmul.msk.f32.vlgmr.msra.gmra.mxu2 %vm655_vm4, %v8364_v31  ;;  %v3492_v8 = vmul.f32 %v8182_v3, %v3452_v52  ;;  %v3453_v15 = vadd.f32 %v3383_v14, %v3143_v48  ;;  %v3094_v36 = vpop.f32.mrf.mxu3  ;;  %v2838_v52 = vadd.f32 %v8409_v42, %v2528_v60  ;;  %v2529_v42 = vadd.f32 %v8429_v20, %v2219_v61 }
 0x39f   : > { %v3532_v4 = vadd.f32 %v8190_v21, %v3492_v8  ;;  %v3493_v28 = vmul.f32 %v8182_v3, %v3453_v15  ;;  %v3148_v13 = vadd.f32 %v8422_v9, %v2838_v52  ;;  %v2839_v33 = vadd.f32 %v8432_v58, %v2529_v42  ;;  %v9559_v9 = vld [vmem:[#allocation12_spill] sm:$0xff]  ;;  %v9560_v8 = vld [vmem:[#allocation23_spill] sm:$0xff] }
 0x3a0   : > { %v3386_v27 = vpop.f32.mrf.mxu0  ;;  %v2220_v50 = vadd.f32 %v9560_v8, %v9559_v9 }
 0x3a1   : > { %v3454_v6 = vadd.f32 %v3386_v27, %v3144_v32  ;;  %v3568_v39 = vmax.f32 %v3532_v4, 0.0  ;;  %v8460_v43 = vpop.f32.mrf.mxu1  ;;  %v3533_v32 = vadd.f32 %v8190_v21, %v3493_v28 }
 0x3a2   : > { %v2530_v58 = vadd.f32 %v8445_v12, %v2220_v50 }
 0x3a3   : > { %v3494_v0 = vmul.f32 %v8182_v3, %v3454_v6  ;;  %v8464_v23 = vpop.f32.mrf.mxu2  ;;  %v3569_v22 = vmax.f32 %v3533_v32, 0.0 }
 0x3a5   : > { %v3534_v41 = vadd.f32 %v8190_v21, %v3494_v0  ;;  %v8471_v1 = vpop.f32.mrf.mxu3 }
 0x3a7   : > { %v3570_v7 = vmax.f32 %v3534_v41, 0.0  ;;  %v9558_v41 = vld [vmem:[#allocation22_spill] sm:$0xff] }
 0x3a8   : > { %v3389_v45 = vpop.f32.mrf.mxu0 }
 0x3a9   : > { %v3455_v56 = vadd.f32 %v3389_v45, %v3145_v62  ;;  %v3849_v40 = vrot.slane %v3570_v7, 2  ;;  %v8475_v19 = vpop.f32.mrf.mxu1  ;;  %v9557_v45 = vld [vmem:[#allocation11_spill] sm:$0xff] }
 0x3ab   : > { %v3495_v29 = vmul.f32 %v8182_v3, %v3455_v56  ;;  %v8477_v62 = vpop.f32.mrf.mxu2  ;;  %v2217_v56 = vadd.f32 %v9558_v41, %v9557_v45  ;;  %v9561_v41 = vld [vmem:[#allocation15_spill] sm:$0xff] }
 0x3ad   : > { %v3535_v49 = vadd.f32 %v8190_v21, %v3495_v29  ;;  %v8490_v18 = vpop.f32.mrf.mxu3  ;;  %v3149_v29 = vadd.f32 %v3091_v35, %v2839_v33  ;;  %v2527_v51 = vadd.f32 %v8386_v26, %v2217_v56 }
 0x3af   : > { %v3571_v11 = vmax.f32 %v3535_v49, 0.0  ;;  %v2837_v15 = vadd.f32 %v8393_v30, %v2527_v51  ;;  %v9564_v51 = vld [vmem:[#allocation24_spill] sm:$0xff] }
 0x3b0   : > { %v3392_v17 = vpop.f32.mrf.mxu0 }
 0x3b1   : > { %v3850_v47 = vrot.slane %v3571_v11, 2  ;;  %v3456_v25 = vadd.f32 %v3392_v17, %v3146_v2  ;;  %v2483_v48 = vpop.f32.mrf.mxu1  ;;  %v3147_v11 = vadd.f32 %v8403_v38, %v2837_v15  ;;  %v2840_v17 = vadd.f32 %v8449_v54, %v2530_v58  ;;  %v9565_v58 = vld [vmem:[#allocation16_spill] sm:$0xff] }
 0x3b3   : > { %v3496_v63 = vmul.f32 %v8182_v3, %v3456_v25  ;;  %v3851_v55 = vsel %vm3601_vm2, %v3849_v40, %v3850_v47  ;;  %v2793_v7 = vpop.f32.mrf.mxu2  ;;  %v3150_v26 = vadd.f32 %v3094_v36, %v2840_v17 }
 0x3b4   : > { %v3856_v14 = vmax.f32 %v3568_v39, %v3851_v55 }
 0x3b5   : > { %v3536_v53 = vadd.f32 %v8190_v21, %v3496_v63  ;;  %v3103_v25 = vpop.f32.mrf.mxu3 }
 0x3b7   : > { %v3572_v27 = vmax.f32 %v3536_v53, 0.0 }
 0x3b8   : > { %v3395_v6 = vpop.f32.mrf.mxu0 }
 0x3b9   : > { %v3852_v37 = vrot.slane %v3572_v27, 2  ;;  %v2486_v63 = vpop.f32.mrf.mxu1 }
 0x3bb   : > { %v3853_v10 = vsel %vm3601_vm2, %v3850_v47, %v3852_v37  ;;  %v3457_v47 = vadd.f32 %v3395_v6, %v3147_v11  ;;  %v2796_v53 = vpop.f32.mrf.mxu2 }
 0x3bc   : > { %v3857_v0 = vmax.f32 %v3569_v22, %v3853_v10 }
 0x3bd   : > { %v3497_v12 = vmul.f32 %v8182_v3, %v3457_v47  ;;  %v3106_v22 = vpop.f32.mrf.mxu3 }
 0x3be   : > { %3872 = vmatpush.msra.mxu3 %v3857_v0  ;;  %3892 = vmatpush.msrb.mxu1 %v3857_v0 }
 0x3bf   : > { %v3537_v6 = vadd.f32 %v8190_v21, %v3497_v12 }
 0x3c0   : > { %v3398_v16 = vpop.f32.mrf.mxu0  ;;  %3873 = vmatpush.msra.mxu3 %v3856_v14  ;;  %3893 = vmatpush.msrb.mxu1 %v3856_v14 }
 0x3c1   : > { %v3458_v44 = vadd.f32 %v3398_v16, %v3148_v13  ;;  %6937 = vmatmul.msk.f32.vlgmr.msra.gmra.mxu3 %vm655_vm4, %v8359_v46  ;;  %6938 = vmatmul.msk.f32.vlgmr.msrb.gmra.mxu1 %vm655_vm4, %v8364_v31  ;;  %v3573_v10 = vmax.f32 %v3537_v6, 0.0  ;;  %v2489_v0 = vpop.f32.mrf.mxu1 }
 0x3c3   : > { %v3498_v34 = vmul.f32 %v8182_v3, %v3458_v44  ;;  %v2799_v13 = vpop.f32.mrf.mxu2 }
 0x3c5   : > { %v3538_v20 = vadd.f32 %v8190_v21, %v3498_v34  ;;  %v3109_v50 = vpop.f32.mrf.mxu3 }
 0x3c7   : > { %v3574_v40 = vmax.f32 %v3538_v20, 0.0 }
 0x3c8   : > { %v3401_v49 = vpop.f32.mrf.mxu0 }
 0x3c9   : > { %v3459_v4 = vadd.f32 %v3401_v49, %v3149_v29  ;;  %v3903_v55 = vrot.slane %v3574_v40, 2  ;;  %v9563_v29 = vld [vmem:[#allocation13_spill] sm:$0xff] }
 0x3ca   : > { %v2221_v49 = vadd.f32 %v9564_v51, %v9563_v29 }
 0x3cb   : > { %v3499_v2 = vmul.f32 %v8182_v3, %v3459_v4  ;;  %v8519_v4 = vpop.f32.mrf.mxu1  ;;  %v8521_v15 = vpop.f32.mrf.mxu2 }
 0x3cc   : > { %v2531_v17 = vadd.f32 %v8460_v43, %v2221_v49 }
 0x3cd   : > { %v3539_v35 = vadd.f32 %v8190_v21, %v3499_v2  ;;  %v9566_v2 = vld [vmem:[#allocation27_spill] sm:$0xff] }
 0x3ce   : > { %v2841_v47 = vadd.f32 %v8464_v23, %v2531_v17 }
 0x3cf   : > { %v3575_v28 = vmax.f32 %v3539_v35, 0.0 }
 0x3d0   : > { %v3404_v39 = vpop.f32.mrf.mxu0 }
 0x3d1   : > { %v3904_v14 = vrot.slane %v3575_v28, 2  ;;  %v3460_v30 = vadd.f32 %v3404_v39, %v3150_v26  ;;  %v9567_v28 = vld [vmem:[#allocation14_spill] sm:$0xff]  ;;  %v9568_v39 = vld [vmem:[#allocation25_spill] sm:$0xff] }
 0x3d3   : > { %v3500_v32 = vmul.f32 %v8182_v3, %v3460_v30  ;;  %v3905_v38 = vsel %vm3601_vm2, %v3903_v55, %v3904_v14  ;;  %v2222_v55 = vadd.f32 %v9568_v39, %v9567_v28  ;;  %v8530_v30 = vpop.f32.mrf.mxu3  ;;  %v2805_v23 = vpop.f32.mrf.mxu2 }
 0x3d4   : > { %v3911_v54 = vmax.f32 %v3572_v27, %v3905_v38  ;;  %v9562_v27 = vld [vmem:[#allocation26_spill] sm:$0xff]  ;;  %v9569_v38 = vld [vmem:[#allocation17_spill] sm:$0xff] }
 0x3d5   : > { %v3540_v24 = vadd.f32 %v8190_v21, %v3500_v32  ;;  %v2223_v56 = vadd.f32 %v9562_v27, %v9561_v41  ;;  %v2532_v6 = vadd.f32 %v8475_v19, %v2222_v55 }
 0x3d6   : > { %v3917_v45 = vrot.slane %v3911_v54, 4 }
 0x3d7   : > { %v3576_v36 = vmax.f32 %v3540_v24, 0.0  ;;  %v2533_v8 = vadd.f32 %v2483_v48, %v2223_v56  ;;  %v2224_v48 = vadd.f32 %v9566_v2, %v9565_v58  ;;  %v2495_v24 = vpop.f32.mrf.mxu1 }
 0x3d8   : > { %v3407_v37 = vpop.f32.mrf.mxu0 }
 0x3d9   : > { %v3906_v60 = vrot.slane %v3576_v36, 2  ;;  %v2843_v20 = vadd.f32 %v2793_v7, %v2533_v8  ;;  %v2534_v26 = vadd.f32 %v2486_v63, %v2224_v48  ;;  %v3151_v7 = vadd.f32 %v8471_v1, %v2841_v47 }
 0x3da   : > { %v2842_v1 = vadd.f32 %v8477_v62, %v2532_v6  ;;  %v9576_v6 = vld [vmem:[#allocation29_spill] sm:$0xff] }
 0x3db   : > { %v3907_v52 = vsel %vm3601_vm2, %v3904_v14, %v3906_v60  ;;  %v3913_v61 = vmax.f32 %v3574_v40, %v3906_v60  ;;  %v3153_v11 = vadd.f32 %v3103_v25, %v2843_v20  ;;  %v2844_v14 = vadd.f32 %v2796_v53, %v2534_v26  ;;  %v9570_v25 = vld [vmem:[#allocation28_spill] sm:$0xff]  ;;  %v9572_v20 = vld [vmem:[#allocation30_spill] sm:$0xff] }
 0x3dc   : > { %v3912_v16 = vmax.f32 %v3573_v10, %v3907_v52  ;;  %v3461_v32 = vadd.f32 %v3407_v37, %v3151_v7  ;;  %v2225_v54 = vadd.f32 %v9570_v25, %v9569_v38  ;;  %v3152_v37 = vadd.f32 %v8490_v18, %v2842_v1  ;;  %v9573_v7 = vld [vmem:[#allocation20_spill] sm:$0xff] }
 0x3dd   : > { %v3920_v44 = vrot.slane %v3913_v61, 4  ;;  %v3154_v43 = vadd.f32 %v3106_v22, %v2844_v14  ;;  %v9574_v14 = vld [vmem:[#allocation31_spill] sm:$0xff] }
 0x3de   : > { %v3918_v42 = vrot.slane %v3912_v16, 4  ;;  %v3501_v53 = vmul.f32 %v8182_v3, %v3461_v32  ;;  %v2535_v10 = vadd.f32 %v2489_v0, %v2225_v54  ;;  %v2808_v0 = vpop.f32.mrf.mxu2 }
 0x3e0   : > { %v3410_v33 = vpop.f32.mrf.mxu0  ;;  %v3921_v34 = vsel %vm3676_vm3, %v3918_v42, %v3920_v44  ;;  %v3919_v9 = vsel %vm3676_vm3, %v3917_v45, %v3918_v42  ;;  %v2845_v61 = vadd.f32 %v2799_v13, %v2535_v10  ;;  %v3541_v19 = vadd.f32 %v8190_v21, %v3501_v53  ;;  %v3115_v45 = vpop.f32.mrf.mxu3 }
 0x3e1   : > { %3938 = vmatpush.msrb.mxu2 %v3921_v34  ;;  %3958 = vmatpush.msrb.mxu3 %v3921_v34  ;;  %v3462_v44 = vadd.f32 %v3410_v33, %v3152_v37  ;;  %v9579_v37 = vld [vmem:[#allocation32_spill] sm:$0xff] }
 0x3e2   : > { %v3155_v42 = vadd.f32 %v3109_v50, %v2845_v61  ;;  %v3577_v8 = vmax.f32 %v3541_v19, 0.0  ;;  %v9571_v50 = vld [vmem:[#allocation19_spill] sm:$0xff] }
 0x3e3   : > { %3939 = vmatpush.msrb.mxu2 %v3919_v9  ;;  %3959 = vmatpush.msrb.mxu3 %v3919_v9  ;;  %v2498_v9 = vpop.f32.mrf.mxu1  ;;  %v3502_v29 = vmul.f32 %v8182_v3, %v3462_v44  ;;  %v2227_v58 = vadd.f32 %v9572_v20, %v9571_v50 }
 0x3e4   : > { %6939 = vmatmul.msk.f32.vlgmr.msrb.gmra.mxu2 %vm655_vm4, %v8359_v46  ;;  %6940 = vmatmul.msk.f32.vlgmr.msrb.gmra.mxu3 %vm655_vm4, %v8364_v31 }
 0x3e5   : > { %v3542_v33 = vadd.f32 %v8190_v21, %v3502_v29 }
 0x3e6   : > { %v2811_v28 = vpop.f32.mrf.mxu2 }
 0x3e8   : > { %v3413_v40 = vpop.f32.mrf.mxu0 }
 0x3e9   : > { %v3463_v35 = vadd.f32 %v3413_v40, %v3153_v11  ;;  %v3118_v11 = vpop.f32.mrf.mxu3  ;;  %v3578_v40 = vmax.f32 %v3542_v33, 0.0  ;;  %v7293_v33 = vld [vmem:[%s9552_s8] ss:$0 sm:$0xff]  ;;  %s7315_s8 = scalar_lea.hbm %s9506_s18, 96 }
 0x3eb   : > { %v3503_v12 = vmul.f32 %v8182_v3, %v3463_v35  ;;  %v2537_v35 = vadd.f32 %v2495_v24, %v2227_v58  ;;  %v2501_v26 = vpop.f32.mrf.mxu1  ;;  %v9575_v24 = vld [vmem:[#allocation18_spill] sm:$0xff] }
 0x3ed   : > { %v3543_v36 = vadd.f32 %v8190_v21, %v3503_v12  ;;  %v2847_v55 = vadd.f32 %v2805_v23, %v2537_v35  ;;  %v2228_v12 = vadd.f32 %v9574_v14, %v9573_v7  ;;  %v2226_v23 = vadd.f32 %v9576_v6, %v9575_v24  ;;  %v4096_v24 = vld [vmem:[%s9577_s4] sm:$0xff]  ;;  %v6966_v6 = vld [vmem:[%s9577_s4 + $0x10] sm:$0xff] }
 0x3ef   : > { %v3579_v16 = vmax.f32 %v3543_v36, 0.0  ;;  %v3157_v32 = vadd.f32 %v3115_v45, %v2847_v55  ;;  %v2538_v54 = vadd.f32 %v2498_v9, %v2228_v12 }
 0x3f0   : > { %v3416_v63 = vpop.f32.mrf.mxu0 }
 0x3f1   : > { %v3464_v60 = vadd.f32 %v3416_v63, %v3154_v43  ;;  %v3969_v56 = vrot.slane %v3579_v16, 2  ;;  %v3121_v43 = vpop.f32.mrf.mxu3  ;;  %v2848_v1 = vadd.f32 %v2808_v0, %v2538_v54 }
 0x3f3   : > { %v3504_v52 = vmul.f32 %v8182_v3, %v3464_v60  ;;  %v3631_v63 = vpop.f32.mrf.mxu1  ;;  %v6945_v60 = vld [vmem:[%s9577_s4 + $0x8] sm:$0xff]  ;;  %v3158_v16 = vadd.f32 %v3118_v11, %v2848_v1  ;;  %v4086_v1 = vld [vmem:[#allocation3] sm:$0xff] }
 0x3f5   : > { %v3544_v22 = vadd.f32 %v8190_v21, %v3504_v52  ;;  %v9578_v52 = vld [vmem:[#allocation21_spill] sm:$0xff] }
 0x3f6   : > { %v2229_v61 = vadd.f32 %v9579_v37, %v9578_v52 }
 0x3f7   : > { %v3580_v41 = vmax.f32 %v3544_v22, 0.0  ;;  %v2536_v22 = vadd.f32 %v8519_v4, %v2226_v23 }
 0x3f8   : > { %v3419_v27 = vpop.f32.mrf.mxu0 }
 0x3f9   : > { %v3970_v62 = vrot.slane %v3580_v41, 2  ;;  %v3465_v34 = vadd.f32 %v3419_v27, %v3155_v42  ;;  %v2846_v45 = vadd.f32 %v8521_v15, %v2536_v22  ;;  %v2539_v41 = vadd.f32 %v2501_v26, %v2229_v61 }
 0x3fa   : > { %v3654_v36 = vpop.f32.mrf.mxu2 }
 0x3fb   : > { %v3505_v18 = vmul.f32 %v8182_v3, %v3465_v34  ;;  %v3971_v13 = vsel %vm3601_vm2, %v3969_v56, %v3970_v62  ;;  %v3657_v10 = vmax.f32 %v3631_v63, %v3654_v36  ;;  %v3156_v4 = vadd.f32 %v8530_v30, %v2846_v45  ;;  %v3701_v56 = vpop.f32.mrf.mxu3  ;;  %v4097_v30 = vld [vmem:[#allocation3 + $0x1] sm:$0xff] }
 0x3fc   : > { %v3976_v51 = vmax.f32 %v3577_v8, %v3971_v13  ;;  %v2849_v34 = vadd.f32 %v2811_v28, %v2539_v41 }
 0x3fd   : > { %v8547_v49 = vadd.f32 %v8190_v21, %v3505_v18  ;;  %3658 = vst.msk [vmem:[#allocation3 + $0xb] sm:$0xff] %vm639_vm7, %v3657_v10 }
 0x3ff   : > { %v3581_v2 = vmax.f32 %v8547_v49, 0.0 }
 0x400   : > { %v3422_v48 = vpop.f32.mrf.mxu0 }
 0x401   : > { %v3972_v17 = vrot.slane %v3581_v2, 2  ;;  %v3466_v0 = vadd.f32 %v3422_v48, %v3156_v4 }
 0x402   : > { %v3755_v11 = vpop.f32.mrf.mxu2 }
 0x403   : > { %v3973_v47 = vsel %vm3601_vm2, %v3970_v62, %v3972_v17  ;;  %v3721_v62 = vpop.f32.mrf.mxu1  ;;  %v3506_v50 = vmul.f32 %v7293_v33, %v3466_v0  ;;  %v3775_v17 = vpop.f32.mrf.mxu3 }
 0x404   : > { %v3977_v39 = vmax.f32 %v3578_v40, %v3973_v47  ;;  %v3724_v29 = vmax.f32 %v3701_v56, %v3721_v62  ;;  %v7294_v40 = vld [vmem:[%s9553_s13] ss:$0 sm:$0xff]  ;;  %v4098_v47 = vld [vmem:[#allocation3 + $0x9] sm:$0xff]  ;;  %v3778_v26 = vmax.f32 %v3755_v11, %v3775_v17 }
 0x405   : > { %v3546_v28 = vadd.f32 %v7294_v40, %v3506_v50  ;;  %v4087_v52 = vld [vmem:[#allocation3 + $0x8] sm:$0xff] }
 0x406   : > { %3992 = vmatpush.msra.mxu1 %v3977_v39  ;;  %4012 = vmatpush.msra.mxu2 %v3977_v39  ;;  %3725 = vst.msk [vmem:[#allocation3 + $0x15] sm:$0xff] %vm639_vm7, %v3724_v29  ;;  %v4264_v37 = vld [vmem:[#allocation3 + $0xa] sm:$0xff] }
 0x407   : > { %3779 = vst.msk [vmem:[#allocation3 + $0x1f] sm:$0xff] %vm639_vm7, %v3778_v26  ;;  %v3582_v7 = vmax.f32 %v3546_v28, 0.0 }
 0x408   : > { %v3425_v38 = vpop.f32.mrf.mxu0  ;;  %3993 = vmatpush.msra.mxu1 %v3976_v51  ;;  %4013 = vmatpush.msra.mxu2 %v3976_v51 }
 0x409   : > { %v3467_v25 = vadd.f32 %v3425_v38, %v3157_v32  ;;  %6942 = vmatmul.msk.f32.vlgmr.msra.gmra.mxu2 %vm655_vm4, %v8364_v31  ;;  %6941 = vmatmul.msk.f32.vlgmr.msra.gmra.mxu1 %vm655_vm4, %v8359_v46 }
 0x40a   : > { %4154 = vmatpush.msrb.mxu2 %v6945_v60 }
 0x40b   : > { %v3507_v53 = vmul.f32 %v8182_v3, %v3467_v25 }
 0x40d   : > { %v3547_v44 = vadd.f32 %v8190_v21, %v3507_v53  ;;  %v4099_v32 = vld [vmem:[#allocation3 + $0x11] sm:$0xff]  ;;  %v4263_v53 = vld [vmem:[#allocation3 + $0x2] sm:$0xff] }
 0x40e   : > { %v4100_v36 = vld [vmem:[#allocation3 + $0x19] sm:$0xff]  ;;  %v4101_v10 = vld [vmem:[#allocation3 + $0x21] sm:$0xff] }
 0x40f   : > { %v3583_v9 = vmax.f32 %v3547_v44, 0.0  ;;  %v4265_v22 = vld [vmem:[#allocation3 + $0x12] sm:$0xff]  ;;  %v4266_v41 = vld [vmem:[#allocation3 + $0x1a] sm:$0xff] }
 0x410   : > { %v3428_v19 = vpop.f32.mrf.mxu0  ;;  %v4089_v45 = vld [vmem:[#allocation3 + $0x18] sm:$0xff]  ;;  %v4090_v4 = vld [vmem:[#allocation3 + $0x20] sm:$0xff] }
 0x411   : > { %v3468_v42 = vadd.f32 %v3428_v19, %v3158_v16  ;;  %6946 = vmatmul.msk.f32.vlgmr.msrb.gmra.mxu2 %vm639_vm7, %v4097_v30  ;;  %v4088_v16 = vld [vmem:[#allocation3 + $0x10] sm:$0xff] }
 0x412   : > { %v4462_v26 = vld [vmem:[#allocation3 + $0x13] sm:$0xff] }
 0x413   : > { %v3508_v27 = vmul.f32 %v8182_v3, %v3468_v42  ;;  %v3159_v3 = vadd.f32 %v3121_v43, %v2849_v34 }
 0x415   : > { %v3548_v15 = vadd.f32 %v8190_v21, %v3508_v27  ;;  %v4023_v21 = vrot.slane %v3583_v9, 2 }
 0x417   : > { %v3584_v8 = vmax.f32 %v3548_v15, 0.0 }
 0x418   : > { %v3431_v18 = vpop.f32.mrf.mxu0 }
 0x419   : > { %v4024_v13 = vrot.slane %v3584_v8, 2  ;;  %v3469_v51 = vadd.f32 %v3431_v18, %v3159_v3  ;;  %6947 = vmatmul.msk.f32.gmra.mxu2 %vm639_vm7, %v4098_v47  ;;  %v3821_v23 = vpop.f32.mrf.mxu1 }
 0x41b   : > { %v3509_v20 = vmul.f32 %v7293_v33, %v3469_v51  ;;  %v4025_v58 = vsel %vm3601_vm2, %v4023_v21, %v4024_v13  ;;  %v6977_v21 = vld [vmem:[%s9577_s4 + $0x18] sm:$0xff] }
 0x41c   : > { %v4031_v48 = vmax.f32 %v3581_v2, %v4025_v58  ;;  %4419 = vmatpush.msra.mxu2 %v6977_v21 }
 0x41d   : > { %v3549_v35 = vadd.f32 %v7294_v40, %v3509_v20  ;;  %v6999_v40 = vld [vmem:[%s9577_s4 + $0x28] sm:$0xff] }
 0x41e   : > { %v4037_v25 = vrot.slane %v4031_v48, 4 }
 0x41f   : > { %v3585_v39 = vmax.f32 %v3549_v35, 0.0  ;;  %v4461_v35 = vld [vmem:[#allocation3 + $0xb] sm:$0xff] }
 0x420   : > { %v3841_v63 = vpop.f32.mrf.mxu2 }
 0x421   : > { %v4026_v55 = vrot.slane %v3585_v39, 2  ;;  %6948 = vmatmul.msk.f32.gmra.mxu2 %vm639_vm7, %v4099_v32  ;;  %v3844_v60 = vmax.f32 %v3821_v23, %v3841_v63 }
 0x423   : > { %v4033_v14 = vmax.f32 %v3583_v9, %v4026_v55  ;;  %v4027_v49 = vsel %vm3601_vm2, %v4024_v13, %v4026_v55  ;;  %3845 = vst.msk [vmem:[#allocation3 + $0x29] sm:$0xff] %vm639_vm7, %v3844_v60  ;;  %v6988_v13 = vld [vmem:[%s9577_s4 + $0x20] sm:$0xff]  ;;  %v4463_v55 = vld [vmem:[#allocation3 + $0x1b] sm:$0xff] }
 0x424   : > { %v4032_v2 = vmax.f32 %v3582_v7, %v4027_v49  ;;  %v4560_v49 = vld [vmem:[#allocation3 + $0xc] sm:$0xff] }
 0x425   : > { %v4040_v12 = vrot.slane %v4033_v14, 4 }
 0x426   : > { %v4038_v38 = vrot.slane %v4032_v2, 4 }
 0x428   : > { %v4041_v54 = vsel %vm3676_vm3, %v4038_v38, %v4040_v12  ;;  %v4039_v43 = vsel %vm3676_vm3, %v4037_v25, %v4038_v38  ;;  %v4561_v12 = vld [vmem:[#allocation3 + $0x14] sm:$0xff] }
 0x429   : > { %4058 = vmatpush.msra.mxu3 %v4041_v54  ;;  %4078 = vmatpush.msrb.mxu1 %v4041_v54  ;;  %v4562_v54 = vld [vmem:[#allocation3 + $0x1c] sm:$0xff] }
 0x42a   : > { %6949 = vmatmul.msk.f32.gmra.mxu2 %vm639_vm7, %v4100_v36  ;;  %v4102_v61 = vld [vmem:[#allocation3 + $0x29] sm:$0xff] }
 0x42b   : > { %4059 = vmatpush.msra.mxu3 %v4039_v43  ;;  %4079 = vmatpush.msrb.mxu1 %v4039_v43  ;;  %v4267_v56 = vld [vmem:[#allocation3 + $0x22] sm:$0xff]  ;;  %v4268_v34 = vld [vmem:[#allocation3 + $0x2a] sm:$0xff]  ;;  %v7010_v43 = vld [vmem:[%s9577_s4 + $0x30] sm:$0xff] }
 0x42c   : > { %6943 = vmatmul.msk.f32.vlgmr.msra.gmra.mxu3 %vm655_vm4, %v8359_v46  ;;  %6944 = vmatmul.msk.f32.vlgmr.msrb.gmra.mxu1 %vm655_vm4, %v8364_v31  ;;  %v4091_v62 = vld [vmem:[#allocation3 + $0x28] sm:$0xff] }
 0x42d   : > { %4231 = vmatpush.msrb.mxu3 %v4096_v24  ;;  %4320 = vmatpush.msra.mxu1 %v6966_v6  ;;  %v4464_v14 = vld [vmem:[#allocation3 + $0x23] sm:$0xff]  ;;  %v4465_v2 = vld [vmem:[#allocation3 + $0x2b] sm:$0xff] }
 0x42e   : > { %v7021_v24 = vld [vmem:[%s9577_s4 + $0x38] sm:$0xff]  ;;  %4716 = vmatpush.msrb.mxu2 %v7010_v43 }
 0x42f   : > { %4518 = vmatpush.msra.mxu3 %v6988_v13  ;;  %4617 = vmatpush.msrb.mxu1 %v6999_v40  ;;  %v4563_v36 = vld [vmem:[#allocation3 + $0x24] sm:$0xff] }
 0x432   : > { %6950 = vmatmul.msk.f32.gmra.mxu2 %vm639_vm7, %v4101_v10 }
 0x434   : > { %6956 = vmatmul.msk.f32.vlgmr.msrb.gmra.mxu3 %vm639_vm7, %v4086_v1  ;;  %6967 = vmatmul.msk.f32.vlgmr.msra.gmra.mxu1 %vm639_vm7, %v4263_v53 }
 0x435   : > { %4815 = vmatpush.msrb.mxu3 %v7021_v24 }
 0x43a   : > { %6951 = vmatmul.msk.f32.gmra.mxu2 %vm639_vm7, %v4102_v61 }
 0x43c   : > { %6957 = vmatmul.msk.f32.gmra.mxu3 %vm639_vm7, %v4087_v52  ;;  %6968 = vmatmul.msk.f32.gmra.mxu1 %vm639_vm7, %v4264_v37 }
 0x43e   : > { %v3895_v19 = vpop.f32.mrf.mxu1 }
 0x444   : > { %6958 = vmatmul.msk.f32.gmra.mxu3 %vm639_vm7, %v4088_v16  ;;  %6969 = vmatmul.msk.f32.gmra.mxu1 %vm639_vm7, %v4265_v22  ;;  %v3875_v44 = vpop.f32.mrf.mxu3 }
 0x445   : > { %v3898_v42 = vmax.f32 %v3875_v44, %v3895_v19 }
 0x447   : > { %3899 = vst.msk [vmem:[#allocation3 + $0x33] sm:$0xff] %vm639_vm7, %v3898_v42 }
 0x44c   : > { %6959 = vmatmul.msk.f32.gmra.mxu3 %vm639_vm7, %v4089_v45  ;;  %6970 = vmatmul.msk.f32.gmra.mxu1 %vm639_vm7, %v4266_v41  ;;  %v7032_v45 = vld [vmem:[%s9577_s4 + $0x40] sm:$0xff] }
 0x44d   : > { %4914 = vmatpush.msra.mxu1 %v7032_v45 }
 0x44e   : > { %v4103_v27 = vld [vmem:[#allocation3 + $0x31] sm:$0xff] }
 0x44f   : > { %6952 = vmatmul.msk.f32.gmra.mxu2 %vm639_vm7, %v4103_v27  ;;  %v4092_v9 = vld [vmem:[#allocation3 + $0x30] sm:$0xff] }
 0x450   : > { %v4269_v8 = vld [vmem:[#allocation3 + $0x32] sm:$0xff] }
 0x451   : > { %v4466_v25 = vld [vmem:[#allocation3 + $0x33] sm:$0xff] }
 0x452   : > { %v4564_v52 = vld [vmem:[#allocation3 + $0x2c] sm:$0xff]  ;;  %v4565_v19 = vld [vmem:[#allocation3 + $0x34] sm:$0xff] }
 0x454   : > { %6960 = vmatmul.msk.f32.gmra.mxu3 %vm639_vm7, %v4090_v4  ;;  %6971 = vmatmul.msk.f32.gmra.mxu1 %vm639_vm7, %v4267_v56 }
 0x45c   : > { %6961 = vmatmul.msk.f32.gmra.mxu3 %vm639_vm7, %v4091_v62  ;;  %6972 = vmatmul.msk.f32.gmra.mxu1 %vm639_vm7, %v4268_v34  ;;  %v4758_v62 = vld [vmem:[#allocation3 + $0x15] sm:$0xff] }
 0x464   : > { %6962 = vmatmul.msk.f32.gmra.mxu3 %vm639_vm7, %v4092_v9  ;;  %6973 = vmatmul.msk.f32.gmra.mxu1 %vm639_vm7, %v4269_v8 }
 0x467   : > { %v3941_v15 = vpop.f32.mrf.mxu2  ;;  %v3961_v0 = vpop.f32.mrf.mxu3 }
 0x468   : > { %v3964_v3 = vmax.f32 %v3941_v15, %v3961_v0 }
 0x46a   : > { %3965 = vst.msk [vmem:[#allocation3 + $0x3d] sm:$0xff] %vm639_vm7, %v3964_v3  ;;  %v4759_v3 = vld [vmem:[#allocation3 + $0x1d] sm:$0xff] }
 0x471   : > { %v4104_v30 = vld [vmem:[#allocation3 + $0x39] sm:$0xff] }
 0x472   : > { %v4093_v29 = vld [vmem:[#allocation3 + $0x38] sm:$0xff]  ;;  %6953 = vmatmul.msk.f32.gmra.mxu2 %vm639_vm7, %v4104_v30  ;;  %v4760_v30 = vld [vmem:[#allocation3 + $0x25] sm:$0xff] }
 0x473   : > { %6963 = vmatmul.msk.f32.gmra.mxu3 %vm639_vm7, %v4093_v29  ;;  %v4270_v18 = vld [vmem:[#allocation3 + $0x3a] sm:$0xff] }
 0x474   : > { %6974 = vmatmul.msk.f32.gmra.mxu1 %vm639_vm7, %v4270_v18  ;;  %v4467_v63 = vld [vmem:[#allocation3 + $0x3b] sm:$0xff] }
 0x486   : > { %v3995_v51 = vpop.f32.mrf.mxu1 }
 0x48c   : > { %v4015_v33 = vpop.f32.mrf.mxu2 }
 0x48d   : > { %v4018_v50 = vmax.f32 %v3995_v51, %v4015_v33  ;;  %v4761_v51 = vld [vmem:[#allocation3 + $0x2d] sm:$0xff] }
 0x48f   : > { %4019 = vst.msk [vmem:[#allocation3 + $0x47] sm:$0xff] %vm639_vm7, %v4018_v50 }
 0x494   : > { %v8683_v32 = vpop.f32.mrf.mxu2 }
 0x496   : > { %v4105_v20 = vld [vmem:[#allocation3 + $0x41] sm:$0xff]  ;;  %v4106_v11 = vld [vmem:[#allocation3 + $0x49] sm:$0xff] }
 0x497   : > { %v4094_v58 = vld [vmem:[#allocation3 + $0x40] sm:$0xff]  ;;  %6954 = vmatmul.msk.f32.gmra.mxu2 %vm639_vm7, %v4105_v20  ;;  %v4095_v17 = vld [vmem:[#allocation3 + $0x48] sm:$0xff] }
 0x498   : > { %6964 = vmatmul.msk.f32.gmra.mxu3 %vm639_vm7, %v4094_v58  ;;  %v4271_v48 = vld [vmem:[#allocation3 + $0x42] sm:$0xff]  ;;  %v4857_v58 = vld [vmem:[#allocation3 + $0x16] sm:$0xff] }
 0x499   : > { %6975 = vmatmul.msk.f32.gmra.mxu1 %vm639_vm7, %v4271_v48  ;;  %v4468_v60 = vld [vmem:[#allocation3 + $0x43] sm:$0xff] }
 0x49a   : > { %v4863_v45 = vld [vmem:[#allocation3 + $0x46] sm:$0xff] }
 0x49c   : > { %v8696_v6 = vpop.f32.mrf.mxu2 }
 0x49f   : > { %6955 = vmatmul.msk.f32.gmra.mxu2 %vm639_vm7, %v4106_v11  ;;  %v4858_v11 = vld [vmem:[#allocation3 + $0x1e] sm:$0xff] }
 0x4a0   : > { %6965 = vmatmul.msk.f32.gmra.mxu3 %vm639_vm7, %v4095_v17 }
 0x4a4   : > { %v8703_v1 = vpop.f32.mrf.mxu2 }
 0x4a7   : > { %6978 = vmatmul.msk.f32.vlgmr.msra.gmra.mxu2 %vm639_vm7, %v4264_v37 }
 0x4a8   : > { %6989 = vmatmul.msk.f32.vlgmr.msra.gmra.mxu3 %vm639_vm7, %v4461_v35 }
 0x4a9   : > { %v4081_v47 = vpop.f32.mrf.mxu1 }
 0x4ad   : > { %v8714_v61 = vpop.f32.mrf.mxu2 }
 0x4af   : > { %v4061_v28 = vpop.f32.mrf.mxu3  ;;  %6979 = vmatmul.msk.f32.gmra.mxu2 %vm639_vm7, %v4265_v22 }
 0x4b0   : > { %6990 = vmatmul.msk.f32.gmra.mxu3 %vm639_vm7, %v4462_v26  ;;  %v4084_v39 = vmax.f32 %v4061_v28, %v4081_v47  ;;  %v4763_v47 = vld [vmem:[#allocation3 + $0x3d] sm:$0xff]  ;;  %v4859_v26 = vld [vmem:[#allocation3 + $0x26] sm:$0xff] }
 0x4b1   : > { %v8707_v10 = vpop.f32.mrf.mxu1 }
 0x4b2   : > { %4085 = vst.msk [vmem:[#allocation3 + $0x51] sm:$0xff] %vm639_vm7, %v4084_v39 }
 0x4b5   : > { %v8727_v27 = vpop.f32.mrf.mxu2 }
 0x4b7   : > { %6980 = vmatmul.msk.f32.gmra.mxu2 %vm639_vm7, %v4266_v41  ;;  %v8685_v38 = vpop.f32.mrf.mxu3  ;;  %v4566_v41 = vld [vmem:[#allocation3 + $0x3c] sm:$0xff] }
 0x4b8   : > { %6991 = vmatmul.msk.f32.gmra.mxu3 %vm639_vm7, %v4463_v55 }
 0x4b9   : > { %v4272_v7 = vld [vmem:[#allocation3 + $0x4a] sm:$0xff]  ;;  %v8718_v22 = vpop.f32.mrf.mxu1  ;;  %v4371_v44 = vld [vmem:[#allocation3 + $0x52] sm:$0xff] }
 0x4ba   : > { %6976 = vmatmul.msk.f32.gmra.mxu1 %vm639_vm7, %v4272_v7  ;;  %v4469_v37 = vld [vmem:[#allocation3 + $0x4b] sm:$0xff]  ;;  %v4470_v42 = vld [vmem:[#allocation3 + $0x53] sm:$0xff] }
 0x4bb   : > { %v4569_v13 = vld [vmem:[#allocation3 + $0x54] sm:$0xff] }
 0x4bd   : > { %v8736_v9 = vpop.f32.mrf.mxu2 }
 0x4bf   : > { %6981 = vmatmul.msk.f32.gmra.mxu2 %vm639_vm7, %v4267_v56  ;;  %v8698_v23 = vpop.f32.mrf.mxu3 }
 0x4c0   : > { %6992 = vmatmul.msk.f32.gmra.mxu3 %vm639_vm7, %v4464_v14  ;;  %v4860_v14 = vld [vmem:[#allocation3 + $0x2e] sm:$0xff] }
 0x4c1   : > { %v8731_v56 = vpop.f32.mrf.mxu1 }
 0x4c2   : > { %7000 = vmatmul.msk.f32.vlgmr.msrb.gmra.mxu1 %vm639_vm7, %v4560_v49 }
 0x4c7   : > { %6982 = vmatmul.msk.f32.gmra.mxu2 %vm639_vm7, %v4268_v34  ;;  %v8705_v53 = vpop.f32.mrf.mxu3  ;;  %v4567_v34 = vld [vmem:[#allocation3 + $0x44] sm:$0xff] }
 0x4c8   : > { %6993 = vmatmul.msk.f32.gmra.mxu3 %vm639_vm7, %v4465_v2 }
 0x4c9   : > { %v8740_v0 = vpop.f32.mrf.mxu1 }
 0x4ca   : > { %7001 = vmatmul.msk.f32.gmra.mxu1 %vm639_vm7, %v4561_v12 }
 0x4cf   : > { %6983 = vmatmul.msk.f32.gmra.mxu2 %vm639_vm7, %v4269_v8  ;;  %v8716_v16 = vpop.f32.mrf.mxu3  ;;  %v4568_v8 = vld [vmem:[#allocation3 + $0x4c] sm:$0xff] }
 0x4d0   : > { %6994 = vmatmul.msk.f32.gmra.mxu3 %vm639_vm7, %v4466_v25 }
 0x4d1   : > { %v8749_v21 = vpop.f32.mrf.mxu1 }
 0x4d2   : > { %7002 = vmatmul.msk.f32.gmra.mxu1 %vm639_vm7, %v4562_v54  ;;  %v8745_v29 = vpop.f32.mrf.mxu2 }
 0x4d7   : > { %6984 = vmatmul.msk.f32.gmra.mxu2 %vm639_vm7, %v4270_v18  ;;  %v8729_v4 = vpop.f32.mrf.mxu3 }
 0x4d8   : > { %6995 = vmatmul.msk.f32.gmra.mxu3 %vm639_vm7, %v4467_v63  ;;  %v4766_v63 = vld [vmem:[#allocation3 + $0x55] sm:$0xff] }
 0x4d9   : > { %v8760_v20 = vpop.f32.mrf.mxu1 }
 0x4da   : > { %7003 = vmatmul.msk.f32.gmra.mxu1 %vm639_vm7, %v4563_v36 }
 0x4df   : > { %6985 = vmatmul.msk.f32.gmra.mxu2 %vm639_vm7, %v4271_v48  ;;  %v8738_v15 = vpop.f32.mrf.mxu3  ;;  %v4762_v48 = vld [vmem:[#allocation3 + $0x35] sm:$0xff] }
 0x4e0   : > { %6996 = vmatmul.msk.f32.gmra.mxu3 %vm639_vm7, %v4468_v60  ;;  %v4862_v60 = vld [vmem:[#allocation3 + $0x3e] sm:$0xff] }
 0x4e1   : > { %v8770_v35 = vpop.f32.mrf.mxu1 }
 0x4e2   : > { %7004 = vmatmul.msk.f32.gmra.mxu1 %vm639_vm7, %v4564_v52 }
 0x4e7   : > { %6986 = vmatmul.msk.f32.gmra.mxu2 %vm639_vm7, %v4272_v7  ;;  %v8747_v18 = vpop.f32.mrf.mxu3  ;;  %v4764_v7 = vld [vmem:[#allocation3 + $0x45] sm:$0xff] }
 0x4e8   : > { %6997 = vmatmul.msk.f32.gmra.mxu3 %vm639_vm7, %v4469_v37 }
 0x4ea   : > { %7005 = vmatmul.msk.f32.gmra.mxu1 %vm639_vm7, %v4565_v19 }
 0x4ef   : > { %6987 = vmatmul.msk.f32.gmra.mxu2 %vm639_vm7, %v4371_v44  ;;  %v4767_v44 = vld [vmem:[#allocation3 + $0x5d] sm:$0xff] }
 0x4f0   : > { %6998 = vmatmul.msk.f32.gmra.mxu3 %vm639_vm7, %v4470_v42 }
 0x4f1   : > { %v8779_v55 = vpop.f32.mrf.mxu1 }
 0x4f2   : > { %7006 = vmatmul.msk.f32.gmra.mxu1 %vm639_vm7, %v4566_v41 }
 0x4f5   : > { %v8756_v33 = vpop.f32.mrf.mxu2 }
 0x4f6   : > { %v8758_v50 = vpop.f32.mrf.mxu3 }
 0x4f7   : > { %7011 = vmatmul.msk.f32.vlgmr.msrb.gmra.mxu2 %vm639_vm7, %v4561_v12  ;;  %v4765_v12 = vld [vmem:[#allocation3 + $0x4d] sm:$0xff] }
 0x4f8   : > { %7022 = vmatmul.msk.f32.vlgmr.msrb.gmra.mxu3 %vm639_vm7, %v4758_v62 }
 0x4fa   : > { %7007 = vmatmul.msk.f32.gmra.mxu1 %vm639_vm7, %v4567_v34 }
 0x4ff   : > { %7012 = vmatmul.msk.f32.gmra.mxu2 %vm639_vm7, %v4562_v54  ;;  %v4861_v54 = vld [vmem:[#allocation3 + $0x36] sm:$0xff] }
 0x500   : > { %7023 = vmatmul.msk.f32.gmra.mxu3 %vm639_vm7, %v4759_v3  ;;  %v4864_v3 = vld [vmem:[#allocation3 + $0x4e] sm:$0xff] }
 0x502   : > { %7008 = vmatmul.msk.f32.gmra.mxu1 %vm639_vm7, %v4568_v8 }
 0x507   : > { %7013 = vmatmul.msk.f32.gmra.mxu2 %vm639_vm7, %v4563_v36 }
 0x508   : > { %7024 = vmatmul.msk.f32.gmra.mxu3 %vm639_vm7, %v4760_v30 }
 0x50a   : > { %7009 = vmatmul.msk.f32.gmra.mxu1 %vm639_vm7, %v4569_v13 }
 0x50f   : > { %7014 = vmatmul.msk.f32.gmra.mxu2 %vm639_vm7, %v4564_v52 }
 0x510   : > { %7025 = vmatmul.msk.f32.gmra.mxu3 %vm639_vm7, %v4761_v51  ;;  %v4865_v51 = vld [vmem:[#allocation3 + $0x56] sm:$0xff] }
 0x512   : > { %7033 = vmatmul.msk.f32.vlgmr.msra.gmra.mxu1 %vm639_vm7, %v4857_v58 }
 0x516   : > { %v8788_v25 = vpop.f32.mrf.mxu1 }
 0x517   : > { %7015 = vmatmul.msk.f32.gmra.mxu2 %vm639_vm7, %v4565_v19  ;;  %9583 = vst [vmem:[#allocation23_spill] sm:$0xff] %v8788_v25  ;;  %v4668_v19 = vld [vmem:[#allocation3 + $0x5c] sm:$0xff] }
 0x518   : > { %7026 = vmatmul.msk.f32.gmra.mxu3 %vm639_vm7, %v4762_v48 }
 0x51a   : > { %v8765_v17 = vpop.f32.mrf.mxu2  ;;  %7034 = vmatmul.msk.f32.gmra.mxu1 %vm639_vm7, %v4858_v11 }
 0x51b   : > { %v8767_v40 = vpop.f32.mrf.mxu3 }
 0x51c   : > { %9580 = vst [vmem:[#allocation11_spill] sm:$0xff] %v8767_v40 }
 0x51f   : > { %7016 = vmatmul.msk.f32.gmra.mxu2 %vm639_vm7, %v4566_v41 }
 0x520   : > { %7027 = vmatmul.msk.f32.gmra.mxu3 %vm639_vm7, %v4763_v47  ;;  %v4866_v47 = vld [vmem:[#allocation3 + $0x5e] sm:$0xff] }
 0x522   : > { %v8774_v28 = vpop.f32.mrf.mxu2  ;;  %7035 = vmatmul.msk.f32.gmra.mxu1 %vm639_vm7, %v4859_v26 }
 0x523   : > { %9581 = vst [vmem:[#allocation22_spill] sm:$0xff] %v8774_v28  ;;  %v8776_v39 = vpop.f32.mrf.mxu3 }
 0x524   : > { %9582 = vst [vmem:[#allocation12_spill] sm:$0xff] %v8776_v39 }
 0x527   : > { %7017 = vmatmul.msk.f32.gmra.mxu2 %vm639_vm7, %v4567_v34 }
 0x528   : > { %7028 = vmatmul.msk.f32.gmra.mxu3 %vm639_vm7, %v4764_v7 }
 0x52a   : > { %v8783_v49 = vpop.f32.mrf.mxu2  ;;  %7036 = vmatmul.msk.f32.gmra.mxu1 %vm639_vm7, %v4860_v14 }
 0x52b   : > { %v8785_v2 = vpop.f32.mrf.mxu3 }
 0x52f   : > { %7018 = vmatmul.msk.f32.gmra.mxu2 %vm639_vm7, %v4568_v8 }
 0x530   : > { %7029 = vmatmul.msk.f32.gmra.mxu3 %vm639_vm7, %v4765_v12 }
 0x532   : > { %v4424_v43 = vpop.f32.mrf.mxu2  ;;  %7037 = vmatmul.msk.f32.gmra.mxu1 %vm639_vm7, %v4861_v54 }
 0x533   : > { %v4523_v24 = vpop.f32.mrf.mxu3 }
 0x537   : > { %v8793_v36 = vpop.f32.mrf.mxu1  ;;  %7019 = vmatmul.msk.f32.gmra.mxu2 %vm639_vm7, %v4569_v13 }
 0x538   : > { %9584 = vst [vmem:[#allocation15_spill] sm:$0xff] %v8793_v36  ;;  %7030 = vmatmul.msk.f32.gmra.mxu3 %vm639_vm7, %v4766_v63  ;;  %v4237_v36 = vadd.f32 %v8698_v23, %v8696_v6 }
 0x53a   : > { %v4427_v52 = vpop.f32.mrf.mxu2  ;;  %7038 = vmatmul.msk.f32.gmra.mxu1 %vm639_vm7, %v4862_v60 }
 0x53b   : > { %v4526_v37 = vpop.f32.mrf.mxu3 }
 0x53f   : > { %v4619_v42 = vpop.f32.mrf.mxu1  ;;  %7020 = vmatmul.msk.f32.gmra.mxu2 %vm639_vm7, %v4668_v19 }
 0x540   : > { %7031 = vmatmul.msk.f32.gmra.mxu3 %vm639_vm7, %v4767_v44 }
 0x542   : > { %v4430_v41 = vpop.f32.mrf.mxu2  ;;  %7039 = vmatmul.msk.f32.gmra.mxu1 %vm639_vm7, %v4863_v45 }
 0x543   : > { %v8800_v62 = vpop.f32.mrf.mxu3 }
 0x547   : > { %v4622_v34 = vpop.f32.mrf.mxu1 }
 0x54a   : > { %v8803_v8 = vpop.f32.mrf.mxu2  ;;  %7040 = vmatmul.msk.f32.gmra.mxu1 %vm639_vm7, %v4864_v3 }
 0x54b   : > { %v8805_v30 = vpop.f32.mrf.mxu3 }
 0x54f   : > { %v4625_v13 = vpop.f32.mrf.mxu1 }
 0x552   : > { %v8808_v58 = vpop.f32.mrf.mxu2  ;;  %7041 = vmatmul.msk.f32.gmra.mxu1 %vm639_vm7, %v4865_v51 }
 0x553   : > { %v8810_v48 = vpop.f32.mrf.mxu3 }
 0x557   : > { %v4628_v11 = vpop.f32.mrf.mxu1 }
 0x55a   : > { %v8813_v26 = vpop.f32.mrf.mxu2  ;;  %7042 = vmatmul.msk.f32.gmra.mxu1 %vm639_vm7, %v4866_v47 }
 0x55b   : > { %v8815_v7 = vpop.f32.mrf.mxu3 }
 0x55f   : > { %v8818_v14 = vpop.f32.mrf.mxu1 }
 0x562   : > { %v8820_v12 = vpop.f32.mrf.mxu2 }
 0x563   : > { %v8822_v54 = vpop.f32.mrf.mxu3 }
 0x564   : > { %9585 = vst [vmem:[#allocation26_spill] sm:$0xff] %v8822_v54 }
 0x567   : > { %v8824_v63 = vpop.f32.mrf.mxu1 }
 0x568   : > { %9586 = vst [vmem:[#allocation13_spill] sm:$0xff] %v8824_v63 }
 0x56a   : > { %v8826_v60 = vpop.f32.mrf.mxu2 }
 0x56b   : > { %9587 = vst [vmem:[#allocation24_spill] sm:$0xff] %v8826_v60  ;;  %v8828_v19 = vpop.f32.mrf.mxu3 }
 0x56c   : > { %9588 = vst [vmem:[#allocation16_spill] sm:$0xff] %v8828_v19  ;;  %v4353_v19 = vadd.f32 %v8718_v22, %v4237_v36 }
 0x56e   : > { %v4452_v60 = vadd.f32 %v4424_v43, %v4353_v19 }
 0x56f   : > { %v8830_v44 = vpop.f32.mrf.mxu1 }
 0x572   : > { %v8832_v45 = vpop.f32.mrf.mxu2 }
 0x573   : > { %9589 = vst [vmem:[#allocation27_spill] sm:$0xff] %v8832_v45  ;;  %v8834_v3 = vpop.f32.mrf.mxu3  ;;  %v4234_v45 = vadd.f32 %v8685_v38, %v8683_v32  ;;  %v4243_v38 = vadd.f32 %v8716_v16, %v8714_v61  ;;  %v4246_v61 = vadd.f32 %v8729_v4, %v8727_v27 }
 0x574   : > { %9590 = vst [vmem:[#allocation14_spill] sm:$0xff] %v8834_v3 }
 0x575   : > { %v4352_v25 = vadd.f32 %v8707_v10, %v4234_v45 }
 0x577   : > { %v8836_v51 = vpop.f32.mrf.mxu1  ;;  %v4451_v54 = vadd.f32 %v8783_v49, %v4352_v25  ;;  %v4355_v49 = vadd.f32 %v8740_v0, %v4243_v38 }
 0x578   : > { %9591 = vst [vmem:[#allocation25_spill] sm:$0xff] %v8836_v51  ;;  %v4240_v51 = vadd.f32 %v8705_v53, %v8703_v1 }
 0x579   : > { %v4550_v36 = vadd.f32 %v8785_v2, %v4451_v54 }
 0x57a   : > { %v4718_v47 = vpop.f32.mrf.mxu2  ;;  %v4354_v23 = vadd.f32 %v8731_v56, %v4240_v51  ;;  %v4454_v56 = vadd.f32 %v4430_v41, %v4355_v49 }
 0x57b   : > { %v4817_v5 = vpop.f32.mrf.mxu3  ;;  %v4649_v43 = vadd.f32 %v4619_v42, %v4550_v36  ;;  %v4356_v42 = vadd.f32 %v8749_v21, %v4246_v61 }
 0x57c   : > { %v4453_v40 = vadd.f32 %v4427_v52, %v4354_v23  ;;  %v4553_v0 = vadd.f32 %v8800_v62, %v4454_v56  ;;  %v8868_v52 = vld [vmem:[%s9502_s14] ss:$0 sm:$0xff] }
 0x57d   : > { %v4748_v10 = vadd.f32 %v4718_v47, %v4649_v43  ;;  %v4455_v4 = vadd.f32 %v8803_v8, %v4356_v42 }
 0x57e   : > { %v4552_v1 = vadd.f32 %v4526_v37, %v4453_v40  ;;  %v4652_v41 = vadd.f32 %v4628_v11, %v4553_v0 }
 0x57f   : > { %v8838_v57 = vpop.f32.mrf.mxu1  ;;  %v4554_v51 = vadd.f32 %v8805_v30, %v4455_v4  ;;  %v9596_v4 = vld [vmem:[#allocation13_spill] sm:$0xff] }
 0x580   : > { %9592 = vst [vmem:[#allocation17_spill] sm:$0xff] %v8838_v57  ;;  %v4551_v57 = vadd.f32 %v4523_v24, %v4452_v60  ;;  %v4651_v25 = vadd.f32 %v4625_v13, %v4552_v1 }
 0x581   : > { %v4653_v23 = vadd.f32 %v8818_v14, %v4554_v51 }
 0x582   : > { %v4721_v59 = vpop.f32.mrf.mxu2 }
 0x583   : > { %v4820_v39 = vpop.f32.mrf.mxu3 }
 0x587   : > { %v8842_v28 = vpop.f32.mrf.mxu1 }
 0x588   : > { %9593 = vst [vmem:[#allocation28_spill] sm:$0xff] %v8842_v28  ;;  %v4650_v28 = vadd.f32 %v4622_v34, %v4551_v57 }
 0x58a   : > { %v4724_v3 = vpop.f32.mrf.mxu2  ;;  %v4749_v22 = vadd.f32 %v4721_v59, %v4650_v28  ;;  %v8859_v59 = vld [vmem:[%s9594_s9] ss:$0 sm:$0xff]  ;;  %v4847_v28 = vadd.f32 %v4817_v5, %v4748_v10  ;;  %s581_s9 = sand.u32 1, %s7349_s28  }
 0x58b   : > { %v4823_v63 = vpop.f32.mrf.mxu3  ;;  %v4750_v57 = vadd.f32 %v4724_v3, %v4651_v25  ;;  %s7237_s4 = smul.u32 48, %s581_s9 }
 0x58c   : > { %v4848_v53 = vadd.f32 %v4820_v39, %v4749_v22 }
 0x58d   : > { %v4849_v2 = vadd.f32 %v4823_v63, %v4750_v57  ;;  %v4255_v57 = vadd.f32 %v8758_v50, %v8756_v33 }
 0x58f   : > { %v4916_v6 = vpop.f32.mrf.mxu1 }
 0x590   : > { %v4946_v40 = vadd.f32 %v4916_v6, %v4847_v28 }
 0x592   : > { %v4727_v32 = vpop.f32.mrf.mxu2  ;;  %v4960_v27 = vmul.f32 %v8859_v59, %v4946_v40 }
 0x593   : > { %v4826_v19 = vpop.f32.mrf.mxu3  ;;  %v4751_v13 = vadd.f32 %v4727_v32, %v4652_v41 }
 0x594   : > { %v4974_v3 = vadd.f32 %v8868_v52, %v4960_v27 }
 0x595   : > { %v4850_v21 = vadd.f32 %v4826_v19, %v4751_v13 }
 0x596   : > { %v4984_v32 = vmax.f32 %v4974_v3, 0.0  ;;  %v9598_v3 = vld [vmem:[#allocation23_spill] sm:$0xff] }
 0x597   : > { %v4919_v24 = vpop.f32.mrf.mxu1 }
 0x598   : > { %v4947_v60 = vadd.f32 %v4919_v24, %v4848_v53  ;;  %v4252_v53 = vadd.f32 %v8747_v18, %v8745_v29  ;;  %v4249_v29 = vadd.f32 %v8738_v15, %v8736_v9  ;;  %v4359_v15 = vadd.f32 %v8779_v55, %v4255_v57 }
 0x59a   : > { %v4961_v16 = vmul.f32 %v8859_v59, %v4947_v60  ;;  %v4730_v39 = vpop.f32.mrf.mxu2  ;;  %v4358_v49 = vadd.f32 %v8770_v35, %v4252_v53  ;;  %v4458_v33 = vadd.f32 %v8820_v12, %v4359_v15  ;;  %v9603_v53 = vld [vmem:[#allocation16_spill] sm:$0xff] }
 0x59b   : > { %v4829_v54 = vpop.f32.mrf.mxu3  ;;  %v4752_v38 = vadd.f32 %v4730_v39, %v4653_v23 }
 0x59c   : > { %v4975_v5 = vadd.f32 %v8868_v52, %v4961_v16  ;;  %v4457_v19 = vadd.f32 %v8813_v26, %v4358_v49  ;;  %v4357_v16 = vadd.f32 %v8760_v20, %v4249_v29  ;;  %v9604_v49 = vld [vmem:[#allocation15_spill] sm:$0xff] }
 0x59d   : > { %v4851_v24 = vadd.f32 %v4829_v54, %v4752_v38  ;;  %v9601_v38 = vld [vmem:[#allocation22_spill] sm:$0xff] }
 0x59e   : > { %v4985_v63 = vmax.f32 %v4975_v5, 0.0  ;;  %v4556_v35 = vadd.f32 %v8815_v7, %v4457_v19  ;;  %v4456_v39 = vadd.f32 %v8808_v58, %v4357_v16  ;;  %v9595_v58 = vld [vmem:[#allocation11_spill] sm:$0xff] }
 0x59f   : > { %v4922_v37 = vpop.f32.mrf.mxu1 }
 0x5a0   : > { %v4948_v34 = vadd.f32 %v4922_v37, %v4849_v2  ;;  %v4996_v22 = vrot.slane %v4985_v63, 2  ;;  %v4655_v26 = vadd.f32 %v8830_v44, %v4556_v35  ;;  %v4555_v20 = vadd.f32 %v8810_v48, %v4456_v39  ;;  %v9597_v44 = vld [vmem:[#allocation26_spill] sm:$0xff] }
 0x5a2   : > { %v4962_v62 = vmul.f32 %v8859_v59, %v4948_v34  ;;  %v4733_v47 = vpop.f32.mrf.mxu2  ;;  %v4258_v34 = vadd.f32 %v9595_v58, %v8765_v17  ;;  %v4654_v55 = vadd.f32 %v9596_v4, %v4555_v20  ;;  %v9600_v17 = vld [vmem:[#allocation24_spill] sm:$0xff] }
 0x5a3   : > { %v4832_v30 = vpop.f32.mrf.mxu3 }
 0x5a4   : > { %v4976_v45 = vadd.f32 %v8868_v52, %v4962_v62  ;;  %v4557_v62 = vadd.f32 %v9597_v44, %v4458_v33  ;;  %v4753_v63 = vadd.f32 %v4733_v47, %v4654_v55  ;;  %v4360_v51 = vadd.f32 %v9598_v3, %v4258_v34  ;;  %v9608_v33 = vld [vmem:[#allocation28_spill] sm:$0xff] }
 0x5a6   : > { %v4986_v11 = vmax.f32 %v4976_v45, 0.0  ;;  %v4459_v23 = vadd.f32 %v9600_v17, %v4360_v51 }
 0x5a7   : > { %v4925_v6 = vpop.f32.mrf.mxu1 }
 0x5a8   : > { %v4997_v36 = vrot.slane %v4986_v11, 2  ;;  %v4949_v8 = vadd.f32 %v4925_v6, %v4850_v21  ;;  %v9599_v21 = vld [vmem:[#allocation25_spill] sm:$0xff] }
 0x5a9   : > { %v4656_v48 = vadd.f32 %v9599_v21, %v4557_v62 }
 0x5aa   : > { %v4998_v43 = vsel %vm3601_vm2, %v4996_v22, %v4997_v36  ;;  %v4963_v10 = vmul.f32 %v8859_v59, %v4949_v8  ;;  %v4736_v18 = vpop.f32.mrf.mxu2  ;;  %v4852_v22 = vadd.f32 %v4832_v30, %v4753_v63 }
 0x5ab   : > { %v5000_v1 = vmax.f32 %v4984_v32, %v4998_v43  ;;  %v4835_v0 = vpop.f32.mrf.mxu3  ;;  %v4754_v50 = vadd.f32 %v4736_v18, %v4655_v26  ;;  %v9602_v43 = vld [vmem:[#allocation12_spill] sm:$0xff] }
 0x5ac   : > { %v4977_v25 = vadd.f32 %v8868_v52, %v4963_v10  ;;  %v4558_v10 = vadd.f32 %v9603_v53, %v4459_v23 }
 0x5ad   : > { %5018 = vmatpush.msra.mxu2 %v5000_v1  ;;  %5040 = vmatpush.msra.mxu3 %v5000_v1  ;;  %v4853_v54 = vadd.f32 %v4835_v0, %v4754_v50  ;;  %v4261_v1 = vadd.f32 %v9602_v43, %v9601_v38  ;;  %v9607_v0 = vld [vmem:[#allocation14_spill] sm:$0xff] }
 0x5ae   : > { %7043 = vmatmul.msk.f32.vlgmr.msra.gmra.mxu2 %vm639_vm7, %v8359_v46  ;;  %7044 = vmatmul.msk.f32.vlgmr.msra.gmra.mxu3 %vm639_vm7, %v8364_v31  ;;  %v4987_v28 = vmax.f32 %v4977_v25, 0.0  ;;  %v7060_v38 = vld [vmem:[%s9609_s5 + $0x28] sm:$0xff]  ;;  %v7059_v43 = vld [vmem:[%s9609_s5 + $0x20] sm:$0xff] }
 0x5af   : > { %v4928_v14 = vpop.f32.mrf.mxu1  ;;  %v4361_v25 = vadd.f32 %v9604_v49, %v4261_v1  ;;  %v7065_v1 = vld [vmem:[%s9609_s5 + $0x38] sm:$0xff] }
 0x5b0   : > { %v4950_v60 = vadd.f32 %v4928_v14, %v4851_v24  ;;  %v5050_v2 = vrot.slane %v4987_v28, 2 }
 0x5b2   : > { %v4964_v56 = vmul.f32 %v8859_v59, %v4950_v60  ;;  %v4739_v7 = vpop.f32.mrf.mxu2  ;;  %v9605_v60 = vld [vmem:[#allocation17_spill] sm:$0xff] }
 0x5b3   : > { %v4755_v47 = vadd.f32 %v4739_v7, %v4656_v48  ;;  %v4657_v29 = vadd.f32 %v9605_v60, %v4558_v10 }
 0x5b4   : > { %v4978_v61 = vadd.f32 %v8868_v52, %v4964_v56  ;;  %v9606_v56 = vld [vmem:[#allocation27_spill] sm:$0xff] }
 0x5b5   : > { %v4460_v57 = vadd.f32 %v9606_v56, %v4361_v25 }
 0x5b6   : > { %v4988_v40 = vmax.f32 %v4978_v61, 0.0 }
 0x5b7   : > { %v4931_v9 = vpop.f32.mrf.mxu1 }
 0x5b8   : > { %v5051_v37 = vrot.slane %v4988_v40, 2  ;;  %v4951_v8 = vadd.f32 %v4931_v9, %v4852_v22  ;;  %v4559_v9 = vadd.f32 %v9607_v0, %v4460_v57  ;;  %v5214_v22 = vld [vmem:[%s9609_s5] sm:$0xff]  ;;  %v7080_v0 = vld [vmem:[%s9609_s5 + $0x68] sm:$0xff] }
 0x5ba   : > { %v5056_v42 = vmax.f32 %v4987_v28, %v5051_v37  ;;  %v5052_v41 = vsel %vm3601_vm2, %v5050_v2, %v5051_v37  ;;  %v4742_v32 = vpop.f32.mrf.mxu2  ;;  %v4965_v30 = vmul.f32 %v8859_v59, %v4951_v8  ;;  %v4658_v50 = vadd.f32 %v9608_v33, %v4559_v9  ;;  %v7089_v9 = vld [vmem:[%s9609_s5 + $0x80] sm:$0xff] }
 0x5bb   : > { %v5055_v5 = vmax.f32 %v4986_v11, %v5052_v41  ;;  %v4838_v11 = vpop.f32.mrf.mxu3  ;;  %v4756_v28 = vadd.f32 %v4742_v32, %v4657_v29  ;;  %v7070_v29 = vld [vmem:[%s9609_s5 + $0x48] sm:$0xff] }
 0x5bc   : > { %v5060_v27 = vrot.slane %v5056_v42, 4  ;;  %v4854_v24 = vadd.f32 %v4838_v11, %v4755_v47  ;;  %v4979_v39 = vadd.f32 %v8868_v52, %v4965_v30  ;;  %v5215_v47 = vld [vmem:[%s9609_s5 + $0x8] sm:$0xff] }
 0x5bd   : > { %v5059_v13 = vrot.slane %v5055_v5, 4 }
 0x5be   : > { %v4989_v7 = vmax.f32 %v4979_v39, 0.0  ;;  %v7090_v39 = vld [vmem:[%s9609_s5 + $0x88] sm:$0xff] }
 0x5bf   : > { %v4934_v12 = vpop.f32.mrf.mxu1  ;;  %v5061_v45 = vsel %vm3676_vm3, %v5059_v13, %v5060_v27 }
 0x5c0   : > { %v4952_v6 = vadd.f32 %v4934_v12, %v4853_v54  ;;  %5078 = vmatpush.msrb.mxu0 %v5061_v45  ;;  %5098 = vmatpush.msrb.mxu1 %v5061_v45 }
 0x5c1   : > { %7045 = vmatmul.msk.f32.vlgmr.msrb.gmra.mxu0 %vm639_vm7, %v8359_v46  ;;  %7046 = vmatmul.msk.f32.vlgmr.msrb.gmra.mxu1 %vm639_vm7, %v8364_v31 }
 0x5c2   : > { %v4966_v36 = vmul.f32 %v8859_v59, %v4952_v6  ;;  %v4745_v2 = vpop.f32.mrf.mxu2 }
 0x5c3   : > { %v4841_v16 = vpop.f32.mrf.mxu3  ;;  %v4757_v5 = vadd.f32 %v4745_v2, %v4658_v50  ;;  %v7084_v2 = vld [vmem:[%s9609_s5 + $0x70] sm:$0xff] }
 0x5c4   : > { %v4980_v18 = vadd.f32 %v8868_v52, %v4966_v36  ;;  %v4855_v15 = vadd.f32 %v4841_v16, %v4756_v28  ;;  %v7075_v28 = vld [vmem:[%s9609_s5 + $0x58] sm:$0xff] }
 0x5c6   : > { %v4990_v35 = vmax.f32 %v4980_v18, 0.0  ;;  %v7069_v18 = vld [vmem:[%s9609_s5 + $0x40] sm:$0xff] }
 0x5c7   : > { %v4937_v14 = vpop.f32.mrf.mxu1 }
 0x5c8   : > { %v4953_v19 = vadd.f32 %v4937_v14, %v4854_v24  ;;  %v5107_v42 = vrot.slane %v4990_v35, 2  ;;  %v7064_v14 = vld [vmem:[%s9609_s5 + $0x30] sm:$0xff] }
 0x5ca   : > { %v4967_v61 = vmul.f32 %v8859_v59, %v4953_v19 }
 0x5cb   : > { %v4844_v34 = vpop.f32.mrf.mxu3 }
 0x5cc   : > { %v4981_v40 = vadd.f32 %v8868_v52, %v4967_v61  ;;  %v4856_v55 = vadd.f32 %v4844_v34, %v4757_v5  ;;  %v7074_v61 = vld [vmem:[%s9609_s5 + $0x50] sm:$0xff] }
 0x5ce   : > { %v4991_v26 = vmax.f32 %v4981_v40, 0.0 }
 0x5cf   : > { %v4940_v37 = vpop.f32.mrf.mxu1 }
 0x5d0   : > { %v5108_v41 = vrot.slane %v4991_v26, 2  ;;  %v4954_v20 = vadd.f32 %v4940_v37, %v4855_v15  ;;  %v7085_v15 = vld [vmem:[%s9609_s5 + $0x78] sm:$0xff] }
 0x5d2   : > { %v5109_v58 = vsel %vm3601_vm2, %v5107_v42, %v5108_v41  ;;  %v4968_v4 = vmul.f32 %v8859_v59, %v4954_v20 }
 0x5d3   : > { %v5111_v27 = vmax.f32 %v4989_v7, %v5109_v58 }
 0x5d4   : > { %v4982_v44 = vadd.f32 %v8868_v52, %v4968_v4 }
 0x5d5   : > { %5127 = vmatpush.msrb.mxu2 %v5111_v27  ;;  %5147 = vmatpush.msrb.mxu3 %v5111_v27 }
 0x5d6   : > { %7047 = vmatmul.msk.f32.vlgmr.msrb.gmra.mxu2 %vm639_vm7, %v8359_v46  ;;  %7048 = vmatmul.msk.f32.vlgmr.msrb.gmra.mxu3 %vm639_vm7, %v8364_v31  ;;  %v4992_v63 = vmax.f32 %v4982_v44, 0.0 }
 0x5d7   : > { %v4943_v13 = vpop.f32.mrf.mxu1  ;;  %5280 = vmatpush.msra.mxu3 %v5215_v47 }
 0x5d8   : > { %v4955_v62 = vadd.f32 %v4943_v13, %v4856_v55  ;;  %v5156_v3 = vrot.slane %v4992_v63, 2 }
 0x5d9   : > { %5281 = vmatpush.msra.mxu3 %v5214_v22 }
 0x5da   : > { %v4969_v54 = vmul.f32 %v8859_v59, %v4955_v62  ;;  %v7052_v59 = vld [vmem:[%s9609_s5 + $0x18] sm:$0xff] }
 0x5db   : > { %5245 = vmatpush.msra.mxu2 %v7052_v59  ;;  %5453 = vmatpush.msrb.mxu3 %v7075_v28 }
 0x5dc   : > { %v4983_v12 = vadd.f32 %v8868_v52, %v4969_v54  ;;  %v7051_v52 = vld [vmem:[%s9609_s5 + $0x10] sm:$0xff]  ;;  %v5514_v54 = vld [vmem:[#allocation4 + $0x1d] sm:$0xff] }
 0x5dd   : > { %5246 = vmatpush.msra.mxu2 %v7051_v52  ;;  %5454 = vmatpush.msrb.mxu3 %v7074_v61 }
 0x5de   : > { %v4993_v45 = vmax.f32 %v4983_v12, 0.0  ;;  %v5558_v12 = vld [vmem:[#allocation4 + $0x1e] sm:$0xff] }
 0x5df   : > { %5409 = vmatpush.msrb.mxu2 %v7070_v29 }
 0x5e0   : > { %v5157_v51 = vrot.slane %v4993_v45, 2 }
 0x5e1   : > { %5410 = vmatpush.msrb.mxu2 %v7069_v18 }
 0x5e2   : > { %v5162_v21 = vmax.f32 %v4992_v63, %v5157_v51  ;;  %v5158_v48 = vsel %vm3601_vm2, %v5156_v3, %v5157_v51 }
 0x5e3   : > { %v5161_v6 = vmax.f32 %v4991_v26, %v5158_v48  ;;  %v7079_v26 = vld [vmem:[%s9609_s5 + $0x60] sm:$0xff]  ;;  %s9616_s5 = sld [smem:[#allocation37_spill]] }
 0x5e4   : > { %v5166_v11 = vrot.slane %v5162_v21, 4 }
 0x5e5   : > { %v5165_v17 = vrot.slane %v5161_v6, 4 }
 0x5e7   : > { %v5167_v23 = vsel %vm3676_vm3, %v5165_v17, %v5166_v11 }
 0x5e8   : > { %5184 = vmatpush.msra.mxu0 %v5167_v23  ;;  %5204 = vmatpush.msra.mxu1 %v5167_v23 }
 0x5e9   : > { %7049 = vmatmul.msk.f32.vlgmr.msra.gmra.mxu0 %vm639_vm7, %v8359_v46  ;;  %7050 = vmatmul.msk.f32.vlgmr.msra.gmra.mxu1 %vm639_vm7, %v8364_v31  ;;  %vm6323_vm7 = vcmask 21508  }
 0x5ea   : > { %5321 = vmatpush.msrb.mxu0 %v7060_v38  ;;  %5365 = vmatpush.msrb.mxu1 %v7065_v1 }
 0x5ec   : > { %5322 = vmatpush.msrb.mxu0 %v7059_v43  ;;  %5366 = vmatpush.msrb.mxu1 %v7064_v14 }
 0x5ee   : > { %5497 = vmatpush.msra.mxu0 %v7080_v0  ;;  %5541 = vmatpush.msra.mxu1 %v7085_v15 }
 0x5f0   : > { %5498 = vmatpush.msra.mxu0 %v7079_v26  ;;  %5542 = vmatpush.msra.mxu1 %v7084_v2  ;;  %v7288_v2 = vld [vmem:[%s9503_s15] ss:$0 sm:$0xff] }
 0x631   : > { %v5020_v36 = vpop.f32.mrf.mxu2  ;;  %v5042_v8 = vpop.f32.mrf.mxu3 }
 0x632   : > { %v5045_v32 = vmax.f32 %v5020_v36, %v5042_v8 }
 0x634   : > { %5047 = vst.msk [vmem:[#allocation4 + $0x7] sm:$0xf] %vm5046_vm8, %v5045_v32 }
 0x63b   : > { %v5216_v53 = vld [vmem:[#allocation4 + $0x1] sm:$0xff] }
 0x63c   : > { %v5211_v10 = vld [vmem:[#allocation4] sm:$0xff]  ;;  %7053 = vmatmul.msk.f32.vlgmr.msra.gmra.mxu2 %vm655_vm4, %v5216_v53 }
 0x63d   : > { %v5292_v24 = vld [vmem:[#allocation4 + $0x2] sm:$0xff]  ;;  %7056 = vmatmul.msk.f32.vlgmr.msra.gmra.mxu3 %vm655_vm4, %v5211_v10  ;;  %5585 = vmatpush.msra.mxu2 %v7090_v39 }
 0x63e   : > { %7061 = vmatmul.msk.f32.vlgmr.msrb.gmra.mxu0 %vm655_vm4, %v5292_v24  ;;  %v5080_v49 = vpop.f32.mrf.mxu0  ;;  %v5100_v25 = vpop.f32.mrf.mxu1 }
 0x63f   : > { %v5103_v60 = vmax.f32 %v5080_v49, %v5100_v25  ;;  %5586 = vmatpush.msra.mxu2 %v7089_v9 }
 0x641   : > { %5104 = vst.msk [vmem:[#allocation4 + $0xd] sm:$0xf] %vm5046_vm8, %v5103_v60 }
 0x648   : > { %v5217_v19 = vld [vmem:[#allocation4 + $0x9] sm:$0xff] }
 0x649   : > { %v5212_v30 = vld [vmem:[#allocation4 + $0x8] sm:$0xff]  ;;  %7054 = vmatmul.msk.f32.gmra.mxu2 %vm655_vm4, %v5217_v19 }
 0x64a   : > { %7057 = vmatmul.msk.f32.gmra.mxu3 %vm655_vm4, %v5212_v30  ;;  %v5336_v56 = vld [vmem:[#allocation4 + $0x6] sm:$0xff] }
 0x64b   : > { %v5293_v57 = vld [vmem:[#allocation4 + $0xa] sm:$0xff]  ;;  %7066 = vmatmul.msk.f32.vlgmr.msrb.gmra.mxu1 %vm655_vm4, %v5336_v56 }
 0x64c   : > { %7062 = vmatmul.msk.f32.gmra.mxu0 %vm655_vm4, %v5293_v57  ;;  %v5380_v7 = vld [vmem:[#allocation4 + $0x7] sm:$0xff] }
 0x659   : > { %v5129_v16 = vpop.f32.mrf.mxu2  ;;  %v5149_v35 = vpop.f32.mrf.mxu3 }
 0x65a   : > { %v5152_v40 = vmax.f32 %v5129_v16, %v5149_v35  ;;  %v7287_v35 = vld [vmem:[%s9498_s10] ss:$0 sm:$0xff] }
 0x65c   : > { %5153 = vst.msk [vmem:[#allocation4 + $0x13] sm:$0xf] %vm5046_vm8, %v5152_v40 }
 0x663   : > { %v5218_v37 = vld [vmem:[#allocation4 + $0x11] sm:$0xff] }
 0x664   : > { %v5213_v33 = vld [vmem:[#allocation4 + $0x10] sm:$0xff]  ;;  %7055 = vmatmul.msk.f32.gmra.mxu2 %vm655_vm4, %v5218_v37 }
 0x665   : > { %7058 = vmatmul.msk.f32.gmra.mxu3 %vm655_vm4, %v5213_v33  ;;  %v5337_v50 = vld [vmem:[#allocation4 + $0xe] sm:$0xff] }
 0x666   : > { %7067 = vmatmul.msk.f32.gmra.mxu1 %vm655_vm4, %v5337_v50  ;;  %v5186_v42 = vpop.f32.mrf.mxu0  ;;  %v5206_v41 = vpop.f32.mrf.mxu1  ;;  %v5381_v34 = vld [vmem:[#allocation4 + $0xf] sm:$0xff] }
 0x667   : > { %v5209_v20 = vmax.f32 %v5186_v42, %v5206_v41  ;;  %v5468_v27 = vld [vmem:[#allocation4 + $0xc] sm:$0xff] }
 0x668   : > { %v5512_v4 = vld [vmem:[#allocation4 + $0xd] sm:$0xff] }
 0x669   : > { %5210 = vst.msk [vmem:[#allocation4 + $0x19] sm:$0xf] %vm5046_vm8, %v5209_v20  ;;  %vm6366_vm8 = vcmask 15360  }
 0x66c   : > { %7071 = vmatmul.msk.f32.vlgmr.msrb.gmra.mxu2 %vm655_vm4, %v5380_v7 }
 0x66d   : > { %7076 = vmatmul.msk.f32.vlgmr.msrb.gmra.mxu3 %vm655_vm4, %v5212_v30 }
 0x670   : > { %v5294_v5 = vld [vmem:[#allocation4 + $0x12] sm:$0xff]  ;;  %v5470_v63 = vld [vmem:[#allocation4 + $0x1c] sm:$0xff] }
 0x671   : > { %v5338_v58 = vld [vmem:[#allocation4 + $0x16] sm:$0xff]  ;;  %7063 = vmatmul.msk.f32.gmra.mxu0 %vm655_vm4, %v5294_v5 }
 0x672   : > { %7068 = vmatmul.msk.f32.gmra.mxu1 %vm655_vm4, %v5338_v58  ;;  %v5382_v55 = vld [vmem:[#allocation4 + $0x17] sm:$0xff] }
 0x673   : > { %v5426_v13 = vld [vmem:[#allocation4 + $0x18] sm:$0xff] }
 0x674   : > { %7072 = vmatmul.msk.f32.gmra.mxu2 %vm655_vm4, %v5381_v34  ;;  %v5469_v44 = vld [vmem:[#allocation4 + $0x14] sm:$0xff] }
 0x675   : > { %7077 = vmatmul.msk.f32.gmra.mxu3 %vm655_vm4, %v5213_v33  ;;  %v5513_v62 = vld [vmem:[#allocation4 + $0x15] sm:$0xff] }
 0x679   : > { %7081 = vmatmul.msk.f32.vlgmr.msra.gmra.mxu0 %vm655_vm4, %v5468_v27 }
 0x67a   : > { %7086 = vmatmul.msk.f32.vlgmr.msra.gmra.mxu1 %vm655_vm4, %v5512_v4 }
 0x67c   : > { %7073 = vmatmul.msk.f32.gmra.mxu2 %vm655_vm4, %v5382_v55 }
 0x67d   : > { %7078 = vmatmul.msk.f32.gmra.mxu3 %vm655_vm4, %v5426_v13 }
 0x681   : > { %7082 = vmatmul.msk.f32.gmra.mxu0 %vm655_vm4, %v5469_v44 }
 0x682   : > { %7087 = vmatmul.msk.f32.gmra.mxu1 %vm655_vm4, %v5513_v62 }
 0x684   : > { %7091 = vmatmul.msk.f32.vlgmr.msra.gmra.mxu2 %vm655_vm4, %v5337_v50 }
 0x689   : > { %7083 = vmatmul.msk.f32.gmra.mxu0 %vm655_vm4, %v5470_v63 }
 0x68a   : > { %7088 = vmatmul.msk.f32.gmra.mxu1 %vm655_vm4, %v5514_v54 }
 0x68c   : > { %7092 = vmatmul.msk.f32.gmra.mxu2 %vm655_vm4, %v5338_v58 }
 0x694   : > { %7093 = vmatmul.msk.f32.gmra.mxu2 %vm655_vm4, %v5558_v12 }
 0x6bb   : > { %v5324_v21 = vpop.f32.mrf.mxu0 }
 0x6bf   : > { %v5248_v45 = vpop.f32.mrf.mxu2 }
 0x6c0   : > { %v5283_v3 = vpop.f32.mrf.mxu3 }
 0x6c1   : > { %v5284_v22 = vadd.f32 %v5283_v3, %v5248_v45 }
 0x6c3   : > { %v5333_v36 = vadd.f32 %v5324_v21, %v5284_v22  ;;  %v5729_v22 = vld [vmem:[%s9611_s6 + $0x10] sm:$0xff] }
 0x6c8   : > { %v5368_v6 = vpop.f32.mrf.mxu1 }
 0x6c9   : > { %v5327_v17 = vpop.f32.mrf.mxu0  ;;  %v5377_v38 = vadd.f32 %v5368_v6, %v5333_v36  ;;  %v7109_v36 = vld [vmem:[%s9611_s6 + $0x48] sm:$0xff] }
 0x6cc   : > { %v5251_v51 = vpop.f32.mrf.mxu2 }
 0x6cd   : > { %v5286_v11 = vpop.f32.mrf.mxu3 }
 0x6ce   : > { %v5287_v10 = vadd.f32 %v5286_v11, %v5251_v51 }
 0x6d0   : > { %v5334_v14 = vadd.f32 %v5327_v17, %v5287_v10  ;;  %v9610_v17 = vmov 0.0   ;;  %v7125_v10 = vld [vmem:[%s9611_s6 + $0xb0] sm:$0xff] }
 0x6d1   : > { %664 = vst.msk [vmem:[#allocation5] sm:$0xff] %vm663_vm11, %v9610_v17 }
 0x6d2   : > { %665 = vst.msk [vmem:[#allocation5 + $0x8] sm:$0xff] %vm663_vm11, %v9610_v17 }
 0x6d3   : > { %667 = vst.msk [vmem:[#allocation5 + $0x10] sm:$0xf] %vm666_vm12, %v9610_v17 }
 0x6d4   : > { %669 = vst.msk [vmem:[#allocation6] sm:$0xff] %vm668_vm14, %v9610_v17 }
 0x6d5   : > { %670 = vst.msk [vmem:[#allocation6 + $0x8] sm:$0xff] %vm668_vm14, %v9610_v17 }
 0x6d6   : > { %672 = vst.msk [vmem:[#allocation6 + $0x10] sm:$0xf] %vm671_vm15, %v9610_v17 }
 0x6e3   : > { %v5371_v59 = vpop.f32.mrf.mxu1 }
 0x6e4   : > { %v5378_v60 = vadd.f32 %v5371_v59, %v5334_v14  ;;  %v7111_v59 = vld [vmem:[%s9611_s6 + $0x58] sm:$0xff]  ;;  %v7115_v14 = vld [vmem:[%s9611_s6 + $0x70] sm:$0xff] }
 0x6e7   : > { %v5254_v48 = vpop.f32.mrf.mxu2 }
 0x6e8   : > { %v5289_v52 = vpop.f32.mrf.mxu3 }
 0x6e9   : > { %v5290_v19 = vadd.f32 %v5289_v52, %v5254_v48  ;;  %v7110_v52 = vld [vmem:[%s9611_s6 + $0x50] sm:$0xff] }
 0x6ee   : > { %v5330_v47 = vpop.f32.mrf.mxu0 }
 0x6ef   : > { %v5412_v23 = vpop.f32.mrf.mxu2  ;;  %v5374_v32 = vpop.f32.mrf.mxu1  ;;  %v5335_v57 = vadd.f32 %v5330_v47, %v5290_v19  ;;  %v7103_v47 = vld [vmem:[%s9611_s6 + $0x28] sm:$0xff]  ;;  %v7123_v19 = vld [vmem:[%s9611_s6 + $0xa0] sm:$0xff] }
 0x6f0   : > { %v5456_v43 = vpop.f32.mrf.mxu3  ;;  %v5421_v53 = vadd.f32 %v5412_v23, %v5377_v38  ;;  %v7105_v23 = vld [vmem:[%s9611_s6 + $0x38] sm:$0xff]  ;;  %v7102_v38 = vld [vmem:[%s9611_s6 + $0x20] sm:$0xff] }
 0x6f1   : > { %v5379_v39 = vadd.f32 %v5374_v32, %v5335_v57  ;;  %v7126_v32 = vld [vmem:[%s9611_s6 + $0xb8] sm:$0xff]  ;;  %v7119_v57 = vld [vmem:[%s9611_s6 + $0x88] sm:$0xff] }
 0x6f2   : > { %v5465_v49 = vadd.f32 %v5456_v43, %v5421_v53  ;;  %v7108_v43 = vld [vmem:[%s9611_s6 + $0x40] sm:$0xff]  ;;  %5894 = vmatpush.msrb.mxu2 %v7126_v32  ;;  %v7116_v53 = vld [vmem:[%s9611_s6 + $0x78] sm:$0xff] }
 0x6f4   : > { %5895 = vmatpush.msrb.mxu2 %v7125_v10  ;;  %v6010_v10 = vld [vmem:[%s9612_s7 + $0x8] sm:$0xff] }
 0x6f6   : > { %v5500_v1 = vpop.f32.mrf.mxu0 }
 0x6f7   : > { %v5415_v8 = vpop.f32.mrf.mxu2  ;;  %v5544_v25 = vpop.f32.mrf.mxu1  ;;  %v5509_v29 = vadd.f32 %v5500_v1, %v5465_v49  ;;  %v5727_v1 = vld [vmem:[%s9611_s6] sm:$0xff]  ;;  %v7121_v49 = vld [vmem:[%s9611_s6 + $0x98] sm:$0xff] }
 0x6f8   : > { %v5422_v18 = vadd.f32 %v5415_v8, %v5378_v60  ;;  %v5459_v30 = vpop.f32.mrf.mxu3  ;;  %v5728_v8 = vld [vmem:[%s9611_s6 + $0x8] sm:$0xff]  ;;  %v7130_v60 = vld [vmem:[%s9611_s6 + $0xd0] sm:$0xff] }
 0x6f9   : > { %v5553_v28 = vadd.f32 %v5544_v25, %v5509_v29  ;;  %v7124_v25 = vld [vmem:[%s9611_s6 + $0xa8] sm:$0xff] }
 0x6fa   : > { %v5466_v40 = vadd.f32 %v5459_v30, %v5422_v18  ;;  %v7114_v29 = vld [vmem:[%s9611_s6 + $0x68] sm:$0xff]  ;;  %v7120_v18 = vld [vmem:[%s9611_s6 + $0x90] sm:$0xff]  ;;  %5896 = vmatpush.msrb.mxu2 %v7124_v25  ;;  %v7175_v25 = vld [vmem:[%s9612_s7 + $0x120] sm:$0xff] }
 0x6fb   : > { %v7129_v30 = vld [vmem:[%s9611_s6 + $0xc8] sm:$0xff] }
 0x6fc   : > { %5897 = vmatpush.msrb.mxu2 %v7123_v19  ;;  %v7154_v19 = vld [vmem:[%s9612_s7 + $0x88] sm:$0xff] }
 0x6fe   : > { %v5503_v56 = vpop.f32.mrf.mxu0 }
 0x6ff   : > { %v5418_v24 = vpop.f32.mrf.mxu2  ;;  %v5510_v0 = vadd.f32 %v5503_v56, %v5466_v40  ;;  %v5547_v9 = vpop.f32.mrf.mxu1  ;;  %v7113_v56 = vld [vmem:[%s9611_s6 + $0x60] sm:$0xff] }
 0x700   : > { %v5423_v15 = vadd.f32 %v5418_v24, %v5379_v39  ;;  %v5462_v33 = vpop.f32.mrf.mxu3  ;;  %v7131_v24 = vld [vmem:[%s9611_s6 + $0xd8] sm:$0xff] }
 0x701   : > { %v5554_v37 = vadd.f32 %v5547_v9, %v5510_v0  ;;  %v7136_v9 = vld [vmem:[%s9611_s6 + $0xf8] sm:$0xff] }
 0x702   : > { %v5467_v7 = vadd.f32 %v5462_v33, %v5423_v15  ;;  %v7141_v15 = vld [vmem:[%s9611_s6 + $0x118] sm:$0xff]  ;;  %v7135_v33 = vld [vmem:[%s9611_s6 + $0xf0] sm:$0xff] }
 0x706   : > { %v5506_v42 = vpop.f32.mrf.mxu0 }
 0x707   : > { %v5588_v61 = vpop.f32.mrf.mxu2  ;;  %v5511_v58 = vadd.f32 %v5506_v42, %v5467_v7  ;;  %v5550_v34 = vpop.f32.mrf.mxu1  ;;  %v7134_v42 = vld [vmem:[%s9611_s6 + $0xe8] sm:$0xff]  ;;  %v7138_v7 = vld [vmem:[%s9611_s6 + $0x100] sm:$0xff] }
 0x708   : > { %v5597_v16 = vadd.f32 %v5588_v61, %v5553_v28  ;;  %v7128_v28 = vld [vmem:[%s9611_s6 + $0xc0] sm:$0xff] }
 0x709   : > { %v5555_v13 = vadd.f32 %v5550_v34, %v5511_v58  ;;  %v7118_v61 = vld [vmem:[%s9611_s6 + $0x80] sm:$0xff] }
 0x70a   : > { %v5604_v26 = vmul.f32 %v7287_v35, %v5597_v16 }
 0x70c   : > { %v5611_v41 = vadd.f32 %v7288_v2, %v5604_v26 }
 0x70e   : > { %v5614_v27 = vmax.f32 %v5611_v41, 0.0  ;;  %v7139_v41 = vld [vmem:[%s9611_s6 + $0x108] sm:$0xff] }
 0x70f   : > { %v5591_v50 = vpop.f32.mrf.mxu2 }
 0x710   : > { %v5598_v20 = vadd.f32 %v5591_v50, %v5554_v37  ;;  %v5620_v62 = vrot.slane %v5614_v27, 6  ;;  %v7140_v50 = vld [vmem:[%s9611_s6 + $0x110] sm:$0xff] }
 0x712   : > { %v5605_v5 = vmul.f32 %v7287_v35, %v5598_v20  ;;  %v7133_v20 = vld [vmem:[%s9611_s6 + $0xe0] sm:$0xff] }
 0x714   : > { %v5612_v4 = vadd.f32 %v7288_v2, %v5605_v5 }
 0x716   : > { %v5615_v55 = vmax.f32 %v5612_v4, 0.0 }
 0x717   : > { %v5594_v44 = vpop.f32.mrf.mxu2 }
 0x718   : > { %v5621_v54 = vrot.slane %v5615_v55, 6  ;;  %v5599_v63 = vadd.f32 %v5594_v44, %v5555_v13  ;;  %v7150_v44 = vld [vmem:[%s9612_s7 + $0x78] sm:$0xff] }
 0x719   : > { %6038 = vmatpush.msra.mxu2 %v7150_v44 }
 0x71a   : > { %v5622_v12 = vsel %vm5619_vm9, %v5620_v62, %v5621_v54  ;;  %v5606_v45 = vmul.f32 %v7287_v35, %v5599_v63  ;;  %v7149_v62 = vld [vmem:[%s9612_s7 + $0x70] sm:$0xff]  ;;  %v7148_v54 = vld [vmem:[%s9612_s7 + $0x68] sm:$0xff]  ;;  %v7147_v63 = vld [vmem:[%s9612_s7 + $0x60] sm:$0xff] }
 0x71b   : > { %v5624_v3 = vmax.f32 %v5614_v27, %v5622_v12  ;;  %6039 = vmatpush.msra.mxu2 %v7149_v62  ;;  %v7146_v12 = vld [vmem:[%s9612_s7 + $0x58] sm:$0xff]  ;;  %v7203_v62 = vld [vmem:[%s9612_s7 + $0x1e8] sm:$0xff] }
 0x71c   : > { %v5613_v51 = vadd.f32 %v7288_v2, %v5606_v45  ;;  %v6016_v45 = vld [vmem:[%s9612_s7 + $0x38] sm:$0xff] }
 0x71d   : > { %7094 = vmatpush.msk.msra.mxu3 %vm3676_vm3, %v5624_v3  ;;  %7096 = vmatpush.msk.msrb.mxu0 %vm3676_vm3, %v5624_v3  ;;  %v7145_v3 = vld [vmem:[%s9612_s7 + $0x50] sm:$0xff] }
 0x71e   : > { %v5616_v21 = vmax.f32 %v5613_v51, 0.0  ;;  %7095 = vmatmul.msk.f32.vlgmr.msra.gmra.mxu3 %vm5625_vm10, %v8359_v46  ;;  %7097 = vmatmul.msk.f32.vlgmr.msrb.gmra.mxu0 %vm5625_vm10, %v8364_v31  ;;  %v6015_v51 = vld [vmem:[%s9612_s7 + $0x30] sm:$0xff] }
 0x71f   : > { %5752 = vmatpush.msra.mxu0 %v7105_v23  ;;  %6040 = vmatpush.msra.mxu2 %v7148_v54  ;;  %v6014_v23 = vld [vmem:[%s9612_s7 + $0x28] sm:$0xff] }
 0x720   : > { %v5677_v48 = vrot.slane %v5616_v21, 6  ;;  %v7160_v21 = vld [vmem:[%s9612_s7 + $0xb8] sm:$0xff] }
 0x721   : > { %6041 = vmatpush.msra.mxu2 %v7147_v63  ;;  %v7181_v63 = vld [vmem:[%s9612_s7 + $0x148] sm:$0xff] }
 0x722   : > { %v5679_v6 = vmax.f32 %v5615_v55, %v5677_v48  ;;  %v7169_v48 = vld [vmem:[%s9612_s7 + $0xf8] sm:$0xff] }
 0x723   : > { %6042 = vmatpush.msra.mxu2 %v7146_v12  ;;  %v7192_v12 = vld [vmem:[%s9612_s7 + $0x198] sm:$0xff] }
 0x724   : > { %v5681_v11 = vrot.slane %v5679_v6, 4  ;;  %v7159_v6 = vld [vmem:[%s9612_s7 + $0xb0] sm:$0xff] }
 0x725   : > { %6043 = vmatpush.msra.mxu2 %v7145_v3  ;;  %v7202_v3 = vld [vmem:[%s9612_s7 + $0x1e0] sm:$0xff] }
 0x726   : > { %7098 = vmatpush.msk.msrb.mxu1 %vm3676_vm3, %v5681_v11  ;;  %7100 = vmatpush.msk.msrb.mxu3 %vm3676_vm3, %v5681_v11  ;;  %v7168_v11 = vld [vmem:[%s9612_s7 + $0xf0] sm:$0xff] }
 0x727   : > { %7101 = vmatmul.msk.f32.vlgmr.msrb.gmra.mxu3 %vm5625_vm10, %v8364_v31  ;;  %7099 = vmatmul.msk.f32.vlgmr.msrb.gmra.mxu1 %vm5625_vm10, %v8359_v46  ;;  %v7104_v31 = vld [vmem:[%s9611_s6 + $0x30] sm:$0xff]  ;;  %v5730_v46 = vld [vmem:[%s9611_s6 + $0x18] sm:$0xff]  ;;  %s583_s6 = scalar_lea.vmem [#allocation8], %s7237_s4 }
 0x728   : > { %5804 = vmatpush.msra.mxu3 %v7111_v59  ;;  %5775 = vmatpush.msra.mxu1 %v5730_v46  ;;  %v7158_v59 = vld [vmem:[%s9612_s7 + $0xa8] sm:$0xff]  ;;  %s6472_s26 = sshll.u32 %s583_s6, 4  ;;  %s6473_s26 = int_to_ptr.vmem [resolvable:$true] %s6472_s26 }
 0x729   : > { %5753 = vmatpush.msra.mxu0 %v7104_v31  ;;  %v7167_v31 = vld [vmem:[%s9612_s7 + $0xe8] sm:$0xff] }
 0x72a   : > { %5805 = vmatpush.msra.mxu3 %v7110_v52  ;;  %5776 = vmatpush.msra.mxu1 %v5729_v22  ;;  %v7144_v46 = vld [vmem:[%s9612_s7 + $0x48] sm:$0xff]  ;;  %v6013_v22 = vld [vmem:[%s9612_s7 + $0x20] sm:$0xff] }
 0x72b   : > { %5754 = vmatpush.msra.mxu0 %v7103_v47  ;;  %6044 = vmatpush.msra.mxu2 %v7144_v46  ;;  %v7143_v47 = vld [vmem:[%s9612_s7 + $0x40] sm:$0xff]  ;;  %v7190_v46 = vld [vmem:[%s9612_s7 + $0x188] sm:$0xff] }
 0x72c   : > { %5806 = vmatpush.msra.mxu3 %v7109_v36  ;;  %5777 = vmatpush.msra.mxu1 %v5728_v8  ;;  %v7178_v36 = vld [vmem:[%s9612_s7 + $0x138] sm:$0xff] }
 0x72d   : > { %5755 = vmatpush.msra.mxu0 %v7102_v38  ;;  %v6012_v8 = vld [vmem:[%s9612_s7 + $0x18] sm:$0xff]  ;;  %6045 = vmatpush.msra.mxu2 %v7143_v47  ;;  %v7177_v38 = vld [vmem:[%s9612_s7 + $0x130] sm:$0xff] }
 0x72e   : > { %5807 = vmatpush.msra.mxu3 %v7108_v43  ;;  %5778 = vmatpush.msra.mxu1 %v5727_v1  ;;  %v6011_v43 = vld [vmem:[%s9612_s7 + $0x10] sm:$0xff]  ;;  %v7176_v1 = vld [vmem:[%s9612_s7 + $0x128] sm:$0xff] }
 0x72f   : > { %5834 = vmatpush.msrb.mxu0 %v7116_v53  ;;  %v7157_v53 = vld [vmem:[%s9612_s7 + $0xa0] sm:$0xff] }
 0x730   : > { %5924 = vmatpush.msrb.mxu3 %v7131_v24  ;;  %5864 = vmatpush.msrb.mxu1 %v7121_v49  ;;  %v7156_v24 = vld [vmem:[%s9612_s7 + $0x98] sm:$0xff]  ;;  %v7155_v49 = vld [vmem:[%s9612_s7 + $0x90] sm:$0xff] }
 0x731   : > { %5835 = vmatpush.msrb.mxu0 %v7115_v14  ;;  %v7166_v14 = vld [vmem:[%s9612_s7 + $0xe0] sm:$0xff] }
 0x732   : > { %5925 = vmatpush.msrb.mxu3 %v7130_v60  ;;  %5865 = vmatpush.msrb.mxu1 %v7120_v18  ;;  %v6009_v60 = vld [vmem:[%s9612_s7] sm:$0xff]  ;;  %v7187_v18 = vld [vmem:[%s9612_s7 + $0x178] sm:$0xff] }
 0x733   : > { %5836 = vmatpush.msrb.mxu0 %v7114_v29  ;;  %v7165_v29 = vld [vmem:[%s9612_s7 + $0xd8] sm:$0xff] }
 0x734   : > { %5926 = vmatpush.msrb.mxu3 %v7129_v30  ;;  %5866 = vmatpush.msrb.mxu1 %v7119_v57  ;;  %v7174_v30 = vld [vmem:[%s9612_s7 + $0x118] sm:$0xff] }
 0x735   : > { %5837 = vmatpush.msrb.mxu0 %v7113_v56  ;;  %v7164_v56 = vld [vmem:[%s9612_s7 + $0xd0] sm:$0xff] }
 0x736   : > { %5927 = vmatpush.msrb.mxu3 %v7128_v28  ;;  %5867 = vmatpush.msrb.mxu1 %v7118_v61  ;;  %v7186_v28 = vld [vmem:[%s9612_s7 + $0x170] sm:$0xff]  ;;  %v7153_v61 = vld [vmem:[%s9612_s7 + $0x80] sm:$0xff] }
 0x79b   : > { %v5670_v16 = vpop.f32.mrf.mxu0 }
 0x7a1   : > { %v5648_v35 = vpop.f32.mrf.mxu3 }
 0x7a2   : > { %v5673_v40 = vmax.f32 %v5648_v35, %v5670_v16 }
 0x7a4   : > { %5675 = vst.msk [vmem:[#allocation5 + $0x5] sm:$0x3] %vm5674_vm13, %v5673_v40  ;;  %v5701_v39 = vpop.f32.mrf.mxu1  ;;  %v7173_v40 = vld [vmem:[%s9612_s7 + $0x110] sm:$0xff] }
 0x7aa   : > { %v5721_v0 = vpop.f32.mrf.mxu3 }
 0x7ab   : > { %v5724_v26 = vmax.f32 %v5701_v39, %v5721_v0  ;;  %v5731_v2 = vld [vmem:[#allocation5 + $0x1] sm:$0xff]  ;;  %v7163_v39 = vld [vmem:[%s9612_s7 + $0xc8] sm:$0xff] }
 0x7ac   : > { %v5726_v37 = vld [vmem:[#allocation5] sm:$0xff]  ;;  %7106 = vmatmul.msk.f32.vlgmr.msra.gmra.mxu0 %vm663_vm11, %v5731_v2  ;;  %v7172_v2 = vld [vmem:[%s9612_s7 + $0x108] sm:$0xff] }
 0x7ad   : > { %7107 = vmatmul.msk.f32.vlgmr.msra.gmra.mxu1 %vm663_vm11, %v5726_v37  ;;  %5725 = vst.msk [vmem:[#allocation5 + $0x9] sm:$0x3] %vm5674_vm13, %v5724_v26  ;;  %5954 = vmatpush.msra.mxu0 %v7136_v9  ;;  %v7185_v9 = vld [vmem:[%s9612_s7 + $0x168] sm:$0xff]  ;;  %v7162_v37 = vld [vmem:[%s9612_s7 + $0xc0] sm:$0xff] }
 0x7ae   : > { %5984 = vmatpush.msra.mxu1 %v7141_v15  ;;  %v7196_v15 = vld [vmem:[%s9612_s7 + $0x1b8] sm:$0xff] }
 0x7af   : > { %5955 = vmatpush.msra.mxu0 %v7135_v33 }
 0x7b0   : > { %5985 = vmatpush.msra.mxu1 %v7140_v50  ;;  %v7184_v50 = vld [vmem:[%s9612_s7 + $0x160] sm:$0xff] }
 0x7b1   : > { %5956 = vmatpush.msra.mxu0 %v7134_v42  ;;  %v7195_v42 = vld [vmem:[%s9612_s7 + $0x1b0] sm:$0xff] }
 0x7b2   : > { %5986 = vmatpush.msra.mxu1 %v7139_v41  ;;  %v7171_v41 = vld [vmem:[%s9612_s7 + $0x100] sm:$0xff] }
 0x7b3   : > { %5957 = vmatpush.msra.mxu0 %v7133_v20  ;;  %v7205_v20 = vld [vmem:[%s9612_s7 + $0x1f8] sm:$0xff] }
 0x7b4   : > { %5987 = vmatpush.msra.mxu1 %v7138_v7  ;;  %v5783_v5 = vld [vmem:[#allocation5 + $0x2] sm:$0xff]  ;;  %v5963_v13 = vld [vmem:[#allocation5 + $0xa] sm:$0xff] }
 0x7b5   : > { %v5873_v58 = vld [vmem:[#allocation5 + $0x6] sm:$0xff]  ;;  %7112 = vmatmul.msk.f32.vlgmr.msra.gmra.mxu3 %vm663_vm11, %v5783_v5 }
 0x7b6   : > { %v5813_v34 = vld [vmem:[#allocation5 + $0x4] sm:$0xff]  ;;  %7127 = vmatmul.msk.f32.vlgmr.msrb.gmra.mxu2 %vm663_vm11, %v5873_v58  ;;  %6061 = vmatpush.msra.mxu3 %v6016_v45  ;;  %v7194_v58 = vld [vmem:[%s9612_s7 + $0x1a8] sm:$0xff] }
 0x7b7   : > { %v5843_v27 = vld [vmem:[#allocation5 + $0x5] sm:$0xff]  ;;  %7117 = vmatmul.msk.f32.vlgmr.msrb.gmra.mxu0 %vm663_vm11, %v5813_v34  ;;  %6162 = vmatpush.msrb.mxu2 %v7178_v36  ;;  %v7199_v36 = vld [vmem:[%s9612_s7 + $0x1c8] sm:$0xff] }
 0x7b8   : > { %7122 = vmatmul.msk.f32.vlgmr.msrb.gmra.mxu1 %vm663_vm11, %v5843_v27  ;;  %v5903_v4 = vld [vmem:[#allocation5 + $0x8] sm:$0xff]  ;;  %6062 = vmatpush.msra.mxu3 %v6015_v51  ;;  %v7183_v5 = vld [vmem:[%s9612_s7 + $0x158] sm:$0xff]  ;;  %v7204_v27 = vld [vmem:[%s9612_s7 + $0x1f0] sm:$0xff] }
 0x7b9   : > { %v5933_v55 = vld [vmem:[#allocation5 + $0x9] sm:$0xff]  ;;  %6094 = vmatpush.msrb.mxu0 %v7160_v21  ;;  %6128 = vmatpush.msrb.mxu1 %v7169_v48  ;;  %v7289_v21 = vld [vmem:[%s9499_s11] ss:$0 sm:$0xff] }
 0x7ba   : > { %6063 = vmatpush.msra.mxu3 %v6014_v23  ;;  %6163 = vmatpush.msrb.mxu2 %v7177_v38  ;;  %v7180_v48 = vld [vmem:[%s9612_s7 + $0x140] sm:$0xff]  ;;  %v7201_v23 = vld [vmem:[%s9612_s7 + $0x1d8] sm:$0xff] }
 0x7bb   : > { %6095 = vmatpush.msrb.mxu0 %v7159_v6  ;;  %6129 = vmatpush.msrb.mxu1 %v7168_v11  ;;  %v7191_v6 = vld [vmem:[%s9612_s7 + $0x190] sm:$0xff] }
 0x7bc   : > { %6064 = vmatpush.msra.mxu3 %v6013_v22  ;;  %6164 = vmatpush.msrb.mxu2 %v7176_v1  ;;  %v7189_v22 = vld [vmem:[%s9612_s7 + $0x180] sm:$0xff] }
 0x7bd   : > { %7132 = vmatmul.msk.f32.vlgmr.msrb.gmra.mxu3 %vm663_vm11, %v5903_v4  ;;  %6096 = vmatpush.msrb.mxu0 %v7158_v59 }
 0x7be   : > { %6130 = vmatpush.msrb.mxu1 %v7167_v31  ;;  %6065 = vmatpush.msra.mxu3 %v6012_v8  ;;  %v7290_v31 = vld [vmem:[%s9504_s16] ss:$0 sm:$0xff] }
 0x7bf   : > { %7137 = vmatmul.msk.f32.vlgmr.msra.gmra.mxu0 %vm663_vm11, %v5933_v55  ;;  %6165 = vmatpush.msrb.mxu2 %v7175_v25  ;;  %v7182_v55 = vld [vmem:[%s9612_s7 + $0x150] sm:$0xff]  ;;  %v7211_v25 = vld [vmem:[%s9612_s7 + $0x220] sm:$0xff] }
 0x7c0   : > { %7142 = vmatmul.msk.f32.vlgmr.msra.gmra.mxu1 %vm663_vm11, %v5963_v13  ;;  %6097 = vmatpush.msrb.mxu0 %v7157_v53  ;;  %v7193_v13 = vld [vmem:[%s9612_s7 + $0x1a0] sm:$0xff] }
 0x7c1   : > { %6066 = vmatpush.msra.mxu3 %v6011_v43  ;;  %6131 = vmatpush.msrb.mxu1 %v7166_v14  ;;  %v7214_v43 = vld [vmem:[%s9612_s7 + $0x238] sm:$0xff] }
 0x7c2   : > { %6098 = vmatpush.msrb.mxu0 %v7156_v24  ;;  %6166 = vmatpush.msrb.mxu2 %v7174_v30 }
 0x7c3   : > { %6067 = vmatpush.msra.mxu3 %v6010_v10  ;;  %6132 = vmatpush.msrb.mxu1 %v7165_v29  ;;  %v7213_v10 = vld [vmem:[%s9612_s7 + $0x230] sm:$0xff] }
 0x7c4   : > { %6099 = vmatpush.msrb.mxu0 %v7155_v49  ;;  %6167 = vmatpush.msrb.mxu2 %v7173_v40  ;;  %v7212_v49 = vld [vmem:[%s9612_s7 + $0x228] sm:$0xff]  ;;  %v9613_v40 = vld [vmem:[#allocation33_spill] sm:$0xff] }
 0x7c5   : > { %6068 = vmatpush.msra.mxu3 %v6009_v60  ;;  %6133 = vmatpush.msrb.mxu1 %v7164_v56  ;;  %v7210_v60 = vld [vmem:[%s9612_s7 + $0x218] sm:$0xff] }
 0x7c6   : > { %6100 = vmatpush.msrb.mxu0 %v7154_v19  ;;  %6168 = vmatpush.msrb.mxu2 %v7172_v2  ;;  %v7209_v19 = vld [vmem:[%s9612_s7 + $0x210] sm:$0xff] }
 0x7c7   : > { %6196 = vmatpush.msrb.mxu3 %v7187_v18  ;;  %6134 = vmatpush.msrb.mxu1 %v7163_v39  ;;  %v6358_v39 = vmul.u32 8, %v9613_v40 }
 0x7c8   : > { %6101 = vmatpush.msrb.mxu0 %v7153_v61  ;;  %6169 = vmatpush.msrb.mxu2 %v7171_v41 }
 0x7c9   : > { %6197 = vmatpush.msrb.mxu3 %v7186_v28  ;;  %6135 = vmatpush.msrb.mxu1 %v7162_v37  ;;  %v7207_v28 = vld [vmem:[%s9612_s7 + $0x200] sm:$0xff] }
 0x7ca   : > { %6230 = vmatpush.msra.mxu0 %v7196_v15 }
 0x7cb   : > { %6198 = vmatpush.msrb.mxu3 %v7185_v9  ;;  %6264 = vmatpush.msra.mxu1 %v7205_v20 }
 0x7cc   : > { %6231 = vmatpush.msra.mxu0 %v7195_v42 }
 0x7cd   : > { %6199 = vmatpush.msrb.mxu3 %v7184_v50  ;;  %6265 = vmatpush.msra.mxu1 %v7204_v27 }
 0x7ce   : > { %6232 = vmatpush.msra.mxu0 %v7194_v58 }
 0x7cf   : > { %6200 = vmatpush.msrb.mxu3 %v7183_v5  ;;  %6266 = vmatpush.msra.mxu1 %v7203_v62 }
 0x7d0   : > { %6233 = vmatpush.msra.mxu0 %v7193_v13 }
 0x7d1   : > { %6201 = vmatpush.msrb.mxu3 %v7182_v55  ;;  %6267 = vmatpush.msra.mxu1 %v7202_v3  ;;  %v7291_v55 = vld [vmem:[%s9500_s12] ss:$0 sm:$0xff] }
 0x7d2   : > { %6234 = vmatpush.msra.mxu0 %v7192_v12 }
 0x7d3   : > { %6202 = vmatpush.msrb.mxu3 %v7181_v63  ;;  %6268 = vmatpush.msra.mxu1 %v7201_v23 }
 0x7d4   : > { %6235 = vmatpush.msra.mxu0 %v7191_v6 }
 0x7d5   : > { %6203 = vmatpush.msrb.mxu3 %v7180_v48  ;;  %v7223_v48 = vld [vmem:[%s9616_s5 + $0x20] sm:$0xff] }
 0x7d6   : > { %6236 = vmatpush.msra.mxu0 %v7190_v46  ;;  %v7222_v46 = vld [vmem:[%s9421_s24 + $0x20] sm:$0xff] }
 0x7d8   : > { %6237 = vmatpush.msra.mxu0 %v7189_v22 }
 0x829   : > { %v5757_v52 = vpop.f32.mrf.mxu0 }
 0x82a   : > { %v5780_v32 = vpop.f32.mrf.mxu1 }
 0x82b   : > { %v5781_v57 = vadd.f32 %v5780_v32, %v5757_v52  ;;  %v7200_v52 = vld [vmem:[%s9612_s7 + $0x1d0] sm:$0xff]  ;;  %v7198_v32 = vld [vmem:[%s9612_s7 + $0x1c0] sm:$0xff] }
 0x82c   : > { %6269 = vmatpush.msra.mxu1 %v7200_v52 }
 0x82e   : > { %6270 = vmatpush.msra.mxu1 %v7199_v36 }
 0x830   : > { %6271 = vmatpush.msra.mxu1 %v7198_v32 }
 0x834   : > { %v5839_v35 = vpop.f32.mrf.mxu0 }
 0x835   : > { %v5869_v26 = vpop.f32.mrf.mxu1 }
 0x838   : > { %v5809_v16 = vpop.f32.mrf.mxu3 }
 0x839   : > { %v5812_v0 = vadd.f32 %v5809_v16, %v5781_v57  ;;  %v5899_v34 = vpop.f32.mrf.mxu2  ;;  %v7208_v57 = vld [vmem:[%s9612_s7 + $0x208] sm:$0xff]  ;;  %s7239_s7 = smul.u32 48, %s7479_s0 }
 0x83b   : > { %v5842_v33 = vadd.f32 %v5839_v35, %v5812_v0  ;;  %v6360_v0 = vadd.s32 1, %v9613_v40  ;;  %s6471_s0 = scalar_lea.hbm %s9506_s18, %s7239_s7  ;;  %s6460_s7 = scalar_lea.sflag [#allocation9], %s581_s9 }
 0x83c   : > { %v5959_v45 = vpop.f32.mrf.mxu0  ;;  %s6474_s20 = sshll.u32 %s6471_s0, 4  ;;  %s6475_s20 = int_to_ptr.hbm [resolvable:$true] %s6474_s20 }
 0x83d   : > { %v5872_v7 = vadd.f32 %v5869_v26, %v5842_v33  ;;  %v5989_v11 = vpop.f32.mrf.mxu1  ;;  %v9614_v26 = vld [vmem:[#allocation34_spill] sm:$0xff]  ;;  %v6361_v2 = vmul.u32 8, %v6360_v0 }
 0x83e   : > { %vm6359_vm2 = vcmp.ge.s32.totalorder %v9614_v26, %v6358_v39 }
 0x83f   : > { %v5902_v4 = vadd.f32 %v5899_v34, %v5872_v7  ;;  %vm6362_vm3 = vcmp.lt.s32.totalorder %v9614_v26, %v6361_v2 }
 0x840   : > { %v5929_v44 = vpop.f32.mrf.mxu3  ;;  %vm6363_vm5 = vmand %vm6359_vm2, %vm6362_vm3 }
 0x841   : > { %v5932_v54 = vadd.f32 %v5929_v44, %v5902_v4  ;;  %v7216_v50 = vsel %vm6363_vm5, 1.0, %v9610_v17  ;;  %v7292_v17 = vld [vmem:[%s9505_s17] ss:$0 sm:$0xff] }
 0x843   : > { %v5962_v51 = vadd.f32 %v5959_v45, %v5932_v54 }
 0x845   : > { %v5992_v59 = vadd.f32 %v5989_v11, %v5962_v51  ;;  %v6394_v51 = vld [vmem:[%s9616_s5] sm:$0xff] }
 0x847   : > { %v5997_v47 = vmul.f32 %v7289_v21, %v5992_v59  ;;  %v7220_v21 = vld [vmem:[%s9616_s5 + $0x10] sm:$0xff]  ;;  %v6393_v59 = vld [vmem:[%s9421_s24] sm:$0xff] }
 0x849   : > { %v6002_v8 = vadd.f32 %v7290_v31, %v5997_v47  ;;  %v7219_v31 = vld [vmem:[%s9421_s24 + $0x10] sm:$0xff] }
 0x84b   : > { %v6003_v38 = vmax.f32 %v6002_v8, 0.0 }
 0x84d   : > { %6005 = vst.msk [vmem:[#allocation6 + $0x5] sm:$0x3] %vm6004_vm0, %v6003_v38 }
 0x84e   : > { %6007 = vst.msk [vmem:[#allocation6 + $0x5] sm:$0x30] %vm6006_vm1, %v6003_v38 }
 0x854   : > { %v6017_v1 = vld [vmem:[#allocation6 + $0x1] sm:$0xff] }
 0x855   : > { %v6008_v53 = vld [vmem:[#allocation6] sm:$0xff]  ;;  %7151 = vmatmul.msk.f32.vlgmr.msra.gmra.mxu2 %vm668_vm14, %v6017_v1  ;;  %v6209_v30 = vld [vmem:[#allocation6 + $0x8] sm:$0xff] }
 0x856   : > { %7152 = vmatmul.msk.f32.vlgmr.msra.gmra.mxu3 %vm668_vm14, %v6008_v53  ;;  %v6073_v24 = vld [vmem:[#allocation6 + $0x2] sm:$0xff]  ;;  %6298 = vmatpush.msra.mxu2 %v7214_v43  ;;  %v6277_v61 = vld [vmem:[#allocation6 + $0xa] sm:$0xff]  ;;  %v6442_v43 = vld [vmem:[%s9616_s5 + $0x8] sm:$0xff] }
 0x857   : > { %7161 = vmatmul.msk.f32.vlgmr.msrb.gmra.mxu0 %vm668_vm14, %v6073_v24  ;;  %v6107_v14 = vld [vmem:[#allocation6 + $0x4] sm:$0xff]  ;;  %7217 = vmatpush.msk.msra.mxu3 %vm5619_vm9, %v7216_v50  ;;  %v7231_v53 = vld [vmem:[%s9616_s5 + $0x28] sm:$0xff] }
 0x858   : > { %7170 = vmatmul.msk.f32.vlgmr.msrb.gmra.mxu1 %vm668_vm14, %v6107_v14  ;;  %6299 = vmatpush.msra.mxu2 %v7213_v10  ;;  %v6141_v29 = vld [vmem:[#allocation6 + $0x5] sm:$0xff] }
 0x859   : > { %v6175_v18 = vld [vmem:[#allocation6 + $0x6] sm:$0xff]  ;;  %7225 = vmatpush.msk.msrb.mxu0 %vm5619_vm9, %v7216_v50 }
 0x85a   : > { %6300 = vmatpush.msra.mxu2 %v7212_v49  ;;  %v6243_v56 = vld [vmem:[#allocation6 + $0x9] sm:$0xff]  ;;  %v6441_v49 = vld [vmem:[%s9421_s24 + $0x8] sm:$0xff] }
 0x85b   : > { %v7228_v1 = vld [vmem:[%s9616_s5 + $0x18] sm:$0xff] }
 0x85c   : > { %6301 = vmatpush.msra.mxu2 %v7211_v25  ;;  %v7227_v25 = vld [vmem:[%s9421_s24 + $0x18] sm:$0xff] }
 0x85d   : > { %7179 = vmatmul.msk.f32.vlgmr.msrb.gmra.mxu2 %vm668_vm14, %v6141_v29 }
 0x85e   : > { %7188 = vmatmul.msk.f32.vlgmr.msrb.gmra.mxu3 %vm668_vm14, %v6175_v18  ;;  %6302 = vmatpush.msra.mxu2 %v7210_v60  ;;  %v7230_v60 = vld [vmem:[%s9421_s24 + $0x28] sm:$0xff]  ;;  %s7309_s24 = sshra.s32 %s6475_s20, 4  ;;  %s7310_s24 = int_to_ptr.hbm [resolvable:$true] %s7309_s24 }
 0x85f   : > { %7197 = vmatmul.msk.f32.vlgmr.msra.gmra.mxu0 %vm668_vm14, %v6209_v30  ;;  %s7311_s13 = scalar_lea.hbm %s7310_s24, 48  ;;  %p7316_p0 = scmp.lt.s32.totalorder %s7310_s24, %s9506_s18 }
 0x860   : > { %7206 = vmatmul.msk.f32.vlgmr.msra.gmra.mxu1 %vm668_vm14, %v6243_v56  ;;  %6303 = vmatpush.msra.mxu2 %v7209_v19  ;;  %p7312_p11 = scmp.ne.s32.totalorder %s7310_s24, %s7311_s13  ;;  %p7317_p1 = scmp.lt.s32.totalorder %s7315_s8, %s7311_s13 }
 0x862   : > { %6304 = vmatpush.msra.mxu2 %v7208_v57  ;;  %p7313_p12 = pnand %p7312_p11, %p7496_p5  ;;  %p7318_p2 = por %p7317_p1, %p7316_p0 }
 0x864   : > { %6305 = vmatpush.msra.mxu2 %v7207_v28  ;;  %p7314_p13 = pneg %p7313_p12 }
 0x865   : > { %7215 = vmatmul.msk.f32.vlgmr.msra.gmra.mxu2 %vm668_vm14, %v6277_v61 }
 0x866   : > { %p7319_p3 = pnand %p7318_p2, %p7314_p13 }
 0x8d4   : > { %v6103_v15 = vpop.f32.mrf.mxu0 }
 0x8d5   : > { %v6137_v33 = vpop.f32.mrf.mxu1 }
 0x8d8   : > { %v6047_v16 = vpop.f32.mrf.mxu2 }
 0x8d9   : > { %v6070_v35 = vpop.f32.mrf.mxu3 }
 0x8da   : > { %v6071_v9 = vadd.f32 %v6070_v35, %v6047_v16 }
 0x8dc   : > { %v6106_v37 = vadd.f32 %v6103_v15, %v6071_v9  ;;  %v6239_v58 = vpop.f32.mrf.mxu0 }
 0x8dd   : > { %v6273_v27 = vpop.f32.mrf.mxu1 }
 0x8de   : > { %v6140_v42 = vadd.f32 %v6137_v33, %v6106_v37 }
 0x8e0   : > { %v6171_v41 = vpop.f32.mrf.mxu2 }
 0x8e1   : > { %v6174_v20 = vadd.f32 %v6171_v41, %v6140_v42  ;;  %v6205_v7 = vpop.f32.mrf.mxu3 }
 0x8e3   : > { %v6208_v5 = vadd.f32 %v6205_v7, %v6174_v20 }
 0x8e5   : > { %v6242_v34 = vadd.f32 %v6239_v58, %v6208_v5 }
 0x8e7   : > { %v6276_v4 = vadd.f32 %v6273_v27, %v6242_v34 }
 0x8e8   : > { %v6307_v13 = vpop.f32.mrf.mxu2 }
 0x8e9   : > { %v6310_v44 = vadd.f32 %v6307_v13, %v6276_v4 }
 0x8eb   : > { %v6315_v62 = vmul.f32 %v7291_v55, %v6310_v44 }
 0x8ed   : > { %v6320_v54 = vadd.f32 %v7292_v17, %v6315_v62 }
 0x8ef   : > { %6322 = vst.msk [vmem:[#allocation7] sm:$0x3] %vm6321_vm6, %v6320_v54 }
 0x8f0   : > { %6324 = vst.msk [vmem:[#allocation7 - $0x2] sm:$0x30] %vm6323_vm7, %v6320_v54 }
 0x8f7   : > { %v6325_v63 = vld [vmem:[#allocation7] sm:$0xf] }
 0x8f8   : > { %6326 = vxpose.xlu0.b32.start.end [1/1] (short) (narrow) %v6325_v63, 8 }
 0x99c   : > { %v6342_v12 = vpop.trf.xlu0 }
 0x99d   : > { %7218 = vmatmul.msk.f32.vlgmr.msra.gmra.mxu3 %vm6366_vm8, %v6342_v12  ;;  %6417 = vrot.lane.b32.xlu0 %v6342_v12, %s7360_s19 }
 0xa0f   : > { %v6418_v45 = vpop.permute.xlu0 %6417 }
 0xa10   : > { %7226 = vmatmul.msk.f32.vlgmr.msrb.gmra.mxu0 %vm6366_vm8, %v6418_v45 }
 0xa20   : > { %v6390_v3 = vpop.f32.mrf.mxu3 }
 0xa21   : > { %v6395_v6 = vperm.slane %v6390_v3, 0  ;;  %v6403_v11 = vperm.slane %v6390_v3, 1  ;;  %v6412_v23 = vperm.slane %v6390_v3, 2 }
 0xa23   : > { %v6396_v52 = vmul.f32 %v6395_v6, %v6394_v51  ;;  %v6404_v47 = vmul.f32 %v7220_v21, %v6403_v11  ;;  %v6413_v22 = vmul.f32 %v7223_v48, %v6412_v23 }
 0xa25   : > { %v6397_v36 = vadd.f32 %v6396_v52, %v6393_v59  ;;  %v6405_v8 = vadd.f32 %v7219_v31, %v6404_v47  ;;  %v6414_v32 = vadd.f32 %v7222_v46, %v6413_v22 }
 0xa27   : > { %6398 = vst.msk [vmem:[%s583_s6] sm:$0xff] %vm655_vm4, %v6397_v36 }
 0xa28   : > { %7221 = vst.msk [vmem:[%s583_s6 + $0x10] sm:$0xff] %vm655_vm4, %v6405_v8 }
 0xa29   : > { %7224 = vst.msk [vmem:[%s583_s6 + $0x20] sm:$0xff] %vm655_vm4, %v6414_v32 }
 0xa8d   : > { %v6438_v38 = vpop.f32.mrf.mxu0 }
 0xa8e   : > { %v6443_v10 = vperm.slane %v6438_v38, 0  ;;  %v6449_v24 = vperm.slane %v6438_v38, 1  ;;  %v6455_v14 = vperm.slane %v6438_v38, 2 }
 0xa90   : > { %v6444_v29 = vmul.f32 %v6443_v10, %v6442_v43  ;;  %v6450_v18 = vmul.f32 %v7228_v1, %v6449_v24  ;;  %v6456_v19 = vmul.f32 %v7231_v53, %v6455_v14 }
 0xa92   : > { %v6445_v30 = vadd.f32 %v6444_v29, %v6441_v49  ;;  %v6451_v56 = vadd.f32 %v7227_v25, %v6450_v18  ;;  %v6457_v57 = vadd.f32 %v7230_v60, %v6456_v19 }
 0xa94   : > { %6446 = vst.msk [vmem:[%s583_s6 + $0x8] sm:$0xff] %vm655_vm4, %v6445_v30 }
 0xa95   : > { %7229 = vst.msk [vmem:[%s583_s6 + $0x18] sm:$0xff] %vm655_vm4, %v6451_v56 }
 0xa96   : > { %7232 = vst.msk [vmem:[%s583_s6 + $0x28] sm:$0xff] %vm655_vm4, %v6457_v57 }
 0xa97   : > { %7322 = shalt.err (!%p7319_p3)
}
 0xa98   : > { %s7361_s9 = smov 128   ;;  %s7362_s6 = smov 8  }
 0xa99   : > { %7240 = dma.vmem_to_hbm [thread:$0]  (%p7496_p5), %s6473_s26, 768, %s6475_s20, %s6460_s7, %s7361_s9, %s7361_s9, %s7362_s6  }
 0xa9a PF: > { %p7246_p4 = scmp.ge.s32.totalorder %s7357_s30, 2  ;;  %s6489_s19 = sand.u32 1, %s7345_s27  }
 0xa9b   : > { %s6490_s0 = scalar_lea.sflag [#allocation9], %s6489_s19 }
 0xa9c   : > { %p7243_p7 = pnand %p7246_p4, %p7500_p6 }
 0xa9e   : > { %p7244_p8 = pneg %p7243_p7 }
 0xaa0   : > { %7340 = dma.done.wait (%p7244_p8), %s6490_s0, 768  }
 0xaa1   : > { %7342 = vsyncadd (%p7244_p8), %s6490_s0, 4294966528  ;;  %p28_p9 = scmp.ge.s32.totalorder %s7483_s1, 4   ;;  %s9617_s27 = smov %s7349_s28 }
 0xaa2   : > { %s9618_s28 = smov %s7353_s29  ;;  %s9619_s29 = smov %s7494_s22 }
 0xaa3   : > { %s9620_s30 = smov %s7483_s1  ;;  %30 = sbr.rel (!%p28_p9) target bundleno = 15 (0xf), region = 191 }
 0xaa8   :  { %6496 = vsyncpa [#allocation9], 1 }
 0xaa9   :  { %6498 = vsyncpa [#allocation9 + $0x1], 1 }

</bundles_post_ra>
